<compile_context>
chip_gen: v5e
topology: v5e:2x2
jax: 0.10.0
libtpu: 0.0.40
codegen_flags: <defaults>
</compile_context>

<pallas_src>
import numpy as np
import jax
import jax.numpy as jnp
from jax.experimental import pallas as pl
from jax.experimental.pallas import tpu as pltpu

# ---------------------------------------------------------------------------- architecture dims
NUM_CLASSES = 5
IN_CH, IN_H, IN_W = 4, 16, 16
B1_CH, B2_CH = 16, 32            # backbone conv channels (stride-2 each)
C_MID, A_MID = 8, 4              # FCNHead intermediate channels (classifier / aux)
A_H, A_W = IN_H // 2, IN_W // 2  # 'aux' feature map 8x8
O_H, O_W = IN_H // 4, IN_W // 4  # 'out' feature map 4x4

D_IN   = IN_CH * IN_H * IN_W          # 1024  flattened input
D_AUX  = B1_CH * A_H * A_W            # 1024  flattened 'aux' features
D_OUTF = B2_CH * O_H * O_W            # 512   flattened 'out' features
D_HC   = C_MID * O_H * O_W            # 128   classifier hidden
D_HA   = A_MID * A_H * A_W            # 256   aux hidden
D_UP   = NUM_CLASSES * IN_H * IN_W    # 1280  flattened per-image output (lane-dense)


# ----------------------------------------------------------------------------
# The single fused kernel: 6 GEMMs, bias/ReLU epilogues, all operands in VMEM.
# Activations are (N, features) with the flattened feature axis on lanes.
# ----------------------------------------------------------------------------
def _fcn_kernel(x_ref, w1_ref, mc1_ref, w2_ref, b_ref, out_ref, aux_ref):
    f32 = jnp.float32
    x = x_ref[...]                                        # (N, D_IN)

    # packed weight slabs (static slices; lane offsets are multiples of 128)
    m1   = w1_ref[:, 0:D_AUX]                             # conv1 4->16 s2      (1024, 1024)
    m2   = w1_ref[:, D_AUX:D_AUX + D_OUTF]                # conv2 16->32 s2     (1024, 512)
    ma1  = w1_ref[:, D_AUX + D_OUTF:D_AUX + D_OUTF + D_HA]  # aux conv3x3+BN    (1024, 256)
    mc1  = mc1_ref[...]                                   # cls conv3x3+BNscale (512, 128)
    mc2u = w2_ref[0:D_HC, :]                              # cls 1x1 + upsample  (128, 1280)
    ma2u = w2_ref[D_HC:D_HC + D_HA, :]                    # aux 1x1 + upsample  (256, 1280)

    b1  = b_ref[0:1, 0:D_AUX]
    b2  = b_ref[1:2, 0:D_OUTF]
    shc = b_ref[2:3, 0:D_HC]
    bcu = b_ref[3:4, :]
    sha = b_ref[4:5, 0:D_HA]
    bau = b_ref[5:6, :]

    # backbone
    a1 = jnp.maximum(jnp.dot(x,  m1, preferred_element_type=f32) + b1, 0.0)    # 'aux' feats (N, 1024)
    a2 = jnp.maximum(jnp.dot(a1, m2, preferred_element_type=f32) + b2, 0.0)    # 'out' feats (N, 512)

    # classifier head (conv3x3+BN+ReLU folded; 1x1+bias+bilinear folded into one GEMM)
    hc = jnp.maximum(jnp.dot(a2, mc1, preferred_element_type=f32) + shc, 0.0)  # (N, 128)
    out_ref[...] = jnp.dot(hc, mc2u, preferred_element_type=f32) + bcu         # (N, 1280)

    # aux head
    ha = jnp.maximum(jnp.dot(a1, ma1, preferred_element_type=f32) + sha, 0.0)  # (N, 256)
    aux_ref[...] = jnp.dot(ha, ma2u, preferred_element_type=f32) + bau         # (N, 1280)


def fcn_forward(x, prep):
    """x: (N, 4, 16, 16) NCHW.  prep: output of prepare_params."""
    N = x.shape[0]
    xf = x.reshape(N, D_IN).astype(jnp.float32)   # NCHW flatten == channel-major flatten (free)

    out_flat, aux_flat = pl.pallas_call(
        _fcn_kernel,
        out_shape=(jax.ShapeDtypeStruct((N, D_UP), jnp.float32),
                   jax.ShapeDtypeStruct((N, D_UP), jnp.float32)),
        grid=(1,),
        in_specs=[
            pl.BlockSpec((N, D_IN), lambda i: (0, 0)),
            pl.BlockSpec((D_IN, D_AUX + D_OUTF + D_HA), lambda i: (0, 0)),
            pl.BlockSpec((D_OUTF, D_HC), lambda i: (0, 0)),
            pl.BlockSpec((D_HC + D_HA, D_UP), lambda i: (0, 0)),
            pl.BlockSpec((8, D_UP), lambda i: (0, 0)),
        ],
        out_specs=(pl.BlockSpec((N, D_UP), lambda i: (0, 0)),
                   pl.BlockSpec((N, D_UP), lambda i: (0, 0))),
        compiler_params=pltpu.CompilerParams(
            dimension_semantics=("arbitrary",),
            vmem_limit_bytes=32 * 1024 * 1024),
    )(xf, prep["w1"], prep["mc1"], prep["w2"], prep["biases"])

    return {"out": out_flat.reshape(N, NUM_CLASSES, IN_H, IN_W),
            "aux": aux_flat.reshape(N, NUM_CLASSES, IN_H, IN_W)}


# ----------------------------------------------------------------------------
# One-time parameter preparation: lower every conv (pad=1) to a dense GEMM on
# channel-major flattened feature maps, fold eval-BN into the head matrices,
# and fold the 1x1 conv + bilinear-upsample into a single matrix per head.
# ----------------------------------------------------------------------------
def _interp_matrix(out_size, in_size):
    # PyTorch bilinear, align_corners=False
    scale = in_size / out_size
    i = np.arange(out_size)
    src = np.maximum((i + 0.5) * scale - 0.5, 0.0)
    i0 = np.minimum(np.floor(src).astype(np.int64), in_size - 1)
    i1 = np.minimum(i0 + 1, in_size - 1)
    l1 = (src - i0).astype(np.float32)
    l0 = 1.0 - l1
    A = np.zeros((out_size, in_size), dtype=np.float32)
    A[i, i0] += l0
    A[i, i1] += l1
    return A


def _upsample_matrix(in_h, in_w, out_h, out_w):
    # U[(ih*in_w+iw), (oh*out_w+ow)] so that out_flat = logits_flat @ U
    return np.kron(_interp_matrix(out_h, in_h), _interp_matrix(out_w, in_w)).T


def _tap_selectors(H, W, stride):
    Ho = (H + 2 - 3) // stride + 1
    Wo = (W + 2 - 3) // stride + 1
    S = np.zeros((9, H * W, Ho * Wo), np.float32)
    for kh in range(3):
        for kw in range(3):
            t = kh * 3 + kw
            for ph in range(Ho):
                ih = ph * stride + kh - 1
                if not (0 <= ih < H):
                    continue
                for pw in range(Wo):
                    iw = pw * stride + kw - 1
                    if 0 <= iw < W:
                        S[t, ih * W + iw, ph * Wo + pw] = 1.0
    return S, Ho, Wo


def _conv3x3_as_dense(w, H, W, stride):
    """w: (Cout, Cin, 3, 3) -> M (Cin*H*W, Cout*Ho*Wo) such that conv2d(pad=1, stride)
    on channel-major flattened maps is flat_out = flat_in @ M."""
    Cout, Cin = w.shape[0], w.shape[1]
    S, Ho, Wo = _tap_selectors(H, W, stride)
    M = jnp.einsum("oit,tqp->iqop", w.reshape(Cout, Cin, 9),
                   jnp.asarray(S)).reshape(Cin * H * W, Cout * Ho * Wo)
    return M, Ho, Wo


def prepare_params(p):
    eps = 1e-5
    f32 = jnp.float32

    # backbone convs (bias + ReLU applied in-kernel)
    m1, ah, aw = _conv3x3_as_dense(p["b1_w"].astype(f32), IN_H, IN_W, 2)   # (1024, 1024), 8x8
    m2, oh, ow = _conv3x3_as_dense(p["b2_w"].astype(f32), ah, aw, 2)       # (1024, 512),  4x4

    # classifier head: conv3x3 (no bias) with BN scale folded in
    mc1, _, _ = _conv3x3_as_dense(p["c1_w"].astype(f32), oh, ow, 1)        # (512, 128)
    c_scale = p["c_bn_gamma"] / jnp.sqrt(p["c_bn_var"] + eps)
    c_shift = p["c_bn_beta"] - p["c_bn_mean"] * c_scale
    mc1 = mc1 * jnp.repeat(c_scale, oh * ow)[None, :]
    uc = _upsample_matrix(oh, ow, IN_H, IN_W)                              # (16, 256)
    mc2u = jnp.kron(p["c2_w"].reshape(NUM_CLASSES, -1).T.astype(f32),
                    jnp.asarray(uc))                                       # (128, 1280)

    # aux head
    ma1, _, _ = _conv3x3_as_dense(p["a1_w"].astype(f32), ah, aw, 1)        # (1024, 256)
    a_scale = p["a_bn_gamma"] / jnp.sqrt(p["a_bn_var"] + eps)
    a_shift = p["a_bn_beta"] - p["a_bn_mean"] * a_scale
    ma1 = ma1 * jnp.repeat(a_scale, ah * aw)[None, :]
    ua = _upsample_matrix(ah, aw, IN_H, IN_W)                              # (64, 256)
    ma2u = jnp.kron(p["a2_w"].reshape(NUM_CLASSES, -1).T.astype(f32),
                    jnp.asarray(ua))                                       # (256, 1280)

    # pack into 3 weight slabs + 1 bias buffer (consolidated refs)
    w1pack = jnp.concatenate([m1, m2, ma1], axis=1).astype(f32)            # (1024, 1792)
    w2pack = jnp.concatenate([mc2u, ma2u], axis=0).astype(f32)             # (384, 1280)

    biases = jnp.zeros((8, D_UP), f32)
    biases = biases.at[0, :D_AUX].set(jnp.repeat(p["b1_b"], ah * aw))
    biases = biases.at[1, :D_OUTF].set(jnp.repeat(p["b2_b"], oh * ow))
    biases = biases.at[2, :D_HC].set(jnp.repeat(c_shift, oh * ow))
    biases = biases.at[3, :].set(jnp.kron(p["c2_b"], jnp.asarray(uc.sum(axis=0))))
    biases = biases.at[4, :D_HA].set(jnp.repeat(a_shift, ah * aw))
    biases = biases.at[5, :].set(jnp.kron(p["a2_b"], jnp.asarray(ua.sum(axis=0))))

    return {"w1": w1pack, "mc1": mc1.astype(f32), "w2": w2pack, "biases": biases}


# ---------------------------------------------------------------------------- params (PyTorch layout)
def init_params(key):
    ks = jax.random.split(key, 16)

    def w(k, shape):
        fan_in = np.prod(shape[1:])
        return jax.random.normal(k, shape, jnp.float32) / np.sqrt(fan_in)

    return {
        # backbone
        "b1_w": w(ks[0], (B1_CH, IN_CH, 3, 3)), "b1_b": 0.01 * jax.random.normal(ks[1], (B1_CH,)),
        "b2_w": w(ks[2], (B2_CH, B1_CH, 3, 3)), "b2_b": 0.01 * jax.random.normal(ks[3], (B2_CH,)),
        # classifier head (FCNHead: 32 -> 8 -> NUM_CLASSES)
        "c1_w": w(ks[4], (C_MID, B2_CH, 3, 3)),
        "c_bn_gamma": jnp.ones((C_MID,)), "c_bn_beta": jnp.zeros((C_MID,)),
        "c_bn_mean": jnp.zeros((C_MID,)), "c_bn_var": jnp.ones((C_MID,)),
        "c2_w": w(ks[5], (NUM_CLASSES, C_MID, 1, 1)),
        "c2_b": 0.01 * jax.random.normal(ks[6], (NUM_CLASSES,)),
        # aux classifier head (16 -> 4 -> NUM_CLASSES)
        "a1_w": w(ks[7], (A_MID, B1_CH, 3, 3)),
        "a_bn_gamma": jnp.ones((A_MID,)), "a_bn_beta": jnp.zeros((A_MID,)),
        "a_bn_mean": jnp.zeros((A_MID,)), "a_bn_var": jnp.ones((A_MID,)),
        "a2_w": w(ks[8], (NUM_CLASSES, A_MID, 1, 1)),
        "a2_b": 0.01 * jax.random.normal(ks[9], (NUM_CLASSES,)),
    }


if __name__ == "__main__":
    key = jax.random.PRNGKey(0)
    k_param, k_x = jax.random.split(key)
    params = init_params(k_param)
    x = jax.random.normal(k_x, (2, IN_CH, IN_H, IN_W), jnp.float32)  # NCHW like PyTorch

    prep = prepare_params(params)          # one-time weight lowering (not in the hot path)
    fwd = jax.jit(fcn_forward)
    result = fwd(x, prep)
    jax.block_until_ready(result)

    assert result["out"].shape == (2, NUM_CLASSES, IN_H, IN_W)
    assert result["aux"].shape == (2, NUM_CLASSES, IN_H, IN_W)
    assert bool(jnp.isfinite(result["out"]).all()) and bool(jnp.isfinite(result["aux"]).all())
    print("KERNEL_OK")
</pallas_src>

<mosaic_0001>
module attributes {stable_mosaic.version = 11 : i64} {
  func.func @_fcn_kernel(%arg0: i32, %arg1: memref<2x1024xf32, #tpu.memory_space<vmem>>, %arg2: memref<1024x1792xf32, #tpu.memory_space<vmem>>, %arg3: memref<512x128xf32, #tpu.memory_space<vmem>>, %arg4: memref<384x1280xf32, #tpu.memory_space<vmem>>, %arg5: memref<8x1280xf32, #tpu.memory_space<vmem>>, %arg6: memref<2x1280xf32, #tpu.memory_space<vmem>>, %arg7: memref<2x1280xf32, #tpu.memory_space<vmem>>) attributes {dimension_semantics = [#tpu.dimension_semantics<arbitrary>], iteration_bounds = array<i64: 1>, scalar_prefetch = 0 : i64, scratch_operands = 0 : i64, tpu.core_type = #tpu.core_type<tc>, window_params = [{pipeline_mode = #tpu.pipeline_mode<synchronous>, transform_indices = @transform_0, window_bounds = array<i64: 2, 1024>}, {pipeline_mode = #tpu.pipeline_mode<synchronous>, transform_indices = @transform_1, window_bounds = array<i64: 1024, 1792>}, {pipeline_mode = #tpu.pipeline_mode<synchronous>, transform_indices = @transform_2, window_bounds = array<i64: 512, 128>}, {pipeline_mode = #tpu.pipeline_mode<synchronous>, transform_indices = @transform_3, window_bounds = array<i64: 384, 1280>}, {pipeline_mode = #tpu.pipeline_mode<synchronous>, transform_indices = @transform_4, window_bounds = array<i64: 8, 1280>}, {pipeline_mode = #tpu.pipeline_mode<synchronous>, transform_indices = @transform_5, window_bounds = array<i64: 2, 1280>}, {pipeline_mode = #tpu.pipeline_mode<synchronous>, transform_indices = @transform_6, window_bounds = array<i64: 2, 1280>}]} {
    %c0 = arith.constant 0 : index
    %c0_0 = arith.constant 0 : index
    %0 = vector.load %arg1[%c0, %c0_0] : memref<2x1024xf32, #tpu.memory_space<vmem>>, vector<2x1024xf32>
    %c0_1 = arith.constant 0 : index
    %c0_2 = arith.constant 0 : index
    %1 = vector.load %arg2[%c0_1, %c0_2] : memref<1024x1792xf32, #tpu.memory_space<vmem>>, vector<1024x1024xf32>
    %c0_3 = arith.constant 0 : index
    %c1024 = arith.constant 1024 : index
    %2 = vector.load %arg2[%c0_3, %c1024] : memref<1024x1792xf32, #tpu.memory_space<vmem>>, vector<1024x512xf32>
    %c0_4 = arith.constant 0 : index
    %c1536 = arith.constant 1536 : index
    %3 = vector.load %arg2[%c0_4, %c1536] : memref<1024x1792xf32, #tpu.memory_space<vmem>>, vector<1024x256xf32>
    %c0_5 = arith.constant 0 : index
    %c0_6 = arith.constant 0 : index
    %4 = vector.load %arg3[%c0_5, %c0_6] : memref<512x128xf32, #tpu.memory_space<vmem>>, vector<512x128xf32>
    %c0_7 = arith.constant 0 : index
    %c0_8 = arith.constant 0 : index
    %5 = vector.load %arg4[%c0_7, %c0_8] : memref<384x1280xf32, #tpu.memory_space<vmem>>, vector<128x1280xf32>
    %c128 = arith.constant 128 : index
    %c0_9 = arith.constant 0 : index
    %6 = vector.load %arg4[%c128, %c0_9] : memref<384x1280xf32, #tpu.memory_space<vmem>>, vector<256x1280xf32>
    %c0_10 = arith.constant 0 : index
    %c0_11 = arith.constant 0 : index
    %7 = vector.load %arg5[%c0_10, %c0_11] : memref<8x1280xf32, #tpu.memory_space<vmem>>, vector<1x1024xf32>
    %c1 = arith.constant 1 : index
    %c0_12 = arith.constant 0 : index
    %8 = vector.load %arg5[%c1, %c0_12] : memref<8x1280xf32, #tpu.memory_space<vmem>>, vector<1x512xf32>
    %c2 = arith.constant 2 : index
    %c0_13 = arith.constant 0 : index
    %9 = vector.load %arg5[%c2, %c0_13] : memref<8x1280xf32, #tpu.memory_space<vmem>>, vector<1x128xf32>
    %c3 = arith.constant 3 : index
    %c0_14 = arith.constant 0 : index
    %10 = vector.load %arg5[%c3, %c0_14] : memref<8x1280xf32, #tpu.memory_space<vmem>>, vector<1x1280xf32>
    %c4 = arith.constant 4 : index
    %c0_15 = arith.constant 0 : index
    %11 = vector.load %arg5[%c4, %c0_15] : memref<8x1280xf32, #tpu.memory_space<vmem>>, vector<1x256xf32>
    %c5 = arith.constant 5 : index
    %c0_16 = arith.constant 0 : index
    %12 = vector.load %arg5[%c5, %c0_16] : memref<8x1280xf32, #tpu.memory_space<vmem>>, vector<1x1280xf32>
    %cst = arith.constant dense<0.000000e+00> : vector<2x1024xf32>
    %13 = tpu.matmul %0, %1, %cst {dimension_numbers = #tpu.dot_dimension_numbers<[1], [0], [0], [1], [0, 0, 1, 1], [], []>} : vector<2x1024xf32>, vector<1024x1024xf32>, vector<2x1024xf32> -> vector<2x1024xf32>
    %14 = vector.broadcast %7 : vector<1x1024xf32> to vector<2x1024xf32>
    %15 = arith.addf %13, %14 : vector<2x1024xf32>
    %cst_17 = arith.constant 0.000000e+00 : f32
    %16 = vector.broadcast %cst_17 : f32 to vector<2x1024xf32>
    %17 = arith.maximumf %15, %16 : vector<2x1024xf32>
    %cst_18 = arith.constant dense<0.000000e+00> : vector<2x512xf32>
    %18 = tpu.matmul %17, %2, %cst_18 {dimension_numbers = #tpu.dot_dimension_numbers<[1], [0], [0], [1], [0, 0, 1, 1], [], []>} : vector<2x1024xf32>, vector<1024x512xf32>, vector<2x512xf32> -> vector<2x512xf32>
    %19 = vector.broadcast %8 : vector<1x512xf32> to vector<2x512xf32>
    %20 = arith.addf %18, %19 : vector<2x512xf32>
    %cst_19 = arith.constant 0.000000e+00 : f32
    %21 = vector.broadcast %cst_19 : f32 to vector<2x512xf32>
    %22 = arith.maximumf %20, %21 : vector<2x512xf32>
    %cst_20 = arith.constant dense<0.000000e+00> : vector<2x128xf32>
    %23 = tpu.matmul %22, %4, %cst_20 {dimension_numbers = #tpu.dot_dimension_numbers<[1], [0], [0], [1], [0, 0, 1, 1], [], []>} : vector<2x512xf32>, vector<512x128xf32>, vector<2x128xf32> -> vector<2x128xf32>
    %24 = vector.broadcast %9 : vector<1x128xf32> to vector<2x128xf32>
    %25 = arith.addf %23, %24 : vector<2x128xf32>
    %cst_21 = arith.constant 0.000000e+00 : f32
    %26 = vector.broadcast %cst_21 : f32 to vector<2x128xf32>
    %27 = arith.maximumf %25, %26 : vector<2x128xf32>
    %cst_22 = arith.constant dense<0.000000e+00> : vector<2x1280xf32>
    %28 = tpu.matmul %27, %5, %cst_22 {dimension_numbers = #tpu.dot_dimension_numbers<[1], [0], [0], [1], [0, 0, 1, 1], [], []>} : vector<2x128xf32>, vector<128x1280xf32>, vector<2x1280xf32> -> vector<2x1280xf32>
    %29 = vector.broadcast %10 : vector<1x1280xf32> to vector<2x1280xf32>
    %30 = arith.addf %28, %29 : vector<2x1280xf32>
    %c0_23 = arith.constant 0 : index
    %c0_24 = arith.constant 0 : index
    %31 = vector.load %arg6[%c0_23, %c0_24] : memref<2x1280xf32, #tpu.memory_space<vmem>>, vector<2x1280xf32>
    tpu.vector_store %arg6[%c0_23, %c0_24], %30 {strides = array<i32>} : memref<2x1280xf32, #tpu.memory_space<vmem>>, vector<2x1280xf32>,
    %cst_25 = arith.constant dense<0.000000e+00> : vector<2x256xf32>
    %32 = tpu.matmul %17, %3, %cst_25 {dimension_numbers = #tpu.dot_dimension_numbers<[1], [0], [0], [1], [0, 0, 1, 1], [], []>} : vector<2x1024xf32>, vector<1024x256xf32>, vector<2x256xf32> -> vector<2x256xf32>
    %33 = vector.broadcast %11 : vector<1x256xf32> to vector<2x256xf32>
    %34 = arith.addf %32, %33 : vector<2x256xf32>
    %cst_26 = arith.constant 0.000000e+00 : f32
    %35 = vector.broadcast %cst_26 : f32 to vector<2x256xf32>
    %36 = arith.maximumf %34, %35 : vector<2x256xf32>
    %cst_27 = arith.constant dense<0.000000e+00> : vector<2x1280xf32>
    %37 = tpu.matmul %36, %6, %cst_27 {dimension_numbers = #tpu.dot_dimension_numbers<[1], [0], [0], [1], [0, 0, 1, 1], [], []>} : vector<2x256xf32>, vector<256x1280xf32>, vector<2x1280xf32> -> vector<2x1280xf32>
    %38 = vector.broadcast %12 : vector<1x1280xf32> to vector<2x1280xf32>
    %39 = arith.addf %37, %38 : vector<2x1280xf32>
    %c0_28 = arith.constant 0 : index
    %c0_29 = arith.constant 0 : index
    %40 = vector.load %arg7[%c0_28, %c0_29] : memref<2x1280xf32, #tpu.memory_space<vmem>>, vector<2x1280xf32>
    tpu.vector_store %arg7[%c0_28, %c0_29], %39 {strides = array<i32>} : memref<2x1280xf32, #tpu.memory_space<vmem>>, vector<2x1280xf32>,
    return
  }
  func.func @transform_0(%arg0: i32) -> (i32, i32) {
    %c0_i32 = arith.constant 0 : i32
    %c0_i32_0 = arith.constant 0 : i32
    %c0_i32_1 = arith.constant 0 : i32
    return %c0_i32, %c0_i32_0 : i32, i32
  }
  func.func @transform_1(%arg0: i32) -> (i32, i32) {
    %c0_i32 = arith.constant 0 : i32
    %c0_i32_0 = arith.constant 0 : i32
    %c0_i32_1 = arith.constant 0 : i32
    return %c0_i32, %c0_i32_0 : i32, i32
  }
  func.func @transform_2(%arg0: i32) -> (i32, i32) {
    %c0_i32 = arith.constant 0 : i32
    %c0_i32_0 = arith.constant 0 : i32
    %c0_i32_1 = arith.constant 0 : i32
    return %c0_i32, %c0_i32_0 : i32, i32
  }
  func.func @transform_3(%arg0: i32) -> (i32, i32) {
    %c0_i32 = arith.constant 0 : i32
    %c0_i32_0 = arith.constant 0 : i32
    %c0_i32_1 = arith.constant 0 : i32
    return %c0_i32, %c0_i32_0 : i32, i32
  }
  func.func @transform_4(%arg0: i32) -> (i32, i32) {
    %c0_i32 = arith.constant 0 : i32
    %c0_i32_0 = arith.constant 0 : i32
    %c0_i32_1 = arith.constant 0 : i32
    return %c0_i32, %c0_i32_0 : i32, i32
  }
  func.func @transform_5(%arg0: i32) -> (i32, i32) {
    %c0_i32 = arith.constant 0 : i32
    %c0_i32_0 = arith.constant 0 : i32
    %c0_i32_1 = arith.constant 0 : i32
    return %c0_i32, %c0_i32_0 : i32, i32
  }
  func.func @transform_6(%arg0: i32) -> (i32, i32) {
    %c0_i32 = arith.constant 0 : i32
    %c0_i32_0 = arith.constant 0 : i32
    %c0_i32_1 = arith.constant 0 : i32
    return %c0_i32, %c0_i32_0 : i32, i32
  }
}

</mosaic_0001>

<bundles_post_ra>
// kernel: fcn_forward.1
= control target key start
LH: loop header
LB: loop body
LE: loop exit
PB: predicated region body
PF: predicated region fallthrough
CT: control target
= control target key end

     0   :  { %12 = vsyncpa [#allocation3], 0  ;;  %s6128_s0 = inlined_call_operand.vmem [shape: f32[2,1024], index: 0, kind: input, shape index: {}]   ;;  %s6129_s1 = inlined_call_operand.hbm [shape: f32[1024,1792], index: 1, kind: input, shape index: {}]   ;;  %s6130_s2 = inlined_call_operand.hbm [shape: f32[512,128], index: 2, kind: input, shape index: {}]   ;;  %s6131_s3 = inlined_call_operand.hbm [shape: f32[384,1280], index: 3, kind: input, shape index: {}]   ;;  %s6132_s4 = inlined_call_operand.hbm [shape: f32[8,1280], index: 4, kind: input, shape index: {}]   ;;  %s6133_s5 = inlined_call_operand.vmem [shape: f32[2,1280], index: 5, kind: output, shape index: {0}]   ;;  %s6134_s6 = inlined_call_operand.vmem [shape: f32[2,1280], index: 6, kind: output, shape index: {1}]  }
   0x1   :  { %13 = vsyncpa [#allocation5], 0  ;;  %s34_s23 = sshll.u32 %s6130_s2, 4  ;;  %s35_s23 = int_to_ptr.hbm [resolvable:$true] %s34_s23 }
   0x2   :  { %14 = vsyncpa [#allocation8], 0  ;;  %s5682_s24 = smov [#allocation4]   ;;  %s21_s28 = sshll.u32 %s6129_s1, 4  ;;  %s22_s28 = int_to_ptr.hbm [resolvable:$true] %s21_s28 }
   0x3   :  { %s36_s25 = sshll.u32 %s5682_s24, 4  ;;  %s5683_s29 = smov 128   ;;  %s37_s25 = int_to_ptr.vmem [resolvable:$true] %s36_s25 }
   0x4   :  { %s5684_s30 = smov 8   ;;  %s5685_s7 = smov [#allocation2]  }
   0x5   :  { %42 = dma.hbm_to_vmem [thread:$0]  %s35_s23, 8192, %s37_s25, [#allocation5], %s5683_s29, %s5683_s29, %s5684_s30  }
   0x6   :  { %s23_s8 = sshll.u32 %s5685_s7, 4  ;;  %s5686_s9 = smov 1792   ;;  %s24_s8 = int_to_ptr.vmem [resolvable:$true] %s23_s8 }
   0x7   :  { %s5687_s10 = smov 112   ;;  %s47_s12 = sshll.u32 %s6131_s3, 4  ;;  %s48_s12 = int_to_ptr.hbm [resolvable:$true] %s47_s12 }
   0x8   :  { %29 = dma.hbm_to_vmem [thread:$0]  %s22_s28, 229376, %s24_s8, [#allocation3], %s5686_s9, %s5686_s9, %s5687_s10  }
   0x9   :  { %s5688_s13 = smov [#allocation6]   ;;  %s61_s16 = sshll.u32 %s6132_s4, 4  ;;  %s62_s16 = int_to_ptr.hbm [resolvable:$true] %s61_s16 }
   0xa   :  { %s49_s14 = sshll.u32 %s5688_s13, 4  ;;  %s5689_s17 = smov 1280   ;;  %s50_s14 = int_to_ptr.vmem [resolvable:$true] %s49_s14 }
   0xb   :  { %s5690_s18 = smov 80   ;;  %s5691_s19 = smov [#allocation7]  }
   0xc   :  { %55 = dma.hbm_to_vmem [thread:$0]  %s48_s12, 61440, %s50_s14, [#allocation5], %s5689_s17, %s5689_s17, %s5690_s18  }
   0xd   :  { %s63_s20 = sshll.u32 %s5691_s19, 4  ;;  %s64_s20 = int_to_ptr.vmem [resolvable:$true] %s63_s20 }
   0xe   :  { %66 = dma.hbm_to_vmem [thread:$0]  %s62_s16, 1280, %s64_s20, [#allocation8]  }
   0xf   :  { %5676 = dma.done.wait [#allocation3], 229376  }
  0x10   :  { %5677 = vsyncadd [#allocation3], 4294737920 }
  0x11   :  { %5678 = dma.done.wait [#allocation5], 69632  }
  0x12   :  { %5679 = vsyncadd [#allocation5], 4294897664 }
  0x13   :  { %5680 = dma.done.wait [#allocation8], 1280  }
  0x14   :  { %5681 = vsyncadd [#allocation8], 4294966016  ;;  %v205_v0 = vld [vmem:[#allocation2 + $0x690] sm:$0xff]  ;;  %v197_v4 = vld [vmem:[#allocation2 + $0x620] sm:$0xff]  ;;  %vm4740_vm0 = vcmask 1041408   ;;  %vm4742_vm1 = vcmask 1045508  }
  0x15   :  { %v333_v1 = vld [vmem:[#allocation2 + $0xd90] sm:$0xff]  ;;  %2479 = vmatpush.msra.mxu0 %v205_v0  ;;  %v325_v5 = vld [vmem:[#allocation2 + $0xd20] sm:$0xff]  ;;  %vm4744_vm2 = vcmask 1043456  }
  0x16   :  { %v461_v2 = vld [vmem:[#allocation2 + $0x1490] sm:$0xff]  ;;  %2499 = vmatpush.msra.mxu1 %v333_v1  ;;  %v453_v6 = vld [vmem:[#allocation2 + $0x1420] sm:$0xff] }
  0x17   :  { %v589_v3 = vld [vmem:[#allocation2 + $0x1b90] sm:$0xff]  ;;  %2519 = vmatpush.msra.mxu2 %v461_v2  ;;  %v581_v7 = vld [vmem:[#allocation2 + $0x1b20] sm:$0xff]  ;;  %2480 = vmatpush.msra.mxu0 %v197_v4 }
  0x18   :  { %2539 = vmatpush.msra.mxu3 %v589_v3  ;;  %v189_v8 = vld [vmem:[#allocation2 + $0x5b0] sm:$0xff]  ;;  %2500 = vmatpush.msra.mxu1 %v325_v5  ;;  %v181_v12 = vld [vmem:[#allocation2 + $0x540] sm:$0xff] }
  0x19   :  { %v317_v9 = vld [vmem:[#allocation2 + $0xcb0] sm:$0xff]  ;;  %2520 = vmatpush.msra.mxu2 %v453_v6  ;;  %v309_v13 = vld [vmem:[#allocation2 + $0xc40] sm:$0xff]  ;;  %2481 = vmatpush.msra.mxu0 %v189_v8 }
  0x1a   :  { %v445_v10 = vld [vmem:[#allocation2 + $0x13b0] sm:$0xff]  ;;  %2540 = vmatpush.msra.mxu3 %v581_v7  ;;  %2501 = vmatpush.msra.mxu1 %v317_v9  ;;  %v437_v14 = vld [vmem:[#allocation2 + $0x1340] sm:$0xff] }
  0x1b   :  { %v573_v11 = vld [vmem:[#allocation2 + $0x1ab0] sm:$0xff]  ;;  %v565_v15 = vld [vmem:[#allocation2 + $0x1a40] sm:$0xff]  ;;  %2521 = vmatpush.msra.mxu2 %v445_v10  ;;  %2482 = vmatpush.msra.mxu0 %v181_v12 }
  0x1c   :  { %2541 = vmatpush.msra.mxu3 %v573_v11  ;;  %v173_v16 = vld [vmem:[#allocation2 + $0x4d0] sm:$0xff]  ;;  %2502 = vmatpush.msra.mxu1 %v309_v13  ;;  %v165_v20 = vld [vmem:[#allocation2 + $0x460] sm:$0xff] }
  0x1d   :  { %v301_v17 = vld [vmem:[#allocation2 + $0xbd0] sm:$0xff]  ;;  %2522 = vmatpush.msra.mxu2 %v437_v14  ;;  %v293_v21 = vld [vmem:[#allocation2 + $0xb60] sm:$0xff]  ;;  %2483 = vmatpush.msra.mxu0 %v173_v16 }
  0x1e   :  { %v429_v18 = vld [vmem:[#allocation2 + $0x12d0] sm:$0xff]  ;;  %2542 = vmatpush.msra.mxu3 %v565_v15  ;;  %2503 = vmatpush.msra.mxu1 %v301_v17  ;;  %v421_v22 = vld [vmem:[#allocation2 + $0x1260] sm:$0xff] }
  0x1f   :  { %v557_v19 = vld [vmem:[#allocation2 + $0x19d0] sm:$0xff]  ;;  %v549_v23 = vld [vmem:[#allocation2 + $0x1960] sm:$0xff]  ;;  %2523 = vmatpush.msra.mxu2 %v429_v18  ;;  %2484 = vmatpush.msra.mxu0 %v165_v20 }
  0x20   :  { %2543 = vmatpush.msra.mxu3 %v557_v19  ;;  %v157_v24 = vld [vmem:[#allocation2 + $0x3f0] sm:$0xff]  ;;  %2504 = vmatpush.msra.mxu1 %v293_v21  ;;  %v149_v28 = vld [vmem:[#allocation2 + $0x380] sm:$0xff] }
  0x21   :  { %v285_v25 = vld [vmem:[#allocation2 + $0xaf0] sm:$0xff]  ;;  %2524 = vmatpush.msra.mxu2 %v421_v22  ;;  %v277_v29 = vld [vmem:[#allocation2 + $0xa80] sm:$0xff]  ;;  %2485 = vmatpush.msra.mxu0 %v157_v24 }
  0x22   :  { %v413_v26 = vld [vmem:[#allocation2 + $0x11f0] sm:$0xff]  ;;  %2544 = vmatpush.msra.mxu3 %v549_v23  ;;  %2505 = vmatpush.msra.mxu1 %v285_v25  ;;  %v405_v30 = vld [vmem:[#allocation2 + $0x1180] sm:$0xff] }
  0x23   :  { %v541_v27 = vld [vmem:[#allocation2 + $0x18f0] sm:$0xff]  ;;  %v533_v31 = vld [vmem:[#allocation2 + $0x1880] sm:$0xff]  ;;  %2525 = vmatpush.msra.mxu2 %v413_v26  ;;  %2486 = vmatpush.msra.mxu0 %v149_v28  ;;  %v83_v26 = vld [vmem:[%s6128_s0] sm:$0xff] }
  0x24   :  { %2545 = vmatpush.msra.mxu3 %v541_v27  ;;  %v141_v32 = vld [vmem:[#allocation2 + $0x310] sm:$0xff]  ;;  %2506 = vmatpush.msra.mxu1 %v277_v29  ;;  %v133_v36 = vld [vmem:[#allocation2 + $0x2a0] sm:$0xff]  ;;  %2460 = vst [vmem:[#allocation1] ss:$4 sm:$0xff] %v83_v26  ;;  %v558_v26 = vld [vmem:[#allocation2 + $0x19d8] sm:$0xff] }
  0x25   :  { %v269_v33 = vld [vmem:[#allocation2 + $0xa10] sm:$0xff]  ;;  %2526 = vmatpush.msra.mxu2 %v405_v30  ;;  %v261_v37 = vld [vmem:[#allocation2 + $0x9a0] sm:$0xff]  ;;  %2487 = vmatpush.msra.mxu0 %v141_v32 }
  0x26   :  { %v397_v34 = vld [vmem:[#allocation2 + $0x1110] sm:$0xff]  ;;  %2546 = vmatpush.msra.mxu3 %v533_v31  ;;  %2507 = vmatpush.msra.mxu1 %v269_v33  ;;  %v389_v38 = vld [vmem:[#allocation2 + $0x10a0] sm:$0xff] }
  0x27   :  { %v525_v35 = vld [vmem:[#allocation2 + $0x1810] sm:$0xff]  ;;  %v517_v39 = vld [vmem:[#allocation2 + $0x17a0] sm:$0xff]  ;;  %2527 = vmatpush.msra.mxu2 %v397_v34  ;;  %2488 = vmatpush.msra.mxu0 %v133_v36 }
  0x28   :  { %2547 = vmatpush.msra.mxu3 %v525_v35  ;;  %v125_v40 = vld [vmem:[#allocation2 + $0x230] sm:$0xff]  ;;  %2508 = vmatpush.msra.mxu1 %v261_v37  ;;  %v117_v44 = vld [vmem:[#allocation2 + $0x1c0] sm:$0xff] }
  0x29   :  { %v253_v41 = vld [vmem:[#allocation2 + $0x930] sm:$0xff]  ;;  %2528 = vmatpush.msra.mxu2 %v389_v38  ;;  %v245_v45 = vld [vmem:[#allocation2 + $0x8c0] sm:$0xff]  ;;  %2489 = vmatpush.msra.mxu0 %v125_v40 }
  0x2a   :  { %v381_v42 = vld [vmem:[#allocation2 + $0x1030] sm:$0xff]  ;;  %2548 = vmatpush.msra.mxu3 %v517_v39  ;;  %2509 = vmatpush.msra.mxu1 %v253_v41  ;;  %v373_v46 = vld [vmem:[#allocation2 + $0xfc0] sm:$0xff] }
  0x2b   :  { %v509_v43 = vld [vmem:[#allocation2 + $0x1730] sm:$0xff]  ;;  %v501_v47 = vld [vmem:[#allocation2 + $0x16c0] sm:$0xff]  ;;  %2529 = vmatpush.msra.mxu2 %v381_v42  ;;  %2490 = vmatpush.msra.mxu0 %v117_v44 }
  0x2c   :  { %2549 = vmatpush.msra.mxu3 %v509_v43  ;;  %v109_v48 = vld [vmem:[#allocation2 + $0x150] sm:$0xff]  ;;  %2510 = vmatpush.msra.mxu1 %v245_v45  ;;  %v101_v52 = vld [vmem:[#allocation2 + $0xe0] sm:$0xff] }
  0x2d   :  { %v237_v49 = vld [vmem:[#allocation2 + $0x850] sm:$0xff]  ;;  %2530 = vmatpush.msra.mxu2 %v373_v46  ;;  %v229_v53 = vld [vmem:[#allocation2 + $0x7e0] sm:$0xff]  ;;  %2491 = vmatpush.msra.mxu0 %v109_v48 }
  0x2e   :  { %v365_v50 = vld [vmem:[#allocation2 + $0xf50] sm:$0xff]  ;;  %2550 = vmatpush.msra.mxu3 %v501_v47  ;;  %2511 = vmatpush.msra.mxu1 %v237_v49  ;;  %v357_v54 = vld [vmem:[#allocation2 + $0xee0] sm:$0xff] }
  0x2f   :  { %v493_v51 = vld [vmem:[#allocation2 + $0x1650] sm:$0xff]  ;;  %v485_v55 = vld [vmem:[#allocation2 + $0x15e0] sm:$0xff]  ;;  %2531 = vmatpush.msra.mxu2 %v365_v50  ;;  %2492 = vmatpush.msra.mxu0 %v101_v52 }
  0x30   :  { %2551 = vmatpush.msra.mxu3 %v493_v51  ;;  %v93_v56 = vld [vmem:[#allocation2 + $0x70] sm:$0xff]  ;;  %2512 = vmatpush.msra.mxu1 %v229_v53  ;;  %v85_v60 = vld [vmem:[#allocation2] sm:$0xff] }
  0x31   :  { %v221_v57 = vld [vmem:[#allocation2 + $0x770] sm:$0xff]  ;;  %2532 = vmatpush.msra.mxu2 %v357_v54  ;;  %v213_v61 = vld [vmem:[#allocation2 + $0x700] sm:$0xff]  ;;  %2493 = vmatpush.msra.mxu0 %v93_v56 }
  0x32   :  { %v349_v58 = vld [vmem:[#allocation2 + $0xe70] sm:$0xff]  ;;  %2552 = vmatpush.msra.mxu3 %v485_v55  ;;  %2513 = vmatpush.msra.mxu1 %v221_v57  ;;  %v341_v62 = vld [vmem:[#allocation2 + $0xe00] sm:$0xff] }
  0x33   :  { %v477_v59 = vld [vmem:[#allocation2 + $0x1570] sm:$0xff]  ;;  %v469_v63 = vld [vmem:[#allocation2 + $0x1500] sm:$0xff]  ;;  %2533 = vmatpush.msra.mxu2 %v349_v58  ;;  %2494 = vmatpush.msra.mxu0 %v85_v60 }
  0x34   :  { %2553 = vmatpush.msra.mxu3 %v477_v59  ;;  %v717_v0 = vld [vmem:[#allocation2 + $0x2290] sm:$0xff]  ;;  %2514 = vmatpush.msra.mxu1 %v213_v61  ;;  %v709_v4 = vld [vmem:[#allocation2 + $0x2220] sm:$0xff] }
  0x35   :  { %v845_v1 = vld [vmem:[#allocation2 + $0x2990] sm:$0xff]  ;;  %2534 = vmatpush.msra.mxu2 %v341_v62  ;;  %v837_v5 = vld [vmem:[#allocation2 + $0x2920] sm:$0xff]  ;;  %2559 = vmatpush.msrb.mxu0 %v717_v0 }
  0x36   :  { %v973_v2 = vld [vmem:[#allocation2 + $0x3090] sm:$0xff]  ;;  %2554 = vmatpush.msra.mxu3 %v469_v63  ;;  %2579 = vmatpush.msrb.mxu1 %v845_v1  ;;  %v965_v6 = vld [vmem:[#allocation2 + $0x3020] sm:$0xff] }
  0x37   :  { %v1101_v3 = vld [vmem:[#allocation2 + $0x3790] sm:$0xff]  ;;  %v1093_v7 = vld [vmem:[#allocation2 + $0x3720] sm:$0xff]  ;;  %2599 = vmatpush.msrb.mxu2 %v973_v2  ;;  %2560 = vmatpush.msrb.mxu0 %v709_v4  ;;  %v5745_v2 = vld.sshfl [vmem:[#allocation1] sm:$0xff pattern:$0x73625140] }
  0x38   :  { %2619 = vmatpush.msrb.mxu3 %v1101_v3  ;;  %v701_v8 = vld [vmem:[#allocation2 + $0x21b0] sm:$0xff]  ;;  %2580 = vmatpush.msrb.mxu1 %v837_v5  ;;  %v693_v12 = vld [vmem:[#allocation2 + $0x2140] sm:$0xff]  ;;  %v5749_v4 = vld.sshfl [vmem:[#allocation1 + $0x10] sm:$0xff pattern:$0x73625140] }
  0x39   :  { %v829_v9 = vld [vmem:[#allocation2 + $0x28b0] sm:$0xff]  ;;  %2600 = vmatpush.msrb.mxu2 %v965_v6  ;;  %v821_v13 = vld [vmem:[#allocation2 + $0x2840] sm:$0xff]  ;;  %2561 = vmatpush.msrb.mxu0 %v701_v8  ;;  %v206_v6 = vld [vmem:[#allocation2 + $0x698] sm:$0xff] }
  0x3a   :  { %v957_v10 = vld [vmem:[#allocation2 + $0x2fb0] sm:$0xff]  ;;  %2620 = vmatpush.msrb.mxu3 %v1093_v7  ;;  %2581 = vmatpush.msrb.mxu1 %v829_v9  ;;  %v949_v14 = vld [vmem:[#allocation2 + $0x2f40] sm:$0xff]  ;;  %v334_v7 = vld [vmem:[#allocation2 + $0xd98] sm:$0xff] }
  0x3b   :  { %v1085_v11 = vld [vmem:[#allocation2 + $0x36b0] sm:$0xff]  ;;  %v1077_v15 = vld [vmem:[#allocation2 + $0x3640] sm:$0xff]  ;;  %2601 = vmatpush.msrb.mxu2 %v957_v10  ;;  %2562 = vmatpush.msrb.mxu0 %v693_v12  ;;  %v462_v8 = vld [vmem:[#allocation2 + $0x1498] sm:$0xff] }
  0x3c   :  { %2621 = vmatpush.msrb.mxu3 %v1085_v11  ;;  %v685_v16 = vld [vmem:[#allocation2 + $0x20d0] sm:$0xff]  ;;  %2582 = vmatpush.msrb.mxu1 %v821_v13  ;;  %v677_v20 = vld [vmem:[#allocation2 + $0x2060] sm:$0xff]  ;;  %v590_v9 = vld [vmem:[#allocation2 + $0x1b98] sm:$0xff] }
  0x3d   :  { %v813_v17 = vld [vmem:[#allocation2 + $0x27d0] sm:$0xff]  ;;  %2602 = vmatpush.msrb.mxu2 %v949_v14  ;;  %v805_v21 = vld [vmem:[#allocation2 + $0x2760] sm:$0xff]  ;;  %2563 = vmatpush.msrb.mxu0 %v685_v16  ;;  %v198_v10 = vld [vmem:[#allocation2 + $0x628] sm:$0xff] }
  0x3e   :  { %v941_v18 = vld [vmem:[#allocation2 + $0x2ed0] sm:$0xff]  ;;  %2622 = vmatpush.msrb.mxu3 %v1077_v15  ;;  %2583 = vmatpush.msrb.mxu1 %v813_v17  ;;  %v933_v22 = vld [vmem:[#allocation2 + $0x2e60] sm:$0xff]  ;;  %v326_v11 = vld [vmem:[#allocation2 + $0xd28] sm:$0xff] }
  0x3f   :  { %v1069_v19 = vld [vmem:[#allocation2 + $0x35d0] sm:$0xff]  ;;  %v1061_v23 = vld [vmem:[#allocation2 + $0x3560] sm:$0xff]  ;;  %2603 = vmatpush.msrb.mxu2 %v941_v18  ;;  %2564 = vmatpush.msrb.mxu0 %v677_v20  ;;  %v454_v12 = vld [vmem:[#allocation2 + $0x1428] sm:$0xff] }
  0x40   :  { %2623 = vmatpush.msrb.mxu3 %v1069_v19  ;;  %v669_v24 = vld [vmem:[#allocation2 + $0x1ff0] sm:$0xff]  ;;  %2584 = vmatpush.msrb.mxu1 %v805_v21  ;;  %v661_v29 = vld [vmem:[#allocation2 + $0x1f80] sm:$0xff]  ;;  %v582_v13 = vld [vmem:[#allocation2 + $0x1b28] sm:$0xff] }
  0x41   :  { %v797_v25 = vld [vmem:[#allocation2 + $0x26f0] sm:$0xff]  ;;  %2604 = vmatpush.msrb.mxu2 %v933_v22  ;;  %v789_v30 = vld [vmem:[#allocation2 + $0x2680] sm:$0xff]  ;;  %2565 = vmatpush.msrb.mxu0 %v669_v24  ;;  %v190_v14 = vld [vmem:[#allocation2 + $0x5b8] sm:$0xff] }
  0x42   :  { %v925_v27 = vld [vmem:[#allocation2 + $0x2df0] sm:$0xff]  ;;  %2624 = vmatpush.msrb.mxu3 %v1061_v23  ;;  %2585 = vmatpush.msrb.mxu1 %v797_v25  ;;  %v917_v31 = vld [vmem:[#allocation2 + $0x2d80] sm:$0xff]  ;;  %v318_v15 = vld [vmem:[#allocation2 + $0xcb8] sm:$0xff] }
  0x43   :  { %v1053_v28 = vld [vmem:[#allocation2 + $0x34f0] sm:$0xff]  ;;  %v1045_v32 = vld [vmem:[#allocation2 + $0x3480] sm:$0xff]  ;;  %2605 = vmatpush.msrb.mxu2 %v925_v27  ;;  %2566 = vmatpush.msrb.mxu0 %v661_v29  ;;  %v446_v16 = vld [vmem:[#allocation2 + $0x13b8] sm:$0xff] }
  0x44   :  { %2625 = vmatpush.msrb.mxu3 %v1053_v28  ;;  %v653_v33 = vld [vmem:[#allocation2 + $0x1f10] sm:$0xff]  ;;  %2586 = vmatpush.msrb.mxu1 %v789_v30  ;;  %v645_v37 = vld [vmem:[#allocation2 + $0x1ea0] sm:$0xff]  ;;  %v574_v17 = vld [vmem:[#allocation2 + $0x1ab8] sm:$0xff] }
  0x45   :  { %v781_v34 = vld [vmem:[#allocation2 + $0x2610] sm:$0xff]  ;;  %2606 = vmatpush.msrb.mxu2 %v917_v31  ;;  %v773_v38 = vld [vmem:[#allocation2 + $0x25a0] sm:$0xff]  ;;  %2567 = vmatpush.msrb.mxu0 %v653_v33  ;;  %v182_v18 = vld [vmem:[#allocation2 + $0x548] sm:$0xff] }
  0x46   :  { %v909_v35 = vld [vmem:[#allocation2 + $0x2d10] sm:$0xff]  ;;  %2626 = vmatpush.msrb.mxu3 %v1045_v32  ;;  %v84_v39 = vld [vmem:[%s6128_s0 + $0x8] sm:$0xff]  ;;  %2587 = vmatpush.msrb.mxu1 %v781_v34  ;;  %v310_v19 = vld [vmem:[#allocation2 + $0xc48] sm:$0xff] }
  0x47   :  { %v1037_v36 = vld [vmem:[#allocation2 + $0x3410] sm:$0xff]  ;;  %v901_v40 = vld [vmem:[#allocation2 + $0x2ca0] sm:$0xff]  ;;  %2462 = vst [vmem:[#allocation1 + $0x20] ss:$4 sm:$0xff] %v84_v39  ;;  %2607 = vmatpush.msrb.mxu2 %v909_v35  ;;  %2568 = vmatpush.msrb.mxu0 %v645_v37  ;;  %v438_v20 = vld [vmem:[#allocation2 + $0x1348] sm:$0xff] }
  0x48   :  { %v1029_v41 = vld [vmem:[#allocation2 + $0x33a0] sm:$0xff]  ;;  %2627 = vmatpush.msrb.mxu3 %v1037_v36  ;;  %v637_v42 = vld [vmem:[#allocation2 + $0x1e30] sm:$0xff]  ;;  %2588 = vmatpush.msrb.mxu1 %v773_v38  ;;  %v566_v21 = vld [vmem:[#allocation2 + $0x1a48] sm:$0xff] }
  0x49   :  { %v765_v43 = vld [vmem:[#allocation2 + $0x2530] sm:$0xff]  ;;  %2608 = vmatpush.msrb.mxu2 %v901_v40  ;;  %v629_v46 = vld [vmem:[#allocation2 + $0x1dc0] sm:$0xff]  ;;  %2569 = vmatpush.msrb.mxu0 %v637_v42  ;;  %v174_v23 = vld [vmem:[#allocation2 + $0x4d8] sm:$0xff] }
  0x4a   :  { %v893_v44 = vld [vmem:[#allocation2 + $0x2c30] sm:$0xff]  ;;  %2628 = vmatpush.msrb.mxu3 %v1029_v41  ;;  %v757_v47 = vld [vmem:[#allocation2 + $0x24c0] sm:$0xff]  ;;  %2589 = vmatpush.msrb.mxu1 %v765_v43  ;;  %v302_v24 = vld [vmem:[#allocation2 + $0xbd8] sm:$0xff] }
  0x4b   :  { %v1021_v45 = vld [vmem:[#allocation2 + $0x3330] sm:$0xff]  ;;  %v885_v48 = vld [vmem:[#allocation2 + $0x2bc0] sm:$0xff]  ;;  %2609 = vmatpush.msrb.mxu2 %v893_v44  ;;  %2570 = vmatpush.msrb.mxu0 %v629_v46  ;;  %v430_v25 = vld [vmem:[#allocation2 + $0x12d8] sm:$0xff] }
  0x4c   :  { %v1013_v49 = vld [vmem:[#allocation2 + $0x32c0] sm:$0xff]  ;;  %2629 = vmatpush.msrb.mxu3 %v1021_v45  ;;  %v621_v50 = vld [vmem:[#allocation2 + $0x1d50] sm:$0xff]  ;;  %2590 = vmatpush.msrb.mxu1 %v757_v47  ;;  %v166_v29 = vld [vmem:[#allocation2 + $0x468] sm:$0xff] }
  0x4d   :  { %v749_v51 = vld [vmem:[#allocation2 + $0x2450] sm:$0xff]  ;;  %2610 = vmatpush.msrb.mxu2 %v885_v48  ;;  %v613_v54 = vld [vmem:[#allocation2 + $0x1ce0] sm:$0xff]  ;;  %2571 = vmatpush.msrb.mxu0 %v621_v50  ;;  %v294_v30 = vld [vmem:[#allocation2 + $0xb68] sm:$0xff] }
  0x4e   :  { %v877_v52 = vld [vmem:[#allocation2 + $0x2b50] sm:$0xff]  ;;  %2630 = vmatpush.msrb.mxu3 %v1013_v49  ;;  %v741_v55 = vld [vmem:[#allocation2 + $0x23e0] sm:$0xff]  ;;  %2591 = vmatpush.msrb.mxu1 %v749_v51  ;;  %v5757_v22 = vld.sshfl [vmem:[#allocation1 + $0x30] sm:$0xff pattern:$0x73625140] }
  0x4f   :  { %v1005_v53 = vld [vmem:[#allocation2 + $0x3250] sm:$0xff]  ;;  %v869_v56 = vld [vmem:[#allocation2 + $0x2ae0] sm:$0xff]  ;;  %2611 = vmatpush.msrb.mxu2 %v877_v52  ;;  %2572 = vmatpush.msrb.mxu0 %v613_v54  ;;  %v5759_v27 = vld.sshfl [vmem:[#allocation1 + $0x20] sm:$0xff pattern:$0x73625140] }
  0x50   :  { %v997_v57 = vld [vmem:[#allocation2 + $0x31e0] sm:$0xff]  ;;  %2631 = vmatpush.msrb.mxu3 %v1005_v53  ;;  %v605_v58 = vld [vmem:[#allocation2 + $0x1c70] sm:$0xff]  ;;  %2592 = vmatpush.msrb.mxu1 %v741_v55  ;;  %v422_v31 = vld [vmem:[#allocation2 + $0x1268] sm:$0xff] }
  0x51   :  { %v733_v59 = vld [vmem:[#allocation2 + $0x2370] sm:$0xff]  ;;  %2612 = vmatpush.msrb.mxu2 %v869_v56  ;;  %v597_v62 = vld [vmem:[#allocation2 + $0x1c00] sm:$0xff]  ;;  %2573 = vmatpush.msrb.mxu0 %v605_v58  ;;  %v550_v32 = vld [vmem:[#allocation2 + $0x1968] sm:$0xff] }
  0x52   :  { %v861_v60 = vld [vmem:[#allocation2 + $0x2a70] sm:$0xff]  ;;  %2632 = vmatpush.msrb.mxu3 %v997_v57  ;;  %v725_v63 = vld [vmem:[#allocation2 + $0x2300] sm:$0xff]  ;;  %2593 = vmatpush.msrb.mxu1 %v733_v59  ;;  %v158_v34 = vld [vmem:[#allocation2 + $0x3f8] sm:$0xff] }
  0x53   :  { %v989_v61 = vld [vmem:[#allocation2 + $0x3170] sm:$0xff]  ;;  %v853_v0 = vld [vmem:[#allocation2 + $0x2a00] sm:$0xff]  ;;  %2613 = vmatpush.msrb.mxu2 %v861_v60  ;;  %2574 = vmatpush.msrb.mxu0 %v597_v62  ;;  %v286_v35 = vld [vmem:[#allocation2 + $0xaf8] sm:$0xff] }
  0x54   :  { %v981_v1 = vld [vmem:[#allocation2 + $0x3100] sm:$0xff]  ;;  %2633 = vmatpush.msrb.mxu3 %v989_v61  ;;  %2594 = vmatpush.msrb.mxu1 %v725_v63  ;;  %v5751_v5 = vld.sshfl [vmem:[#allocation1 + $0x18] sm:$0xff pattern:$0x73625140]  ;;  %v414_v36 = vld [vmem:[#allocation2 + $0x11f8] sm:$0xff] }
  0x55   :  { %v5747_v3 = vld.sshfl [vmem:[#allocation1 + $0x8] sm:$0xff pattern:$0x73625140]  ;;  %2614 = vmatpush.msrb.mxu2 %v853_v0  ;;  %2495 = vmatmul.f32.vlgmr.msra.gmra.mxu0 %v5745_v2  ;;  %v5762_v28 = vld.sshfl [vmem:[#allocation1 + $0x38] sm:$0xff pattern:$0x73625140] }
  0x56   :  { %2634 = vmatpush.msrb.mxu3 %v981_v1  ;;  %2515 = vmatmul.f32.vlgmr.msra.gmra.mxu1 %v5747_v3  ;;  %v5765_v33 = vld.sshfl [vmem:[#allocation1 + $0x28] sm:$0xff pattern:$0x73625140]  ;;  %v542_v37 = vld [vmem:[#allocation2 + $0x18f8] sm:$0xff]  ;;  %v150_v38 = vld [vmem:[#allocation2 + $0x388] sm:$0xff] }
  0x57   :  { %2535 = vmatmul.f32.vlgmr.msra.gmra.mxu2 %v5749_v4  ;;  %2555 = vmatmul.f32.vlgmr.msra.gmra.mxu3 %v5751_v5  ;;  %v278_v39 = vld [vmem:[#allocation2 + $0xa88] sm:$0xff]  ;;  %v142_v42 = vld [vmem:[#allocation2 + $0x318] sm:$0xff] }
  0x58   :  { %2639 = vmatpush.msra.mxu0 %v206_v6  ;;  %2659 = vmatpush.msra.mxu1 %v334_v7  ;;  %v406_v40 = vld [vmem:[#allocation2 + $0x1188] sm:$0xff]  ;;  %v270_v43 = vld [vmem:[#allocation2 + $0xa18] sm:$0xff] }
  0x59   :  { %2679 = vmatpush.msra.mxu2 %v462_v8  ;;  %2699 = vmatpush.msra.mxu3 %v590_v9  ;;  %v534_v41 = vld [vmem:[#allocation2 + $0x1888] sm:$0xff]  ;;  %v398_v44 = vld [vmem:[#allocation2 + $0x1118] sm:$0xff] }
  0x5a   :  { %2640 = vmatpush.msra.mxu0 %v198_v10  ;;  %2660 = vmatpush.msra.mxu1 %v326_v11  ;;  %v526_v45 = vld [vmem:[#allocation2 + $0x1818] sm:$0xff]  ;;  %v134_v46 = vld [vmem:[#allocation2 + $0x2a8] sm:$0xff] }
  0x5b   :  { %2680 = vmatpush.msra.mxu2 %v454_v12  ;;  %2700 = vmatpush.msra.mxu3 %v582_v13  ;;  %v262_v47 = vld [vmem:[#allocation2 + $0x9a8] sm:$0xff]  ;;  %v126_v50 = vld [vmem:[#allocation2 + $0x238] sm:$0xff] }
  0x5c   :  { %2641 = vmatpush.msra.mxu0 %v190_v14  ;;  %2661 = vmatpush.msra.mxu1 %v318_v15  ;;  %v390_v48 = vld [vmem:[#allocation2 + $0x10a8] sm:$0xff]  ;;  %v254_v51 = vld [vmem:[#allocation2 + $0x938] sm:$0xff] }
  0x5d   :  { %2681 = vmatpush.msra.mxu2 %v446_v16  ;;  %2701 = vmatpush.msra.mxu3 %v574_v17  ;;  %v518_v49 = vld [vmem:[#allocation2 + $0x17a8] sm:$0xff]  ;;  %v382_v52 = vld [vmem:[#allocation2 + $0x1038] sm:$0xff] }
  0x5e   :  { %2642 = vmatpush.msra.mxu0 %v182_v18  ;;  %2662 = vmatpush.msra.mxu1 %v310_v19  ;;  %v510_v53 = vld [vmem:[#allocation2 + $0x1738] sm:$0xff]  ;;  %v118_v54 = vld [vmem:[#allocation2 + $0x1c8] sm:$0xff] }
  0x5f   :  { %2682 = vmatpush.msra.mxu2 %v438_v20  ;;  %2702 = vmatpush.msra.mxu3 %v566_v21  ;;  %v246_v55 = vld [vmem:[#allocation2 + $0x8c8] sm:$0xff]  ;;  %v110_v58 = vld [vmem:[#allocation2 + $0x158] sm:$0xff] }
  0x60   :  { %2615 = vmatmul.f32.vlgmr.msrb.gmra.mxu2 %v5757_v22  ;;  %2643 = vmatpush.msra.mxu0 %v174_v23  ;;  %v374_v56 = vld [vmem:[#allocation2 + $0xfc8] sm:$0xff]  ;;  %v238_v59 = vld [vmem:[#allocation2 + $0x858] sm:$0xff] }
  0x61   :  { %2663 = vmatpush.msra.mxu1 %v302_v24  ;;  %2683 = vmatpush.msra.mxu2 %v430_v25  ;;  %v502_v57 = vld [vmem:[#allocation2 + $0x16c8] sm:$0xff]  ;;  %v366_v60 = vld [vmem:[#allocation2 + $0xf58] sm:$0xff] }
  0x62   :  { %2703 = vmatpush.msra.mxu3 %v558_v26  ;;  %2575 = vmatmul.f32.vlgmr.msrb.gmra.mxu0 %v5759_v27  ;;  %v494_v61 = vld [vmem:[#allocation2 + $0x1658] sm:$0xff]  ;;  %v102_v62 = vld [vmem:[#allocation2 + $0xe8] sm:$0xff] }
  0x63   :  { %2635 = vmatmul.f32.vlgmr.msrb.gmra.mxu3 %v5762_v28  ;;  %2644 = vmatpush.msra.mxu0 %v166_v29  ;;  %v230_v63 = vld [vmem:[#allocation2 + $0x7e8] sm:$0xff]  ;;  %v94_v6 = vld [vmem:[#allocation2 + $0x78] sm:$0xff] }
  0x64   :  { %2664 = vmatpush.msra.mxu1 %v294_v30  ;;  %2684 = vmatpush.msra.mxu2 %v422_v31  ;;  %v358_v0 = vld [vmem:[#allocation2 + $0xee8] sm:$0xff]  ;;  %v222_v7 = vld [vmem:[#allocation2 + $0x778] sm:$0xff] }
  0x65   :  { %2704 = vmatpush.msra.mxu3 %v550_v32  ;;  %2595 = vmatmul.f32.vlgmr.msrb.gmra.mxu1 %v5765_v33  ;;  %v486_v1 = vld [vmem:[#allocation2 + $0x15e8] sm:$0xff]  ;;  %v350_v8 = vld [vmem:[#allocation2 + $0xe78] sm:$0xff] }
  0x66   :  { %2645 = vmatpush.msra.mxu0 %v158_v34  ;;  %2665 = vmatpush.msra.mxu1 %v286_v35  ;;  %v478_v9 = vld [vmem:[#allocation2 + $0x1578] sm:$0xff]  ;;  %v86_v10 = vld [vmem:[#allocation2 + $0x8] sm:$0xff] }
  0x67   :  { %2685 = vmatpush.msra.mxu2 %v414_v36  ;;  %2705 = vmatpush.msra.mxu3 %v542_v37  ;;  %v214_v11 = vld [vmem:[#allocation2 + $0x708] sm:$0xff]  ;;  %v718_v14 = vld [vmem:[#allocation2 + $0x2298] sm:$0xff] }
  0x68   :  { %2646 = vmatpush.msra.mxu0 %v150_v38  ;;  %2666 = vmatpush.msra.mxu1 %v278_v39  ;;  %v342_v12 = vld [vmem:[#allocation2 + $0xe08] sm:$0xff]  ;;  %v846_v15 = vld [vmem:[#allocation2 + $0x2998] sm:$0xff] }
  0x69   :  { %2686 = vmatpush.msra.mxu2 %v406_v40  ;;  %2706 = vmatpush.msra.mxu3 %v534_v41  ;;  %v470_v13 = vld [vmem:[#allocation2 + $0x1508] sm:$0xff]  ;;  %v974_v16 = vld [vmem:[#allocation2 + $0x3098] sm:$0xff] }
  0x6a   :  { %2647 = vmatpush.msra.mxu0 %v142_v42  ;;  %2667 = vmatpush.msra.mxu1 %v270_v43  ;;  %v1102_v17 = vld [vmem:[#allocation2 + $0x3798] sm:$0xff]  ;;  %v710_v18 = vld [vmem:[#allocation2 + $0x2228] sm:$0xff] }
  0x6b   :  { %2687 = vmatpush.msra.mxu2 %v398_v44  ;;  %2707 = vmatpush.msra.mxu3 %v526_v45  ;;  %v838_v19 = vld [vmem:[#allocation2 + $0x2928] sm:$0xff]  ;;  %v702_v23 = vld [vmem:[#allocation2 + $0x21b8] sm:$0xff] }
  0x6c   :  { %2648 = vmatpush.msra.mxu0 %v134_v46  ;;  %2668 = vmatpush.msra.mxu1 %v262_v47  ;;  %v966_v20 = vld [vmem:[#allocation2 + $0x3028] sm:$0xff]  ;;  %v830_v24 = vld [vmem:[#allocation2 + $0x28b8] sm:$0xff] }
  0x6d   :  { %2688 = vmatpush.msra.mxu2 %v390_v48  ;;  %2708 = vmatpush.msra.mxu3 %v518_v49  ;;  %v1094_v21 = vld [vmem:[#allocation2 + $0x3728] sm:$0xff]  ;;  %v958_v25 = vld [vmem:[#allocation2 + $0x2fb8] sm:$0xff] }
  0x6e   :  { %2649 = vmatpush.msra.mxu0 %v126_v50  ;;  %2669 = vmatpush.msra.mxu1 %v254_v51  ;;  %v1086_v26 = vld [vmem:[#allocation2 + $0x36b8] sm:$0xff]  ;;  %v694_v29 = vld [vmem:[#allocation2 + $0x2148] sm:$0xff] }
  0x6f   :  { %2689 = vmatpush.msra.mxu2 %v382_v52  ;;  %2709 = vmatpush.msra.mxu3 %v510_v53  ;;  %v822_v30 = vld [vmem:[#allocation2 + $0x2848] sm:$0xff]  ;;  %v686_v34 = vld [vmem:[#allocation2 + $0x20d8] sm:$0xff] }
  0x70   :  { %2650 = vmatpush.msra.mxu0 %v118_v54  ;;  %2670 = vmatpush.msra.mxu1 %v246_v55  ;;  %v950_v31 = vld [vmem:[#allocation2 + $0x2f48] sm:$0xff]  ;;  %v814_v35 = vld [vmem:[#allocation2 + $0x27d8] sm:$0xff] }
  0x71   :  { %2690 = vmatpush.msra.mxu2 %v374_v56  ;;  %2710 = vmatpush.msra.mxu3 %v502_v57  ;;  %v1078_v32 = vld [vmem:[#allocation2 + $0x3648] sm:$0xff]  ;;  %v942_v36 = vld [vmem:[#allocation2 + $0x2ed8] sm:$0xff] }
  0x72   :  { %2651 = vmatpush.msra.mxu0 %v110_v58  ;;  %2671 = vmatpush.msra.mxu1 %v238_v59  ;;  %v1070_v37 = vld [vmem:[#allocation2 + $0x35d8] sm:$0xff]  ;;  %v678_v38 = vld [vmem:[#allocation2 + $0x2068] sm:$0xff] }
  0x73   :  { %2691 = vmatpush.msra.mxu2 %v366_v60  ;;  %2711 = vmatpush.msra.mxu3 %v494_v61  ;;  %v806_v39 = vld [vmem:[#allocation2 + $0x2768] sm:$0xff]  ;;  %v670_v42 = vld [vmem:[#allocation2 + $0x1ff8] sm:$0xff] }
  0x74   :  { %2652 = vmatpush.msra.mxu0 %v102_v62  ;;  %2672 = vmatpush.msra.mxu1 %v230_v63  ;;  %v934_v40 = vld [vmem:[#allocation2 + $0x2e68] sm:$0xff]  ;;  %v798_v43 = vld [vmem:[#allocation2 + $0x26f8] sm:$0xff] }
  0x75   :  { %2692 = vmatpush.msra.mxu2 %v358_v0  ;;  %2712 = vmatpush.msra.mxu3 %v486_v1  ;;  %v1062_v41 = vld [vmem:[#allocation2 + $0x3568] sm:$0xff]  ;;  %v926_v44 = vld [vmem:[#allocation2 + $0x2df8] sm:$0xff] }
  0x76   :  { %2653 = vmatpush.msra.mxu0 %v94_v6  ;;  %2673 = vmatpush.msra.mxu1 %v222_v7  ;;  %v1054_v45 = vld [vmem:[#allocation2 + $0x34f8] sm:$0xff]  ;;  %v662_v46 = vld [vmem:[#allocation2 + $0x1f88] sm:$0xff] }
  0x77   :  { %2693 = vmatpush.msra.mxu2 %v350_v8  ;;  %2713 = vmatpush.msra.mxu3 %v478_v9  ;;  %v790_v47 = vld [vmem:[#allocation2 + $0x2688] sm:$0xff]  ;;  %v654_v50 = vld [vmem:[#allocation2 + $0x1f18] sm:$0xff] }
  0x78   :  { %2654 = vmatpush.msra.mxu0 %v86_v10  ;;  %2674 = vmatpush.msra.mxu1 %v214_v11  ;;  %v918_v48 = vld [vmem:[#allocation2 + $0x2d88] sm:$0xff]  ;;  %v782_v51 = vld [vmem:[#allocation2 + $0x2618] sm:$0xff] }
  0x79   :  { %2694 = vmatpush.msra.mxu2 %v342_v12  ;;  %2714 = vmatpush.msra.mxu3 %v470_v13  ;;  %v1046_v49 = vld [vmem:[#allocation2 + $0x3488] sm:$0xff]  ;;  %v910_v52 = vld [vmem:[#allocation2 + $0x2d18] sm:$0xff] }
  0x7a   :  { %2719 = vmatpush.msrb.mxu0 %v718_v14  ;;  %2739 = vmatpush.msrb.mxu1 %v846_v15  ;;  %v1038_v53 = vld [vmem:[#allocation2 + $0x3418] sm:$0xff]  ;;  %v646_v54 = vld [vmem:[#allocation2 + $0x1ea8] sm:$0xff] }
  0x7b   :  { %2759 = vmatpush.msrb.mxu2 %v974_v16  ;;  %2779 = vmatpush.msrb.mxu3 %v1102_v17  ;;  %v774_v55 = vld [vmem:[#allocation2 + $0x25a8] sm:$0xff]  ;;  %v638_v58 = vld [vmem:[#allocation2 + $0x1e38] sm:$0xff] }
  0x7c   :  { %2720 = vmatpush.msrb.mxu0 %v710_v18  ;;  %2740 = vmatpush.msrb.mxu1 %v838_v19  ;;  %v902_v56 = vld [vmem:[#allocation2 + $0x2ca8] sm:$0xff]  ;;  %v766_v59 = vld [vmem:[#allocation2 + $0x2538] sm:$0xff] }
  0x7d   :  { %2760 = vmatpush.msrb.mxu2 %v966_v20  ;;  %2780 = vmatpush.msrb.mxu3 %v1094_v21  ;;  %v1030_v57 = vld [vmem:[#allocation2 + $0x33a8] sm:$0xff]  ;;  %v894_v60 = vld [vmem:[#allocation2 + $0x2c38] sm:$0xff] }
  0x7e   :  { %2721 = vmatpush.msrb.mxu0 %v702_v23  ;;  %2741 = vmatpush.msrb.mxu1 %v830_v24  ;;  %v1022_v61 = vld [vmem:[#allocation2 + $0x3338] sm:$0xff]  ;;  %v630_v62 = vld [vmem:[#allocation2 + $0x1dc8] sm:$0xff]  ;;  %v207_v23 = vld [vmem:[#allocation2 + $0x6a0] sm:$0xff] }
  0x7f   :  { %2761 = vmatpush.msrb.mxu2 %v958_v25  ;;  %2781 = vmatpush.msrb.mxu3 %v1086_v26  ;;  %v758_v63 = vld [vmem:[#allocation2 + $0x24c8] sm:$0xff]  ;;  %v622_v6 = vld [vmem:[#allocation2 + $0x1d58] sm:$0xff]  ;;  %v335_v24 = vld [vmem:[#allocation2 + $0xda0] sm:$0xff] }
  0x80   :  { %2722 = vmatpush.msrb.mxu0 %v694_v29  ;;  %2742 = vmatpush.msrb.mxu1 %v822_v30  ;;  %v886_v0 = vld [vmem:[#allocation2 + $0x2bc8] sm:$0xff]  ;;  %v750_v7 = vld [vmem:[#allocation2 + $0x2458] sm:$0xff]  ;;  %v463_v25 = vld [vmem:[#allocation2 + $0x14a0] sm:$0xff] }
  0x81   :  { %2762 = vmatpush.msrb.mxu2 %v950_v31  ;;  %2782 = vmatpush.msrb.mxu3 %v1078_v32  ;;  %v1014_v1 = vld [vmem:[#allocation2 + $0x32c8] sm:$0xff]  ;;  %v878_v8 = vld [vmem:[#allocation2 + $0x2b58] sm:$0xff]  ;;  %v591_v26 = vld [vmem:[#allocation2 + $0x1ba0] sm:$0xff] }
  0x82   :  { %2723 = vmatpush.msrb.mxu0 %v686_v34  ;;  %2743 = vmatpush.msrb.mxu1 %v814_v35  ;;  %v1006_v9 = vld [vmem:[#allocation2 + $0x3258] sm:$0xff]  ;;  %v614_v10 = vld [vmem:[#allocation2 + $0x1ce8] sm:$0xff]  ;;  %v199_v29 = vld [vmem:[#allocation2 + $0x630] sm:$0xff] }
  0x83   :  { %2763 = vmatpush.msrb.mxu2 %v942_v36  ;;  %2783 = vmatpush.msrb.mxu3 %v1070_v37  ;;  %v742_v11 = vld [vmem:[#allocation2 + $0x23e8] sm:$0xff]  ;;  %v606_v14 = vld [vmem:[#allocation2 + $0x1c78] sm:$0xff]  ;;  %v327_v30 = vld [vmem:[#allocation2 + $0xd30] sm:$0xff] }
  0x84   :  { %2724 = vmatpush.msrb.mxu0 %v678_v38  ;;  %2744 = vmatpush.msrb.mxu1 %v806_v39  ;;  %v870_v12 = vld [vmem:[#allocation2 + $0x2ae8] sm:$0xff]  ;;  %v734_v15 = vld [vmem:[#allocation2 + $0x2378] sm:$0xff]  ;;  %v455_v31 = vld [vmem:[#allocation2 + $0x1430] sm:$0xff] }
  0x85   :  { %2764 = vmatpush.msrb.mxu2 %v934_v40  ;;  %2784 = vmatpush.msrb.mxu3 %v1062_v41  ;;  %v998_v13 = vld [vmem:[#allocation2 + $0x31e8] sm:$0xff]  ;;  %v862_v16 = vld [vmem:[#allocation2 + $0x2a78] sm:$0xff]  ;;  %v583_v32 = vld [vmem:[#allocation2 + $0x1b30] sm:$0xff] }
  0x86   :  { %2725 = vmatpush.msrb.mxu0 %v670_v42  ;;  %2745 = vmatpush.msrb.mxu1 %v798_v43  ;;  %v990_v17 = vld [vmem:[#allocation2 + $0x3178] sm:$0xff]  ;;  %v598_v18 = vld [vmem:[#allocation2 + $0x1c08] sm:$0xff]  ;;  %v191_v34 = vld [vmem:[#allocation2 + $0x5c0] sm:$0xff] }
  0x87   :  { %2765 = vmatpush.msrb.mxu2 %v926_v44  ;;  %2785 = vmatpush.msrb.mxu3 %v1054_v45  ;;  %v726_v19 = vld [vmem:[#allocation2 + $0x2308] sm:$0xff]  ;;  %v319_v35 = vld [vmem:[#allocation2 + $0xcc0] sm:$0xff]  ;;  %v183_v36 = vld [vmem:[#allocation2 + $0x550] sm:$0xff] }
  0x88   :  { %2726 = vmatpush.msrb.mxu0 %v662_v46  ;;  %2746 = vmatpush.msrb.mxu1 %v790_v47  ;;  %v854_v20 = vld [vmem:[#allocation2 + $0x2a08] sm:$0xff]  ;;  %v567_v37 = vld [vmem:[#allocation2 + $0x1a50] sm:$0xff]  ;;  %v175_v38 = vld [vmem:[#allocation2 + $0x4e0] sm:$0xff] }
  0x89   :  { %2766 = vmatpush.msrb.mxu2 %v918_v48  ;;  %2786 = vmatpush.msrb.mxu3 %v1046_v49  ;;  %v982_v21 = vld [vmem:[#allocation2 + $0x3108] sm:$0xff]  ;;  %v303_v39 = vld [vmem:[#allocation2 + $0xbe0] sm:$0xff]  ;;  %v167_v42 = vld [vmem:[#allocation2 + $0x470] sm:$0xff] }
  0x8a   :  { %2727 = vmatpush.msrb.mxu0 %v654_v50  ;;  %2747 = vmatpush.msrb.mxu1 %v782_v51  ;;  %v431_v40 = vld [vmem:[#allocation2 + $0x12e0] sm:$0xff]  ;;  %v295_v43 = vld [vmem:[#allocation2 + $0xb70] sm:$0xff] }
  0x8b   :  { %2767 = vmatpush.msrb.mxu2 %v910_v52  ;;  %2787 = vmatpush.msrb.mxu3 %v1038_v53  ;;  %v559_v41 = vld [vmem:[#allocation2 + $0x19e0] sm:$0xff]  ;;  %v423_v44 = vld [vmem:[#allocation2 + $0x1270] sm:$0xff] }
  0x8c   :  { %2728 = vmatpush.msrb.mxu0 %v646_v54  ;;  %2748 = vmatpush.msrb.mxu1 %v774_v55  ;;  %v551_v45 = vld [vmem:[#allocation2 + $0x1970] sm:$0xff]  ;;  %v159_v46 = vld [vmem:[#allocation2 + $0x400] sm:$0xff] }
  0x8d   :  { %2768 = vmatpush.msrb.mxu2 %v902_v56  ;;  %2788 = vmatpush.msrb.mxu3 %v1030_v57  ;;  %v287_v47 = vld [vmem:[#allocation2 + $0xb00] sm:$0xff]  ;;  %v279_v50 = vld [vmem:[#allocation2 + $0xa90] sm:$0xff] }
  0x8e   :  { %2729 = vmatpush.msrb.mxu0 %v638_v58  ;;  %2749 = vmatpush.msrb.mxu1 %v766_v59  ;;  %v415_v48 = vld [vmem:[#allocation2 + $0x1200] sm:$0xff]  ;;  %v407_v51 = vld [vmem:[#allocation2 + $0x1190] sm:$0xff] }
  0x8f   :  { %2769 = vmatpush.msrb.mxu2 %v894_v60  ;;  %2789 = vmatpush.msrb.mxu3 %v1022_v61  ;;  %v543_v49 = vld [vmem:[#allocation2 + $0x1900] sm:$0xff]  ;;  %v535_v52 = vld [vmem:[#allocation2 + $0x1890] sm:$0xff] }
  0x90   :  { %2730 = vmatpush.msrb.mxu0 %v630_v62  ;;  %2750 = vmatpush.msrb.mxu1 %v758_v63  ;;  %v399_v53 = vld [vmem:[#allocation2 + $0x1120] sm:$0xff]  ;;  %v135_v55 = vld [vmem:[#allocation2 + $0x2b0] sm:$0xff] }
  0x91   :  { %2770 = vmatpush.msrb.mxu2 %v886_v0  ;;  %2790 = vmatpush.msrb.mxu3 %v1014_v1  ;;  %v527_v54 = vld [vmem:[#allocation2 + $0x1820] sm:$0xff]  ;;  %v263_v56 = vld [vmem:[#allocation2 + $0x9b0] sm:$0xff] }
  0x92   :  { %2731 = vmatpush.msrb.mxu0 %v622_v6  ;;  %2751 = vmatpush.msrb.mxu1 %v750_v7  ;;  %v519_v57 = vld [vmem:[#allocation2 + $0x17b0] sm:$0xff]  ;;  %v127_v58 = vld [vmem:[#allocation2 + $0x240] sm:$0xff] }
  0x93   :  { %2771 = vmatpush.msrb.mxu2 %v878_v8  ;;  %2791 = vmatpush.msrb.mxu3 %v1006_v9  ;;  %v255_v59 = vld [vmem:[#allocation2 + $0x940] sm:$0xff]  ;;  %v119_v62 = vld [vmem:[#allocation2 + $0x1d0] sm:$0xff] }
  0x94   :  { %2732 = vmatpush.msrb.mxu0 %v614_v10  ;;  %2752 = vmatpush.msrb.mxu1 %v742_v11  ;;  %v383_v60 = vld [vmem:[#allocation2 + $0x1040] sm:$0xff]  ;;  %v247_v63 = vld [vmem:[#allocation2 + $0x8d0] sm:$0xff] }
  0x95   :  { %2772 = vmatpush.msrb.mxu2 %v870_v12  ;;  %2792 = vmatpush.msrb.mxu3 %v998_v13  ;;  %v511_v61 = vld [vmem:[#allocation2 + $0x1740] sm:$0xff]  ;;  %v375_v0 = vld [vmem:[#allocation2 + $0xfd0] sm:$0xff] }
  0x96   :  { %2733 = vmatpush.msrb.mxu0 %v606_v14  ;;  %2753 = vmatpush.msrb.mxu1 %v734_v15  ;;  %v503_v1 = vld [vmem:[#allocation2 + $0x16d0] sm:$0xff]  ;;  %v111_v6 = vld [vmem:[#allocation2 + $0x160] sm:$0xff] }
  0x97   :  { %2773 = vmatpush.msrb.mxu2 %v862_v16  ;;  %2793 = vmatpush.msrb.mxu3 %v990_v17  ;;  %v239_v7 = vld [vmem:[#allocation2 + $0x860] sm:$0xff]  ;;  %v103_v10 = vld [vmem:[#allocation2 + $0xf0] sm:$0xff] }
  0x98   :  { %2734 = vmatpush.msrb.mxu0 %v598_v18  ;;  %2754 = vmatpush.msrb.mxu1 %v726_v19  ;;  %v367_v8 = vld [vmem:[#allocation2 + $0xf60] sm:$0xff]  ;;  %v231_v11 = vld [vmem:[#allocation2 + $0x7f0] sm:$0xff] }
  0x99   :  { %2774 = vmatpush.msrb.mxu2 %v854_v20  ;;  %2794 = vmatpush.msrb.mxu3 %v982_v21  ;;  %v495_v9 = vld [vmem:[#allocation2 + $0x1660] sm:$0xff]  ;;  %v359_v12 = vld [vmem:[#allocation2 + $0xef0] sm:$0xff] }
  0x9a   :  { %2655 = vmatmul.f32.vlgmr.msra.gmra.mxu0 %v5745_v2  ;;  %2675 = vmatmul.f32.vlgmr.msra.gmra.mxu1 %v5747_v3  ;;  %v447_v2 = vld [vmem:[#allocation2 + $0x13c0] sm:$0xff]  ;;  %v487_v13 = vld [vmem:[#allocation2 + $0x15f0] sm:$0xff] }
  0x9b   :  { %2695 = vmatmul.f32.vlgmr.msra.gmra.mxu2 %v5749_v4  ;;  %2715 = vmatmul.f32.vlgmr.msra.gmra.mxu3 %v5751_v5  ;;  %v575_v3 = vld [vmem:[#allocation2 + $0x1ac0] sm:$0xff]  ;;  %v311_v4 = vld [vmem:[#allocation2 + $0xc50] sm:$0xff] }
  0x9c   :  { %2799 = vmatpush.msra.mxu0 %v207_v23  ;;  %2819 = vmatpush.msra.mxu1 %v335_v24  ;;  %v439_v5 = vld [vmem:[#allocation2 + $0x1350] sm:$0xff]  ;;  %v95_v14 = vld [vmem:[#allocation2 + $0x80] sm:$0xff] }
  0x9d   :  { %2839 = vmatpush.msra.mxu2 %v463_v25  ;;  %2859 = vmatpush.msra.mxu3 %v591_v26  ;;  %v223_v15 = vld [vmem:[#allocation2 + $0x780] sm:$0xff]  ;;  %v87_v18 = vld [vmem:[#allocation2 + $0x10] sm:$0xff] }
  0x9e   :  { %2800 = vmatpush.msra.mxu0 %v199_v29  ;;  %2820 = vmatpush.msra.mxu1 %v327_v30  ;;  %v351_v16 = vld [vmem:[#allocation2 + $0xe80] sm:$0xff]  ;;  %v215_v19 = vld [vmem:[#allocation2 + $0x710] sm:$0xff] }
  0x9f   :  { %2840 = vmatpush.msra.mxu2 %v455_v31  ;;  %2860 = vmatpush.msra.mxu3 %v583_v32  ;;  %v479_v17 = vld [vmem:[#allocation2 + $0x1580] sm:$0xff]  ;;  %v343_v20 = vld [vmem:[#allocation2 + $0xe10] sm:$0xff] }
  0xa0   :  { %2801 = vmatpush.msra.mxu0 %v191_v34  ;;  %2821 = vmatpush.msra.mxu1 %v319_v35  ;;  %v471_v21 = vld [vmem:[#allocation2 + $0x1510] sm:$0xff]  ;;  %v719_v23 = vld [vmem:[#allocation2 + $0x22a0] sm:$0xff] }
  0xa1   :  { %2841 = vmatpush.msra.mxu2 %v447_v2  ;;  %2861 = vmatpush.msra.mxu3 %v575_v3  ;;  %v847_v24 = vld [vmem:[#allocation2 + $0x29a0] sm:$0xff]  ;;  %v711_v29 = vld [vmem:[#allocation2 + $0x2230] sm:$0xff] }
  0xa2   :  { %2802 = vmatpush.msra.mxu0 %v183_v36  ;;  %2822 = vmatpush.msra.mxu1 %v311_v4  ;;  %v975_v25 = vld [vmem:[#allocation2 + $0x30a0] sm:$0xff]  ;;  %v839_v30 = vld [vmem:[#allocation2 + $0x2930] sm:$0xff] }
  0xa3   :  { %2842 = vmatpush.msra.mxu2 %v439_v5  ;;  %2862 = vmatpush.msra.mxu3 %v567_v37  ;;  %v1103_v26 = vld [vmem:[#allocation2 + $0x37a0] sm:$0xff]  ;;  %v967_v31 = vld [vmem:[#allocation2 + $0x3030] sm:$0xff] }
  0xa4   :  { %2775 = vmatmul.f32.vlgmr.msrb.gmra.mxu2 %v5757_v22  ;;  %2803 = vmatpush.msra.mxu0 %v175_v38  ;;  %v151_v22 = vld [vmem:[#allocation2 + $0x390] sm:$0xff]  ;;  %v703_v34 = vld [vmem:[#allocation2 + $0x21c0] sm:$0xff] }
  0xa5   :  { %2823 = vmatpush.msra.mxu1 %v303_v39  ;;  %2843 = vmatpush.msra.mxu2 %v431_v40  ;;  %v1095_v32 = vld [vmem:[#allocation2 + $0x3730] sm:$0xff]  ;;  %v831_v35 = vld [vmem:[#allocation2 + $0x28c0] sm:$0xff] }
  0xa6   :  { %2863 = vmatpush.msra.mxu3 %v559_v41  ;;  %2735 = vmatmul.f32.vlgmr.msrb.gmra.mxu0 %v5759_v27  ;;  %v143_v27 = vld [vmem:[#allocation2 + $0x320] sm:$0xff]  ;;  %v695_v36 = vld [vmem:[#allocation2 + $0x2150] sm:$0xff] }
  0xa7   :  { %2795 = vmatmul.f32.vlgmr.msrb.gmra.mxu3 %v5762_v28  ;;  %2804 = vmatpush.msra.mxu0 %v167_v42  ;;  %v271_v28 = vld [vmem:[#allocation2 + $0xa20] sm:$0xff]  ;;  %v823_v4 = vld [vmem:[#allocation2 + $0x2850] sm:$0xff] }
  0xa8   :  { %2824 = vmatpush.msra.mxu1 %v295_v43  ;;  %2844 = vmatpush.msra.mxu2 %v423_v44  ;;  %v959_v2 = vld [vmem:[#allocation2 + $0x2fc0] sm:$0xff]  ;;  %v951_v5 = vld [vmem:[#allocation2 + $0x2f50] sm:$0xff] }
  0xa9   :  { %2864 = vmatpush.msra.mxu3 %v551_v45  ;;  %2755 = vmatmul.f32.vlgmr.msrb.gmra.mxu1 %v5765_v33  ;;  %v391_v33 = vld [vmem:[#allocation2 + $0x10b0] sm:$0xff]  ;;  %v1087_v3 = vld [vmem:[#allocation2 + $0x36c0] sm:$0xff] }
  0xaa   :  { %2805 = vmatpush.msra.mxu0 %v159_v46  ;;  %2825 = vmatpush.msra.mxu1 %v287_v47  ;;  %v1079_v37 = vld [vmem:[#allocation2 + $0x3650] sm:$0xff]  ;;  %v687_v38 = vld [vmem:[#allocation2 + $0x20e0] sm:$0xff] }
  0xab   :  { %2845 = vmatpush.msra.mxu2 %v415_v48  ;;  %2865 = vmatpush.msra.mxu3 %v543_v49  ;;  %v815_v39 = vld [vmem:[#allocation2 + $0x27e0] sm:$0xff]  ;;  %v679_v42 = vld [vmem:[#allocation2 + $0x2070] sm:$0xff] }
  0xac   :  { %2806 = vmatpush.msra.mxu0 %v151_v22  ;;  %2826 = vmatpush.msra.mxu1 %v279_v50  ;;  %v943_v40 = vld [vmem:[#allocation2 + $0x2ee0] sm:$0xff]  ;;  %v807_v43 = vld [vmem:[#allocation2 + $0x2770] sm:$0xff] }
  0xad   :  { %2846 = vmatpush.msra.mxu2 %v407_v51  ;;  %2866 = vmatpush.msra.mxu3 %v535_v52  ;;  %v1071_v41 = vld [vmem:[#allocation2 + $0x35e0] sm:$0xff]  ;;  %v935_v44 = vld [vmem:[#allocation2 + $0x2e70] sm:$0xff] }
  0xae   :  { %2807 = vmatpush.msra.mxu0 %v143_v27  ;;  %2827 = vmatpush.msra.mxu1 %v271_v28  ;;  %v1063_v45 = vld [vmem:[#allocation2 + $0x3570] sm:$0xff]  ;;  %v671_v46 = vld [vmem:[#allocation2 + $0x2000] sm:$0xff] }
  0xaf   :  { %2847 = vmatpush.msra.mxu2 %v399_v53  ;;  %2867 = vmatpush.msra.mxu3 %v527_v54  ;;  %v799_v47 = vld [vmem:[#allocation2 + $0x2700] sm:$0xff]  ;;  %v663_v22 = vld [vmem:[#allocation2 + $0x1f90] sm:$0xff] }
  0xb0   :  { %2808 = vmatpush.msra.mxu0 %v135_v55  ;;  %2828 = vmatpush.msra.mxu1 %v263_v56  ;;  %v927_v48 = vld [vmem:[#allocation2 + $0x2e00] sm:$0xff]  ;;  %v791_v50 = vld [vmem:[#allocation2 + $0x2690] sm:$0xff] }
  0xb1   :  { %2848 = vmatpush.msra.mxu2 %v391_v33  ;;  %2868 = vmatpush.msra.mxu3 %v519_v57  ;;  %v1055_v49 = vld [vmem:[#allocation2 + $0x3500] sm:$0xff]  ;;  %v919_v51 = vld [vmem:[#allocation2 + $0x2d90] sm:$0xff] }
  0xb2   :  { %2809 = vmatpush.msra.mxu0 %v127_v58  ;;  %2829 = vmatpush.msra.mxu1 %v255_v59  ;;  %v1047_v52 = vld [vmem:[#allocation2 + $0x3490] sm:$0xff]  ;;  %v655_v27 = vld [vmem:[#allocation2 + $0x1f20] sm:$0xff] }
  0xb3   :  { %2849 = vmatpush.msra.mxu2 %v383_v60  ;;  %2869 = vmatpush.msra.mxu3 %v511_v61  ;;  %v783_v28 = vld [vmem:[#allocation2 + $0x2620] sm:$0xff]  ;;  %v647_v55 = vld [vmem:[#allocation2 + $0x1eb0] sm:$0xff] }
  0xb4   :  { %2810 = vmatpush.msra.mxu0 %v119_v62  ;;  %2830 = vmatpush.msra.mxu1 %v247_v63  ;;  %v911_v53 = vld [vmem:[#allocation2 + $0x2d20] sm:$0xff]  ;;  %v775_v56 = vld [vmem:[#allocation2 + $0x25b0] sm:$0xff] }
  0xb5   :  { %2850 = vmatpush.msra.mxu2 %v375_v0  ;;  %2870 = vmatpush.msra.mxu3 %v503_v1  ;;  %v1039_v54 = vld [vmem:[#allocation2 + $0x3420] sm:$0xff]  ;;  %v903_v33 = vld [vmem:[#allocation2 + $0x2cb0] sm:$0xff] }
  0xb6   :  { %2811 = vmatpush.msra.mxu0 %v111_v6  ;;  %2831 = vmatpush.msra.mxu1 %v239_v7  ;;  %v1031_v57 = vld [vmem:[#allocation2 + $0x33b0] sm:$0xff]  ;;  %v639_v58 = vld [vmem:[#allocation2 + $0x1e40] sm:$0xff] }
  0xb7   :  { %2851 = vmatpush.msra.mxu2 %v367_v8  ;;  %2871 = vmatpush.msra.mxu3 %v495_v9  ;;  %v767_v59 = vld [vmem:[#allocation2 + $0x2540] sm:$0xff]  ;;  %v631_v62 = vld [vmem:[#allocation2 + $0x1dd0] sm:$0xff] }
  0xb8   :  { %2812 = vmatpush.msra.mxu0 %v103_v10  ;;  %2832 = vmatpush.msra.mxu1 %v231_v11  ;;  %v895_v60 = vld [vmem:[#allocation2 + $0x2c40] sm:$0xff]  ;;  %v759_v63 = vld [vmem:[#allocation2 + $0x24d0] sm:$0xff] }
  0xb9   :  { %2852 = vmatpush.msra.mxu2 %v359_v12  ;;  %2872 = vmatpush.msra.mxu3 %v487_v13  ;;  %v1023_v61 = vld [vmem:[#allocation2 + $0x3340] sm:$0xff]  ;;  %v887_v0 = vld [vmem:[#allocation2 + $0x2bd0] sm:$0xff] }
  0xba   :  { %2813 = vmatpush.msra.mxu0 %v95_v14  ;;  %2833 = vmatpush.msra.mxu1 %v223_v15  ;;  %v1015_v1 = vld [vmem:[#allocation2 + $0x32d0] sm:$0xff]  ;;  %v623_v6 = vld [vmem:[#allocation2 + $0x1d60] sm:$0xff] }
  0xbb   :  { %2853 = vmatpush.msra.mxu2 %v351_v16  ;;  %2873 = vmatpush.msra.mxu3 %v479_v17  ;;  %v751_v7 = vld [vmem:[#allocation2 + $0x2460] sm:$0xff]  ;;  %v615_v10 = vld [vmem:[#allocation2 + $0x1cf0] sm:$0xff] }
  0xbc   :  { %2814 = vmatpush.msra.mxu0 %v87_v18  ;;  %2834 = vmatpush.msra.mxu1 %v215_v19  ;;  %v879_v8 = vld [vmem:[#allocation2 + $0x2b60] sm:$0xff]  ;;  %v743_v11 = vld [vmem:[#allocation2 + $0x23f0] sm:$0xff] }
  0xbd   :  { %2854 = vmatpush.msra.mxu2 %v343_v20  ;;  %2874 = vmatpush.msra.mxu3 %v471_v21  ;;  %v1007_v9 = vld [vmem:[#allocation2 + $0x3260] sm:$0xff]  ;;  %v871_v12 = vld [vmem:[#allocation2 + $0x2af0] sm:$0xff] }
  0xbe   :  { %2879 = vmatpush.msrb.mxu0 %v719_v23  ;;  %2899 = vmatpush.msrb.mxu1 %v847_v24  ;;  %v999_v13 = vld [vmem:[#allocation2 + $0x31f0] sm:$0xff]  ;;  %v607_v14 = vld [vmem:[#allocation2 + $0x1c80] sm:$0xff]  ;;  %v208_v23 = vld [vmem:[#allocation2 + $0x6a8] sm:$0xff] }
  0xbf   :  { %2919 = vmatpush.msrb.mxu2 %v975_v25  ;;  %2939 = vmatpush.msrb.mxu3 %v1103_v26  ;;  %v735_v15 = vld [vmem:[#allocation2 + $0x2380] sm:$0xff]  ;;  %v599_v18 = vld [vmem:[#allocation2 + $0x1c10] sm:$0xff]  ;;  %v336_v24 = vld [vmem:[#allocation2 + $0xda8] sm:$0xff] }
  0xc0   :  { %2880 = vmatpush.msrb.mxu0 %v711_v29  ;;  %2900 = vmatpush.msrb.mxu1 %v839_v30  ;;  %v863_v16 = vld [vmem:[#allocation2 + $0x2a80] sm:$0xff]  ;;  %v727_v19 = vld [vmem:[#allocation2 + $0x2310] sm:$0xff]  ;;  %v5777_v25 = vld.sshfl [vmem:[#allocation1] sm:$0xff pattern:$0x73625140] }
  0xc1   :  { %2920 = vmatpush.msrb.mxu2 %v967_v31  ;;  %2940 = vmatpush.msrb.mxu3 %v1095_v32  ;;  %v991_v17 = vld [vmem:[#allocation2 + $0x3180] sm:$0xff]  ;;  %v855_v20 = vld [vmem:[#allocation2 + $0x2a10] sm:$0xff]  ;;  %v464_v29 = vld [vmem:[#allocation2 + $0x14a8] sm:$0xff] }
  0xc2   :  { %2881 = vmatpush.msrb.mxu0 %v703_v34  ;;  %2901 = vmatpush.msrb.mxu1 %v831_v35  ;;  %v983_v21 = vld [vmem:[#allocation2 + $0x3110] sm:$0xff]  ;;  %v5780_v26 = vld.sshfl [vmem:[#allocation1 + $0x8] sm:$0xff pattern:$0x73625140]  ;;  %v592_v30 = vld [vmem:[#allocation2 + $0x1ba8] sm:$0xff] }
  0xc3   :  { %2921 = vmatpush.msrb.mxu2 %v959_v2  ;;  %2941 = vmatpush.msrb.mxu3 %v1087_v3  ;;  %v5783_v31 = vld.sshfl [vmem:[#allocation1 + $0x10] sm:$0xff pattern:$0x73625140]  ;;  %v5786_v32 = vld.sshfl [vmem:[#allocation1 + $0x18] sm:$0xff pattern:$0x73625140] }
  0xc4   :  { %2882 = vmatpush.msrb.mxu0 %v695_v36  ;;  %2902 = vmatpush.msrb.mxu1 %v823_v4  ;;  %v200_v34 = vld [vmem:[#allocation2 + $0x638] sm:$0xff]  ;;  %v192_v36 = vld [vmem:[#allocation2 + $0x5c8] sm:$0xff] }
  0xc5   :  { %2922 = vmatpush.msrb.mxu2 %v951_v5  ;;  %2942 = vmatpush.msrb.mxu3 %v1079_v37  ;;  %v328_v35 = vld [vmem:[#allocation2 + $0xd38] sm:$0xff]  ;;  %v320_v4 = vld [vmem:[#allocation2 + $0xcc8] sm:$0xff] }
  0xc6   :  { %2883 = vmatpush.msrb.mxu0 %v687_v38  ;;  %2903 = vmatpush.msrb.mxu1 %v815_v39  ;;  %v456_v2 = vld [vmem:[#allocation2 + $0x1438] sm:$0xff]  ;;  %v448_v5 = vld [vmem:[#allocation2 + $0x13c8] sm:$0xff] }
  0xc7   :  { %2923 = vmatpush.msrb.mxu2 %v943_v40  ;;  %2943 = vmatpush.msrb.mxu3 %v1071_v41  ;;  %v584_v3 = vld [vmem:[#allocation2 + $0x1b38] sm:$0xff]  ;;  %v576_v37 = vld [vmem:[#allocation2 + $0x1ac8] sm:$0xff] }
  0xc8   :  { %2884 = vmatpush.msrb.mxu0 %v679_v42  ;;  %2904 = vmatpush.msrb.mxu1 %v807_v43  ;;  %v184_v38 = vld [vmem:[#allocation2 + $0x558] sm:$0xff]  ;;  %v176_v42 = vld [vmem:[#allocation2 + $0x4e8] sm:$0xff] }
  0xc9   :  { %2924 = vmatpush.msrb.mxu2 %v935_v44  ;;  %2944 = vmatpush.msrb.mxu3 %v1063_v45  ;;  %v312_v39 = vld [vmem:[#allocation2 + $0xc58] sm:$0xff]  ;;  %v304_v43 = vld [vmem:[#allocation2 + $0xbe8] sm:$0xff] }
  0xca   :  { %2885 = vmatpush.msrb.mxu0 %v671_v46  ;;  %2905 = vmatpush.msrb.mxu1 %v799_v47  ;;  %v440_v40 = vld [vmem:[#allocation2 + $0x1358] sm:$0xff]  ;;  %v432_v44 = vld [vmem:[#allocation2 + $0x12e8] sm:$0xff] }
  0xcb   :  { %2925 = vmatpush.msrb.mxu2 %v927_v48  ;;  %2945 = vmatpush.msrb.mxu3 %v1055_v49  ;;  %v568_v41 = vld [vmem:[#allocation2 + $0x1a58] sm:$0xff]  ;;  %v560_v45 = vld [vmem:[#allocation2 + $0x19e8] sm:$0xff] }
  0xcc   :  { %2886 = vmatpush.msrb.mxu0 %v663_v22  ;;  %2906 = vmatpush.msrb.mxu1 %v791_v50  ;;  %v5789_v46 = vld.sshfl [vmem:[#allocation1 + $0x30] sm:$0xff pattern:$0x73625140]  ;;  %v168_v47 = vld [vmem:[#allocation2 + $0x478] sm:$0xff] }
  0xcd   :  { %2926 = vmatpush.msrb.mxu2 %v919_v51  ;;  %2946 = vmatpush.msrb.mxu3 %v1047_v52  ;;  %v296_v48 = vld [vmem:[#allocation2 + $0xb78] sm:$0xff]  ;;  %v5795_v51 = vld.sshfl [vmem:[#allocation1 + $0x38] sm:$0xff pattern:$0x73625140]  ;;  %v160_v52 = vld [vmem:[#allocation2 + $0x408] sm:$0xff] }
  0xce   :  { %2887 = vmatpush.msrb.mxu0 %v655_v27  ;;  %2907 = vmatpush.msrb.mxu1 %v783_v28  ;;  %v424_v49 = vld [vmem:[#allocation2 + $0x1278] sm:$0xff]  ;;  %v288_v27 = vld [vmem:[#allocation2 + $0xb08] sm:$0xff] }
  0xcf   :  { %2927 = vmatpush.msrb.mxu2 %v911_v53  ;;  %2947 = vmatpush.msrb.mxu3 %v1039_v54  ;;  %v5792_v22 = vld.sshfl [vmem:[#allocation1 + $0x20] sm:$0xff pattern:$0x73625140]  ;;  %v416_v28 = vld [vmem:[#allocation2 + $0x1208] sm:$0xff] }
  0xd0   :  { %2888 = vmatpush.msrb.mxu0 %v647_v55  ;;  %2908 = vmatpush.msrb.mxu1 %v775_v56  ;;  %v552_v50 = vld [vmem:[#allocation2 + $0x1978] sm:$0xff]  ;;  %v544_v53 = vld [vmem:[#allocation2 + $0x1908] sm:$0xff]  ;;  %v5798_v54 = vld.sshfl [vmem:[#allocation1 + $0x28] sm:$0xff pattern:$0x73625140] }
  0xd1   :  { %2928 = vmatpush.msrb.mxu2 %v903_v33  ;;  %2948 = vmatpush.msrb.mxu3 %v1031_v57  ;;  %v152_v55 = vld [vmem:[#allocation2 + $0x398] sm:$0xff] }
  0xd2   :  { %2889 = vmatpush.msrb.mxu0 %v639_v58  ;;  %2909 = vmatpush.msrb.mxu1 %v767_v59  ;;  %v280_v56 = vld [vmem:[#allocation2 + $0xa98] sm:$0xff]  ;;  %v144_v58 = vld [vmem:[#allocation2 + $0x328] sm:$0xff] }
  0xd3   :  { %2929 = vmatpush.msrb.mxu2 %v895_v60  ;;  %2949 = vmatpush.msrb.mxu3 %v1023_v61  ;;  %v408_v33 = vld [vmem:[#allocation2 + $0x1198] sm:$0xff]  ;;  %v272_v59 = vld [vmem:[#allocation2 + $0xa28] sm:$0xff] }
  0xd4   :  { %2890 = vmatpush.msrb.mxu0 %v631_v62  ;;  %2910 = vmatpush.msrb.mxu1 %v759_v63  ;;  %v536_v57 = vld [vmem:[#allocation2 + $0x1898] sm:$0xff]  ;;  %v400_v60 = vld [vmem:[#allocation2 + $0x1128] sm:$0xff] }
  0xd5   :  { %2930 = vmatpush.msrb.mxu2 %v887_v0  ;;  %2950 = vmatpush.msrb.mxu3 %v1015_v1  ;;  %v528_v61 = vld [vmem:[#allocation2 + $0x1828] sm:$0xff]  ;;  %v136_v62 = vld [vmem:[#allocation2 + $0x2b8] sm:$0xff] }
  0xd6   :  { %2891 = vmatpush.msrb.mxu0 %v623_v6  ;;  %2911 = vmatpush.msrb.mxu1 %v751_v7  ;;  %v264_v63 = vld [vmem:[#allocation2 + $0x9b8] sm:$0xff]  ;;  %v128_v6 = vld [vmem:[#allocation2 + $0x248] sm:$0xff] }
  0xd7   :  { %2931 = vmatpush.msrb.mxu2 %v879_v8  ;;  %2951 = vmatpush.msrb.mxu3 %v1007_v9  ;;  %v392_v0 = vld [vmem:[#allocation2 + $0x10b8] sm:$0xff]  ;;  %v256_v7 = vld [vmem:[#allocation2 + $0x948] sm:$0xff] }
  0xd8   :  { %2892 = vmatpush.msrb.mxu0 %v615_v10  ;;  %2912 = vmatpush.msrb.mxu1 %v743_v11  ;;  %v520_v1 = vld [vmem:[#allocation2 + $0x17b8] sm:$0xff]  ;;  %v384_v8 = vld [vmem:[#allocation2 + $0x1048] sm:$0xff] }
  0xd9   :  { %2932 = vmatpush.msrb.mxu2 %v871_v12  ;;  %2952 = vmatpush.msrb.mxu3 %v999_v13  ;;  %v512_v9 = vld [vmem:[#allocation2 + $0x1748] sm:$0xff]  ;;  %v120_v10 = vld [vmem:[#allocation2 + $0x1d8] sm:$0xff] }
  0xda   :  { %2893 = vmatpush.msrb.mxu0 %v607_v14  ;;  %2913 = vmatpush.msrb.mxu1 %v735_v15  ;;  %v248_v11 = vld [vmem:[#allocation2 + $0x8d8] sm:$0xff]  ;;  %v112_v14 = vld [vmem:[#allocation2 + $0x168] sm:$0xff] }
  0xdb   :  { %2933 = vmatpush.msrb.mxu2 %v863_v16  ;;  %2953 = vmatpush.msrb.mxu3 %v991_v17  ;;  %v376_v12 = vld [vmem:[#allocation2 + $0xfd8] sm:$0xff]  ;;  %v240_v15 = vld [vmem:[#allocation2 + $0x868] sm:$0xff] }
  0xdc   :  { %2894 = vmatpush.msrb.mxu0 %v599_v18  ;;  %2914 = vmatpush.msrb.mxu1 %v727_v19  ;;  %v504_v13 = vld [vmem:[#allocation2 + $0x16d8] sm:$0xff]  ;;  %v368_v16 = vld [vmem:[#allocation2 + $0xf68] sm:$0xff] }
  0xdd   :  { %2934 = vmatpush.msrb.mxu2 %v855_v20  ;;  %2954 = vmatpush.msrb.mxu3 %v983_v21  ;;  %v496_v17 = vld [vmem:[#allocation2 + $0x1668] sm:$0xff]  ;;  %v104_v18 = vld [vmem:[#allocation2 + $0xf8] sm:$0xff] }
  0xde   :  { %2815 = vmatmul.f32.vlgmr.msra.gmra.mxu0 %v5777_v25  ;;  %2835 = vmatmul.f32.vlgmr.msra.gmra.mxu1 %v5780_v26  ;;  %v232_v19 = vld [vmem:[#allocation2 + $0x7f8] sm:$0xff] }
  0xdf   :  { %2855 = vmatmul.f32.vlgmr.msra.gmra.mxu2 %v5783_v31  ;;  %2875 = vmatmul.f32.vlgmr.msra.gmra.mxu3 %v5786_v32  ;;  %v360_v20 = vld [vmem:[#allocation2 + $0xef8] sm:$0xff] }
  0xe0   :  { %2959 = vmatpush.msra.mxu0 %v208_v23  ;;  %2979 = vmatpush.msra.mxu1 %v336_v24  ;;  %v488_v21 = vld [vmem:[#allocation2 + $0x15f8] sm:$0xff]  ;;  %v96_v23 = vld [vmem:[#allocation2 + $0x88] sm:$0xff] }
  0xe1   :  { %2999 = vmatpush.msra.mxu2 %v464_v29  ;;  %3019 = vmatpush.msra.mxu3 %v592_v30  ;;  %v224_v24 = vld [vmem:[#allocation2 + $0x788] sm:$0xff] }
  0xe2   :  { %2960 = vmatpush.msra.mxu0 %v200_v34  ;;  %2980 = vmatpush.msra.mxu1 %v328_v35  ;;  %v352_v29 = vld [vmem:[#allocation2 + $0xe88] sm:$0xff]  ;;  %v88_v34 = vld [vmem:[#allocation2 + $0x18] sm:$0xff] }
  0xe3   :  { %3000 = vmatpush.msra.mxu2 %v456_v2  ;;  %3020 = vmatpush.msra.mxu3 %v584_v3  ;;  %v480_v30 = vld [vmem:[#allocation2 + $0x1588] sm:$0xff]  ;;  %v216_v35 = vld [vmem:[#allocation2 + $0x718] sm:$0xff] }
  0xe4   :  { %2961 = vmatpush.msra.mxu0 %v192_v36  ;;  %2981 = vmatpush.msra.mxu1 %v320_v4  ;;  %v344_v2 = vld [vmem:[#allocation2 + $0xe18] sm:$0xff]  ;;  %v720_v36 = vld [vmem:[#allocation2 + $0x22a8] sm:$0xff] }
  0xe5   :  { %3001 = vmatpush.msra.mxu2 %v448_v5  ;;  %3021 = vmatpush.msra.mxu3 %v576_v37  ;;  %v472_v3 = vld [vmem:[#allocation2 + $0x1518] sm:$0xff]  ;;  %v848_v4 = vld [vmem:[#allocation2 + $0x29a8] sm:$0xff] }
  0xe6   :  { %2962 = vmatpush.msra.mxu0 %v184_v38  ;;  %2982 = vmatpush.msra.mxu1 %v312_v39  ;;  %v976_v5 = vld [vmem:[#allocation2 + $0x30a8] sm:$0xff]  ;;  %v712_v38 = vld [vmem:[#allocation2 + $0x2238] sm:$0xff] }
  0xe7   :  { %3002 = vmatpush.msra.mxu2 %v440_v40  ;;  %3022 = vmatpush.msra.mxu3 %v568_v41  ;;  %v1104_v37 = vld [vmem:[#allocation2 + $0x37a8] sm:$0xff]  ;;  %v840_v39 = vld [vmem:[#allocation2 + $0x2938] sm:$0xff] }
  0xe8   :  { %2935 = vmatmul.f32.vlgmr.msrb.gmra.mxu2 %v5789_v46  ;;  %2963 = vmatpush.msra.mxu0 %v176_v42  ;;  %v968_v40 = vld [vmem:[#allocation2 + $0x3038] sm:$0xff]  ;;  %v704_v42 = vld [vmem:[#allocation2 + $0x21c8] sm:$0xff] }
  0xe9   :  { %2983 = vmatpush.msra.mxu1 %v304_v43  ;;  %3003 = vmatpush.msra.mxu2 %v432_v44  ;;  %v1096_v41 = vld [vmem:[#allocation2 + $0x3738] sm:$0xff]  ;;  %v832_v43 = vld [vmem:[#allocation2 + $0x28c8] sm:$0xff] }
  0xea   :  { %3023 = vmatpush.msra.mxu3 %v560_v45  ;;  %2895 = vmatmul.f32.vlgmr.msrb.gmra.mxu0 %v5792_v22  ;;  %v960_v44 = vld [vmem:[#allocation2 + $0x2fc8] sm:$0xff] }
  0xeb   :  { %2955 = vmatmul.f32.vlgmr.msrb.gmra.mxu3 %v5795_v51  ;;  %2964 = vmatpush.msra.mxu0 %v168_v47  ;;  %v1088_v45 = vld [vmem:[#allocation2 + $0x36c8] sm:$0xff]  ;;  %v696_v47 = vld [vmem:[#allocation2 + $0x2158] sm:$0xff] }
  0xec   :  { %2984 = vmatpush.msra.mxu1 %v296_v48  ;;  %3004 = vmatpush.msra.mxu2 %v424_v49  ;;  %v824_v48 = vld [vmem:[#allocation2 + $0x2858] sm:$0xff] }
  0xed   :  { %3024 = vmatpush.msra.mxu3 %v552_v50  ;;  %2915 = vmatmul.f32.vlgmr.msrb.gmra.mxu1 %v5798_v54  ;;  %v952_v49 = vld [vmem:[#allocation2 + $0x2f58] sm:$0xff] }
  0xee   :  { %2965 = vmatpush.msra.mxu0 %v160_v52  ;;  %2985 = vmatpush.msra.mxu1 %v288_v27  ;;  %v1080_v50 = vld [vmem:[#allocation2 + $0x3658] sm:$0xff]  ;;  %v688_v52 = vld [vmem:[#allocation2 + $0x20e8] sm:$0xff] }
  0xef   :  { %3005 = vmatpush.msra.mxu2 %v416_v28  ;;  %3025 = vmatpush.msra.mxu3 %v544_v53  ;;  %v816_v27 = vld [vmem:[#allocation2 + $0x27e8] sm:$0xff] }
  0xf0   :  { %2966 = vmatpush.msra.mxu0 %v152_v55  ;;  %2986 = vmatpush.msra.mxu1 %v280_v56  ;;  %v944_v28 = vld [vmem:[#allocation2 + $0x2ee8] sm:$0xff]  ;;  %v680_v55 = vld [vmem:[#allocation2 + $0x2078] sm:$0xff] }
  0xf1   :  { %3006 = vmatpush.msra.mxu2 %v408_v33  ;;  %3026 = vmatpush.msra.mxu3 %v536_v57  ;;  %v1072_v53 = vld [vmem:[#allocation2 + $0x35e8] sm:$0xff]  ;;  %v808_v56 = vld [vmem:[#allocation2 + $0x2778] sm:$0xff] }
  0xf2   :  { %2967 = vmatpush.msra.mxu0 %v144_v58  ;;  %2987 = vmatpush.msra.mxu1 %v272_v59  ;;  %v936_v33 = vld [vmem:[#allocation2 + $0x2e78] sm:$0xff]  ;;  %v672_v58 = vld [vmem:[#allocation2 + $0x2008] sm:$0xff] }
  0xf3   :  { %3007 = vmatpush.msra.mxu2 %v400_v60  ;;  %3027 = vmatpush.msra.mxu3 %v528_v61  ;;  %v1064_v57 = vld [vmem:[#allocation2 + $0x3578] sm:$0xff]  ;;  %v800_v59 = vld [vmem:[#allocation2 + $0x2708] sm:$0xff] }
  0xf4   :  { %2968 = vmatpush.msra.mxu0 %v136_v62  ;;  %2988 = vmatpush.msra.mxu1 %v264_v63  ;;  %v928_v60 = vld [vmem:[#allocation2 + $0x2e08] sm:$0xff]  ;;  %v664_v62 = vld [vmem:[#allocation2 + $0x1f98] sm:$0xff] }
  0xf5   :  { %3008 = vmatpush.msra.mxu2 %v392_v0  ;;  %3028 = vmatpush.msra.mxu3 %v520_v1  ;;  %v1056_v61 = vld [vmem:[#allocation2 + $0x3508] sm:$0xff]  ;;  %v792_v63 = vld [vmem:[#allocation2 + $0x2698] sm:$0xff] }
  0xf6   :  { %2969 = vmatpush.msra.mxu0 %v128_v6  ;;  %2989 = vmatpush.msra.mxu1 %v256_v7  ;;  %v920_v0 = vld [vmem:[#allocation2 + $0x2d98] sm:$0xff]  ;;  %v656_v6 = vld [vmem:[#allocation2 + $0x1f28] sm:$0xff] }
  0xf7   :  { %3009 = vmatpush.msra.mxu2 %v384_v8  ;;  %3029 = vmatpush.msra.mxu3 %v512_v9  ;;  %v1048_v1 = vld [vmem:[#allocation2 + $0x3498] sm:$0xff]  ;;  %v784_v7 = vld [vmem:[#allocation2 + $0x2628] sm:$0xff] }
  0xf8   :  { %2970 = vmatpush.msra.mxu0 %v120_v10  ;;  %2990 = vmatpush.msra.mxu1 %v248_v11  ;;  %v912_v8 = vld [vmem:[#allocation2 + $0x2d28] sm:$0xff]  ;;  %v648_v10 = vld [vmem:[#allocation2 + $0x1eb8] sm:$0xff] }
  0xf9   :  { %3010 = vmatpush.msra.mxu2 %v376_v12  ;;  %3030 = vmatpush.msra.mxu3 %v504_v13  ;;  %v1040_v9 = vld [vmem:[#allocation2 + $0x3428] sm:$0xff]  ;;  %v776_v11 = vld [vmem:[#allocation2 + $0x25b8] sm:$0xff] }
  0xfa   :  { %2971 = vmatpush.msra.mxu0 %v112_v14  ;;  %2991 = vmatpush.msra.mxu1 %v240_v15  ;;  %v904_v12 = vld [vmem:[#allocation2 + $0x2cb8] sm:$0xff]  ;;  %v640_v14 = vld [vmem:[#allocation2 + $0x1e48] sm:$0xff] }
  0xfb   :  { %3011 = vmatpush.msra.mxu2 %v368_v16  ;;  %3031 = vmatpush.msra.mxu3 %v496_v17  ;;  %v1032_v13 = vld [vmem:[#allocation2 + $0x33b8] sm:$0xff]  ;;  %v768_v15 = vld [vmem:[#allocation2 + $0x2548] sm:$0xff] }
  0xfc   :  { %2972 = vmatpush.msra.mxu0 %v104_v18  ;;  %2992 = vmatpush.msra.mxu1 %v232_v19  ;;  %v896_v16 = vld [vmem:[#allocation2 + $0x2c48] sm:$0xff]  ;;  %v632_v18 = vld [vmem:[#allocation2 + $0x1dd8] sm:$0xff] }
  0xfd   :  { %3012 = vmatpush.msra.mxu2 %v360_v20  ;;  %3032 = vmatpush.msra.mxu3 %v488_v21  ;;  %v1024_v17 = vld [vmem:[#allocation2 + $0x3348] sm:$0xff]  ;;  %v760_v19 = vld [vmem:[#allocation2 + $0x24d8] sm:$0xff] }
  0xfe   :  { %2973 = vmatpush.msra.mxu0 %v96_v23  ;;  %2993 = vmatpush.msra.mxu1 %v224_v24  ;;  %v888_v20 = vld [vmem:[#allocation2 + $0x2bd8] sm:$0xff]  ;;  %v624_v23 = vld [vmem:[#allocation2 + $0x1d68] sm:$0xff] }
  0xff   :  { %3013 = vmatpush.msra.mxu2 %v352_v29  ;;  %3033 = vmatpush.msra.mxu3 %v480_v30  ;;  %v1016_v21 = vld [vmem:[#allocation2 + $0x32d8] sm:$0xff]  ;;  %v752_v24 = vld [vmem:[#allocation2 + $0x2468] sm:$0xff] }
 0x100   :  { %2974 = vmatpush.msra.mxu0 %v88_v34  ;;  %2994 = vmatpush.msra.mxu1 %v216_v35  ;;  %v880_v29 = vld [vmem:[#allocation2 + $0x2b68] sm:$0xff]  ;;  %v616_v34 = vld [vmem:[#allocation2 + $0x1cf8] sm:$0xff] }
 0x101   :  { %3014 = vmatpush.msra.mxu2 %v344_v2  ;;  %3034 = vmatpush.msra.mxu3 %v472_v3  ;;  %v1008_v30 = vld [vmem:[#allocation2 + $0x3268] sm:$0xff]  ;;  %v744_v35 = vld [vmem:[#allocation2 + $0x23f8] sm:$0xff] }
 0x102   :  { %3039 = vmatpush.msrb.mxu0 %v720_v36  ;;  %3059 = vmatpush.msrb.mxu1 %v848_v4  ;;  %v872_v2 = vld [vmem:[#allocation2 + $0x2af8] sm:$0xff]  ;;  %v608_v36 = vld [vmem:[#allocation2 + $0x1c88] sm:$0xff] }
 0x103   :  { %3079 = vmatpush.msrb.mxu2 %v976_v5  ;;  %3099 = vmatpush.msrb.mxu3 %v1104_v37  ;;  %v1000_v3 = vld [vmem:[#allocation2 + $0x31f8] sm:$0xff]  ;;  %v736_v4 = vld [vmem:[#allocation2 + $0x2388] sm:$0xff] }
 0x104   :  { %3040 = vmatpush.msrb.mxu0 %v712_v38  ;;  %3060 = vmatpush.msrb.mxu1 %v840_v39  ;;  %v864_v5 = vld [vmem:[#allocation2 + $0x2a88] sm:$0xff]  ;;  %v600_v38 = vld [vmem:[#allocation2 + $0x1c18] sm:$0xff] }
 0x105   :  { %3080 = vmatpush.msrb.mxu2 %v968_v40  ;;  %3100 = vmatpush.msrb.mxu3 %v1096_v41  ;;  %v992_v37 = vld [vmem:[#allocation2 + $0x3188] sm:$0xff]  ;;  %v728_v39 = vld [vmem:[#allocation2 + $0x2318] sm:$0xff] }
 0x106   :  { %3041 = vmatpush.msrb.mxu0 %v704_v42  ;;  %3061 = vmatpush.msrb.mxu1 %v832_v43  ;;  %v856_v40 = vld [vmem:[#allocation2 + $0x2a18] sm:$0xff]  ;;  %v209_v42 = vld [vmem:[#allocation2 + $0x6b0] sm:$0xff] }
 0x107   :  { %3081 = vmatpush.msrb.mxu2 %v960_v44  ;;  %3101 = vmatpush.msrb.mxu3 %v1088_v45  ;;  %v984_v41 = vld [vmem:[#allocation2 + $0x3118] sm:$0xff]  ;;  %v337_v43 = vld [vmem:[#allocation2 + $0xdb0] sm:$0xff] }
 0x108   :  { %3042 = vmatpush.msrb.mxu0 %v696_v47  ;;  %3062 = vmatpush.msrb.mxu1 %v824_v48  ;;  %v465_v44 = vld [vmem:[#allocation2 + $0x14b0] sm:$0xff]  ;;  %v201_v47 = vld [vmem:[#allocation2 + $0x640] sm:$0xff] }
 0x109   :  { %3082 = vmatpush.msrb.mxu2 %v952_v49  ;;  %3102 = vmatpush.msrb.mxu3 %v1080_v50  ;;  %v593_v45 = vld [vmem:[#allocation2 + $0x1bb0] sm:$0xff]  ;;  %v329_v48 = vld [vmem:[#allocation2 + $0xd40] sm:$0xff] }
 0x10a   :  { %3043 = vmatpush.msrb.mxu0 %v688_v52  ;;  %3063 = vmatpush.msrb.mxu1 %v816_v27  ;;  %v457_v49 = vld [vmem:[#allocation2 + $0x1440] sm:$0xff]  ;;  %v193_v52 = vld [vmem:[#allocation2 + $0x5d0] sm:$0xff] }
 0x10b   :  { %3083 = vmatpush.msrb.mxu2 %v944_v28  ;;  %3103 = vmatpush.msrb.mxu3 %v1072_v53  ;;  %v585_v50 = vld [vmem:[#allocation2 + $0x1b40] sm:$0xff]  ;;  %v321_v27 = vld [vmem:[#allocation2 + $0xcd0] sm:$0xff] }
 0x10c   :  { %3044 = vmatpush.msrb.mxu0 %v680_v55  ;;  %3064 = vmatpush.msrb.mxu1 %v808_v56  ;;  %v185_v28 = vld [vmem:[#allocation2 + $0x560] sm:$0xff]  ;;  %v177_v55 = vld [vmem:[#allocation2 + $0x4f0] sm:$0xff] }
 0x10d   :  { %3084 = vmatpush.msrb.mxu2 %v936_v33  ;;  %3104 = vmatpush.msrb.mxu3 %v1064_v57  ;;  %v569_v53 = vld [vmem:[#allocation2 + $0x1a60] sm:$0xff]  ;;  %v305_v56 = vld [vmem:[#allocation2 + $0xbf0] sm:$0xff] }
 0x10e   :  { %3045 = vmatpush.msrb.mxu0 %v672_v58  ;;  %3065 = vmatpush.msrb.mxu1 %v800_v59  ;;  %v433_v33 = vld [vmem:[#allocation2 + $0x12f0] sm:$0xff]  ;;  %v169_v58 = vld [vmem:[#allocation2 + $0x480] sm:$0xff] }
 0x10f   :  { %3085 = vmatpush.msrb.mxu2 %v928_v60  ;;  %3105 = vmatpush.msrb.mxu3 %v1056_v61  ;;  %v561_v57 = vld [vmem:[#allocation2 + $0x19f0] sm:$0xff]  ;;  %v297_v59 = vld [vmem:[#allocation2 + $0xb80] sm:$0xff] }
 0x110   :  { %3046 = vmatpush.msrb.mxu0 %v664_v62  ;;  %3066 = vmatpush.msrb.mxu1 %v792_v63  ;;  %v425_v60 = vld [vmem:[#allocation2 + $0x1280] sm:$0xff]  ;;  %v161_v62 = vld [vmem:[#allocation2 + $0x410] sm:$0xff] }
 0x111   :  { %3086 = vmatpush.msrb.mxu2 %v920_v0  ;;  %3106 = vmatpush.msrb.mxu3 %v1048_v1  ;;  %v553_v61 = vld [vmem:[#allocation2 + $0x1980] sm:$0xff]  ;;  %v289_v63 = vld [vmem:[#allocation2 + $0xb10] sm:$0xff] }
 0x112   :  { %3047 = vmatpush.msrb.mxu0 %v656_v6  ;;  %3067 = vmatpush.msrb.mxu1 %v784_v7  ;;  %v417_v0 = vld [vmem:[#allocation2 + $0x1210] sm:$0xff]  ;;  %v281_v6 = vld [vmem:[#allocation2 + $0xaa0] sm:$0xff] }
 0x113   :  { %3087 = vmatpush.msrb.mxu2 %v912_v8  ;;  %3107 = vmatpush.msrb.mxu3 %v1040_v9  ;;  %v545_v1 = vld [vmem:[#allocation2 + $0x1910] sm:$0xff]  ;;  %v409_v7 = vld [vmem:[#allocation2 + $0x11a0] sm:$0xff] }
 0x114   :  { %3048 = vmatpush.msrb.mxu0 %v648_v10  ;;  %3068 = vmatpush.msrb.mxu1 %v776_v11  ;;  %v537_v8 = vld [vmem:[#allocation2 + $0x18a0] sm:$0xff]  ;;  %v401_v9 = vld [vmem:[#allocation2 + $0x1130] sm:$0xff] }
 0x115   :  { %3088 = vmatpush.msrb.mxu2 %v904_v12  ;;  %3108 = vmatpush.msrb.mxu3 %v1032_v13  ;;  %v529_v10 = vld [vmem:[#allocation2 + $0x1830] sm:$0xff]  ;;  %v137_v11 = vld [vmem:[#allocation2 + $0x2c0] sm:$0xff] }
 0x116   :  { %3049 = vmatpush.msrb.mxu0 %v640_v14  ;;  %3069 = vmatpush.msrb.mxu1 %v768_v15  ;;  %v265_v12 = vld [vmem:[#allocation2 + $0x9c0] sm:$0xff]  ;;  %v129_v14 = vld [vmem:[#allocation2 + $0x250] sm:$0xff] }
 0x117   :  { %3089 = vmatpush.msrb.mxu2 %v896_v16  ;;  %3109 = vmatpush.msrb.mxu3 %v1024_v17  ;;  %v521_v13 = vld [vmem:[#allocation2 + $0x17c0] sm:$0xff]  ;;  %v257_v15 = vld [vmem:[#allocation2 + $0x950] sm:$0xff] }
 0x118   :  { %3050 = vmatpush.msrb.mxu0 %v632_v18  ;;  %3070 = vmatpush.msrb.mxu1 %v760_v19  ;;  %v385_v16 = vld [vmem:[#allocation2 + $0x1050] sm:$0xff]  ;;  %v121_v18 = vld [vmem:[#allocation2 + $0x1e0] sm:$0xff] }
 0x119   :  { %3090 = vmatpush.msrb.mxu2 %v888_v20  ;;  %3110 = vmatpush.msrb.mxu3 %v1016_v21  ;;  %v513_v17 = vld [vmem:[#allocation2 + $0x1750] sm:$0xff]  ;;  %v249_v19 = vld [vmem:[#allocation2 + $0x8e0] sm:$0xff] }
 0x11a   :  { %3051 = vmatpush.msrb.mxu0 %v624_v23  ;;  %3071 = vmatpush.msrb.mxu1 %v752_v24  ;;  %v377_v20 = vld [vmem:[#allocation2 + $0xfe0] sm:$0xff]  ;;  %v113_v23 = vld [vmem:[#allocation2 + $0x170] sm:$0xff] }
 0x11b   :  { %3091 = vmatpush.msrb.mxu2 %v880_v29  ;;  %3111 = vmatpush.msrb.mxu3 %v1008_v30  ;;  %v505_v21 = vld [vmem:[#allocation2 + $0x16e0] sm:$0xff]  ;;  %v241_v24 = vld [vmem:[#allocation2 + $0x870] sm:$0xff] }
 0x11c   :  { %3052 = vmatpush.msrb.mxu0 %v616_v34  ;;  %3072 = vmatpush.msrb.mxu1 %v744_v35  ;;  %v369_v29 = vld [vmem:[#allocation2 + $0xf70] sm:$0xff]  ;;  %v105_v34 = vld [vmem:[#allocation2 + $0x100] sm:$0xff] }
 0x11d   :  { %3092 = vmatpush.msrb.mxu2 %v872_v2  ;;  %3112 = vmatpush.msrb.mxu3 %v1000_v3  ;;  %v497_v30 = vld [vmem:[#allocation2 + $0x1670] sm:$0xff]  ;;  %v233_v35 = vld [vmem:[#allocation2 + $0x800] sm:$0xff] }
 0x11e   :  { %3053 = vmatpush.msrb.mxu0 %v608_v36  ;;  %3073 = vmatpush.msrb.mxu1 %v736_v4  ;;  %v361_v2 = vld [vmem:[#allocation2 + $0xf00] sm:$0xff]  ;;  %v97_v36 = vld [vmem:[#allocation2 + $0x90] sm:$0xff] }
 0x11f   :  { %3093 = vmatpush.msrb.mxu2 %v864_v5  ;;  %3113 = vmatpush.msrb.mxu3 %v992_v37  ;;  %v489_v3 = vld [vmem:[#allocation2 + $0x1600] sm:$0xff]  ;;  %v225_v4 = vld [vmem:[#allocation2 + $0x790] sm:$0xff] }
 0x120   :  { %3054 = vmatpush.msrb.mxu0 %v600_v38  ;;  %3074 = vmatpush.msrb.mxu1 %v728_v39  ;;  %v353_v5 = vld [vmem:[#allocation2 + $0xe90] sm:$0xff]  ;;  %v89_v38 = vld [vmem:[#allocation2 + $0x20] sm:$0xff] }
 0x121   :  { %3094 = vmatpush.msrb.mxu2 %v856_v40  ;;  %3114 = vmatpush.msrb.mxu3 %v984_v41  ;;  %v481_v37 = vld [vmem:[#allocation2 + $0x1590] sm:$0xff]  ;;  %v217_v39 = vld [vmem:[#allocation2 + $0x720] sm:$0xff] }
 0x122   :  { %2975 = vmatmul.f32.vlgmr.msra.gmra.mxu0 %v5777_v25  ;;  %2995 = vmatmul.f32.vlgmr.msra.gmra.mxu1 %v5780_v26  ;;  %v449_v25 = vld [vmem:[#allocation2 + $0x13d0] sm:$0xff]  ;;  %v345_v40 = vld [vmem:[#allocation2 + $0xe20] sm:$0xff] }
 0x123   :  { %3015 = vmatmul.f32.vlgmr.msra.gmra.mxu2 %v5783_v31  ;;  %3035 = vmatmul.f32.vlgmr.msra.gmra.mxu3 %v5786_v32  ;;  %v577_v26 = vld [vmem:[#allocation2 + $0x1ad0] sm:$0xff]  ;;  %v313_v31 = vld [vmem:[#allocation2 + $0xc60] sm:$0xff] }
 0x124   :  { %3119 = vmatpush.msra.mxu0 %v209_v42  ;;  %3139 = vmatpush.msra.mxu1 %v337_v43  ;;  %v441_v32 = vld [vmem:[#allocation2 + $0x1360] sm:$0xff]  ;;  %v721_v42 = vld [vmem:[#allocation2 + $0x22b0] sm:$0xff] }
 0x125   :  { %3159 = vmatpush.msra.mxu2 %v465_v44  ;;  %3179 = vmatpush.msra.mxu3 %v593_v45  ;;  %v473_v41 = vld [vmem:[#allocation2 + $0x1520] sm:$0xff]  ;;  %v849_v43 = vld [vmem:[#allocation2 + $0x29b0] sm:$0xff] }
 0x126   :  { %3120 = vmatpush.msra.mxu0 %v201_v47  ;;  %3140 = vmatpush.msra.mxu1 %v329_v48  ;;  %v977_v44 = vld [vmem:[#allocation2 + $0x30b0] sm:$0xff]  ;;  %v713_v47 = vld [vmem:[#allocation2 + $0x2240] sm:$0xff] }
 0x127   :  { %3160 = vmatpush.msra.mxu2 %v457_v49  ;;  %3180 = vmatpush.msra.mxu3 %v585_v50  ;;  %v1105_v45 = vld [vmem:[#allocation2 + $0x37b0] sm:$0xff]  ;;  %v841_v48 = vld [vmem:[#allocation2 + $0x2940] sm:$0xff] }
 0x128   :  { %3121 = vmatpush.msra.mxu0 %v193_v52  ;;  %3141 = vmatpush.msra.mxu1 %v321_v27  ;;  %v969_v49 = vld [vmem:[#allocation2 + $0x3040] sm:$0xff]  ;;  %v705_v52 = vld [vmem:[#allocation2 + $0x21d0] sm:$0xff] }
 0x129   :  { %3161 = vmatpush.msra.mxu2 %v449_v25  ;;  %3181 = vmatpush.msra.mxu3 %v577_v26  ;;  %v1097_v50 = vld [vmem:[#allocation2 + $0x3740] sm:$0xff]  ;;  %v833_v27 = vld [vmem:[#allocation2 + $0x28d0] sm:$0xff] }
 0x12a   :  { %3122 = vmatpush.msra.mxu0 %v185_v28  ;;  %3142 = vmatpush.msra.mxu1 %v313_v31  ;;  %v961_v25 = vld [vmem:[#allocation2 + $0x2fd0] sm:$0xff]  ;;  %v697_v28 = vld [vmem:[#allocation2 + $0x2160] sm:$0xff] }
 0x12b   :  { %3162 = vmatpush.msra.mxu2 %v441_v32  ;;  %3182 = vmatpush.msra.mxu3 %v569_v53  ;;  %v1089_v26 = vld [vmem:[#allocation2 + $0x36d0] sm:$0xff]  ;;  %v825_v31 = vld [vmem:[#allocation2 + $0x2860] sm:$0xff] }
 0x12c   :  { %3095 = vmatmul.f32.vlgmr.msrb.gmra.mxu2 %v5789_v46  ;;  %3123 = vmatpush.msra.mxu0 %v177_v55  ;;  %v153_v46 = vld [vmem:[#allocation2 + $0x3a0] sm:$0xff]  ;;  %v689_v55 = vld [vmem:[#allocation2 + $0x20f0] sm:$0xff] }
 0x12d   :  { %3143 = vmatpush.msra.mxu1 %v305_v56  ;;  %3163 = vmatpush.msra.mxu2 %v433_v33  ;;  %v953_v32 = vld [vmem:[#allocation2 + $0x2f60] sm:$0xff]  ;;  %v817_v56 = vld [vmem:[#allocation2 + $0x27f0] sm:$0xff] }
 0x12e   :  { %3183 = vmatpush.msra.mxu3 %v561_v57  ;;  %3055 = vmatmul.f32.vlgmr.msrb.gmra.mxu0 %v5792_v22  ;;  %v145_v22 = vld [vmem:[#allocation2 + $0x330] sm:$0xff]  ;;  %v1081_v53 = vld [vmem:[#allocation2 + $0x3660] sm:$0xff] }
 0x12f   :  { %3115 = vmatmul.f32.vlgmr.msrb.gmra.mxu3 %v5795_v51  ;;  %3124 = vmatpush.msra.mxu0 %v169_v58  ;;  %v273_v51 = vld [vmem:[#allocation2 + $0xa30] sm:$0xff]  ;;  %v681_v58 = vld [vmem:[#allocation2 + $0x2080] sm:$0xff] }
 0x130   :  { %3144 = vmatpush.msra.mxu1 %v297_v59  ;;  %3164 = vmatpush.msra.mxu2 %v425_v60  ;;  %v945_v33 = vld [vmem:[#allocation2 + $0x2ef0] sm:$0xff]  ;;  %v809_v59 = vld [vmem:[#allocation2 + $0x2780] sm:$0xff] }
 0x131   :  { %3184 = vmatpush.msra.mxu3 %v553_v61  ;;  %3075 = vmatmul.f32.vlgmr.msrb.gmra.mxu1 %v5798_v54  ;;  %v393_v54 = vld [vmem:[#allocation2 + $0x10c0] sm:$0xff]  ;;  %v1073_v57 = vld [vmem:[#allocation2 + $0x35f0] sm:$0xff] }
 0x132   :  { %3125 = vmatpush.msra.mxu0 %v161_v62  ;;  %3145 = vmatpush.msra.mxu1 %v289_v63  ;;  %v937_v60 = vld [vmem:[#allocation2 + $0x2e80] sm:$0xff]  ;;  %v673_v62 = vld [vmem:[#allocation2 + $0x2010] sm:$0xff] }
 0x133   :  { %3165 = vmatpush.msra.mxu2 %v417_v0  ;;  %3185 = vmatpush.msra.mxu3 %v545_v1  ;;  %v1065_v61 = vld [vmem:[#allocation2 + $0x3580] sm:$0xff]  ;;  %v801_v63 = vld [vmem:[#allocation2 + $0x2710] sm:$0xff] }
 0x134   :  { %3126 = vmatpush.msra.mxu0 %v153_v46  ;;  %3146 = vmatpush.msra.mxu1 %v281_v6  ;;  %v929_v0 = vld [vmem:[#allocation2 + $0x2e10] sm:$0xff]  ;;  %v665_v46 = vld [vmem:[#allocation2 + $0x1fa0] sm:$0xff] }
 0x135   :  { %3166 = vmatpush.msra.mxu2 %v409_v7  ;;  %3186 = vmatpush.msra.mxu3 %v537_v8  ;;  %v1057_v1 = vld [vmem:[#allocation2 + $0x3510] sm:$0xff]  ;;  %v793_v6 = vld [vmem:[#allocation2 + $0x26a0] sm:$0xff] }
 0x136   :  { %3127 = vmatpush.msra.mxu0 %v145_v22  ;;  %3147 = vmatpush.msra.mxu1 %v273_v51  ;;  %v921_v7 = vld [vmem:[#allocation2 + $0x2da0] sm:$0xff]  ;;  %v657_v22 = vld [vmem:[#allocation2 + $0x1f30] sm:$0xff] }
 0x137   :  { %3167 = vmatpush.msra.mxu2 %v401_v9  ;;  %3187 = vmatpush.msra.mxu3 %v529_v10  ;;  %v1049_v8 = vld [vmem:[#allocation2 + $0x34a0] sm:$0xff]  ;;  %v785_v51 = vld [vmem:[#allocation2 + $0x2630] sm:$0xff] }
 0x138   :  { %3128 = vmatpush.msra.mxu0 %v137_v11  ;;  %3148 = vmatpush.msra.mxu1 %v265_v12  ;;  %v913_v9 = vld [vmem:[#allocation2 + $0x2d30] sm:$0xff]  ;;  %v649_v11 = vld [vmem:[#allocation2 + $0x1ec0] sm:$0xff] }
 0x139   :  { %3168 = vmatpush.msra.mxu2 %v393_v54  ;;  %3188 = vmatpush.msra.mxu3 %v521_v13  ;;  %v1041_v10 = vld [vmem:[#allocation2 + $0x3430] sm:$0xff]  ;;  %v777_v12 = vld [vmem:[#allocation2 + $0x25c0] sm:$0xff] }
 0x13a   :  { %3129 = vmatpush.msra.mxu0 %v129_v14  ;;  %3149 = vmatpush.msra.mxu1 %v257_v15  ;;  %v905_v54 = vld [vmem:[#allocation2 + $0x2cc0] sm:$0xff]  ;;  %v641_v14 = vld [vmem:[#allocation2 + $0x1e50] sm:$0xff] }
 0x13b   :  { %3169 = vmatpush.msra.mxu2 %v385_v16  ;;  %3189 = vmatpush.msra.mxu3 %v513_v17  ;;  %v1033_v13 = vld [vmem:[#allocation2 + $0x33c0] sm:$0xff]  ;;  %v769_v15 = vld [vmem:[#allocation2 + $0x2550] sm:$0xff] }
 0x13c   :  { %3130 = vmatpush.msra.mxu0 %v121_v18  ;;  %3150 = vmatpush.msra.mxu1 %v249_v19  ;;  %v897_v16 = vld [vmem:[#allocation2 + $0x2c50] sm:$0xff]  ;;  %v633_v18 = vld [vmem:[#allocation2 + $0x1de0] sm:$0xff] }
 0x13d   :  { %3170 = vmatpush.msra.mxu2 %v377_v20  ;;  %3190 = vmatpush.msra.mxu3 %v505_v21  ;;  %v1025_v17 = vld [vmem:[#allocation2 + $0x3350] sm:$0xff]  ;;  %v761_v19 = vld [vmem:[#allocation2 + $0x24e0] sm:$0xff] }
 0x13e   :  { %3131 = vmatpush.msra.mxu0 %v113_v23  ;;  %3151 = vmatpush.msra.mxu1 %v241_v24  ;;  %v889_v20 = vld [vmem:[#allocation2 + $0x2be0] sm:$0xff]  ;;  %v625_v23 = vld [vmem:[#allocation2 + $0x1d70] sm:$0xff] }
 0x13f   :  { %3171 = vmatpush.msra.mxu2 %v369_v29  ;;  %3191 = vmatpush.msra.mxu3 %v497_v30  ;;  %v1017_v21 = vld [vmem:[#allocation2 + $0x32e0] sm:$0xff]  ;;  %v753_v24 = vld [vmem:[#allocation2 + $0x2470] sm:$0xff] }
 0x140   :  { %3132 = vmatpush.msra.mxu0 %v105_v34  ;;  %3152 = vmatpush.msra.mxu1 %v233_v35  ;;  %v881_v29 = vld [vmem:[#allocation2 + $0x2b70] sm:$0xff]  ;;  %v617_v34 = vld [vmem:[#allocation2 + $0x1d00] sm:$0xff] }
 0x141   :  { %3172 = vmatpush.msra.mxu2 %v361_v2  ;;  %3192 = vmatpush.msra.mxu3 %v489_v3  ;;  %v1009_v30 = vld [vmem:[#allocation2 + $0x3270] sm:$0xff]  ;;  %v745_v35 = vld [vmem:[#allocation2 + $0x2400] sm:$0xff] }
 0x142   :  { %3133 = vmatpush.msra.mxu0 %v97_v36  ;;  %3153 = vmatpush.msra.mxu1 %v225_v4  ;;  %v873_v2 = vld [vmem:[#allocation2 + $0x2b00] sm:$0xff]  ;;  %v609_v36 = vld [vmem:[#allocation2 + $0x1c90] sm:$0xff] }
 0x143   :  { %3173 = vmatpush.msra.mxu2 %v353_v5  ;;  %3193 = vmatpush.msra.mxu3 %v481_v37  ;;  %v1001_v3 = vld [vmem:[#allocation2 + $0x3200] sm:$0xff]  ;;  %v737_v4 = vld [vmem:[#allocation2 + $0x2390] sm:$0xff] }
 0x144   :  { %3134 = vmatpush.msra.mxu0 %v89_v38  ;;  %3154 = vmatpush.msra.mxu1 %v217_v39  ;;  %v865_v5 = vld [vmem:[#allocation2 + $0x2a90] sm:$0xff]  ;;  %v601_v38 = vld [vmem:[#allocation2 + $0x1c20] sm:$0xff] }
 0x145   :  { %3174 = vmatpush.msra.mxu2 %v345_v40  ;;  %3194 = vmatpush.msra.mxu3 %v473_v41  ;;  %v993_v37 = vld [vmem:[#allocation2 + $0x3190] sm:$0xff]  ;;  %v729_v39 = vld [vmem:[#allocation2 + $0x2320] sm:$0xff] }
 0x146   :  { %3199 = vmatpush.msrb.mxu0 %v721_v42  ;;  %3219 = vmatpush.msrb.mxu1 %v849_v43  ;;  %v857_v40 = vld [vmem:[#allocation2 + $0x2a20] sm:$0xff]  ;;  %v210_v42 = vld [vmem:[#allocation2 + $0x6b8] sm:$0xff] }
 0x147   :  { %3239 = vmatpush.msrb.mxu2 %v977_v44  ;;  %3259 = vmatpush.msrb.mxu3 %v1105_v45  ;;  %v985_v41 = vld [vmem:[#allocation2 + $0x3120] sm:$0xff]  ;;  %v338_v43 = vld [vmem:[#allocation2 + $0xdb8] sm:$0xff] }
 0x148   :  { %3200 = vmatpush.msrb.mxu0 %v713_v47  ;;  %3220 = vmatpush.msrb.mxu1 %v841_v48  ;;  %v5809_v44 = vld.sshfl [vmem:[#allocation1] sm:$0xff pattern:$0x73625140]  ;;  %v5812_v45 = vld.sshfl [vmem:[#allocation1 + $0x8] sm:$0xff pattern:$0x73625140] }
 0x149   :  { %3240 = vmatpush.msrb.mxu2 %v969_v49  ;;  %3260 = vmatpush.msrb.mxu3 %v1097_v50  ;;  %v466_v47 = vld [vmem:[#allocation2 + $0x14b8] sm:$0xff]  ;;  %v5815_v49 = vld.sshfl [vmem:[#allocation1 + $0x10] sm:$0xff pattern:$0x73625140] }
 0x14a   :  { %3201 = vmatpush.msrb.mxu0 %v705_v52  ;;  %3221 = vmatpush.msrb.mxu1 %v833_v27  ;;  %v594_v48 = vld [vmem:[#allocation2 + $0x1bb8] sm:$0xff]  ;;  %v5818_v50 = vld.sshfl [vmem:[#allocation1 + $0x18] sm:$0xff pattern:$0x73625140]  ;;  %v202_v52 = vld [vmem:[#allocation2 + $0x648] sm:$0xff] }
 0x14b   :  { %3241 = vmatpush.msrb.mxu2 %v961_v25  ;;  %3261 = vmatpush.msrb.mxu3 %v1089_v26  ;;  %v330_v27 = vld [vmem:[#allocation2 + $0xd48] sm:$0xff] }
 0x14c   :  { %3202 = vmatpush.msrb.mxu0 %v697_v28  ;;  %3222 = vmatpush.msrb.mxu1 %v825_v31  ;;  %v458_v25 = vld [vmem:[#allocation2 + $0x1448] sm:$0xff]  ;;  %v194_v28 = vld [vmem:[#allocation2 + $0x5d8] sm:$0xff] }
 0x14d   :  { %3242 = vmatpush.msrb.mxu2 %v953_v32  ;;  %3262 = vmatpush.msrb.mxu3 %v1081_v53  ;;  %v586_v26 = vld [vmem:[#allocation2 + $0x1b48] sm:$0xff]  ;;  %v322_v31 = vld [vmem:[#allocation2 + $0xcd8] sm:$0xff] }
 0x14e   :  { %3203 = vmatpush.msrb.mxu0 %v689_v55  ;;  %3223 = vmatpush.msrb.mxu1 %v817_v56  ;;  %v450_v32 = vld [vmem:[#allocation2 + $0x13d8] sm:$0xff]  ;;  %v186_v55 = vld [vmem:[#allocation2 + $0x568] sm:$0xff] }
 0x14f   :  { %3243 = vmatpush.msrb.mxu2 %v945_v33  ;;  %3263 = vmatpush.msrb.mxu3 %v1073_v57  ;;  %v578_v53 = vld [vmem:[#allocation2 + $0x1ad8] sm:$0xff]  ;;  %v314_v56 = vld [vmem:[#allocation2 + $0xc68] sm:$0xff] }
 0x150   :  { %3204 = vmatpush.msrb.mxu0 %v681_v58  ;;  %3224 = vmatpush.msrb.mxu1 %v809_v59  ;;  %v442_v33 = vld [vmem:[#allocation2 + $0x1368] sm:$0xff]  ;;  %v178_v58 = vld [vmem:[#allocation2 + $0x4f8] sm:$0xff] }
 0x151   :  { %3244 = vmatpush.msrb.mxu2 %v937_v60  ;;  %3264 = vmatpush.msrb.mxu3 %v1065_v61  ;;  %v570_v57 = vld [vmem:[#allocation2 + $0x1a68] sm:$0xff]  ;;  %v306_v59 = vld [vmem:[#allocation2 + $0xbf8] sm:$0xff] }
 0x152   :  { %3205 = vmatpush.msrb.mxu0 %v673_v62  ;;  %3225 = vmatpush.msrb.mxu1 %v801_v63  ;;  %v434_v60 = vld [vmem:[#allocation2 + $0x12f8] sm:$0xff]  ;;  %v5821_v62 = vld.sshfl [vmem:[#allocation1 + $0x30] sm:$0xff pattern:$0x73625140] }
 0x153   :  { %3245 = vmatpush.msrb.mxu2 %v929_v0  ;;  %3265 = vmatpush.msrb.mxu3 %v1057_v1  ;;  %v562_v61 = vld [vmem:[#allocation2 + $0x19f8] sm:$0xff]  ;;  %v170_v63 = vld [vmem:[#allocation2 + $0x488] sm:$0xff] }
 0x154   :  { %3206 = vmatpush.msrb.mxu0 %v665_v46  ;;  %3226 = vmatpush.msrb.mxu1 %v793_v6  ;;  %v298_v0 = vld [vmem:[#allocation2 + $0xb88] sm:$0xff]  ;;  %v5824_v46 = vld.sshfl [vmem:[#allocation1 + $0x20] sm:$0xff pattern:$0x73625140] }
 0x155   :  { %3246 = vmatpush.msrb.mxu2 %v921_v7  ;;  %3266 = vmatpush.msrb.mxu3 %v1049_v8  ;;  %v426_v1 = vld [vmem:[#allocation2 + $0x1288] sm:$0xff]  ;;  %v5827_v7 = vld.sshfl [vmem:[#allocation1 + $0x38] sm:$0xff pattern:$0x73625140]  ;;  %v162_v8 = vld [vmem:[#allocation2 + $0x418] sm:$0xff] }
 0x156   :  { %3207 = vmatpush.msrb.mxu0 %v657_v22  ;;  %3227 = vmatpush.msrb.mxu1 %v785_v51  ;;  %v554_v6 = vld [vmem:[#allocation2 + $0x1988] sm:$0xff]  ;;  %v290_v22 = vld [vmem:[#allocation2 + $0xb18] sm:$0xff] }
 0x157   :  { %3247 = vmatpush.msrb.mxu2 %v913_v9  ;;  %3267 = vmatpush.msrb.mxu3 %v1041_v10  ;;  %v418_v51 = vld [vmem:[#allocation2 + $0x1218] sm:$0xff]  ;;  %v5830_v10 = vld.sshfl [vmem:[#allocation1 + $0x28] sm:$0xff pattern:$0x73625140] }
 0x158   :  { %3208 = vmatpush.msrb.mxu0 %v649_v11  ;;  %3228 = vmatpush.msrb.mxu1 %v777_v12  ;;  %v546_v9 = vld [vmem:[#allocation2 + $0x1918] sm:$0xff]  ;;  %v154_v11 = vld [vmem:[#allocation2 + $0x3a8] sm:$0xff] }
 0x159   :  { %3248 = vmatpush.msrb.mxu2 %v905_v54  ;;  %3268 = vmatpush.msrb.mxu3 %v1033_v13  ;;  %v282_v12 = vld [vmem:[#allocation2 + $0xaa8] sm:$0xff] }
 0x15a   :  { %3209 = vmatpush.msrb.mxu0 %v641_v14  ;;  %3229 = vmatpush.msrb.mxu1 %v769_v15  ;;  %v410_v54 = vld [vmem:[#allocation2 + $0x11a8] sm:$0xff]  ;;  %v146_v14 = vld [vmem:[#allocation2 + $0x338] sm:$0xff] }
 0x15b   :  { %3249 = vmatpush.msrb.mxu2 %v897_v16  ;;  %3269 = vmatpush.msrb.mxu3 %v1025_v17  ;;  %v538_v13 = vld [vmem:[#allocation2 + $0x18a8] sm:$0xff]  ;;  %v274_v15 = vld [vmem:[#allocation2 + $0xa38] sm:$0xff] }
 0x15c   :  { %3210 = vmatpush.msrb.mxu0 %v633_v18  ;;  %3230 = vmatpush.msrb.mxu1 %v761_v19  ;;  %v402_v16 = vld [vmem:[#allocation2 + $0x1138] sm:$0xff]  ;;  %v138_v18 = vld [vmem:[#allocation2 + $0x2c8] sm:$0xff] }
 0x15d   :  { %3250 = vmatpush.msrb.mxu2 %v889_v20  ;;  %3270 = vmatpush.msrb.mxu3 %v1017_v21  ;;  %v530_v17 = vld [vmem:[#allocation2 + $0x1838] sm:$0xff]  ;;  %v266_v19 = vld [vmem:[#allocation2 + $0x9c8] sm:$0xff] }
 0x15e   :  { %3211 = vmatpush.msrb.mxu0 %v625_v23  ;;  %3231 = vmatpush.msrb.mxu1 %v753_v24  ;;  %v394_v20 = vld [vmem:[#allocation2 + $0x10c8] sm:$0xff]  ;;  %v130_v23 = vld [vmem:[#allocation2 + $0x258] sm:$0xff] }
 0x15f   :  { %3251 = vmatpush.msrb.mxu2 %v881_v29  ;;  %3271 = vmatpush.msrb.mxu3 %v1009_v30  ;;  %v522_v21 = vld [vmem:[#allocation2 + $0x17c8] sm:$0xff]  ;;  %v258_v24 = vld [vmem:[#allocation2 + $0x958] sm:$0xff] }
 0x160   :  { %3212 = vmatpush.msrb.mxu0 %v617_v34  ;;  %3232 = vmatpush.msrb.mxu1 %v745_v35  ;;  %v386_v29 = vld [vmem:[#allocation2 + $0x1058] sm:$0xff]  ;;  %v122_v34 = vld [vmem:[#allocation2 + $0x1e8] sm:$0xff] }
 0x161   :  { %3252 = vmatpush.msrb.mxu2 %v873_v2  ;;  %3272 = vmatpush.msrb.mxu3 %v1001_v3  ;;  %v514_v30 = vld [vmem:[#allocation2 + $0x1758] sm:$0xff]  ;;  %v250_v35 = vld [vmem:[#allocation2 + $0x8e8] sm:$0xff] }
 0x162   :  { %3213 = vmatpush.msrb.mxu0 %v609_v36  ;;  %3233 = vmatpush.msrb.mxu1 %v737_v4  ;;  %v378_v2 = vld [vmem:[#allocation2 + $0xfe8] sm:$0xff]  ;;  %v114_v36 = vld [vmem:[#allocation2 + $0x178] sm:$0xff] }
 0x163   :  { %3253 = vmatpush.msrb.mxu2 %v865_v5  ;;  %3273 = vmatpush.msrb.mxu3 %v993_v37  ;;  %v506_v3 = vld [vmem:[#allocation2 + $0x16e8] sm:$0xff]  ;;  %v242_v4 = vld [vmem:[#allocation2 + $0x878] sm:$0xff] }
 0x164   :  { %3214 = vmatpush.msrb.mxu0 %v601_v38  ;;  %3234 = vmatpush.msrb.mxu1 %v729_v39  ;;  %v370_v5 = vld [vmem:[#allocation2 + $0xf78] sm:$0xff]  ;;  %v106_v38 = vld [vmem:[#allocation2 + $0x108] sm:$0xff] }
 0x165   :  { %3254 = vmatpush.msrb.mxu2 %v857_v40  ;;  %3274 = vmatpush.msrb.mxu3 %v985_v41  ;;  %v498_v37 = vld [vmem:[#allocation2 + $0x1678] sm:$0xff]  ;;  %v234_v39 = vld [vmem:[#allocation2 + $0x808] sm:$0xff] }
 0x166   :  { %3135 = vmatmul.f32.vlgmr.msra.gmra.mxu0 %v5809_v44  ;;  %3155 = vmatmul.f32.vlgmr.msra.gmra.mxu1 %v5812_v45  ;;  %v362_v40 = vld [vmem:[#allocation2 + $0xf08] sm:$0xff] }
 0x167   :  { %3175 = vmatmul.f32.vlgmr.msra.gmra.mxu2 %v5815_v49  ;;  %3195 = vmatmul.f32.vlgmr.msra.gmra.mxu3 %v5818_v50  ;;  %v490_v41 = vld [vmem:[#allocation2 + $0x1608] sm:$0xff] }
 0x168   :  { %3279 = vmatpush.msra.mxu0 %v210_v42  ;;  %3299 = vmatpush.msra.mxu1 %v338_v43  ;;  %v98_v42 = vld [vmem:[#allocation2 + $0x98] sm:$0xff] }
 0x169   :  { %3319 = vmatpush.msra.mxu2 %v466_v47  ;;  %3339 = vmatpush.msra.mxu3 %v594_v48  ;;  %v226_v43 = vld [vmem:[#allocation2 + $0x798] sm:$0xff] }
 0x16a   :  { %3280 = vmatpush.msra.mxu0 %v202_v52  ;;  %3300 = vmatpush.msra.mxu1 %v330_v27  ;;  %v354_v47 = vld [vmem:[#allocation2 + $0xe98] sm:$0xff]  ;;  %v90_v52 = vld [vmem:[#allocation2 + $0x28] sm:$0xff] }
 0x16b   :  { %3320 = vmatpush.msra.mxu2 %v458_v25  ;;  %3340 = vmatpush.msra.mxu3 %v586_v26  ;;  %v482_v48 = vld [vmem:[#allocation2 + $0x1598] sm:$0xff]  ;;  %v218_v27 = vld [vmem:[#allocation2 + $0x728] sm:$0xff] }
 0x16c   :  { %3281 = vmatpush.msra.mxu0 %v194_v28  ;;  %3301 = vmatpush.msra.mxu1 %v322_v31  ;;  %v346_v25 = vld [vmem:[#allocation2 + $0xe28] sm:$0xff]  ;;  %v722_v28 = vld [vmem:[#allocation2 + $0x22b8] sm:$0xff] }
 0x16d   :  { %3321 = vmatpush.msra.mxu2 %v450_v32  ;;  %3341 = vmatpush.msra.mxu3 %v578_v53  ;;  %v474_v26 = vld [vmem:[#allocation2 + $0x1528] sm:$0xff]  ;;  %v850_v31 = vld [vmem:[#allocation2 + $0x29b8] sm:$0xff] }
 0x16e   :  { %3282 = vmatpush.msra.mxu0 %v186_v55  ;;  %3302 = vmatpush.msra.mxu1 %v314_v56  ;;  %v978_v32 = vld [vmem:[#allocation2 + $0x30b8] sm:$0xff]  ;;  %v714_v55 = vld [vmem:[#allocation2 + $0x2248] sm:$0xff] }
 0x16f   :  { %3322 = vmatpush.msra.mxu2 %v442_v33  ;;  %3342 = vmatpush.msra.mxu3 %v570_v57  ;;  %v1106_v53 = vld [vmem:[#allocation2 + $0x37b8] sm:$0xff]  ;;  %v842_v56 = vld [vmem:[#allocation2 + $0x2948] sm:$0xff] }
 0x170   :  { %3255 = vmatmul.f32.vlgmr.msrb.gmra.mxu2 %v5821_v62  ;;  %3283 = vmatpush.msra.mxu0 %v178_v58  ;;  %v970_v33 = vld [vmem:[#allocation2 + $0x3048] sm:$0xff]  ;;  %v706_v58 = vld [vmem:[#allocation2 + $0x21d8] sm:$0xff] }
 0x171   :  { %3303 = vmatpush.msra.mxu1 %v306_v59  ;;  %3323 = vmatpush.msra.mxu2 %v434_v60  ;;  %v1098_v57 = vld [vmem:[#allocation2 + $0x3748] sm:$0xff]  ;;  %v834_v59 = vld [vmem:[#allocation2 + $0x28d8] sm:$0xff] }
 0x172   :  { %3343 = vmatpush.msra.mxu3 %v562_v61  ;;  %3215 = vmatmul.f32.vlgmr.msrb.gmra.mxu0 %v5824_v46  ;;  %v962_v60 = vld [vmem:[#allocation2 + $0x2fd8] sm:$0xff] }
 0x173   :  { %3275 = vmatmul.f32.vlgmr.msrb.gmra.mxu3 %v5827_v7  ;;  %3284 = vmatpush.msra.mxu0 %v170_v63  ;;  %v1090_v61 = vld [vmem:[#allocation2 + $0x36d8] sm:$0xff]  ;;  %v698_v63 = vld [vmem:[#allocation2 + $0x2168] sm:$0xff] }
 0x174   :  { %3304 = vmatpush.msra.mxu1 %v298_v0  ;;  %3324 = vmatpush.msra.mxu2 %v426_v1  ;;  %v826_v0 = vld [vmem:[#allocation2 + $0x2868] sm:$0xff] }
 0x175   :  { %3344 = vmatpush.msra.mxu3 %v554_v6  ;;  %3235 = vmatmul.f32.vlgmr.msrb.gmra.mxu1 %v5830_v10  ;;  %v954_v1 = vld [vmem:[#allocation2 + $0x2f68] sm:$0xff] }
 0x176   :  { %3285 = vmatpush.msra.mxu0 %v162_v8  ;;  %3305 = vmatpush.msra.mxu1 %v290_v22  ;;  %v1082_v6 = vld [vmem:[#allocation2 + $0x3668] sm:$0xff]  ;;  %v690_v8 = vld [vmem:[#allocation2 + $0x20f8] sm:$0xff] }
 0x177   :  { %3325 = vmatpush.msra.mxu2 %v418_v51  ;;  %3345 = vmatpush.msra.mxu3 %v546_v9  ;;  %v818_v22 = vld [vmem:[#allocation2 + $0x27f8] sm:$0xff] }
 0x178   :  { %3286 = vmatpush.msra.mxu0 %v154_v11  ;;  %3306 = vmatpush.msra.mxu1 %v282_v12  ;;  %v946_v51 = vld [vmem:[#allocation2 + $0x2ef8] sm:$0xff]  ;;  %v682_v11 = vld [vmem:[#allocation2 + $0x2088] sm:$0xff] }
 0x179   :  { %3326 = vmatpush.msra.mxu2 %v410_v54  ;;  %3346 = vmatpush.msra.mxu3 %v538_v13  ;;  %v1074_v9 = vld [vmem:[#allocation2 + $0x35f8] sm:$0xff]  ;;  %v810_v12 = vld [vmem:[#allocation2 + $0x2788] sm:$0xff] }
 0x17a   :  { %3287 = vmatpush.msra.mxu0 %v146_v14  ;;  %3307 = vmatpush.msra.mxu1 %v274_v15  ;;  %v938_v54 = vld [vmem:[#allocation2 + $0x2e88] sm:$0xff]  ;;  %v674_v14 = vld [vmem:[#allocation2 + $0x2018] sm:$0xff] }
 0x17b   :  { %3327 = vmatpush.msra.mxu2 %v402_v16  ;;  %3347 = vmatpush.msra.mxu3 %v530_v17  ;;  %v1066_v13 = vld [vmem:[#allocation2 + $0x3588] sm:$0xff]  ;;  %v802_v15 = vld [vmem:[#allocation2 + $0x2718] sm:$0xff] }
 0x17c   :  { %3288 = vmatpush.msra.mxu0 %v138_v18  ;;  %3308 = vmatpush.msra.mxu1 %v266_v19  ;;  %v930_v16 = vld [vmem:[#allocation2 + $0x2e18] sm:$0xff]  ;;  %v666_v18 = vld [vmem:[#allocation2 + $0x1fa8] sm:$0xff] }
 0x17d   :  { %3328 = vmatpush.msra.mxu2 %v394_v20  ;;  %3348 = vmatpush.msra.mxu3 %v522_v21  ;;  %v1058_v17 = vld [vmem:[#allocation2 + $0x3518] sm:$0xff]  ;;  %v794_v19 = vld [vmem:[#allocation2 + $0x26a8] sm:$0xff] }
 0x17e   :  { %3289 = vmatpush.msra.mxu0 %v130_v23  ;;  %3309 = vmatpush.msra.mxu1 %v258_v24  ;;  %v922_v20 = vld [vmem:[#allocation2 + $0x2da8] sm:$0xff]  ;;  %v658_v23 = vld [vmem:[#allocation2 + $0x1f38] sm:$0xff] }
 0x17f   :  { %3329 = vmatpush.msra.mxu2 %v386_v29  ;;  %3349 = vmatpush.msra.mxu3 %v514_v30  ;;  %v1050_v21 = vld [vmem:[#allocation2 + $0x34a8] sm:$0xff]  ;;  %v786_v24 = vld [vmem:[#allocation2 + $0x2638] sm:$0xff] }
 0x180   :  { %3290 = vmatpush.msra.mxu0 %v122_v34  ;;  %3310 = vmatpush.msra.mxu1 %v250_v35  ;;  %v914_v29 = vld [vmem:[#allocation2 + $0x2d38] sm:$0xff]  ;;  %v650_v34 = vld [vmem:[#allocation2 + $0x1ec8] sm:$0xff] }
 0x181   :  { %3330 = vmatpush.msra.mxu2 %v378_v2  ;;  %3350 = vmatpush.msra.mxu3 %v506_v3  ;;  %v1042_v30 = vld [vmem:[#allocation2 + $0x3438] sm:$0xff]  ;;  %v778_v35 = vld [vmem:[#allocation2 + $0x25c8] sm:$0xff] }
 0x182   :  { %3291 = vmatpush.msra.mxu0 %v114_v36  ;;  %3311 = vmatpush.msra.mxu1 %v242_v4  ;;  %v906_v2 = vld [vmem:[#allocation2 + $0x2cc8] sm:$0xff]  ;;  %v642_v36 = vld [vmem:[#allocation2 + $0x1e58] sm:$0xff] }
 0x183   :  { %3331 = vmatpush.msra.mxu2 %v370_v5  ;;  %3351 = vmatpush.msra.mxu3 %v498_v37  ;;  %v1034_v3 = vld [vmem:[#allocation2 + $0x33c8] sm:$0xff]  ;;  %v770_v4 = vld [vmem:[#allocation2 + $0x2558] sm:$0xff] }
 0x184   :  { %3292 = vmatpush.msra.mxu0 %v106_v38  ;;  %3312 = vmatpush.msra.mxu1 %v234_v39  ;;  %v898_v5 = vld [vmem:[#allocation2 + $0x2c58] sm:$0xff]  ;;  %v634_v38 = vld [vmem:[#allocation2 + $0x1de8] sm:$0xff] }
 0x185   :  { %3332 = vmatpush.msra.mxu2 %v362_v40  ;;  %3352 = vmatpush.msra.mxu3 %v490_v41  ;;  %v1026_v37 = vld [vmem:[#allocation2 + $0x3358] sm:$0xff]  ;;  %v762_v39 = vld [vmem:[#allocation2 + $0x24e8] sm:$0xff] }
 0x186   :  { %3293 = vmatpush.msra.mxu0 %v98_v42  ;;  %3313 = vmatpush.msra.mxu1 %v226_v43  ;;  %v890_v40 = vld [vmem:[#allocation2 + $0x2be8] sm:$0xff]  ;;  %v626_v42 = vld [vmem:[#allocation2 + $0x1d78] sm:$0xff] }
 0x187   :  { %3333 = vmatpush.msra.mxu2 %v354_v47  ;;  %3353 = vmatpush.msra.mxu3 %v482_v48  ;;  %v1018_v41 = vld [vmem:[#allocation2 + $0x32e8] sm:$0xff]  ;;  %v754_v43 = vld [vmem:[#allocation2 + $0x2478] sm:$0xff] }
 0x188   :  { %3294 = vmatpush.msra.mxu0 %v90_v52  ;;  %3314 = vmatpush.msra.mxu1 %v218_v27  ;;  %v882_v47 = vld [vmem:[#allocation2 + $0x2b78] sm:$0xff]  ;;  %v618_v52 = vld [vmem:[#allocation2 + $0x1d08] sm:$0xff] }
 0x189   :  { %3334 = vmatpush.msra.mxu2 %v346_v25  ;;  %3354 = vmatpush.msra.mxu3 %v474_v26  ;;  %v1010_v48 = vld [vmem:[#allocation2 + $0x3278] sm:$0xff]  ;;  %v746_v27 = vld [vmem:[#allocation2 + $0x2408] sm:$0xff] }
 0x18a   :  { %3359 = vmatpush.msrb.mxu0 %v722_v28  ;;  %3379 = vmatpush.msrb.mxu1 %v850_v31  ;;  %v874_v25 = vld [vmem:[#allocation2 + $0x2b08] sm:$0xff]  ;;  %v610_v28 = vld [vmem:[#allocation2 + $0x1c98] sm:$0xff] }
 0x18b   :  { %3399 = vmatpush.msrb.mxu2 %v978_v32  ;;  %3419 = vmatpush.msrb.mxu3 %v1106_v53  ;;  %v1002_v26 = vld [vmem:[#allocation2 + $0x3208] sm:$0xff]  ;;  %v738_v31 = vld [vmem:[#allocation2 + $0x2398] sm:$0xff] }
 0x18c   :  { %3360 = vmatpush.msrb.mxu0 %v714_v55  ;;  %3380 = vmatpush.msrb.mxu1 %v842_v56  ;;  %v866_v32 = vld [vmem:[#allocation2 + $0x2a98] sm:$0xff]  ;;  %v602_v55 = vld [vmem:[#allocation2 + $0x1c28] sm:$0xff] }
 0x18d   :  { %3400 = vmatpush.msrb.mxu2 %v970_v33  ;;  %3420 = vmatpush.msrb.mxu3 %v1098_v57  ;;  %v994_v53 = vld [vmem:[#allocation2 + $0x3198] sm:$0xff]  ;;  %v730_v56 = vld [vmem:[#allocation2 + $0x2328] sm:$0xff] }
 0x18e   :  { %3361 = vmatpush.msrb.mxu0 %v706_v58  ;;  %3381 = vmatpush.msrb.mxu1 %v834_v59  ;;  %v858_v33 = vld [vmem:[#allocation2 + $0x2a28] sm:$0xff]  ;;  %v211_v58 = vld [vmem:[#allocation2 + $0x6c0] sm:$0xff] }
 0x18f   :  { %3401 = vmatpush.msrb.mxu2 %v962_v60  ;;  %3421 = vmatpush.msrb.mxu3 %v1090_v61  ;;  %v986_v57 = vld [vmem:[#allocation2 + $0x3128] sm:$0xff]  ;;  %v339_v59 = vld [vmem:[#allocation2 + $0xdc0] sm:$0xff] }
 0x190   :  { %3362 = vmatpush.msrb.mxu0 %v698_v63  ;;  %3382 = vmatpush.msrb.mxu1 %v826_v0  ;;  %v467_v60 = vld [vmem:[#allocation2 + $0x14c0] sm:$0xff]  ;;  %v203_v63 = vld [vmem:[#allocation2 + $0x650] sm:$0xff] }
 0x191   :  { %3402 = vmatpush.msrb.mxu2 %v954_v1  ;;  %3422 = vmatpush.msrb.mxu3 %v1082_v6  ;;  %v595_v61 = vld [vmem:[#allocation2 + $0x1bc0] sm:$0xff]  ;;  %v331_v0 = vld [vmem:[#allocation2 + $0xd50] sm:$0xff] }
 0x192   :  { %3363 = vmatpush.msrb.mxu0 %v690_v8  ;;  %3383 = vmatpush.msrb.mxu1 %v818_v22  ;;  %v459_v1 = vld [vmem:[#allocation2 + $0x1450] sm:$0xff]  ;;  %v195_v8 = vld [vmem:[#allocation2 + $0x5e0] sm:$0xff] }
 0x193   :  { %3403 = vmatpush.msrb.mxu2 %v946_v51  ;;  %3423 = vmatpush.msrb.mxu3 %v1074_v9  ;;  %v587_v6 = vld [vmem:[#allocation2 + $0x1b50] sm:$0xff]  ;;  %v323_v22 = vld [vmem:[#allocation2 + $0xce0] sm:$0xff] }
 0x194   :  { %3364 = vmatpush.msrb.mxu0 %v682_v11  ;;  %3384 = vmatpush.msrb.mxu1 %v810_v12  ;;  %v451_v51 = vld [vmem:[#allocation2 + $0x13e0] sm:$0xff]  ;;  %v187_v9 = vld [vmem:[#allocation2 + $0x570] sm:$0xff] }
 0x195   :  { %3404 = vmatpush.msrb.mxu2 %v938_v54  ;;  %3424 = vmatpush.msrb.mxu3 %v1066_v13  ;;  %v315_v11 = vld [vmem:[#allocation2 + $0xc70] sm:$0xff]  ;;  %v179_v13 = vld [vmem:[#allocation2 + $0x500] sm:$0xff] }
 0x196   :  { %3365 = vmatpush.msrb.mxu0 %v674_v14  ;;  %3385 = vmatpush.msrb.mxu1 %v802_v15  ;;  %v443_v12 = vld [vmem:[#allocation2 + $0x1370] sm:$0xff]  ;;  %v307_v14 = vld [vmem:[#allocation2 + $0xc00] sm:$0xff] }
 0x197   :  { %3405 = vmatpush.msrb.mxu2 %v930_v16  ;;  %3425 = vmatpush.msrb.mxu3 %v1058_v17  ;;  %v571_v54 = vld [vmem:[#allocation2 + $0x1a70] sm:$0xff]  ;;  %v435_v15 = vld [vmem:[#allocation2 + $0x1300] sm:$0xff] }
 0x198   :  { %3366 = vmatpush.msrb.mxu0 %v666_v18  ;;  %3386 = vmatpush.msrb.mxu1 %v794_v19  ;;  %v563_v16 = vld [vmem:[#allocation2 + $0x1a00] sm:$0xff]  ;;  %v171_v17 = vld [vmem:[#allocation2 + $0x490] sm:$0xff] }
 0x199   :  { %3406 = vmatpush.msrb.mxu2 %v922_v20  ;;  %3426 = vmatpush.msrb.mxu3 %v1050_v21  ;;  %v299_v18 = vld [vmem:[#allocation2 + $0xb90] sm:$0xff]  ;;  %v163_v21 = vld [vmem:[#allocation2 + $0x420] sm:$0xff] }
 0x19a   :  { %3367 = vmatpush.msrb.mxu0 %v658_v23  ;;  %3387 = vmatpush.msrb.mxu1 %v786_v24  ;;  %v427_v19 = vld [vmem:[#allocation2 + $0x1290] sm:$0xff]  ;;  %v291_v23 = vld [vmem:[#allocation2 + $0xb20] sm:$0xff] }
 0x19b   :  { %3407 = vmatpush.msrb.mxu2 %v914_v29  ;;  %3427 = vmatpush.msrb.mxu3 %v1042_v30  ;;  %v555_v20 = vld [vmem:[#allocation2 + $0x1990] sm:$0xff]  ;;  %v419_v24 = vld [vmem:[#allocation2 + $0x1220] sm:$0xff] }
 0x19c   :  { %3368 = vmatpush.msrb.mxu0 %v650_v34  ;;  %3388 = vmatpush.msrb.mxu1 %v778_v35  ;;  %v547_v29 = vld [vmem:[#allocation2 + $0x1920] sm:$0xff]  ;;  %v155_v30 = vld [vmem:[#allocation2 + $0x3b0] sm:$0xff] }
 0x19d   :  { %3408 = vmatpush.msrb.mxu2 %v906_v2  ;;  %3428 = vmatpush.msrb.mxu3 %v1034_v3  ;;  %v283_v34 = vld [vmem:[#allocation2 + $0xab0] sm:$0xff]  ;;  %v147_v3 = vld [vmem:[#allocation2 + $0x340] sm:$0xff] }
 0x19e   :  { %3369 = vmatpush.msrb.mxu0 %v642_v36  ;;  %3389 = vmatpush.msrb.mxu1 %v770_v4  ;;  %v411_v35 = vld [vmem:[#allocation2 + $0x11b0] sm:$0xff]  ;;  %v275_v36 = vld [vmem:[#allocation2 + $0xa40] sm:$0xff] }
 0x19f   :  { %3409 = vmatpush.msrb.mxu2 %v898_v5  ;;  %3429 = vmatpush.msrb.mxu3 %v1026_v37  ;;  %v539_v2 = vld [vmem:[#allocation2 + $0x18b0] sm:$0xff]  ;;  %v403_v4 = vld [vmem:[#allocation2 + $0x1140] sm:$0xff] }
 0x1a0   :  { %3370 = vmatpush.msrb.mxu0 %v634_v38  ;;  %3390 = vmatpush.msrb.mxu1 %v762_v39  ;;  %v531_v5 = vld [vmem:[#allocation2 + $0x1840] sm:$0xff]  ;;  %v139_v37 = vld [vmem:[#allocation2 + $0x2d0] sm:$0xff] }
 0x1a1   :  { %3410 = vmatpush.msrb.mxu2 %v890_v40  ;;  %3430 = vmatpush.msrb.mxu3 %v1018_v41  ;;  %v267_v38 = vld [vmem:[#allocation2 + $0x9d0] sm:$0xff]  ;;  %v131_v41 = vld [vmem:[#allocation2 + $0x260] sm:$0xff] }
 0x1a2   :  { %3371 = vmatpush.msrb.mxu0 %v626_v42  ;;  %3391 = vmatpush.msrb.mxu1 %v754_v43  ;;  %v395_v39 = vld [vmem:[#allocation2 + $0x10d0] sm:$0xff]  ;;  %v259_v42 = vld [vmem:[#allocation2 + $0x960] sm:$0xff] }
 0x1a3   :  { %3411 = vmatpush.msrb.mxu2 %v882_v47  ;;  %3431 = vmatpush.msrb.mxu3 %v1010_v48  ;;  %v523_v40 = vld [vmem:[#allocation2 + $0x17d0] sm:$0xff]  ;;  %v387_v43 = vld [vmem:[#allocation2 + $0x1060] sm:$0xff] }
 0x1a4   :  { %3372 = vmatpush.msrb.mxu0 %v618_v52  ;;  %3392 = vmatpush.msrb.mxu1 %v746_v27  ;;  %v515_v47 = vld [vmem:[#allocation2 + $0x1760] sm:$0xff]  ;;  %v123_v48 = vld [vmem:[#allocation2 + $0x1f0] sm:$0xff] }
 0x1a5   :  { %3412 = vmatpush.msrb.mxu2 %v874_v25  ;;  %3432 = vmatpush.msrb.mxu3 %v1002_v26  ;;  %v251_v52 = vld [vmem:[#allocation2 + $0x8f0] sm:$0xff]  ;;  %v115_v26 = vld [vmem:[#allocation2 + $0x180] sm:$0xff] }
 0x1a6   :  { %3373 = vmatpush.msrb.mxu0 %v610_v28  ;;  %3393 = vmatpush.msrb.mxu1 %v738_v31  ;;  %v379_v27 = vld [vmem:[#allocation2 + $0xff0] sm:$0xff]  ;;  %v243_v28 = vld [vmem:[#allocation2 + $0x880] sm:$0xff] }
 0x1a7   :  { %3413 = vmatpush.msrb.mxu2 %v866_v32  ;;  %3433 = vmatpush.msrb.mxu3 %v994_v53  ;;  %v507_v25 = vld [vmem:[#allocation2 + $0x16f0] sm:$0xff]  ;;  %v371_v31 = vld [vmem:[#allocation2 + $0xf80] sm:$0xff] }
 0x1a8   :  { %3374 = vmatpush.msrb.mxu0 %v602_v55  ;;  %3394 = vmatpush.msrb.mxu1 %v730_v56  ;;  %v499_v32 = vld [vmem:[#allocation2 + $0x1680] sm:$0xff]  ;;  %v107_v53 = vld [vmem:[#allocation2 + $0x110] sm:$0xff] }
 0x1a9   :  { %3414 = vmatpush.msrb.mxu2 %v858_v33  ;;  %3434 = vmatpush.msrb.mxu3 %v986_v57  ;;  %v235_v55 = vld [vmem:[#allocation2 + $0x810] sm:$0xff]  ;;  %v99_v57 = vld [vmem:[#allocation2 + $0xa0] sm:$0xff] }
 0x1aa   :  { %3295 = vmatmul.f32.vlgmr.msra.gmra.mxu0 %v5809_v44  ;;  %3315 = vmatmul.f32.vlgmr.msra.gmra.mxu1 %v5812_v45  ;;  %v579_v45 = vld [vmem:[#allocation2 + $0x1ae0] sm:$0xff]  ;;  %v363_v56 = vld [vmem:[#allocation2 + $0xf10] sm:$0xff] }
 0x1ab   :  { %3335 = vmatmul.f32.vlgmr.msra.gmra.mxu2 %v5815_v49  ;;  %3355 = vmatmul.f32.vlgmr.msra.gmra.mxu3 %v5818_v50  ;;  %v491_v33 = vld [vmem:[#allocation2 + $0x1610] sm:$0xff] }
 0x1ac   :  { %3439 = vmatpush.msra.mxu0 %v211_v58  ;;  %3459 = vmatpush.msra.mxu1 %v339_v59  ;;  %v227_v58 = vld [vmem:[#allocation2 + $0x7a0] sm:$0xff] }
 0x1ad   :  { %3479 = vmatpush.msra.mxu2 %v467_v60  ;;  %3499 = vmatpush.msra.mxu3 %v595_v61  ;;  %v355_v59 = vld [vmem:[#allocation2 + $0xea0] sm:$0xff]  ;;  %v91_v61 = vld [vmem:[#allocation2 + $0x30] sm:$0xff] }
 0x1ae   :  { %3440 = vmatpush.msra.mxu0 %v203_v63  ;;  %3460 = vmatpush.msra.mxu1 %v331_v0  ;;  %v483_v60 = vld [vmem:[#allocation2 + $0x15a0] sm:$0xff]  ;;  %v219_v63 = vld [vmem:[#allocation2 + $0x730] sm:$0xff] }
 0x1af   :  { %3480 = vmatpush.msra.mxu2 %v459_v1  ;;  %3500 = vmatpush.msra.mxu3 %v587_v6  ;;  %v347_v0 = vld [vmem:[#allocation2 + $0xe30] sm:$0xff]  ;;  %v723_v6 = vld [vmem:[#allocation2 + $0x22c0] sm:$0xff] }
 0x1b0   :  { %3441 = vmatpush.msra.mxu0 %v195_v8  ;;  %3461 = vmatpush.msra.mxu1 %v323_v22  ;;  %v475_v1 = vld [vmem:[#allocation2 + $0x1530] sm:$0xff]  ;;  %v851_v8 = vld [vmem:[#allocation2 + $0x29c0] sm:$0xff] }
 0x1b1   :  { %3481 = vmatpush.msra.mxu2 %v451_v51  ;;  %3501 = vmatpush.msra.mxu3 %v579_v45  ;;  %v979_v22 = vld [vmem:[#allocation2 + $0x30c0] sm:$0xff]  ;;  %v715_v45 = vld [vmem:[#allocation2 + $0x2250] sm:$0xff] }
 0x1b2   :  { %3442 = vmatpush.msra.mxu0 %v187_v9  ;;  %3462 = vmatpush.msra.mxu1 %v315_v11  ;;  %v1107_v51 = vld [vmem:[#allocation2 + $0x37c0] sm:$0xff]  ;;  %v843_v9 = vld [vmem:[#allocation2 + $0x2950] sm:$0xff] }
 0x1b3   :  { %3482 = vmatpush.msra.mxu2 %v443_v12  ;;  %3502 = vmatpush.msra.mxu3 %v571_v54  ;;  %v971_v11 = vld [vmem:[#allocation2 + $0x3050] sm:$0xff]  ;;  %v707_v54 = vld [vmem:[#allocation2 + $0x21e0] sm:$0xff] }
 0x1b4   :  { %3415 = vmatmul.f32.vlgmr.msrb.gmra.mxu2 %v5821_v62  ;;  %3443 = vmatpush.msra.mxu0 %v179_v13  ;;  %v1099_v12 = vld [vmem:[#allocation2 + $0x3750] sm:$0xff]  ;;  %v835_v13 = vld [vmem:[#allocation2 + $0x28e0] sm:$0xff] }
 0x1b5   :  { %3463 = vmatpush.msra.mxu1 %v307_v14  ;;  %3483 = vmatpush.msra.mxu2 %v435_v15  ;;  %v963_v14 = vld [vmem:[#allocation2 + $0x2fe0] sm:$0xff] }
 0x1b6   :  { %3503 = vmatpush.msra.mxu3 %v563_v16  ;;  %3375 = vmatmul.f32.vlgmr.msrb.gmra.mxu0 %v5824_v46  ;;  %v1091_v15 = vld [vmem:[#allocation2 + $0x36e0] sm:$0xff]  ;;  %v699_v16 = vld [vmem:[#allocation2 + $0x2170] sm:$0xff] }
 0x1b7   :  { %3435 = vmatmul.f32.vlgmr.msrb.gmra.mxu3 %v5827_v7  ;;  %3444 = vmatpush.msra.mxu0 %v171_v17  ;;  %v827_v17 = vld [vmem:[#allocation2 + $0x2870] sm:$0xff] }
 0x1b8   :  { %3464 = vmatpush.msra.mxu1 %v299_v18  ;;  %3484 = vmatpush.msra.mxu2 %v427_v19  ;;  %v955_v18 = vld [vmem:[#allocation2 + $0x2f70] sm:$0xff] }
 0x1b9   :  { %3504 = vmatpush.msra.mxu3 %v555_v20  ;;  %3395 = vmatmul.f32.vlgmr.msrb.gmra.mxu1 %v5830_v10  ;;  %v1083_v19 = vld [vmem:[#allocation2 + $0x3670] sm:$0xff]  ;;  %v691_v20 = vld [vmem:[#allocation2 + $0x2100] sm:$0xff] }
 0x1ba   :  { %3445 = vmatpush.msra.mxu0 %v163_v21  ;;  %3465 = vmatpush.msra.mxu1 %v291_v23  ;;  %v819_v21 = vld [vmem:[#allocation2 + $0x2800] sm:$0xff] }
 0x1bb   :  { %3485 = vmatpush.msra.mxu2 %v419_v24  ;;  %3505 = vmatpush.msra.mxu3 %v547_v29  ;;  %v947_v23 = vld [vmem:[#allocation2 + $0x2f00] sm:$0xff]  ;;  %v683_v29 = vld [vmem:[#allocation2 + $0x2090] sm:$0xff] }
 0x1bc   :  { %3446 = vmatpush.msra.mxu0 %v155_v30  ;;  %3466 = vmatpush.msra.mxu1 %v283_v34  ;;  %v1075_v24 = vld [vmem:[#allocation2 + $0x3600] sm:$0xff]  ;;  %v811_v30 = vld [vmem:[#allocation2 + $0x2790] sm:$0xff] }
 0x1bd   :  { %3486 = vmatpush.msra.mxu2 %v411_v35  ;;  %3506 = vmatpush.msra.mxu3 %v539_v2  ;;  %v939_v34 = vld [vmem:[#allocation2 + $0x2e90] sm:$0xff]  ;;  %v675_v2 = vld [vmem:[#allocation2 + $0x2020] sm:$0xff] }
 0x1be   :  { %3447 = vmatpush.msra.mxu0 %v147_v3  ;;  %3467 = vmatpush.msra.mxu1 %v275_v36  ;;  %v1067_v35 = vld [vmem:[#allocation2 + $0x3590] sm:$0xff]  ;;  %v803_v3 = vld [vmem:[#allocation2 + $0x2720] sm:$0xff] }
 0x1bf   :  { %3487 = vmatpush.msra.mxu2 %v403_v4  ;;  %3507 = vmatpush.msra.mxu3 %v531_v5  ;;  %v931_v36 = vld [vmem:[#allocation2 + $0x2e20] sm:$0xff]  ;;  %v667_v5 = vld [vmem:[#allocation2 + $0x1fb0] sm:$0xff] }
 0x1c0   :  { %3448 = vmatpush.msra.mxu0 %v139_v37  ;;  %3468 = vmatpush.msra.mxu1 %v267_v38  ;;  %v1059_v4 = vld [vmem:[#allocation2 + $0x3520] sm:$0xff]  ;;  %v795_v37 = vld [vmem:[#allocation2 + $0x26b0] sm:$0xff] }
 0x1c1   :  { %3488 = vmatpush.msra.mxu2 %v395_v39  ;;  %3508 = vmatpush.msra.mxu3 %v523_v40  ;;  %v923_v38 = vld [vmem:[#allocation2 + $0x2db0] sm:$0xff]  ;;  %v659_v40 = vld [vmem:[#allocation2 + $0x1f40] sm:$0xff] }
 0x1c2   :  { %3449 = vmatpush.msra.mxu0 %v131_v41  ;;  %3469 = vmatpush.msra.mxu1 %v259_v42  ;;  %v1051_v39 = vld [vmem:[#allocation2 + $0x34b0] sm:$0xff]  ;;  %v787_v41 = vld [vmem:[#allocation2 + $0x2640] sm:$0xff] }
 0x1c3   :  { %3489 = vmatpush.msra.mxu2 %v387_v43  ;;  %3509 = vmatpush.msra.mxu3 %v515_v47  ;;  %v915_v42 = vld [vmem:[#allocation2 + $0x2d40] sm:$0xff]  ;;  %v651_v47 = vld [vmem:[#allocation2 + $0x1ed0] sm:$0xff] }
 0x1c4   :  { %3450 = vmatpush.msra.mxu0 %v123_v48  ;;  %3470 = vmatpush.msra.mxu1 %v251_v52  ;;  %v1043_v43 = vld [vmem:[#allocation2 + $0x3440] sm:$0xff]  ;;  %v779_v48 = vld [vmem:[#allocation2 + $0x25d0] sm:$0xff] }
 0x1c5   :  { %3490 = vmatpush.msra.mxu2 %v379_v27  ;;  %3510 = vmatpush.msra.mxu3 %v507_v25  ;;  %v907_v52 = vld [vmem:[#allocation2 + $0x2cd0] sm:$0xff]  ;;  %v643_v25 = vld [vmem:[#allocation2 + $0x1e60] sm:$0xff] }
 0x1c6   :  { %3451 = vmatpush.msra.mxu0 %v115_v26  ;;  %3471 = vmatpush.msra.mxu1 %v243_v28  ;;  %v1035_v27 = vld [vmem:[#allocation2 + $0x33d0] sm:$0xff]  ;;  %v771_v26 = vld [vmem:[#allocation2 + $0x2560] sm:$0xff] }
 0x1c7   :  { %3491 = vmatpush.msra.mxu2 %v371_v31  ;;  %3511 = vmatpush.msra.mxu3 %v499_v32  ;;  %v899_v28 = vld [vmem:[#allocation2 + $0x2c60] sm:$0xff]  ;;  %v635_v32 = vld [vmem:[#allocation2 + $0x1df0] sm:$0xff] }
 0x1c8   :  { %3452 = vmatpush.msra.mxu0 %v107_v53  ;;  %3472 = vmatpush.msra.mxu1 %v235_v55  ;;  %v1027_v31 = vld [vmem:[#allocation2 + $0x3360] sm:$0xff]  ;;  %v763_v53 = vld [vmem:[#allocation2 + $0x24f0] sm:$0xff] }
 0x1c9   :  { %3492 = vmatpush.msra.mxu2 %v363_v56  ;;  %3512 = vmatpush.msra.mxu3 %v491_v33  ;;  %v891_v55 = vld [vmem:[#allocation2 + $0x2bf0] sm:$0xff]  ;;  %v627_v33 = vld [vmem:[#allocation2 + $0x1d80] sm:$0xff] }
 0x1ca   :  { %3453 = vmatpush.msra.mxu0 %v99_v57  ;;  %3473 = vmatpush.msra.mxu1 %v227_v58  ;;  %v1019_v56 = vld [vmem:[#allocation2 + $0x32f0] sm:$0xff]  ;;  %v755_v57 = vld [vmem:[#allocation2 + $0x2480] sm:$0xff] }
 0x1cb   :  { %3493 = vmatpush.msra.mxu2 %v355_v59  ;;  %3513 = vmatpush.msra.mxu3 %v483_v60  ;;  %v883_v58 = vld [vmem:[#allocation2 + $0x2b80] sm:$0xff]  ;;  %v619_v60 = vld [vmem:[#allocation2 + $0x1d10] sm:$0xff] }
 0x1cc   :  { %3454 = vmatpush.msra.mxu0 %v91_v61  ;;  %3474 = vmatpush.msra.mxu1 %v219_v63  ;;  %v1011_v59 = vld [vmem:[#allocation2 + $0x3280] sm:$0xff]  ;;  %v747_v61 = vld [vmem:[#allocation2 + $0x2410] sm:$0xff] }
 0x1cd   :  { %3494 = vmatpush.msra.mxu2 %v347_v0  ;;  %3514 = vmatpush.msra.mxu3 %v475_v1  ;;  %v875_v63 = vld [vmem:[#allocation2 + $0x2b10] sm:$0xff]  ;;  %v611_v1 = vld [vmem:[#allocation2 + $0x1ca0] sm:$0xff] }
 0x1ce   :  { %3519 = vmatpush.msrb.mxu0 %v723_v6  ;;  %3539 = vmatpush.msrb.mxu1 %v851_v8  ;;  %v1003_v0 = vld [vmem:[#allocation2 + $0x3210] sm:$0xff]  ;;  %v739_v6 = vld [vmem:[#allocation2 + $0x23a0] sm:$0xff] }
 0x1cf   :  { %3559 = vmatpush.msrb.mxu2 %v979_v22  ;;  %3579 = vmatpush.msrb.mxu3 %v1107_v51  ;;  %v867_v8 = vld [vmem:[#allocation2 + $0x2aa0] sm:$0xff]  ;;  %v603_v51 = vld [vmem:[#allocation2 + $0x1c30] sm:$0xff] }
 0x1d0   :  { %3520 = vmatpush.msrb.mxu0 %v715_v45  ;;  %3540 = vmatpush.msrb.mxu1 %v843_v9  ;;  %v995_v22 = vld [vmem:[#allocation2 + $0x31a0] sm:$0xff]  ;;  %v731_v45 = vld [vmem:[#allocation2 + $0x2330] sm:$0xff] }
 0x1d1   :  { %3560 = vmatpush.msrb.mxu2 %v971_v11  ;;  %3580 = vmatpush.msrb.mxu3 %v1099_v12  ;;  %v987_v9 = vld [vmem:[#allocation2 + $0x3130] sm:$0xff]  ;;  %v340_v11 = vld [vmem:[#allocation2 + $0xdc8] sm:$0xff] }
 0x1d2   :  { %3521 = vmatpush.msrb.mxu0 %v707_v54  ;;  %3541 = vmatpush.msrb.mxu1 %v835_v13  ;;  %v468_v12 = vld [vmem:[#allocation2 + $0x14c8] sm:$0xff]  ;;  %v204_v13 = vld [vmem:[#allocation2 + $0x658] sm:$0xff] }
 0x1d3   :  { %3561 = vmatpush.msrb.mxu2 %v963_v14  ;;  %3581 = vmatpush.msrb.mxu3 %v1091_v15  ;;  %v596_v54 = vld [vmem:[#allocation2 + $0x1bc8] sm:$0xff]  ;;  %v332_v14 = vld [vmem:[#allocation2 + $0xd58] sm:$0xff] }
 0x1d4   :  { %3522 = vmatpush.msrb.mxu0 %v699_v16  ;;  %3542 = vmatpush.msrb.mxu1 %v827_v17  ;;  %v460_v15 = vld [vmem:[#allocation2 + $0x1458] sm:$0xff]  ;;  %v196_v17 = vld [vmem:[#allocation2 + $0x5e8] sm:$0xff] }
 0x1d5   :  { %3562 = vmatpush.msrb.mxu2 %v955_v18  ;;  %3582 = vmatpush.msrb.mxu3 %v1083_v19  ;;  %v588_v16 = vld [vmem:[#allocation2 + $0x1b58] sm:$0xff]  ;;  %v324_v18 = vld [vmem:[#allocation2 + $0xce8] sm:$0xff] }
 0x1d6   :  { %3523 = vmatpush.msrb.mxu0 %v691_v20  ;;  %3543 = vmatpush.msrb.mxu1 %v819_v21  ;;  %v452_v19 = vld [vmem:[#allocation2 + $0x13e8] sm:$0xff]  ;;  %v316_v21 = vld [vmem:[#allocation2 + $0xc78] sm:$0xff] }
 0x1d7   :  { %3563 = vmatpush.msrb.mxu2 %v947_v23  ;;  %3583 = vmatpush.msrb.mxu3 %v1075_v24  ;;  %v580_v20 = vld [vmem:[#allocation2 + $0x1ae8] sm:$0xff]  ;;  %v444_v23 = vld [vmem:[#allocation2 + $0x1378] sm:$0xff] }
 0x1d8   :  { %3524 = vmatpush.msrb.mxu0 %v683_v29  ;;  %3544 = vmatpush.msrb.mxu1 %v811_v30  ;;  %v572_v24 = vld [vmem:[#allocation2 + $0x1a78] sm:$0xff]  ;;  %v436_v29 = vld [vmem:[#allocation2 + $0x1308] sm:$0xff] }
 0x1d9   :  { %3564 = vmatpush.msrb.mxu2 %v939_v34  ;;  %3584 = vmatpush.msrb.mxu3 %v1067_v35  ;;  %v564_v30 = vld [vmem:[#allocation2 + $0x1a08] sm:$0xff]  ;;  %v5851_v34 = vpop.f32.mrf.mxu0  ;;  %v172_v35 = vld [vmem:[#allocation2 + $0x498] sm:$0xff] }
 0x1da   :  { %3525 = vmatpush.msrb.mxu0 %v675_v2  ;;  %3545 = vmatpush.msrb.mxu1 %v803_v3  ;;  %v428_v2 = vld [vmem:[#allocation2 + $0x1298] sm:$0xff] }
 0x1db   :  { %3565 = vmatpush.msrb.mxu2 %v931_v36  ;;  %3585 = vmatpush.msrb.mxu3 %v1059_v4  ;;  %v556_v3 = vld [vmem:[#allocation2 + $0x1998] sm:$0xff]  ;;  %v164_v36 = vld [vmem:[#allocation2 + $0x428] sm:$0xff] }
 0x1dc   :  { %3526 = vmatpush.msrb.mxu0 %v667_v5  ;;  %3546 = vmatpush.msrb.mxu1 %v795_v37  ;;  %v292_v4 = vld [vmem:[#allocation2 + $0xb28] sm:$0xff]  ;;  %v5853_v5 = vpop.f32.mrf.mxu1 }
 0x1dd   :  { %3566 = vmatpush.msrb.mxu2 %v923_v38  ;;  %3586 = vmatpush.msrb.mxu3 %v1051_v39  ;;  %v420_v37 = vld [vmem:[#allocation2 + $0x1228] sm:$0xff]  ;;  %v5855_v39 = vpop.f32.mrf.mxu2 }
 0x1de   :  { %3527 = vmatpush.msrb.mxu0 %v659_v40  ;;  %3547 = vmatpush.msrb.mxu1 %v787_v41  ;;  %v548_v38 = vld [vmem:[#allocation2 + $0x1928] sm:$0xff]  ;;  %v156_v40 = vld [vmem:[#allocation2 + $0x3b8] sm:$0xff] }
 0x1df   :  { %3567 = vmatpush.msrb.mxu2 %v915_v42  ;;  %3587 = vmatpush.msrb.mxu3 %v1043_v43  ;;  %v284_v41 = vld [vmem:[#allocation2 + $0xab8] sm:$0xff] }
 0x1e0   :  { %3528 = vmatpush.msrb.mxu0 %v651_v47  ;;  %3548 = vmatpush.msrb.mxu1 %v779_v48  ;;  %v412_v42 = vld [vmem:[#allocation2 + $0x11b8] sm:$0xff]  ;;  %v148_v47 = vld [vmem:[#allocation2 + $0x348] sm:$0xff] }
 0x1e1   :  { %3568 = vmatpush.msrb.mxu2 %v907_v52  ;;  %3588 = vmatpush.msrb.mxu3 %v1035_v27  ;;  %v540_v43 = vld [vmem:[#allocation2 + $0x18b8] sm:$0xff]  ;;  %v276_v48 = vld [vmem:[#allocation2 + $0xa48] sm:$0xff]  ;;  %v5857_v52 = vpop.f32.mrf.mxu3 }
 0x1e2   :  { %3529 = vmatpush.msrb.mxu0 %v643_v25  ;;  %3549 = vmatpush.msrb.mxu1 %v771_v26  ;;  %v404_v27 = vld [vmem:[#allocation2 + $0x1148] sm:$0xff]  ;;  %v140_v26 = vld [vmem:[#allocation2 + $0x2d8] sm:$0xff] }
 0x1e3   :  { %3569 = vmatpush.msrb.mxu2 %v899_v28  ;;  %3589 = vmatpush.msrb.mxu3 %v1027_v31  ;;  %v532_v25 = vld [vmem:[#allocation2 + $0x1848] sm:$0xff]  ;;  %v268_v28 = vld [vmem:[#allocation2 + $0x9d8] sm:$0xff] }
 0x1e4   :  { %3530 = vmatpush.msrb.mxu0 %v635_v32  ;;  %3550 = vmatpush.msrb.mxu1 %v763_v53  ;;  %v396_v31 = vld [vmem:[#allocation2 + $0x10d8] sm:$0xff]  ;;  %v5859_v53 = vpop.f32.mrf.mxu0 }
 0x1e5   :  { %3570 = vmatpush.msrb.mxu2 %v891_v55  ;;  %3590 = vmatpush.msrb.mxu3 %v1019_v56  ;;  %v524_v32 = vld [vmem:[#allocation2 + $0x17d8] sm:$0xff]  ;;  %v132_v55 = vld [vmem:[#allocation2 + $0x268] sm:$0xff] }
 0x1e6   :  { %3495 = vmatmul.f32.vlgmr.msra.gmra.mxu2 %v5815_v49  ;;  %3531 = vmatpush.msrb.mxu0 %v627_v33  ;;  %v5844_v49 = vld.sshfl [vmem:[#allocation1 + $0x8] sm:$0xff pattern:$0x73625140]  ;;  %v260_v56 = vld [vmem:[#allocation2 + $0x968] sm:$0xff] }
 0x1e7   :  { %3551 = vmatpush.msrb.mxu1 %v755_v57  ;;  %3571 = vmatpush.msrb.mxu2 %v883_v58  ;;  %v388_v33 = vld [vmem:[#allocation2 + $0x1068] sm:$0xff]  ;;  %v124_v58 = vld [vmem:[#allocation2 + $0x1f8] sm:$0xff] }
 0x1e8   :  { %3591 = vmatpush.msrb.mxu3 %v1011_v59  ;;  %3455 = vmatmul.f32.vlgmr.msra.gmra.mxu0 %v5809_v44  ;;  %v859_v44 = vld [vmem:[#allocation2 + $0x2a30] sm:$0xff]  ;;  %v516_v57 = vld [vmem:[#allocation2 + $0x1768] sm:$0xff]  ;;  %v252_v59 = vld [vmem:[#allocation2 + $0x8f8] sm:$0xff] }
 0x1e9   :  { %3515 = vmatmul.f32.vlgmr.msra.gmra.mxu3 %v5818_v50  ;;  %3532 = vmatpush.msrb.mxu0 %v619_v60  ;;  %v212_v50 = vld [vmem:[#allocation2 + $0x6c8] sm:$0xff]  ;;  %v5861_v60 = vpop.f32.mrf.mxu1 }
 0x1ea   :  { %3552 = vmatpush.msrb.mxu1 %v747_v61  ;;  %3572 = vmatpush.msrb.mxu2 %v875_v63  ;;  %v380_v61 = vld [vmem:[#allocation2 + $0xff8] sm:$0xff] }
 0x1eb   :  { %3592 = vmatpush.msrb.mxu3 %v1003_v0  ;;  %3475 = vmatmul.f32.vlgmr.msra.gmra.mxu1 %v5844_v49  ;;  %v508_v63 = vld [vmem:[#allocation2 + $0x16f8] sm:$0xff]  ;;  %v5863_v0 = vpop.f32.mrf.mxu2 }
 0x1ec   :  { %3533 = vmatpush.msrb.mxu0 %v611_v1  ;;  %3553 = vmatpush.msrb.mxu1 %v739_v6  ;;  %v116_v1 = vld [vmem:[#allocation2 + $0x188] sm:$0xff] }
 0x1ed   :  { %3573 = vmatpush.msrb.mxu2 %v867_v8  ;;  %3593 = vmatpush.msrb.mxu3 %v995_v22  ;;  %v244_v6 = vld [vmem:[#allocation2 + $0x888] sm:$0xff] }
 0x1ee   :  { %3534 = vmatpush.msrb.mxu0 %v603_v51  ;;  %3554 = vmatpush.msrb.mxu1 %v731_v45  ;;  %v372_v8 = vld [vmem:[#allocation2 + $0xf88] sm:$0xff]  ;;  %v108_v51 = vld [vmem:[#allocation2 + $0x118] sm:$0xff] }
 0x1ef   :  { %3574 = vmatpush.msrb.mxu2 %v859_v44  ;;  %3594 = vmatpush.msrb.mxu3 %v987_v9  ;;  %v500_v22 = vld [vmem:[#allocation2 + $0x1688] sm:$0xff]  ;;  %v236_v45 = vld [vmem:[#allocation2 + $0x818] sm:$0xff]  ;;  %v5865_v44 = vpop.f32.mrf.mxu3 }
 0x1f0   :  { %3575 = vmatmul.f32.vlgmr.msrb.gmra.mxu2 %v5821_v62  ;;  %3599 = vmatpush.msra.mxu0 %v212_v50  ;;  %v188_v62 = vld [vmem:[#allocation2 + $0x578] sm:$0xff] }
 0x1f1   :  { %3619 = vmatpush.msra.mxu1 %v340_v11  ;;  %3639 = vmatpush.msra.mxu2 %v468_v12  ;;  %v364_v9 = vld [vmem:[#allocation2 + $0xf18] sm:$0xff]  ;;  %v5867_v11 = vpop.f32.mrf.mxu0  ;;  %v100_v12 = vld [vmem:[#allocation2 + $0xa8] sm:$0xff] }
 0x1f2   :  { %3659 = vmatpush.msra.mxu3 %v596_v54  ;;  %3535 = vmatmul.f32.vlgmr.msrb.gmra.mxu0 %v5824_v46  ;;  %v180_v46 = vld [vmem:[#allocation2 + $0x508] sm:$0xff]  ;;  %v492_v50 = vld [vmem:[#allocation2 + $0x1618] sm:$0xff] }
 0x1f3   :  { %3595 = vmatmul.f32.vlgmr.msrb.gmra.mxu3 %v5827_v7  ;;  %3600 = vmatpush.msra.mxu0 %v204_v13  ;;  %v308_v7 = vld [vmem:[#allocation2 + $0xc08] sm:$0xff] }
 0x1f4   :  { %3620 = vmatpush.msra.mxu1 %v332_v14  ;;  %3640 = vmatpush.msra.mxu2 %v460_v15  ;;  %v228_v54 = vld [vmem:[#allocation2 + $0x7a8] sm:$0xff]  ;;  %v92_v15 = vld [vmem:[#allocation2 + $0x38] sm:$0xff] }
 0x1f5   :  { %3660 = vmatpush.msra.mxu3 %v588_v16  ;;  %3555 = vmatmul.f32.vlgmr.msrb.gmra.mxu1 %v5830_v10  ;;  %v300_v10 = vld [vmem:[#allocation2 + $0xb98] sm:$0xff]  ;;  %v356_v13 = vld [vmem:[#allocation2 + $0xea8] sm:$0xff] }
 0x1f6   :  { %3601 = vmatpush.msra.mxu0 %v196_v17  ;;  %3621 = vmatpush.msra.mxu1 %v324_v18  ;;  %v484_v14 = vld [vmem:[#allocation2 + $0x15a8] sm:$0xff]  ;;  %v220_v16 = vld [vmem:[#allocation2 + $0x738] sm:$0xff]  ;;  %v5869_v17 = vpop.f32.mrf.mxu1 }
 0x1f7   :  { %3641 = vmatpush.msra.mxu2 %v452_v19  ;;  %3661 = vmatpush.msra.mxu3 %v580_v20  ;;  %v348_v18 = vld [vmem:[#allocation2 + $0xe38] sm:$0xff]  ;;  %v5871_v20 = vpop.f32.mrf.mxu2 }
 0x1f8   :  { %3602 = vmatpush.msra.mxu0 %v188_v62  ;;  %3622 = vmatpush.msra.mxu1 %v316_v21  ;;  %v476_v19 = vld [vmem:[#allocation2 + $0x1538] sm:$0xff]  ;;  %v724_v62 = vld [vmem:[#allocation2 + $0x22c8] sm:$0xff] }
 0x1f9   :  { %3642 = vmatpush.msra.mxu2 %v444_v23  ;;  %3662 = vmatpush.msra.mxu3 %v572_v24  ;;  %v852_v21 = vld [vmem:[#allocation2 + $0x29c8] sm:$0xff] }
 0x1fa   :  { %3603 = vmatpush.msra.mxu0 %v180_v46  ;;  %3623 = vmatpush.msra.mxu1 %v308_v7  ;;  %v980_v23 = vld [vmem:[#allocation2 + $0x30c8] sm:$0xff]  ;;  %v716_v46 = vld [vmem:[#allocation2 + $0x2258] sm:$0xff] }
 0x1fb   :  { %3643 = vmatpush.msra.mxu2 %v436_v29  ;;  %3663 = vmatpush.msra.mxu3 %v564_v30  ;;  %v1108_v24 = vld [vmem:[#allocation2 + $0x37c8] sm:$0xff]  ;;  %v844_v7 = vld [vmem:[#allocation2 + $0x2958] sm:$0xff]  ;;  %v5873_v29 = vpop.f32.mrf.mxu3 }
 0x1fc   :  { %3604 = vmatpush.msra.mxu0 %v172_v35  ;;  %3624 = vmatpush.msra.mxu1 %v300_v10  ;;  %v972_v30 = vld [vmem:[#allocation2 + $0x3058] sm:$0xff]  ;;  %v708_v10 = vld [vmem:[#allocation2 + $0x21e8] sm:$0xff] }
 0x1fd   :  { %3644 = vmatpush.msra.mxu2 %v428_v2  ;;  %3664 = vmatpush.msra.mxu3 %v556_v3  ;;  %v1100_v35 = vld [vmem:[#allocation2 + $0x3758] sm:$0xff]  ;;  %v836_v2 = vld [vmem:[#allocation2 + $0x28e8] sm:$0xff] }
 0x1fe   :  { %3605 = vmatpush.msra.mxu0 %v164_v36  ;;  %3625 = vmatpush.msra.mxu1 %v292_v4  ;;  %v964_v3 = vld [vmem:[#allocation2 + $0x2fe8] sm:$0xff]  ;;  %v5875_v4 = vpop.f32.mrf.mxu0 }
 0x1ff   :  { %3645 = vmatpush.msra.mxu2 %v420_v37  ;;  %3665 = vmatpush.msra.mxu3 %v548_v38  ;;  %v1092_v36 = vld [vmem:[#allocation2 + $0x36e8] sm:$0xff]  ;;  %v700_v37 = vld [vmem:[#allocation2 + $0x2178] sm:$0xff] }
 0x200   :  { %3606 = vmatpush.msra.mxu0 %v156_v40  ;;  %3626 = vmatpush.msra.mxu1 %v284_v41  ;;  %v828_v38 = vld [vmem:[#allocation2 + $0x2878] sm:$0xff] }
 0x201   :  { %3646 = vmatpush.msra.mxu2 %v412_v42  ;;  %3666 = vmatpush.msra.mxu3 %v540_v43  ;;  %v956_v40 = vld [vmem:[#allocation2 + $0x2f78] sm:$0xff]  ;;  %v692_v42 = vld [vmem:[#allocation2 + $0x2108] sm:$0xff] }
 0x202   :  { %3607 = vmatpush.msra.mxu0 %v148_v47  ;;  %3627 = vmatpush.msra.mxu1 %v276_v48  ;;  %v1084_v41 = vld [vmem:[#allocation2 + $0x3678] sm:$0xff]  ;;  %v820_v43 = vld [vmem:[#allocation2 + $0x2808] sm:$0xff]  ;;  %v5877_v47 = vpop.f32.mrf.mxu1 }
 0x203   :  { %3647 = vmatpush.msra.mxu2 %v404_v27  ;;  %3667 = vmatpush.msra.mxu3 %v532_v25  ;;  %v948_v48 = vld [vmem:[#allocation2 + $0x2f08] sm:$0xff]  ;;  %v5879_v25 = vpop.f32.mrf.mxu2 }
 0x204   :  { %3608 = vmatpush.msra.mxu0 %v140_v26  ;;  %3628 = vmatpush.msra.mxu1 %v268_v28  ;;  %v1076_v27 = vld [vmem:[#allocation2 + $0x3608] sm:$0xff]  ;;  %v684_v26 = vld [vmem:[#allocation2 + $0x2098] sm:$0xff] }
 0x205   :  { %3648 = vmatpush.msra.mxu2 %v396_v31  ;;  %3668 = vmatpush.msra.mxu3 %v524_v32  ;;  %v812_v28 = vld [vmem:[#allocation2 + $0x2798] sm:$0xff] }
 0x206   :  { %3609 = vmatpush.msra.mxu0 %v132_v55  ;;  %3629 = vmatpush.msra.mxu1 %v260_v56  ;;  %v940_v31 = vld [vmem:[#allocation2 + $0x2e98] sm:$0xff]  ;;  %v676_v55 = vld [vmem:[#allocation2 + $0x2028] sm:$0xff] }
 0x207   :  { %3649 = vmatpush.msra.mxu2 %v388_v33  ;;  %3669 = vmatpush.msra.mxu3 %v516_v57  ;;  %v1068_v32 = vld [vmem:[#allocation2 + $0x3598] sm:$0xff]  ;;  %v804_v56 = vld [vmem:[#allocation2 + $0x2728] sm:$0xff]  ;;  %v5881_v33 = vpop.f32.mrf.mxu3 }
 0x208   :  { %3610 = vmatpush.msra.mxu0 %v124_v58  ;;  %3630 = vmatpush.msra.mxu1 %v252_v59  ;;  %v932_v57 = vld [vmem:[#allocation2 + $0x2e28] sm:$0xff]  ;;  %v5883_v59 = vpop.f32.mrf.mxu0 }
 0x209   :  { %3650 = vmatpush.msra.mxu2 %v380_v61  ;;  %3670 = vmatpush.msra.mxu3 %v508_v63  ;;  %v1060_v58 = vld [vmem:[#allocation2 + $0x3528] sm:$0xff]  ;;  %v668_v61 = vld [vmem:[#allocation2 + $0x1fb8] sm:$0xff] }
 0x20a   :  { %3611 = vmatpush.msra.mxu0 %v116_v1  ;;  %3631 = vmatpush.msra.mxu1 %v244_v6  ;;  %v796_v63 = vld [vmem:[#allocation2 + $0x26b8] sm:$0xff] }
 0x20b   :  { %3651 = vmatpush.msra.mxu2 %v372_v8  ;;  %3671 = vmatpush.msra.mxu3 %v500_v22  ;;  %v924_v1 = vld [vmem:[#allocation2 + $0x2db8] sm:$0xff]  ;;  %v660_v8 = vld [vmem:[#allocation2 + $0x1f48] sm:$0xff] }
 0x20c   :  { %3612 = vmatpush.msra.mxu0 %v108_v51  ;;  %3632 = vmatpush.msra.mxu1 %v236_v45  ;;  %v1052_v6 = vld [vmem:[#allocation2 + $0x34b8] sm:$0xff]  ;;  %v788_v22 = vld [vmem:[#allocation2 + $0x2648] sm:$0xff]  ;;  %v5885_v51 = vpop.f32.mrf.mxu1 }
 0x20d   :  { %3652 = vmatpush.msra.mxu2 %v364_v9  ;;  %3672 = vmatpush.msra.mxu3 %v492_v50  ;;  %v916_v45 = vld [vmem:[#allocation2 + $0x2d48] sm:$0xff]  ;;  %v5887_v50 = vpop.f32.mrf.mxu2 }
 0x20e   :  { %3613 = vmatpush.msra.mxu0 %v100_v12  ;;  %3633 = vmatpush.msra.mxu1 %v228_v54  ;;  %v1044_v9 = vld [vmem:[#allocation2 + $0x3448] sm:$0xff]  ;;  %v652_v12 = vld [vmem:[#allocation2 + $0x1ed8] sm:$0xff] }
 0x20f   :  { %3653 = vmatpush.msra.mxu2 %v356_v13  ;;  %3673 = vmatpush.msra.mxu3 %v484_v14  ;;  %v780_v54 = vld [vmem:[#allocation2 + $0x25d8] sm:$0xff] }
 0x210   :  { %3614 = vmatpush.msra.mxu0 %v92_v15  ;;  %3634 = vmatpush.msra.mxu1 %v220_v16  ;;  %v908_v13 = vld [vmem:[#allocation2 + $0x2cd8] sm:$0xff]  ;;  %v644_v15 = vld [vmem:[#allocation2 + $0x1e68] sm:$0xff] }
 0x211   :  { %3654 = vmatpush.msra.mxu2 %v348_v18  ;;  %3674 = vmatpush.msra.mxu3 %v476_v19  ;;  %v1036_v14 = vld [vmem:[#allocation2 + $0x33d8] sm:$0xff]  ;;  %v772_v16 = vld [vmem:[#allocation2 + $0x2568] sm:$0xff]  ;;  %v5889_v18 = vpop.f32.mrf.mxu3 }
 0x212   :  { %3679 = vmatpush.msrb.mxu0 %v724_v62  ;;  %3699 = vmatpush.msrb.mxu1 %v852_v21  ;;  %v900_v19 = vld [vmem:[#allocation2 + $0x2c68] sm:$0xff]  ;;  %v636_v21 = vld [vmem:[#allocation2 + $0x1df8] sm:$0xff] }
 0x213   :  { %3719 = vmatpush.msrb.mxu2 %v980_v23  ;;  %3739 = vmatpush.msrb.mxu3 %v1108_v24  ;;  %v1028_v62 = vld [vmem:[#allocation2 + $0x3368] sm:$0xff]  ;;  %v764_v23 = vld [vmem:[#allocation2 + $0x24f8] sm:$0xff] }
 0x214   :  { %3680 = vmatpush.msrb.mxu0 %v716_v46  ;;  %3700 = vmatpush.msrb.mxu1 %v844_v7  ;;  %v892_v24 = vld [vmem:[#allocation2 + $0x2bf8] sm:$0xff]  ;;  %v5891_v7 = vpop.f32.mrf.mxu0 }
 0x215   :  { %3720 = vmatpush.msrb.mxu2 %v972_v30  ;;  %3740 = vmatpush.msrb.mxu3 %v1100_v35  ;;  %v1020_v46 = vld [vmem:[#allocation2 + $0x32f8] sm:$0xff]  ;;  %v628_v30 = vld [vmem:[#allocation2 + $0x1d88] sm:$0xff] }
 0x216   :  { %3681 = vmatpush.msrb.mxu0 %v708_v10  ;;  %3701 = vmatpush.msrb.mxu1 %v836_v2  ;;  %v2421_v35 = vld [vmem:[#allocation7] ss:$8 sm:$0xf] }
 0x217   :  { %3721 = vmatpush.msrb.mxu2 %v964_v3  ;;  %3741 = vmatpush.msrb.mxu3 %v1092_v36  ;;  %v756_v10 = vld [vmem:[#allocation2 + $0x2488] sm:$0xff] }
 0x218   :  { %3682 = vmatpush.msrb.mxu0 %v700_v37  ;;  %3702 = vmatpush.msrb.mxu1 %v828_v38  ;;  %v884_v2 = vld [vmem:[#allocation2 + $0x2b88] sm:$0xff]  ;;  %v5893_v37 = vpop.f32.mrf.mxu1 }
 0x219   :  { %3722 = vmatpush.msrb.mxu2 %v956_v40  ;;  %3742 = vmatpush.msrb.mxu3 %v1084_v41  ;;  %v2422_v3 = vld [vmem:[#allocation7] ss:$8 sm:$0xf0]  ;;  %v5895_v41 = vpop.f32.mrf.mxu2 }
 0x21a   :  { %3683 = vmatpush.msrb.mxu0 %v692_v42  ;;  %3703 = vmatpush.msrb.mxu1 %v820_v43  ;;  %v1012_v36 = vld [vmem:[#allocation2 + $0x3288] sm:$0xff]  ;;  %v620_v40 = vld [vmem:[#allocation2 + $0x1d18] sm:$0xff] }
 0x21b   :  { %3723 = vmatpush.msrb.mxu2 %v948_v48  ;;  %3743 = vmatpush.msrb.mxu3 %v1076_v27  ;;  %v5573_v38 = vld.sshfl [vmem:[#allocation1 + $0x10] sm:$0xff pattern:$0x73625140]  ;;  %v748_v42 = vld [vmem:[#allocation2 + $0x2418] sm:$0xff]  ;;  %v5897_v48 = vor.u32 %v2422_v3, %v2421_v35 }
 0x21c   :  { %3684 = vmatpush.msrb.mxu0 %v684_v26  ;;  %3704 = vmatpush.msrb.mxu1 %v812_v28  ;;  %v876_v43 = vld [vmem:[#allocation2 + $0x2b18] sm:$0xff]  ;;  %v5575_v28 = vld.sshfl [vmem:[#allocation1 + $0x18] sm:$0xff pattern:$0x73625140] }
 0x21d   :  { %3724 = vmatpush.msrb.mxu2 %v940_v31  ;;  %3744 = vmatpush.msrb.mxu3 %v1068_v32  ;;  %v5574_v27 = vld.sshfl [vmem:[#allocation1] sm:$0xff pattern:$0x73625140]  ;;  %v612_v31 = vld [vmem:[#allocation2 + $0x1ca8] sm:$0xff] }
 0x21e   :  { %3685 = vmatpush.msrb.mxu0 %v676_v55  ;;  %3705 = vmatpush.msrb.mxu1 %v804_v56  ;;  %v1004_v26 = vld [vmem:[#allocation2 + $0x3218] sm:$0xff]  ;;  %v740_v32 = vld [vmem:[#allocation2 + $0x23a8] sm:$0xff]  ;;  %v5899_v55 = vpop.f32.mrf.mxu3  ;;  %v5578_v3 = vld.sshfl [vmem:[#allocation1 + $0x38] sm:$0xff pattern:$0x73625140] }
 0x21f   :  { %3725 = vmatpush.msrb.mxu2 %v932_v57  ;;  %3745 = vmatpush.msrb.mxu3 %v1060_v58  ;;  %v868_v56 = vld [vmem:[#allocation2 + $0x2aa8] sm:$0xff]  ;;  %v2976_v58 = vpop.f32.mrf.mxu0 }
 0x220   :  { %3686 = vmatpush.msrb.mxu0 %v668_v61  ;;  %3706 = vmatpush.msrb.mxu1 %v796_v63  ;;  %v996_v57 = vld [vmem:[#allocation2 + $0x31a8] sm:$0xff]  ;;  %v604_v61 = vld [vmem:[#allocation2 + $0x1c38] sm:$0xff] }
 0x221   :  { %3726 = vmatpush.msrb.mxu2 %v924_v1  ;;  %3746 = vmatpush.msrb.mxu3 %v1052_v6  ;;  %v732_v63 = vld [vmem:[#allocation2 + $0x2338] sm:$0xff]  ;;  %v2442_v1 = vperm.slane %v5897_v48, 0  ;;  %v2443_v6 = vperm.slane %v5897_v48, 1 }
 0x222   :  { %3687 = vmatpush.msrb.mxu0 %v660_v8  ;;  %3707 = vmatpush.msrb.mxu1 %v788_v22  ;;  %v860_v8 = vld [vmem:[#allocation2 + $0x2a38] sm:$0xff] }
 0x223   :  { %3727 = vmatpush.msrb.mxu2 %v916_v45  ;;  %3747 = vmatpush.msrb.mxu3 %v1044_v9  ;;  %v988_v22 = vld [vmem:[#allocation2 + $0x3138] sm:$0xff]  ;;  %v2444_v45 = vperm.slane %v5897_v48, 2  ;;  %v2445_v9 = vperm.slane %v5897_v48, 3 }
 0x224   :  { %3688 = vmatpush.msrb.mxu0 %v652_v12  ;;  %3708 = vmatpush.msrb.mxu1 %v780_v54  ;;  %v1169_v12 = vld [vmem:[#allocation2 + $0x6d0] sm:$0xff]  ;;  %v2996_v54 = vpop.f32.mrf.mxu1 }
 0x225   :  { %3728 = vmatpush.msrb.mxu2 %v908_v13  ;;  %3748 = vmatpush.msrb.mxu3 %v1036_v14  ;;  %v1297_v13 = vld [vmem:[#allocation2 + $0x14d0] sm:$0xff]  ;;  %v3016_v14 = vpop.f32.mrf.mxu2 }
 0x226   :  { %3689 = vmatpush.msrb.mxu0 %v644_v15  ;;  %3709 = vmatpush.msrb.mxu1 %v772_v16  ;;  %v1361_v15 = vld [vmem:[#allocation2 + $0x1bd0] sm:$0xff]  ;;  %v2497_v16 = vadd.f32 %v5851_v34, %v2442_v1  ;;  %v3036_v35 = vpop.f32.mrf.mxu3 }
 0x227   :  { %3729 = vmatpush.msrb.mxu2 %v900_v19  ;;  %3749 = vmatpush.msrb.mxu3 %v1028_v62  ;;  %v2657_v19 = vadd.f32 %v5867_v11, %v2443_v6  ;;  %v5576_v62 = vld.sshfl [vmem:[#allocation1 + $0x30] sm:$0xff pattern:$0x73625140]  ;;  %v1161_v34 = vld [vmem:[#allocation2 + $0x5f0] sm:$0xff] }
 0x228   :  { %3690 = vmatpush.msrb.mxu0 %v636_v21  ;;  %3710 = vmatpush.msrb.mxu1 %v764_v23  ;;  %v1165_v21 = vld [vmem:[#allocation2 + $0x660] sm:$0xff]  ;;  %v2817_v23 = vadd.f32 %v5883_v59, %v2444_v45  ;;  %v1225_v11 = vld [vmem:[#allocation2 + $0xcf0] sm:$0xff] }
 0x229   :  { %3730 = vmatpush.msrb.mxu2 %v892_v24  ;;  %3750 = vmatpush.msrb.mxu3 %v1020_v46  ;;  %v2977_v24 = vadd.f32 %v2976_v58, %v2445_v9  ;;  %v1229_v46 = vld [vmem:[#allocation2 + $0xd60] sm:$0xff]  ;;  %v1289_v59 = vld [vmem:[#allocation2 + $0x13f0] sm:$0xff] }
 0x22a   :  { %3655 = vmatmul.f32.vlgmr.msra.gmra.mxu2 %v5573_v38  ;;  %3691 = vmatpush.msrb.mxu0 %v628_v30  ;;  %v1293_v30 = vld [vmem:[#allocation2 + $0x1460] sm:$0xff]  ;;  %v2677_v38 = vadd.f32 %v5869_v17, %v2657_v19  ;;  %v1153_v17 = vld [vmem:[#allocation2 + $0x510] sm:$0xff] }
 0x22b   :  { %3711 = vmatpush.msrb.mxu1 %v756_v10  ;;  %3731 = vmatpush.msrb.mxu2 %v884_v2  ;;  %v5577_v10 = vld.sshfl [vmem:[#allocation1 + $0x20] sm:$0xff pattern:$0x73625140]  ;;  %v1357_v2 = vld [vmem:[#allocation2 + $0x1b60] sm:$0xff] }
 0x22c   :  { %3751 = vmatpush.msrb.mxu3 %v1012_v36  ;;  %3615 = vmatmul.f32.vlgmr.msra.gmra.mxu0 %v5574_v27  ;;  %v2517_v36 = vadd.f32 %v5853_v5, %v2497_v16  ;;  %v5912_v27 = vpop.f32.mrf.mxu0  ;;  %v1349_v5 = vld [vmem:[#allocation2 + $0x1a80] sm:$0xff]  ;;  %v5916_v58 = vpop.f32.mrf.mxu1 }
 0x22d   :  { %3675 = vmatmul.f32.vlgmr.msra.gmra.mxu3 %v5575_v28  ;;  %3692 = vmatpush.msrb.mxu0 %v620_v40  ;;  %v1353_v40 = vld [vmem:[#allocation2 + $0x1af0] sm:$0xff]  ;;  %v1157_v28 = vld [vmem:[#allocation2 + $0x580] sm:$0xff] }
 0x22e   :  { %3712 = vmatpush.msrb.mxu1 %v748_v42  ;;  %3732 = vmatpush.msrb.mxu2 %v876_v43  ;;  %v2837_v42 = vadd.f32 %v5885_v51, %v2817_v23  ;;  %v2997_v43 = vadd.f32 %v2996_v54, %v2977_v24  ;;  %v2697_v51 = vadd.f32 %v5871_v20, %v2677_v38  ;;  %v1213_v45 = vld [vmem:[#allocation2 + $0xba0] sm:$0xff]  ;;  %v1145_v20 = vld [vmem:[#allocation2 + $0x430] sm:$0xff] }
 0x22f   :  { %3752 = vmatpush.msrb.mxu3 %v1004_v26  ;;  %3635 = vmatmul.f32.vlgmr.msra.gmra.mxu1 %v5844_v49  ;;  %v1233_v49 = vld [vmem:[#allocation2 + $0xdd0] sm:$0xff]  ;;  %v5579_v26 = vld.sshfl [vmem:[#allocation1 + $0x28] sm:$0xff pattern:$0x73625140] }
 0x230   :  { %3693 = vmatpush.msrb.mxu0 %v612_v31  ;;  %3713 = vmatpush.msrb.mxu1 %v740_v32  ;;  %v1221_v31 = vld [vmem:[#allocation2 + $0xc80] sm:$0xff]  ;;  %v2857_v1 = vadd.f32 %v5887_v50, %v2837_v42  ;;  %v3017_v6 = vadd.f32 %v3016_v14, %v2997_v43  ;;  %v5923_v50 = vpop.f32.mrf.mxu3  ;;  %v1337_v14 = vld [vmem:[#allocation2 + $0x1930] sm:$0xff] }
 0x231   :  { %3733 = vmatpush.msrb.mxu2 %v868_v56  ;;  %3753 = vmatpush.msrb.mxu3 %v996_v57  ;;  %v1285_v32 = vld [vmem:[#allocation2 + $0x1380] sm:$0xff]  ;;  %v1217_v56 = vld [vmem:[#allocation2 + $0xc10] sm:$0xff]  ;;  %v2537_v57 = vadd.f32 %v5855_v39, %v2517_v36 }
 0x232   :  { %3694 = vmatpush.msrb.mxu0 %v604_v61  ;;  %3714 = vmatpush.msrb.mxu1 %v732_v63  ;;  %v1281_v61 = vld [vmem:[#allocation2 + $0x1310] sm:$0xff]  ;;  %v1277_v39 = vld [vmem:[#allocation2 + $0x12a0] sm:$0xff]  ;;  %v3037_v16 = vadd.f32 %v3036_v35, %v3017_v6 }
 0x233   :  { %3734 = vmatpush.msrb.mxu2 %v860_v8  ;;  %3754 = vmatpush.msrb.mxu3 %v988_v22  ;;  %v1345_v63 = vld [vmem:[#allocation2 + $0x1a10] sm:$0xff]  ;;  %v5919_v8 = vpop.f32.mrf.mxu2  ;;  %v1149_v22 = vld [vmem:[#allocation2 + $0x4a0] sm:$0xff]  ;;  %v2557_v54 = vadd.f32 %v5857_v52, %v2537_v57 }
 0x234   :  { %3735 = vmatmul.f32.vlgmr.msrb.gmra.mxu2 %v5576_v62  ;;  %3776 = vmatpush.msra.mxu0 %v1169_v12  ;;  %v1341_v9 = vld [vmem:[#allocation2 + $0x19a0] sm:$0xff]  ;;  %v1209_v12 = vld [vmem:[#allocation2 + $0xb30] sm:$0xff]  ;;  %v5926_v19 = vpop.f32.mrf.mxu0 }
 0x235   :  { %3796 = vmatpush.msra.mxu1 %v1233_v49  ;;  %3816 = vmatpush.msra.mxu2 %v1297_v13  ;;  %v2717_v49 = vadd.f32 %v5873_v29, %v2697_v51  ;;  %v1273_v13 = vld [vmem:[#allocation2 + $0x1230] sm:$0xff]  ;;  %v1141_v62 = vld [vmem:[#allocation2 + $0x3c0] sm:$0xff] }
 0x236   :  { %3836 = vmatpush.msra.mxu3 %v1361_v15  ;;  %3695 = vmatmul.f32.vlgmr.msrb.gmra.mxu0 %v5577_v10  ;;  %v2877_v15 = vadd.f32 %v5889_v18, %v2857_v1  ;;  %v1269_v52 = vld [vmem:[#allocation2 + $0x11c0] sm:$0xff]  ;;  %v1137_v29 = vld [vmem:[#allocation2 + $0x350] sm:$0xff]  ;;  %v5930_v18 = vpop.f32.mrf.mxu1 }
 0x237   :  { %3755 = vmatmul.f32.vlgmr.msrb.gmra.mxu3 %v5578_v3  ;;  %3777 = vmatpush.msra.mxu0 %v1165_v21  ;;  %v1205_v21 = vld [vmem:[#allocation2 + $0xac0] sm:$0xff]  ;;  %v1201_v24 = vld [vmem:[#allocation2 + $0xa50] sm:$0xff]  ;;  %v3057_v3 = vadd.f32 %v5912_v27, %v3037_v16 }
 0x238   :  { %3797 = vmatpush.msra.mxu1 %v1229_v46  ;;  %3817 = vmatpush.msra.mxu2 %v1293_v30  ;;  %v1333_v23 = vld [vmem:[#allocation2 + $0x18c0] sm:$0xff]  ;;  %v2577_v46 = vadd.f32 %v5859_v53, %v2557_v54  ;;  %v2737_v30 = vadd.f32 %v5875_v4, %v2717_v49  ;;  %v1265_v35 = vld [vmem:[#allocation2 + $0x1150] sm:$0xff]  ;;  %v5938_v42 = vpop.f32.mrf.mxu3 }
 0x239   :  { %3837 = vmatpush.msra.mxu3 %v1357_v2  ;;  %3715 = vmatmul.f32.vlgmr.msrb.gmra.mxu1 %v5579_v26  ;;  %v1329_v10 = vld [vmem:[#allocation2 + $0x1850] sm:$0xff]  ;;  %v2897_v2 = vadd.f32 %v5891_v7, %v2877_v15  ;;  %v1197_v36 = vld [vmem:[#allocation2 + $0x9e0] sm:$0xff] }
 0x23a   :  { %3778 = vmatpush.msra.mxu0 %v1161_v34  ;;  %3798 = vmatpush.msra.mxu1 %v1225_v11  ;;  %v1133_v11 = vld [vmem:[#allocation2 + $0x2e0] sm:$0xff]  ;;  %v1129_v38 = vld [vmem:[#allocation2 + $0x270] sm:$0xff]  ;;  %v2757_v7 = vadd.f32 %v5877_v47, %v2737_v30 }
 0x23b   :  { %3818 = vmatpush.msra.mxu2 %v1289_v59  ;;  %3838 = vmatpush.msra.mxu3 %v1353_v40  ;;  %v5934_v34 = vpop.f32.mrf.mxu2  ;;  %v1261_v53 = vld [vmem:[#allocation2 + $0x10e0] sm:$0xff]  ;;  %v1193_v59 = vld [vmem:[#allocation2 + $0x970] sm:$0xff]  ;;  %v2597_v40 = vadd.f32 %v5861_v60, %v2577_v46  ;;  %v2917_v26 = vadd.f32 %v5893_v37, %v2897_v2 }
 0x23c   :  { %3779 = vmatpush.msra.mxu0 %v1157_v28  ;;  %3799 = vmatpush.msra.mxu1 %v1221_v31  ;;  %v1325_v4 = vld [vmem:[#allocation2 + $0x17e0] sm:$0xff]  ;;  %v1257_v43 = vld [vmem:[#allocation2 + $0x1070] sm:$0xff]  ;;  %v3077_v28 = vadd.f32 %v5916_v58, %v3057_v3  ;;  %v2777_v37 = vadd.f32 %v5879_v25, %v2757_v7 }
 0x23d   :  { %3819 = vmatpush.msra.mxu2 %v1285_v32  ;;  %3839 = vmatpush.msra.mxu3 %v1349_v5  ;;  %v1321_v27 = vld [vmem:[#allocation2 + $0x1770] sm:$0xff]  ;;  %v1125_v31 = vld [vmem:[#allocation2 + $0x200] sm:$0xff]  ;;  %v2617_v57 = vadd.f32 %v5863_v0, %v2597_v40 }
 0x23e   :  { %3780 = vmatpush.msra.mxu0 %v1153_v17  ;;  %3800 = vmatpush.msra.mxu1 %v1217_v56  ;;  %v1189_v32 = vld [vmem:[#allocation2 + $0x900] sm:$0xff]  ;;  %v5942_v17 = vpop.f32.mrf.mxu0  ;;  %v1121_v47 = vld [vmem:[#allocation2 + $0x190] sm:$0xff] }
 0x23f   :  { %3820 = vmatpush.msra.mxu2 %v1281_v61  ;;  %3840 = vmatpush.msra.mxu3 %v1345_v63  ;;  %v1253_v5 = vld [vmem:[#allocation2 + $0x1000] sm:$0xff]  ;;  %v1185_v56 = vld [vmem:[#allocation2 + $0x890] sm:$0xff]  ;;  %v2937_v61 = vadd.f32 %v5895_v41, %v2917_v26  ;;  %v3097_v63 = vadd.f32 %v5919_v8, %v3077_v28  ;;  %v2637_v41 = vadd.f32 %v5865_v44, %v2617_v57  ;;  %v2447_v44 = vperm.slane %v5897_v48, 5 }
 0x240   :  { %3781 = vmatpush.msra.mxu0 %v1149_v22  ;;  %3801 = vmatpush.msra.mxu1 %v1213_v45  ;;  %v1317_v60 = vld [vmem:[#allocation2 + $0x1700] sm:$0xff]  ;;  %v1249_v51 = vld [vmem:[#allocation2 + $0xf90] sm:$0xff]  ;;  %v5948_v22 = vpop.f32.mrf.mxu1  ;;  %v2797_v8 = vadd.f32 %v5881_v33, %v2777_v37  ;;  %v5957_v16 = vpop.f32.mrf.mxu3 }
 0x241   :  { %3821 = vmatpush.msra.mxu2 %v1277_v39  ;;  %3841 = vmatpush.msra.mxu3 %v1341_v9  ;;  %v1313_v58 = vld [vmem:[#allocation2 + $0x1690] sm:$0xff]  ;;  %v1117_v1 = vld [vmem:[#allocation2 + $0x120] sm:$0xff]  ;;  %v2957_v54 = vadd.f32 %v5899_v55, %v2937_v61  ;;  %v3117_v49 = vadd.f32 %v5923_v50, %v3097_v63  ;;  %v5960_v55 = vmax.f32 %v2637_v41, 0.0 }
 0x242   :  { %3782 = vmatpush.msra.mxu0 %v1145_v20  ;;  %3802 = vmatpush.msra.mxu1 %v1209_v12  ;;  %v1181_v6 = vld [vmem:[#allocation2 + $0x820] sm:$0xff]  ;;  %v1113_v25 = vld [vmem:[#allocation2 + $0xb0] sm:$0xff]  ;;  %v5962_v50 = vmax.f32 %v2797_v8, 0.0 }
 0x243   :  { %3822 = vmatpush.msra.mxu2 %v1273_v13  ;;  %3842 = vmatpush.msra.mxu3 %v1337_v14  ;;  %v1245_v45 = vld [vmem:[#allocation2 + $0xf20] sm:$0xff]  ;;  %v5950_v39 = vpop.f32.mrf.mxu2  ;;  %v1177_v9 = vld [vmem:[#allocation2 + $0x7b0] sm:$0xff]  ;;  %v2446_v13 = vperm.slane %v5897_v48, 4 }
 0x244   :  { %3783 = vmatpush.msra.mxu0 %v1141_v62  ;;  %3803 = vmatpush.msra.mxu1 %v1205_v21  ;;  %v1309_v0 = vld [vmem:[#allocation2 + $0x1620] sm:$0xff]  ;;  %v1241_v20 = vld [vmem:[#allocation2 + $0xeb0] sm:$0xff] }
 0x245   :  { %3823 = vmatpush.msra.mxu2 %v1269_v52  ;;  %3843 = vmatpush.msra.mxu3 %v1333_v23  ;;  %v1305_v12 = vld [vmem:[#allocation2 + $0x15b0] sm:$0xff]  ;;  %v1109_v14 = vld [vmem:[#allocation2 + $0x40] sm:$0xff]  ;;  %v5964_v52 = vmax.f32 %v2957_v54, 0.0  ;;  %v5966_v23 = vmax.f32 %v3117_v49, 0.0 }
 0x246   :  { %3784 = vmatpush.msra.mxu0 %v1137_v29  ;;  %3804 = vmatpush.msra.mxu1 %v1201_v24  ;;  %v1173_v15 = vld [vmem:[#allocation2 + $0x740] sm:$0xff]  ;;  %v3296_v21 = vpop.f32.mrf.mxu0  ;;  %v3137_v29 = vadd.f32 %v5926_v19, %v2446_v13  ;;  %v1425_v24 = vld [vmem:[#allocation2 + $0x22d0] sm:$0xff] }
 0x247   :  { %3824 = vmatpush.msra.mxu2 %v1265_v35  ;;  %3844 = vmatpush.msra.mxu3 %v1329_v10  ;;  %v1237_v33 = vld [vmem:[#allocation2 + $0xe40] sm:$0xff]  ;;  %v1489_v46 = vld [vmem:[#allocation2 + $0x29d0] sm:$0xff]  ;;  %v3297_v30 = vadd.f32 %v3296_v21, %v2447_v44 }
 0x248   :  { %3785 = vmatpush.msra.mxu0 %v1133_v11  ;;  %3805 = vmatpush.msra.mxu1 %v1197_v36  ;;  %v1301_v62 = vld [vmem:[#allocation2 + $0x1540] sm:$0xff]  ;;  %v3316_v35 = vpop.f32.mrf.mxu1  ;;  %v1553_v10 = vld [vmem:[#allocation2 + $0x30d0] sm:$0xff]  ;;  %v3157_v36 = vadd.f32 %v5930_v18, %v3137_v29 }
 0x249   :  { %3825 = vmatpush.msra.mxu2 %v1261_v53  ;;  %3845 = vmatpush.msra.mxu3 %v1325_v4  ;;  %v1421_v3 = vld [vmem:[#allocation2 + $0x2260] sm:$0xff]  ;;  %v1417_v53 = vld [vmem:[#allocation2 + $0x21f0] sm:$0xff] }
 0x24a   :  { %3786 = vmatpush.msra.mxu0 %v1129_v38  ;;  %3806 = vmatpush.msra.mxu1 %v1193_v59  ;;  %v1485_v11 = vld [vmem:[#allocation2 + $0x2960] sm:$0xff]  ;;  %v1481_v4 = vld [vmem:[#allocation2 + $0x28f0] sm:$0xff]  ;;  %v3317_v38 = vadd.f32 %v3316_v35, %v3297_v30  ;;  %v3356_v59 = vpop.f32.mrf.mxu3  ;;  %v3177_v26 = vadd.f32 %v5934_v34, %v3157_v36 }
 0x24b   :  { %3826 = vmatpush.msra.mxu2 %v1257_v43  ;;  %3846 = vmatpush.msra.mxu3 %v1321_v27  ;;  %v3336_v2 = vpop.f32.mrf.mxu2  ;;  %v1549_v19 = vld [vmem:[#allocation2 + $0x3060] sm:$0xff]  ;;  %v1545_v40 = vld [vmem:[#allocation2 + $0x2ff0] sm:$0xff] }
 0x24c   :  { %3787 = vmatpush.msra.mxu0 %v1125_v31  ;;  %3807 = vmatpush.msra.mxu1 %v1189_v32  ;;  %v1413_v7 = vld [vmem:[#allocation2 + $0x2180] sm:$0xff]  ;;  %v1409_v31 = vld [vmem:[#allocation2 + $0x2110] sm:$0xff]  ;;  %v3337_v32 = vadd.f32 %v3336_v2, %v3317_v38  ;;  %v3197_v37 = vadd.f32 %v5938_v42, %v3177_v26 }
 0x24d   :  { %3827 = vmatpush.msra.mxu2 %v1253_v5  ;;  %3847 = vmatpush.msra.mxu3 %v1317_v60  ;;  %v1477_v43 = vld [vmem:[#allocation2 + $0x2880] sm:$0xff]  ;;  %v1473_v18 = vld [vmem:[#allocation2 + $0x2810] sm:$0xff] }
 0x24e   :  { %3788 = vmatpush.msra.mxu0 %v1121_v47  ;;  %3808 = vmatpush.msra.mxu1 %v1185_v56  ;;  %v1541_v27 = vld [vmem:[#allocation2 + $0x2f80] sm:$0xff]  ;;  %v3376_v28 = vpop.f32.mrf.mxu0  ;;  %v1537_v5 = vld [vmem:[#allocation2 + $0x2f10] sm:$0xff]  ;;  %v3357_v61 = vadd.f32 %v3356_v59, %v3337_v32  ;;  %v3217_v42 = vadd.f32 %v5942_v17, %v3197_v37 }
 0x24f   :  { %3828 = vmatpush.msra.mxu2 %v1249_v51  ;;  %3848 = vmatpush.msra.mxu3 %v1313_v58  ;;  %v1405_v60 = vld [vmem:[#allocation2 + $0x20a0] sm:$0xff]  ;;  %v1401_v34 = vld [vmem:[#allocation2 + $0x2030] sm:$0xff] }
 0x250   :  { %3789 = vmatpush.msra.mxu0 %v1117_v1  ;;  %3809 = vmatpush.msra.mxu1 %v1181_v6  ;;  %v1469_v47 = vld [vmem:[#allocation2 + $0x27a0] sm:$0xff]  ;;  %v3396_v56 = vpop.f32.mrf.mxu1  ;;  %v1465_v58 = vld [vmem:[#allocation2 + $0x2730] sm:$0xff]  ;;  %v2448_v1 = vperm.slane %v5897_v48, 6  ;;  %v3237_v17 = vadd.f32 %v5948_v22, %v3217_v42 }
 0x251   :  { %3829 = vmatpush.msra.mxu2 %v1245_v45  ;;  %3849 = vmatpush.msra.mxu3 %v1309_v0  ;;  %v1533_v57 = vld [vmem:[#allocation2 + $0x2ea0] sm:$0xff]  ;;  %v1529_v63 = vld [vmem:[#allocation2 + $0x2e30] sm:$0xff] }
 0x252   :  { %3790 = vmatpush.msra.mxu0 %v1113_v25  ;;  %3810 = vmatpush.msra.mxu1 %v1177_v9  ;;  %v1397_v6 = vld [vmem:[#allocation2 + $0x1fc0] sm:$0xff]  ;;  %v5979_v0 = vpop.f32.mrf.mxu3  ;;  %v1393_v9 = vld [vmem:[#allocation2 + $0x1f50] sm:$0xff]  ;;  %v3257_v36 = vadd.f32 %v5950_v39, %v3237_v17  ;;  %v1286_v17 = vld [vmem:[#allocation2 + $0x1388] sm:$0xff] }
 0x253   :  { %3830 = vmatpush.msra.mxu2 %v1241_v20  ;;  %3850 = vmatpush.msra.mxu3 %v1305_v12  ;;  %v5976_v51 = vpop.f32.mrf.mxu2  ;;  %v1461_v45 = vld [vmem:[#allocation2 + $0x26c0] sm:$0xff]  ;;  %v1457_v41 = vld [vmem:[#allocation2 + $0x2650] sm:$0xff]  ;;  %v3377_v12 = vadd.f32 %v3376_v28, %v3357_v61 }
 0x254   :  { %3791 = vmatpush.msra.mxu0 %v1109_v14  ;;  %3811 = vmatpush.msra.mxu1 %v1173_v15  ;;  %v1525_v25 = vld [vmem:[#allocation2 + $0x2dc0] sm:$0xff]  ;;  %v1617_v20 = vld [vmem:[#allocation2 + $0x37d0] sm:$0xff] }
 0x255   :  { %3831 = vmatpush.msra.mxu2 %v1237_v33  ;;  %3851 = vmatpush.msra.mxu3 %v1301_v62  ;;  %v1521_v54 = vld [vmem:[#allocation2 + $0x2d50] sm:$0xff]  ;;  %v1389_v13 = vld [vmem:[#allocation2 + $0x1ee0] sm:$0xff]  ;;  %v3397_v30 = vadd.f32 %v3396_v56, %v3377_v12  ;;  %v1294_v12 = vld [vmem:[#allocation2 + $0x1468] sm:$0xff] }
 0x256   :  { %3792 = vmatmul.f32.vlgmr.msra.gmra.mxu0 %v5960_v55  ;;  %3812 = vmatmul.f32.vlgmr.msra.gmra.mxu1 %v5962_v50  ;;  %v1453_v14 = vld [vmem:[#allocation2 + $0x25e0] sm:$0xff]  ;;  %v1385_v62 = vld [vmem:[#allocation2 + $0x1e70] sm:$0xff] }
 0x257   :  { %3832 = vmatmul.f32.vlgmr.msra.gmra.mxu2 %v5964_v52  ;;  %3852 = vmatmul.f32.vlgmr.msra.gmra.mxu3 %v5966_v23  ;;  %v1613_v15 = vld [vmem:[#allocation2 + $0x3760] sm:$0xff]  ;;  %v1449_v21 = vld [vmem:[#allocation2 + $0x2570] sm:$0xff] }
 0x258   :  { %3856 = vmatpush.msrb.mxu0 %v1425_v24  ;;  %3876 = vmatpush.msrb.mxu1 %v1489_v46  ;;  %v1517_v44 = vld [vmem:[#allocation2 + $0x2ce0] sm:$0xff]  ;;  %v1609_v46 = vld [vmem:[#allocation2 + $0x36f0] sm:$0xff] }
 0x259   :  { %3896 = vmatpush.msrb.mxu2 %v1553_v10  ;;  %3916 = vmatpush.msrb.mxu3 %v1617_v20  ;;  %v1513_v35 = vld [vmem:[#allocation2 + $0x2c70] sm:$0xff]  ;;  %v1381_v10 = vld [vmem:[#allocation2 + $0x1e00] sm:$0xff]  ;;  %v1230_v20 = vld [vmem:[#allocation2 + $0xd68] sm:$0xff] }
 0x25a   :  { %3857 = vmatpush.msrb.mxu0 %v1421_v3  ;;  %3877 = vmatpush.msrb.mxu1 %v1485_v11  ;;  %v1445_v2 = vld [vmem:[#allocation2 + $0x2500] sm:$0xff]  ;;  %v1601_v59 = vld [vmem:[#allocation2 + $0x3610] sm:$0xff] }
 0x25b   :  { %3897 = vmatpush.msrb.mxu2 %v1549_v19  ;;  %3917 = vmatpush.msrb.mxu3 %v1613_v15  ;;  %v1605_v11 = vld [vmem:[#allocation2 + $0x3680] sm:$0xff]  ;;  %v1369_v32 = vld [vmem:[#allocation2 + $0x1cb0] sm:$0xff]  ;;  %v1158_v15 = vld [vmem:[#allocation2 + $0x588] sm:$0xff] }
 0x25c   :  { %3858 = vmatpush.msrb.mxu0 %v1417_v53  ;;  %3878 = vmatpush.msrb.mxu1 %v1481_v4  ;;  %v1509_v22 = vld [vmem:[#allocation2 + $0x2c00] sm:$0xff]  ;;  %v1377_v53 = vld [vmem:[#allocation2 + $0x1d90] sm:$0xff] }
 0x25d   :  { %3898 = vmatpush.msrb.mxu2 %v1545_v40  ;;  %3918 = vmatpush.msrb.mxu3 %v1609_v46  ;;  %v1441_v4 = vld [vmem:[#allocation2 + $0x2490] sm:$0xff]  ;;  %v3417_v40 = vadd.f32 %v5976_v51, %v3397_v30  ;;  %v1597_v28 = vld [vmem:[#allocation2 + $0x35a0] sm:$0xff]  ;;  %v1150_v46 = vld [vmem:[#allocation2 + $0x4a8] sm:$0xff] }
 0x25e   :  { %3859 = vmatpush.msrb.mxu0 %v1413_v7  ;;  %3879 = vmatpush.msrb.mxu1 %v1477_v43  ;;  %v1505_v7 = vld [vmem:[#allocation2 + $0x2b90] sm:$0xff]  ;;  %v1373_v43 = vld [vmem:[#allocation2 + $0x1d20] sm:$0xff] }
 0x25f   :  { %3899 = vmatpush.msrb.mxu2 %v1541_v27  ;;  %3919 = vmatpush.msrb.mxu3 %v1605_v11  ;;  %v1437_v27 = vld [vmem:[#allocation2 + $0x2420] sm:$0xff]  ;;  %v1497_v56 = vld [vmem:[#allocation2 + $0x2ab0] sm:$0xff]  ;;  %v1210_v11 = vld [vmem:[#allocation2 + $0xb38] sm:$0xff] }
 0x260   :  { %3860 = vmatpush.msrb.mxu0 %v1409_v31  ;;  %3880 = vmatpush.msrb.mxu1 %v1473_v18  ;;  %v1501_v39 = vld [vmem:[#allocation2 + $0x2b20] sm:$0xff]  ;;  %v3277_v18 = vadd.f32 %v5957_v16, %v3257_v36 }
 0x261   :  { %3900 = vmatpush.msrb.mxu2 %v1537_v5  ;;  %3920 = vmatpush.msrb.mxu3 %v1601_v59  ;;  %v1433_v5 = vld [vmem:[#allocation2 + $0x23b0] sm:$0xff]  ;;  %v1365_v37 = vld [vmem:[#allocation2 + $0x1c40] sm:$0xff] }
 0x262   :  { %3861 = vmatpush.msrb.mxu0 %v1405_v60  ;;  %3881 = vmatpush.msrb.mxu1 %v1469_v47  ;;  %v1593_v60 = vld [vmem:[#allocation2 + $0x3530] sm:$0xff]  ;;  %v3437_v47 = vadd.f32 %v5979_v0, %v3417_v40  ;;  %v1429_v51 = vld [vmem:[#allocation2 + $0x2340] sm:$0xff]  ;;  %v1234_v0 = vld [vmem:[#allocation2 + $0xdd8] sm:$0xff] }
 0x263   :  { %3901 = vmatpush.msrb.mxu2 %v1533_v57  ;;  %3921 = vmatpush.msrb.mxu3 %v1597_v28  ;;  %v1589_v61 = vld [vmem:[#allocation2 + $0x34c0] sm:$0xff]  ;;  %v1561_v59 = vld [vmem:[#allocation2 + $0x31b0] sm:$0xff]  ;;  %v1202_v40 = vld [vmem:[#allocation2 + $0xa58] sm:$0xff] }
 0x264   :  { %3862 = vmatpush.msrb.mxu0 %v1401_v34  ;;  %3882 = vmatpush.msrb.mxu1 %v1465_v58  ;;  %v1493_v16 = vld [vmem:[#allocation2 + $0x2a40] sm:$0xff]  ;;  %v1262_v28 = vld [vmem:[#allocation2 + $0x10e8] sm:$0xff] }
 0x265   :  { %3902 = vmatpush.msrb.mxu2 %v1529_v63  ;;  %v3456_v8 = vpop.f32.mrf.mxu0  ;;  %3922 = vmatpush.msrb.mxu3 %v1593_v60  ;;  %v5987_v63 = vmax.f32 %v3277_v18, 0.0  ;;  %v1573_v30 = vld [vmem:[#allocation2 + $0x3300] sm:$0xff]  ;;  %v1194_v18 = vld [vmem:[#allocation2 + $0x978] sm:$0xff]  ;;  %v1358_v60 = vld [vmem:[#allocation2 + $0x1b68] sm:$0xff] }
 0x266   :  { %3863 = vmatpush.msrb.mxu0 %v1397_v6  ;;  %3883 = vmatpush.msrb.mxu1 %v1461_v45  ;;  %v3457_v49 = vadd.f32 %v3456_v8, %v2448_v1  ;;  %v1170_v1 = vld [vmem:[#allocation2 + $0x6d8] sm:$0xff]  ;;  %v5989_v45 = vmax.f32 %v3437_v47, 0.0  ;;  %v1585_v8 = vld [vmem:[#allocation2 + $0x3450] sm:$0xff]  ;;  %v1565_v36 = vld [vmem:[#allocation2 + $0x3220] sm:$0xff] }
 0x267   :  { %3903 = vmatpush.msrb.mxu2 %v1525_v25  ;;  %3923 = vmatpush.msrb.mxu3 %v1589_v61  ;;  %v1298_v25 = vld [vmem:[#allocation2 + $0x14d8] sm:$0xff]  ;;  %v1190_v47 = vld [vmem:[#allocation2 + $0x908] sm:$0xff] }
 0x268   :  { %3864 = vmatpush.msrb.mxu0 %v1393_v9  ;;  %3884 = vmatpush.msrb.mxu1 %v1457_v41  ;;  %v3476_v33 = vpop.f32.mrf.mxu1  ;;  %v1166_v9 = vld [vmem:[#allocation2 + $0x668] sm:$0xff] }
 0x269   :  { %3904 = vmatpush.msrb.mxu2 %v1521_v54  ;;  %v3477_v29 = vadd.f32 %v3476_v33, %v3457_v49  ;;  %v3496_v24 = vpop.f32.mrf.mxu2  ;;  %v1162_v54 = vld [vmem:[#allocation2 + $0x5f8] sm:$0xff]  ;;  %3924 = vmatpush.msrb.mxu3 %v1585_v8  ;;  %v1222_v33 = vld [vmem:[#allocation2 + $0xc88] sm:$0xff] }
 0x26a   :  { %3865 = vmatpush.msrb.mxu0 %v1389_v13  ;;  %3885 = vmatpush.msrb.mxu1 %v1453_v14  ;;  %v1226_v13 = vld [vmem:[#allocation2 + $0xcf8] sm:$0xff]  ;;  %v1350_v61 = vld [vmem:[#allocation2 + $0x1a88] sm:$0xff] }
 0x26b   :  { %3905 = vmatpush.msrb.mxu2 %v1517_v44  ;;  %v3497_v3 = vadd.f32 %v3496_v24, %v3477_v29  ;;  %v1290_v14 = vld [vmem:[#allocation2 + $0x13f8] sm:$0xff]  ;;  %v1581_v44 = vld [vmem:[#allocation2 + $0x33e0] sm:$0xff]  ;;  %v1174_v8 = vld [vmem:[#allocation2 + $0x748] sm:$0xff] }
 0x26c   :  { %3866 = vmatpush.msrb.mxu0 %v1385_v62  ;;  %3886 = vmatpush.msrb.mxu1 %v1449_v21  ;;  %v3516_v19 = vpop.f32.mrf.mxu3  ;;  %v1154_v62 = vld [vmem:[#allocation2 + $0x518] sm:$0xff]  ;;  %v1577_v21 = vld [vmem:[#allocation2 + $0x3370] sm:$0xff] }
 0x26d   :  { %3906 = vmatpush.msrb.mxu2 %v1513_v35  ;;  %v3517_v38 = vadd.f32 %v3516_v19, %v3497_v3  ;;  %v1218_v29 = vld [vmem:[#allocation2 + $0xc18] sm:$0xff]  ;;  %3925 = vmatpush.msrb.mxu3 %v1581_v44  ;;  %v1214_v35 = vld [vmem:[#allocation2 + $0xba8] sm:$0xff]  ;;  %v1569_v3 = vld [vmem:[#allocation2 + $0x3290] sm:$0xff] }
 0x26e   :  { %3867 = vmatpush.msrb.mxu0 %v1381_v10  ;;  %3887 = vmatpush.msrb.mxu1 %v1445_v2  ;;  %v1282_v24 = vld [vmem:[#allocation2 + $0x1318] sm:$0xff]  ;;  %v1278_v10 = vld [vmem:[#allocation2 + $0x12a8] sm:$0xff] }
 0x26f   :  { %3907 = vmatpush.msrb.mxu2 %v1509_v22  ;;  %v3536_v26 = vpop.f32.mrf.mxu0  ;;  %3926 = vmatpush.msrb.mxu3 %v1577_v21  ;;  %v1146_v2 = vld [vmem:[#allocation2 + $0x438] sm:$0xff]  ;;  %v1142_v19 = vld [vmem:[#allocation2 + $0x3c8] sm:$0xff] }
 0x270   :  { %3868 = vmatpush.msrb.mxu0 %v1377_v53  ;;  %3888 = vmatpush.msrb.mxu1 %v1441_v4  ;;  %v3537_v31 = vadd.f32 %v3536_v26, %v3517_v38  ;;  %v1274_v22 = vld [vmem:[#allocation2 + $0x1238] sm:$0xff]  ;;  %v1206_v53 = vld [vmem:[#allocation2 + $0xac8] sm:$0xff] }
 0x271   :  { %3908 = vmatpush.msrb.mxu2 %v1505_v7  ;;  %3927 = vmatpush.msrb.mxu3 %v1573_v30  ;;  %v1270_v4 = vld [vmem:[#allocation2 + $0x11c8] sm:$0xff]  ;;  %v1138_v38 = vld [vmem:[#allocation2 + $0x358] sm:$0xff] }
 0x272   :  { %3869 = vmatpush.msrb.mxu0 %v1373_v43  ;;  %3889 = vmatpush.msrb.mxu1 %v1437_v27  ;;  %v3556_v57 = vpop.f32.mrf.mxu1  ;;  %v1266_v7 = vld [vmem:[#allocation2 + $0x1158] sm:$0xff]  ;;  %v1134_v43 = vld [vmem:[#allocation2 + $0x2e8] sm:$0xff]  ;;  %v1557_v27 = vld [vmem:[#allocation2 + $0x3140] sm:$0xff] }
 0x273   :  { %3909 = vmatpush.msrb.mxu2 %v1501_v39  ;;  %v3557_v34 = vadd.f32 %v3556_v57, %v3537_v31  ;;  %v3576_v58 = vpop.f32.mrf.mxu2  ;;  %3928 = vmatpush.msrb.mxu3 %v1569_v3  ;;  %v1198_v26 = vld [vmem:[#allocation2 + $0x9e8] sm:$0xff]  ;;  %v1130_v39 = vld [vmem:[#allocation2 + $0x278] sm:$0xff] }
 0x274   :  { %3870 = vmatpush.msrb.mxu0 %v1369_v32  ;;  %3890 = vmatpush.msrb.mxu1 %v1433_v5  ;;  %v1362_v31 = vld [vmem:[#allocation2 + $0x1bd8] sm:$0xff]  ;;  %v1126_v5 = vld [vmem:[#allocation2 + $0x208] sm:$0xff] }
 0x275   :  { %3910 = vmatpush.msrb.mxu2 %v1497_v56  ;;  %v3577_v6 = vadd.f32 %v3576_v58, %v3557_v34  ;;  %3929 = vmatpush.msrb.mxu3 %v1565_v36  ;;  %v1258_v32 = vld [vmem:[#allocation2 + $0x1078] sm:$0xff]  ;;  %v1254_v56 = vld [vmem:[#allocation2 + $0x1008] sm:$0xff] }
 0x276   :  { %3871 = vmatpush.msrb.mxu0 %v1365_v37  ;;  %3891 = vmatpush.msrb.mxu1 %v1429_v51  ;;  %v3596_v42 = vpop.f32.mrf.mxu3  ;;  %v1122_v57 = vld [vmem:[#allocation2 + $0x198] sm:$0xff]  ;;  %v1118_v58 = vld [vmem:[#allocation2 + $0x128] sm:$0xff] }
 0x277   :  { %3911 = vmatpush.msrb.mxu2 %v1493_v16  ;;  %3872 = vmatmul.f32.vlgmr.msrb.gmra.mxu0 %v5987_v63  ;;  %v3597_v41 = vadd.f32 %v3596_v42, %v3577_v6  ;;  %v1354_v37 = vld [vmem:[#allocation2 + $0x1af8] sm:$0xff]  ;;  %v1182_v16 = vld [vmem:[#allocation2 + $0x828] sm:$0xff] }
 0x278   :  { %3892 = vmatmul.f32.vlgmr.msrb.gmra.mxu1 %v5989_v45  ;;  %3936 = vmatpush.msra.mxu0 %v1170_v1  ;;  %v1186_v51 = vld [vmem:[#allocation2 + $0x898] sm:$0xff]  ;;  %v1246_v1 = vld [vmem:[#allocation2 + $0xf28] sm:$0xff] }
 0x279   :  { %3956 = vmatpush.msra.mxu1 %v1234_v0  ;;  %3976 = vmatpush.msra.mxu2 %v1298_v25  ;;  %v5993_v49 = vmax.f32 %v3597_v41, 0.0  ;;  %v1250_v34 = vld [vmem:[#allocation2 + $0xf98] sm:$0xff]  ;;  %v1342_v41 = vld [vmem:[#allocation2 + $0x19a8] sm:$0xff] }
 0x27a   :  { %3937 = vmatpush.msra.mxu0 %v1166_v9  ;;  %3930 = vmatpush.msrb.mxu3 %v1561_v59  ;;  %v1114_v6 = vld [vmem:[#allocation2 + $0xb8] sm:$0xff]  ;;  %v1110_v9 = vld [vmem:[#allocation2 + $0x48] sm:$0xff] }
 0x27b   :  { %3957 = vmatpush.msra.mxu1 %v1230_v20  ;;  %3977 = vmatpush.msra.mxu2 %v1294_v12  ;;  %v1346_v0 = vld [vmem:[#allocation2 + $0x1a18] sm:$0xff]  ;;  %v1238_v20 = vld [vmem:[#allocation2 + $0xe48] sm:$0xff] }
 0x27c   :  { %3938 = vmatpush.msra.mxu0 %v1162_v54  ;;  %3912 = vmatmul.f32.vlgmr.msrb.gmra.mxu2 %v5993_v49  ;;  %v1178_v25 = vld [vmem:[#allocation2 + $0x7b8] sm:$0xff]  ;;  %v1486_v44 = vld [vmem:[#allocation2 + $0x2968] sm:$0xff] }
 0x27d   :  { %3958 = vmatpush.msra.mxu1 %v1226_v13  ;;  %3978 = vmatpush.msra.mxu2 %v1290_v14  ;;  %v1242_v42 = vld [vmem:[#allocation2 + $0xeb8] sm:$0xff]  ;;  %v1422_v14 = vld [vmem:[#allocation2 + $0x2268] sm:$0xff] }
 0x27e   :  { %3939 = vmatpush.msra.mxu0 %v1158_v15  ;;  %3931 = vmatpush.msrb.mxu3 %v1557_v27  ;;  %v1426_v12 = vld [vmem:[#allocation2 + $0x22d8] sm:$0xff]  ;;  %v1478_v30 = vld [vmem:[#allocation2 + $0x2888] sm:$0xff] }
 0x27f   :  { %3959 = vmatpush.msra.mxu1 %v1222_v33  ;;  %3979 = vmatpush.msra.mxu2 %v1286_v17  ;;  %v1490_v54 = vld [vmem:[#allocation2 + $0x29d8] sm:$0xff]  ;;  %v1550_v33 = vld [vmem:[#allocation2 + $0x3068] sm:$0xff] }
 0x280   :  { %3940 = vmatpush.msra.mxu0 %v1154_v62  ;;  %3996 = vmatpush.msra.mxu3 %v1362_v31  ;;  %v1554_v13 = vld [vmem:[#allocation2 + $0x30d8] sm:$0xff]  ;;  %v1334_v62 = vld [vmem:[#allocation2 + $0x18c8] sm:$0xff] }
 0x281   :  { %3960 = vmatpush.msra.mxu1 %v1218_v29  ;;  %3980 = vmatpush.msra.mxu2 %v1282_v24  ;;  %v1338_v15 = vld [vmem:[#allocation2 + $0x1938] sm:$0xff]  ;;  %v1414_v24 = vld [vmem:[#allocation2 + $0x2188] sm:$0xff] }
 0x282   :  { %3941 = vmatpush.msra.mxu0 %v1150_v46  ;;  %3997 = vmatpush.msra.mxu3 %v1358_v60  ;;  %v1418_v17 = vld [vmem:[#allocation2 + $0x21f8] sm:$0xff]  ;;  %v1470_v36 = vld [vmem:[#allocation2 + $0x27a8] sm:$0xff] }
 0x283   :  { %3961 = vmatpush.msra.mxu1 %v1214_v35  ;;  %3981 = vmatpush.msra.mxu2 %v1278_v10  ;;  %v1482_v21 = vld [vmem:[#allocation2 + $0x28f8] sm:$0xff]  ;;  %v1542_v35 = vld [vmem:[#allocation2 + $0x2f88] sm:$0xff] }
 0x284   :  { %3942 = vmatpush.msra.mxu0 %v1146_v2  ;;  %3998 = vmatpush.msra.mxu3 %v1354_v37  ;;  %v1546_v29 = vld [vmem:[#allocation2 + $0x2ff8] sm:$0xff]  ;;  %v1326_v2 = vld [vmem:[#allocation2 + $0x17e8] sm:$0xff] }
 0x285   :  { %3962 = vmatpush.msra.mxu1 %v1210_v11  ;;  %3982 = vmatpush.msra.mxu2 %v1274_v22  ;;  %v1330_v46 = vld [vmem:[#allocation2 + $0x1858] sm:$0xff]  ;;  %v1406_v22 = vld [vmem:[#allocation2 + $0x20a8] sm:$0xff] }
 0x286   :  { %3943 = vmatpush.msra.mxu0 %v1142_v19  ;;  %3999 = vmatpush.msra.mxu3 %v1350_v61  ;;  %v1410_v10 = vld [vmem:[#allocation2 + $0x2118] sm:$0xff]  ;;  %v1462_v27 = vld [vmem:[#allocation2 + $0x26c8] sm:$0xff] }
 0x287   :  { %3963 = vmatpush.msra.mxu1 %v1206_v53  ;;  %3983 = vmatpush.msra.mxu2 %v1270_v4  ;;  %v1474_v3 = vld [vmem:[#allocation2 + $0x2818] sm:$0xff]  ;;  %v1534_v53 = vld [vmem:[#allocation2 + $0x2ea8] sm:$0xff] }
 0x288   :  { %3944 = vmatpush.msra.mxu0 %v1138_v38  ;;  %4000 = vmatpush.msra.mxu3 %v1346_v0  ;;  %v1538_v11 = vld [vmem:[#allocation2 + $0x2f18] sm:$0xff]  ;;  %v1318_v38 = vld [vmem:[#allocation2 + $0x1708] sm:$0xff] }
 0x289   :  { %3964 = vmatpush.msra.mxu1 %v1202_v40  ;;  %3984 = vmatpush.msra.mxu2 %v1266_v7  ;;  %v1322_v19 = vld [vmem:[#allocation2 + $0x1778] sm:$0xff]  ;;  %v1398_v7 = vld [vmem:[#allocation2 + $0x1fc8] sm:$0xff] }
 0x28a   :  { %3945 = vmatpush.msra.mxu0 %v1134_v43  ;;  %4001 = vmatpush.msra.mxu3 %v1342_v41  ;;  %v1402_v4 = vld [vmem:[#allocation2 + $0x2038] sm:$0xff]  ;;  %v1310_v31 = vld [vmem:[#allocation2 + $0x1628] sm:$0xff] }
 0x28b   :  { %3965 = vmatpush.msra.mxu1 %v1198_v26  ;;  %3985 = vmatpush.msra.mxu2 %v1262_v28  ;;  %v1466_v59 = vld [vmem:[#allocation2 + $0x2738] sm:$0xff]  ;;  %v1526_v26 = vld [vmem:[#allocation2 + $0x2dc8] sm:$0xff] }
 0x28c   :  { %3946 = vmatpush.msra.mxu0 %v1130_v39  ;;  %4002 = vmatpush.msra.mxu3 %v1338_v15  ;;  %v1530_v40 = vld [vmem:[#allocation2 + $0x2e38] sm:$0xff]  ;;  %v2449_v39 = vperm.slane %v5897_v48, 7  ;;  %v1382_v61 = vld [vmem:[#allocation2 + $0x1e08] sm:$0xff] }
 0x28d   :  { %3966 = vmatpush.msra.mxu1 %v1194_v18  ;;  %3986 = vmatpush.msra.mxu2 %v1258_v32  ;;  %v1314_v43 = vld [vmem:[#allocation2 + $0x1698] sm:$0xff] }
 0x28e   :  { %3947 = vmatpush.msra.mxu0 %v1126_v5  ;;  %4003 = vmatpush.msra.mxu3 %v1334_v62  ;;  %v1394_v28 = vld [vmem:[#allocation2 + $0x1f58] sm:$0xff]  ;;  %v1390_v5 = vld [vmem:[#allocation2 + $0x1ee8] sm:$0xff] }
 0x28f   :  { %3967 = vmatpush.msra.mxu1 %v1190_v47  ;;  %3987 = vmatpush.msra.mxu2 %v1254_v56  ;;  %v1458_v18 = vld [vmem:[#allocation2 + $0x2658] sm:$0xff]  ;;  %v1454_v47 = vld [vmem:[#allocation2 + $0x25e8] sm:$0xff] }
 0x290   :  { %3948 = vmatpush.msra.mxu0 %v1122_v57  ;;  %4004 = vmatpush.msra.mxu3 %v1330_v46  ;;  %v1522_v32 = vld [vmem:[#allocation2 + $0x2d58] sm:$0xff]  ;;  %v1518_v56 = vld [vmem:[#allocation2 + $0x2ce8] sm:$0xff] }
 0x291   :  { %3968 = vmatpush.msra.mxu1 %v1186_v51  ;;  %3988 = vmatpush.msra.mxu2 %v1250_v34  ;;  %v1306_v60 = vld [vmem:[#allocation2 + $0x15b8] sm:$0xff]  ;;  %v1302_v34 = vld [vmem:[#allocation2 + $0x1548] sm:$0xff] }
 0x292   :  { %3949 = vmatpush.msra.mxu0 %v1118_v58  ;;  %4005 = vmatpush.msra.mxu3 %v1326_v2  ;;  %v1386_v37 = vld [vmem:[#allocation2 + $0x1e78] sm:$0xff]  ;;  %v1366_v62 = vld [vmem:[#allocation2 + $0x1c48] sm:$0xff]  ;;  %v1235_v2 = vld [vmem:[#allocation2 + $0xde0] sm:$0xff] }
 0x293   :  { %3969 = vmatpush.msra.mxu1 %v1182_v16  ;;  %3989 = vmatpush.msra.mxu2 %v1246_v1  ;;  %v1450_v48 = vld [vmem:[#allocation2 + $0x2578] sm:$0xff]  ;;  %v1446_v1 = vld [vmem:[#allocation2 + $0x2508] sm:$0xff] }
 0x294   :  { %3950 = vmatpush.msra.mxu0 %v1114_v6  ;;  %4006 = vmatpush.msra.mxu3 %v1322_v19  ;;  %v1514_v58 = vld [vmem:[#allocation2 + $0x2c78] sm:$0xff]  ;;  %v1510_v6 = vld [vmem:[#allocation2 + $0x2c08] sm:$0xff]  ;;  %v1231_v19 = vld [vmem:[#allocation2 + $0xd70] sm:$0xff] }
 0x295   :  { %3970 = vmatpush.msra.mxu1 %v1178_v25  ;;  %3990 = vmatpush.msra.mxu2 %v1242_v42  ;;  %v1378_v42 = vld [vmem:[#allocation2 + $0x1d98] sm:$0xff] }
 0x296   :  { %3951 = vmatpush.msra.mxu0 %v1110_v9  ;;  %4007 = vmatpush.msra.mxu3 %v1318_v38  ;;  %v1442_v9 = vld [vmem:[#allocation2 + $0x2498] sm:$0xff] }
 0x297   :  { %3971 = vmatpush.msra.mxu1 %v1174_v8  ;;  %3991 = vmatpush.msra.mxu2 %v1238_v20  ;;  %v1506_v41 = vld [vmem:[#allocation2 + $0x2b98] sm:$0xff]  ;;  %v1374_v20 = vld [vmem:[#allocation2 + $0x1d28] sm:$0xff] }
 0x298   :  { %3952 = vmatmul.f32.vlgmr.msra.gmra.mxu0 %v5960_v55  ;;  %3972 = vmatmul.f32.vlgmr.msra.gmra.mxu1 %v5962_v50  ;;  %v1370_v15 = vld [vmem:[#allocation2 + $0x1cb8] sm:$0xff] }
 0x299   :  { %3992 = vmatmul.f32.vlgmr.msra.gmra.mxu2 %v5964_v52  ;;  %4016 = vmatpush.msrb.mxu0 %v1426_v12 }
 0x29a   :  { %4036 = vmatpush.msrb.mxu1 %v1490_v54  ;;  %4056 = vmatpush.msrb.mxu2 %v1554_v13  ;;  %v1438_v54 = vld [vmem:[#allocation2 + $0x2428] sm:$0xff] }
 0x29b   :  { %4017 = vmatpush.msrb.mxu0 %v1422_v14  ;;  %4008 = vmatpush.msra.mxu3 %v1314_v43  ;;  %v1502_v13 = vld [vmem:[#allocation2 + $0x2b28] sm:$0xff] }
 0x29c   :  { %4037 = vmatpush.msrb.mxu1 %v1486_v44  ;;  %4057 = vmatpush.msrb.mxu2 %v1550_v33  ;;  %v1434_v44 = vld [vmem:[#allocation2 + $0x23b8] sm:$0xff] }
 0x29d   :  { %4018 = vmatpush.msrb.mxu0 %v1418_v17  ;;  %4009 = vmatpush.msra.mxu3 %v1310_v31  ;;  %v1498_v33 = vld [vmem:[#allocation2 + $0x2ab8] sm:$0xff]  ;;  %v1219_v31 = vld [vmem:[#allocation2 + $0xc20] sm:$0xff] }
 0x29e   :  { %4038 = vmatpush.msrb.mxu1 %v1482_v21  ;;  %4058 = vmatpush.msrb.mxu2 %v1546_v29  ;;  %v1430_v29 = vld [vmem:[#allocation2 + $0x2348] sm:$0xff] }
 0x29f   :  { %4019 = vmatpush.msrb.mxu0 %v1414_v24  ;;  %4010 = vmatpush.msra.mxu3 %v1306_v60  ;;  %v1494_v24 = vld [vmem:[#allocation2 + $0x2a48] sm:$0xff]  ;;  %v1215_v60 = vld [vmem:[#allocation2 + $0xbb0] sm:$0xff] }
 0x2a0   :  { %4039 = vmatpush.msrb.mxu1 %v1478_v30  ;;  %4059 = vmatpush.msrb.mxu2 %v1542_v35  ;;  %v1171_v30 = vld [vmem:[#allocation2 + $0x6e0] sm:$0xff] }
 0x2a1   :  { %4020 = vmatpush.msrb.mxu0 %v1410_v10  ;;  %4011 = vmatpush.msra.mxu3 %v1302_v34  ;;  %v1143_v34 = vld [vmem:[#allocation2 + $0x3d0] sm:$0xff] }
 0x2a2   :  { %4040 = vmatpush.msrb.mxu1 %v1474_v3  ;;  %4060 = vmatpush.msrb.mxu2 %v1538_v11  ;;  %v1299_v3 = vld [vmem:[#allocation2 + $0x14e0] sm:$0xff]  ;;  %v1167_v11 = vld [vmem:[#allocation2 + $0x670] sm:$0xff] }
 0x2a3   :  { %4021 = vmatpush.msrb.mxu0 %v1406_v22 }
 0x2a4   :  { %4041 = vmatpush.msrb.mxu1 %v1470_v36  ;;  %4061 = vmatpush.msrb.mxu2 %v1534_v53  ;;  %v1295_v36 = vld [vmem:[#allocation2 + $0x1470] sm:$0xff] }
 0x2a5   :  { %4022 = vmatpush.msrb.mxu0 %v1402_v4  ;;  %v1163_v4 = vld [vmem:[#allocation2 + $0x600] sm:$0xff] }
 0x2a6   :  { %4042 = vmatpush.msrb.mxu1 %v1466_v59  ;;  %4062 = vmatpush.msrb.mxu2 %v1530_v40  ;;  %v1227_v59 = vld [vmem:[#allocation2 + $0xd00] sm:$0xff] }
 0x2a7   :  { %4023 = vmatpush.msrb.mxu0 %v1398_v7  ;;  %v1291_v40 = vld [vmem:[#allocation2 + $0x1400] sm:$0xff]  ;;  %v1159_v7 = vld [vmem:[#allocation2 + $0x590] sm:$0xff] }
 0x2a8   :  { %4043 = vmatpush.msrb.mxu1 %v1462_v27  ;;  %4063 = vmatpush.msrb.mxu2 %v1526_v26  ;;  %v1223_v27 = vld [vmem:[#allocation2 + $0xc90] sm:$0xff] }
 0x2a9   :  { %4024 = vmatpush.msrb.mxu0 %v1394_v28  ;;  %v3616_v57 = vpop.f32.mrf.mxu0  ;;  %v1287_v26 = vld [vmem:[#allocation2 + $0x1390] sm:$0xff]  ;;  %v1155_v28 = vld [vmem:[#allocation2 + $0x520] sm:$0xff] }
 0x2aa   :  { %4044 = vmatpush.msrb.mxu1 %v1458_v18  ;;  %4064 = vmatpush.msrb.mxu2 %v1522_v32  ;;  %v3617_v51 = vadd.f32 %v3616_v57, %v2449_v39  ;;  %v1618_v39 = vld [vmem:[#allocation2 + $0x37d8] sm:$0xff]  ;;  %v1283_v18 = vld [vmem:[#allocation2 + $0x1320] sm:$0xff]  ;;  %v1151_v32 = vld [vmem:[#allocation2 + $0x4b0] sm:$0xff] }
 0x2ab   :  { %4025 = vmatpush.msrb.mxu0 %v1390_v5  ;;  %v1614_v5 = vld [vmem:[#allocation2 + $0x3768] sm:$0xff]  ;;  %v1610_v57 = vld [vmem:[#allocation2 + $0x36f8] sm:$0xff] }
 0x2ac   :  { %4045 = vmatpush.msrb.mxu1 %v1454_v47  ;;  %4065 = vmatpush.msrb.mxu2 %v1518_v56  ;;  %v3636_v16 = vpop.f32.mrf.mxu1  ;;  %v1279_v47 = vld [vmem:[#allocation2 + $0x12b0] sm:$0xff]  ;;  %v1147_v56 = vld [vmem:[#allocation2 + $0x440] sm:$0xff] }
 0x2ad   :  { %4026 = vmatpush.msrb.mxu0 %v1386_v37  ;;  %v3637_v0 = vadd.f32 %v3636_v16, %v3617_v51  ;;  %v3656_v25 = vpop.f32.mrf.mxu2  ;;  %v1211_v37 = vld [vmem:[#allocation2 + $0xb40] sm:$0xff] }
 0x2ae   :  { %4046 = vmatpush.msrb.mxu1 %v1450_v48  ;;  %4066 = vmatpush.msrb.mxu2 %v1514_v58  ;;  %v1275_v51 = vld [vmem:[#allocation2 + $0x1240] sm:$0xff]  ;;  %v1606_v48 = vld [vmem:[#allocation2 + $0x3688] sm:$0xff]  ;;  %v1207_v58 = vld [vmem:[#allocation2 + $0xad0] sm:$0xff] }
 0x2af   :  { %4027 = vmatpush.msrb.mxu0 %v1382_v61  ;;  %v3657_v8 = vadd.f32 %v3656_v25, %v3637_v0  ;;  %v1271_v61 = vld [vmem:[#allocation2 + $0x11d0] sm:$0xff]  ;;  %v1139_v16 = vld [vmem:[#allocation2 + $0x360] sm:$0xff]  ;;  %v1602_v25 = vld [vmem:[#allocation2 + $0x3618] sm:$0xff] }
 0x2b0   :  { %4047 = vmatpush.msrb.mxu1 %v1446_v1  ;;  %4067 = vmatpush.msrb.mxu2 %v1510_v6  ;;  %v3676_v12 = vpop.f32.mrf.mxu3  ;;  %v1203_v1 = vld [vmem:[#allocation2 + $0xa60] sm:$0xff]  ;;  %v1135_v0 = vld [vmem:[#allocation2 + $0x2f0] sm:$0xff] }
 0x2b1   :  { %4028 = vmatpush.msrb.mxu0 %v1378_v42  ;;  %v3677_v14 = vadd.f32 %v3676_v12, %v3657_v8  ;;  %v1267_v6 = vld [vmem:[#allocation2 + $0x1160] sm:$0xff]  ;;  %v1199_v42 = vld [vmem:[#allocation2 + $0x9f0] sm:$0xff]  ;;  %v1598_v8 = vld [vmem:[#allocation2 + $0x35a8] sm:$0xff] }
 0x2b2   :  { %4048 = vmatpush.msrb.mxu1 %v1442_v9  ;;  %4068 = vmatpush.msrb.mxu2 %v1506_v41  ;;  %v1263_v9 = vld [vmem:[#allocation2 + $0x10f0] sm:$0xff]  ;;  %v1131_v41 = vld [vmem:[#allocation2 + $0x280] sm:$0xff] }
 0x2b3   :  { %4029 = vmatpush.msrb.mxu0 %v1374_v20  ;;  %v3696_v17 = vpop.f32.mrf.mxu0  ;;  %v1195_v20 = vld [vmem:[#allocation2 + $0x980] sm:$0xff] }
 0x2b4   :  { %4049 = vmatpush.msrb.mxu1 %v1438_v54  ;;  %4069 = vmatpush.msrb.mxu2 %v1502_v13  ;;  %v3697_v21 = vadd.f32 %v3696_v17, %v3677_v14  ;;  %v1259_v12 = vld [vmem:[#allocation2 + $0x1080] sm:$0xff]  ;;  %v1127_v54 = vld [vmem:[#allocation2 + $0x210] sm:$0xff]  ;;  %v1594_v13 = vld [vmem:[#allocation2 + $0x3538] sm:$0xff] }
 0x2b5   :  { %4030 = vmatpush.msrb.mxu0 %v1370_v15  ;;  %v1191_v14 = vld [vmem:[#allocation2 + $0x910] sm:$0xff]  ;;  %v1187_v17 = vld [vmem:[#allocation2 + $0x8a0] sm:$0xff] }
 0x2b6   :  { %4050 = vmatpush.msrb.mxu1 %v1434_v44  ;;  %4070 = vmatpush.msrb.mxu2 %v1498_v33  ;;  %v3716_v46 = vpop.f32.mrf.mxu1  ;;  %v1255_v15 = vld [vmem:[#allocation2 + $0x1010] sm:$0xff]  ;;  %v1123_v44 = vld [vmem:[#allocation2 + $0x1a0] sm:$0xff]  ;;  %v1590_v33 = vld [vmem:[#allocation2 + $0x34c8] sm:$0xff] }
 0x2b7   :  { %4031 = vmatpush.msrb.mxu0 %v1366_v62  ;;  %v3717_v35 = vadd.f32 %v3716_v46, %v3697_v21  ;;  %v3736_v10 = vpop.f32.mrf.mxu2  ;;  %v1251_v62 = vld [vmem:[#allocation2 + $0xfa0] sm:$0xff]  ;;  %v1119_v21 = vld [vmem:[#allocation2 + $0x130] sm:$0xff] }
 0x2b8   :  { %4051 = vmatpush.msrb.mxu1 %v1430_v29  ;;  %4071 = vmatpush.msrb.mxu2 %v1494_v24  ;;  %v1586_v29 = vld [vmem:[#allocation2 + $0x3458] sm:$0xff]  ;;  %v1183_v24 = vld [vmem:[#allocation2 + $0x830] sm:$0xff] }
 0x2b9   :  { %4032 = vmatmul.f32.vlgmr.msrb.gmra.mxu0 %v5987_v63  ;;  %4052 = vmatmul.f32.vlgmr.msrb.gmra.mxu1 %v5989_v45  ;;  %v3737_v22 = vadd.f32 %v3736_v10, %v3717_v35  ;;  %v1247_v46 = vld [vmem:[#allocation2 + $0xf30] sm:$0xff]  ;;  %v1582_v35 = vld [vmem:[#allocation2 + $0x33e8] sm:$0xff]  ;;  %v1179_v10 = vld [vmem:[#allocation2 + $0x7c0] sm:$0xff] }
 0x2ba   :  { %4072 = vmatmul.f32.vlgmr.msrb.gmra.mxu2 %v5993_v49  ;;  %4096 = vmatpush.msra.mxu0 %v1171_v30  ;;  %v3756_v53 = vpop.f32.mrf.mxu3  ;;  %v1115_v30 = vld [vmem:[#allocation2 + $0xc0] sm:$0xff] }
 0x2bb   :  { %4116 = vmatpush.msra.mxu1 %v1235_v2  ;;  %4136 = vmatpush.msra.mxu2 %v1299_v3  ;;  %v3757_v38 = vadd.f32 %v3756_v53, %v3737_v22  ;;  %v1243_v2 = vld [vmem:[#allocation2 + $0xec0] sm:$0xff]  ;;  %v1111_v3 = vld [vmem:[#allocation2 + $0x50] sm:$0xff] }
 0x2bc   :  { %4097 = vmatpush.msra.mxu0 %v1167_v11  ;;  %v1578_v11 = vld [vmem:[#allocation2 + $0x3378] sm:$0xff]  ;;  %v1175_v22 = vld [vmem:[#allocation2 + $0x750] sm:$0xff]  ;;  %v1491_v53 = vld [vmem:[#allocation2 + $0x29e0] sm:$0xff] }
 0x2bd   :  { %4117 = vmatpush.msra.mxu1 %v1231_v19  ;;  %4137 = vmatpush.msra.mxu2 %v1295_v36  ;;  %v6003_v43 = vmax.f32 %v3757_v38, 0.0  ;;  %v1239_v19 = vld [vmem:[#allocation2 + $0xe50] sm:$0xff]  ;;  %v1427_v36 = vld [vmem:[#allocation2 + $0x22e0] sm:$0xff] }
 0x2be   :  { %4098 = vmatpush.msra.mxu0 %v1163_v4  ;;  %v1555_v4 = vld [vmem:[#allocation2 + $0x30e0] sm:$0xff]  ;;  %v1423_v38 = vld [vmem:[#allocation2 + $0x2270] sm:$0xff] }
 0x2bf   :  { %4118 = vmatpush.msra.mxu1 %v1227_v59  ;;  %4138 = vmatpush.msra.mxu2 %v1291_v40  ;;  %v1574_v59 = vld [vmem:[#allocation2 + $0x3308] sm:$0xff]  ;;  %v1487_v40 = vld [vmem:[#allocation2 + $0x2970] sm:$0xff] }
 0x2c0   :  { %4099 = vmatpush.msra.mxu0 %v1159_v7  ;;  %3932 = vmatmul.f32.vlgmr.msrb.gmra.mxu3 %v6003_v43  ;;  %v1551_v7 = vld [vmem:[#allocation2 + $0x3070] sm:$0xff] }
 0x2c1   :  { %4119 = vmatpush.msra.mxu1 %v1223_v27  ;;  %4139 = vmatpush.msra.mxu2 %v1287_v26  ;;  %v1419_v27 = vld [vmem:[#allocation2 + $0x2200] sm:$0xff]  ;;  %v1570_v26 = vld [vmem:[#allocation2 + $0x3298] sm:$0xff] }
 0x2c2   :  { %4100 = vmatpush.msra.mxu0 %v1155_v28  ;;  %4076 = vmatpush.msrb.mxu3 %v1618_v39  ;;  %v1483_v28 = vld [vmem:[#allocation2 + $0x2900] sm:$0xff] }
 0x2c3   :  { %4120 = vmatpush.msra.mxu1 %v1219_v31  ;;  %4140 = vmatpush.msra.mxu2 %v1283_v18  ;;  %v1547_v39 = vld [vmem:[#allocation2 + $0x3000] sm:$0xff]  ;;  %v1415_v31 = vld [vmem:[#allocation2 + $0x2190] sm:$0xff]  ;;  %v1566_v18 = vld [vmem:[#allocation2 + $0x3228] sm:$0xff] }
 0x2c4   :  { %4101 = vmatpush.msra.mxu0 %v1151_v32  ;;  %4077 = vmatpush.msrb.mxu3 %v1614_v5  ;;  %v1479_v32 = vld [vmem:[#allocation2 + $0x2890] sm:$0xff] }
 0x2c5   :  { %4121 = vmatpush.msra.mxu1 %v1215_v60  ;;  %4141 = vmatpush.msra.mxu2 %v1279_v47  ;;  %v1543_v5 = vld [vmem:[#allocation2 + $0x2f90] sm:$0xff]  ;;  %v1411_v60 = vld [vmem:[#allocation2 + $0x2120] sm:$0xff]  ;;  %v1562_v47 = vld [vmem:[#allocation2 + $0x31b8] sm:$0xff] }
 0x2c6   :  { %4102 = vmatpush.msra.mxu0 %v1147_v56  ;;  %4078 = vmatpush.msrb.mxu3 %v1610_v57  ;;  %v1475_v56 = vld [vmem:[#allocation2 + $0x2820] sm:$0xff] }
 0x2c7   :  { %4122 = vmatpush.msra.mxu1 %v1211_v37  ;;  %4142 = vmatpush.msra.mxu2 %v1275_v51  ;;  %v1539_v57 = vld [vmem:[#allocation2 + $0x2f20] sm:$0xff]  ;;  %v1407_v37 = vld [vmem:[#allocation2 + $0x20b0] sm:$0xff]  ;;  %v1558_v51 = vld [vmem:[#allocation2 + $0x3148] sm:$0xff] }
 0x2c8   :  { %4103 = vmatpush.msra.mxu0 %v1143_v34  ;;  %4079 = vmatpush.msrb.mxu3 %v1606_v48  ;;  %v1471_v34 = vld [vmem:[#allocation2 + $0x27b0] sm:$0xff] }
 0x2c9   :  { %4123 = vmatpush.msra.mxu1 %v1207_v58  ;;  %4143 = vmatpush.msra.mxu2 %v1271_v61  ;;  %v1535_v48 = vld [vmem:[#allocation2 + $0x2eb0] sm:$0xff]  ;;  %v1403_v58 = vld [vmem:[#allocation2 + $0x2040] sm:$0xff] }
 0x2ca   :  { %4104 = vmatpush.msra.mxu0 %v1139_v16  ;;  %4012 = vmatmul.f32.vlgmr.msra.gmra.mxu3 %v5966_v23  ;;  %v1467_v61 = vld [vmem:[#allocation2 + $0x2740] sm:$0xff] }
 0x2cb   :  { %4124 = vmatpush.msra.mxu1 %v1203_v1  ;;  %4144 = vmatpush.msra.mxu2 %v1267_v6  ;;  %v1531_v16 = vld [vmem:[#allocation2 + $0x2e40] sm:$0xff]  ;;  %v1399_v6 = vld [vmem:[#allocation2 + $0x1fd0] sm:$0xff] }
 0x2cc   :  { %4105 = vmatpush.msra.mxu0 %v1135_v0  ;;  %4080 = vmatpush.msrb.mxu3 %v1602_v25  ;;  %v1363_v1 = vld [vmem:[#allocation2 + $0x1be0] sm:$0xff]  ;;  %v1463_v0 = vld [vmem:[#allocation2 + $0x26d0] sm:$0xff] }
 0x2cd   :  { %4125 = vmatpush.msra.mxu1 %v1199_v42  ;;  %4145 = vmatpush.msra.mxu2 %v1263_v9  ;;  %v1527_v25 = vld [vmem:[#allocation2 + $0x2dd0] sm:$0xff]  ;;  %v1395_v9 = vld [vmem:[#allocation2 + $0x1f60] sm:$0xff] }
 0x2ce   :  { %4106 = vmatpush.msra.mxu0 %v1131_v41  ;;  %4081 = vmatpush.msrb.mxu3 %v1598_v8  ;;  %v1359_v42 = vld [vmem:[#allocation2 + $0x1b70] sm:$0xff]  ;;  %v1459_v41 = vld [vmem:[#allocation2 + $0x2660] sm:$0xff] }
 0x2cf   :  { %4126 = vmatpush.msra.mxu1 %v1195_v20  ;;  %4146 = vmatpush.msra.mxu2 %v1259_v12  ;;  %v1523_v8 = vld [vmem:[#allocation2 + $0x2d60] sm:$0xff]  ;;  %v1391_v12 = vld [vmem:[#allocation2 + $0x1ef0] sm:$0xff] }
 0x2d0   :  { %4107 = vmatpush.msra.mxu0 %v1127_v54  ;;  %4082 = vmatpush.msrb.mxu3 %v1594_v13  ;;  %v1355_v20 = vld [vmem:[#allocation2 + $0x1b00] sm:$0xff]  ;;  %v1455_v54 = vld [vmem:[#allocation2 + $0x25f0] sm:$0xff] }
 0x2d1   :  { %4127 = vmatpush.msra.mxu1 %v1191_v14  ;;  %4147 = vmatpush.msra.mxu2 %v1255_v15  ;;  %v1519_v13 = vld [vmem:[#allocation2 + $0x2cf0] sm:$0xff]  ;;  %v1387_v15 = vld [vmem:[#allocation2 + $0x1e80] sm:$0xff] }
 0x2d2   :  { %4108 = vmatpush.msra.mxu0 %v1123_v44  ;;  %4083 = vmatpush.msrb.mxu3 %v1590_v33  ;;  %v1351_v14 = vld [vmem:[#allocation2 + $0x1a90] sm:$0xff]  ;;  %v1451_v44 = vld [vmem:[#allocation2 + $0x2580] sm:$0xff] }
 0x2d3   :  { %4128 = vmatpush.msra.mxu1 %v1187_v17  ;;  %4148 = vmatpush.msra.mxu2 %v1251_v62  ;;  %v1515_v33 = vld [vmem:[#allocation2 + $0x2c80] sm:$0xff]  ;;  %v1383_v62 = vld [vmem:[#allocation2 + $0x1e10] sm:$0xff] }
 0x2d4   :  { %4109 = vmatpush.msra.mxu0 %v1119_v21  ;;  %4084 = vmatpush.msrb.mxu3 %v1586_v29  ;;  %v1347_v17 = vld [vmem:[#allocation2 + $0x1a20] sm:$0xff]  ;;  %v1447_v21 = vld [vmem:[#allocation2 + $0x2510] sm:$0xff] }
 0x2d5   :  { %4129 = vmatpush.msra.mxu1 %v1183_v24  ;;  %4149 = vmatpush.msra.mxu2 %v1247_v46  ;;  %v1511_v29 = vld [vmem:[#allocation2 + $0x2c10] sm:$0xff]  ;;  %v1379_v46 = vld [vmem:[#allocation2 + $0x1da0] sm:$0xff] }
 0x2d6   :  { %4110 = vmatpush.msra.mxu0 %v1115_v30  ;;  %4085 = vmatpush.msrb.mxu3 %v1582_v35  ;;  %v1343_v24 = vld [vmem:[#allocation2 + $0x19b0] sm:$0xff]  ;;  %v1443_v30 = vld [vmem:[#allocation2 + $0x24a0] sm:$0xff] }
 0x2d7   :  { %4130 = vmatpush.msra.mxu1 %v1179_v10  ;;  %4150 = vmatpush.msra.mxu2 %v1243_v2  ;;  %v1507_v35 = vld [vmem:[#allocation2 + $0x2ba0] sm:$0xff]  ;;  %v1375_v2 = vld [vmem:[#allocation2 + $0x1d30] sm:$0xff] }
 0x2d8   :  { %4111 = vmatpush.msra.mxu0 %v1111_v3  ;;  %4086 = vmatpush.msrb.mxu3 %v1578_v11  ;;  %v1339_v10 = vld [vmem:[#allocation2 + $0x1940] sm:$0xff]  ;;  %v1439_v3 = vld [vmem:[#allocation2 + $0x2430] sm:$0xff] }
 0x2d9   :  { %4131 = vmatpush.msra.mxu1 %v1175_v22  ;;  %4151 = vmatpush.msra.mxu2 %v1239_v19  ;;  %v1503_v11 = vld [vmem:[#allocation2 + $0x2b30] sm:$0xff]  ;;  %v1371_v19 = vld [vmem:[#allocation2 + $0x1cc0] sm:$0xff] }
 0x2da   :  { %4112 = vmatmul.f32.vlgmr.msra.gmra.mxu0 %v5960_v55  ;;  %4132 = vmatmul.f32.vlgmr.msra.gmra.mxu1 %v5962_v50  ;;  %v1335_v22 = vld [vmem:[#allocation2 + $0x18d0] sm:$0xff] }
 0x2db   :  { %4152 = vmatmul.f32.vlgmr.msra.gmra.mxu2 %v5964_v52  ;;  %4176 = vmatpush.msrb.mxu0 %v1427_v36  ;;  %v1435_v36 = vld [vmem:[#allocation2 + $0x23c0] sm:$0xff] }
 0x2dc   :  { %4196 = vmatpush.msrb.mxu1 %v1491_v53  ;;  %4216 = vmatpush.msrb.mxu2 %v1555_v4  ;;  %v1499_v53 = vld [vmem:[#allocation2 + $0x2ac0] sm:$0xff] }
 0x2dd   :  { %4177 = vmatpush.msrb.mxu0 %v1423_v38  ;;  %4087 = vmatpush.msrb.mxu3 %v1574_v59  ;;  %v1331_v4 = vld [vmem:[#allocation2 + $0x1860] sm:$0xff]  ;;  %v1367_v38 = vld [vmem:[#allocation2 + $0x1c50] sm:$0xff] }
 0x2de   :  { %4197 = vmatpush.msrb.mxu1 %v1487_v40  ;;  %4217 = vmatpush.msrb.mxu2 %v1551_v7  ;;  %v1431_v59 = vld [vmem:[#allocation2 + $0x2350] sm:$0xff]  ;;  %v1172_v7 = vld [vmem:[#allocation2 + $0x6e8] sm:$0xff] }
 0x2df   :  { %4178 = vmatpush.msrb.mxu0 %v1419_v27  ;;  %4088 = vmatpush.msrb.mxu3 %v1570_v26  ;;  %v1495_v40 = vld [vmem:[#allocation2 + $0x2a50] sm:$0xff]  ;;  %v1236_v27 = vld [vmem:[#allocation2 + $0xde8] sm:$0xff] }
 0x2e0   :  { %4198 = vmatpush.msrb.mxu1 %v1483_v28  ;;  %4218 = vmatpush.msrb.mxu2 %v1547_v39  ;;  %v1300_v26 = vld [vmem:[#allocation2 + $0x14e8] sm:$0xff]  ;;  %v1327_v28 = vld [vmem:[#allocation2 + $0x17f0] sm:$0xff]  ;;  %v1168_v39 = vld [vmem:[#allocation2 + $0x678] sm:$0xff] }
 0x2e1   :  { %4179 = vmatpush.msrb.mxu0 %v1415_v31  ;;  %4089 = vmatpush.msrb.mxu3 %v1566_v18  ;;  %v1232_v31 = vld [vmem:[#allocation2 + $0xd78] sm:$0xff] }
 0x2e2   :  { %4199 = vmatpush.msrb.mxu1 %v1479_v32  ;;  %4219 = vmatpush.msrb.mxu2 %v1543_v5  ;;  %v1296_v18 = vld [vmem:[#allocation2 + $0x1478] sm:$0xff]  ;;  %v1323_v32 = vld [vmem:[#allocation2 + $0x1780] sm:$0xff]  ;;  %v1164_v5 = vld [vmem:[#allocation2 + $0x608] sm:$0xff] }
 0x2e3   :  { %4180 = vmatpush.msrb.mxu0 %v1411_v60  ;;  %4090 = vmatpush.msrb.mxu3 %v1562_v47  ;;  %v1228_v60 = vld [vmem:[#allocation2 + $0xd08] sm:$0xff] }
 0x2e4   :  { %4200 = vmatpush.msrb.mxu1 %v1475_v56  ;;  %4220 = vmatpush.msrb.mxu2 %v1539_v57  ;;  %v1292_v47 = vld [vmem:[#allocation2 + $0x1408] sm:$0xff]  ;;  %v1319_v56 = vld [vmem:[#allocation2 + $0x1710] sm:$0xff]  ;;  %v1160_v57 = vld [vmem:[#allocation2 + $0x598] sm:$0xff] }
 0x2e5   :  { %4181 = vmatpush.msrb.mxu0 %v1407_v37  ;;  %4091 = vmatpush.msrb.mxu3 %v1558_v51  ;;  %v1224_v37 = vld [vmem:[#allocation2 + $0xc98] sm:$0xff] }
 0x2e6   :  { %4201 = vmatpush.msrb.mxu1 %v1471_v34  ;;  %4221 = vmatpush.msrb.mxu2 %v1535_v48  ;;  %v1288_v51 = vld [vmem:[#allocation2 + $0x1398] sm:$0xff]  ;;  %v1315_v34 = vld [vmem:[#allocation2 + $0x16a0] sm:$0xff]  ;;  %v1156_v48 = vld [vmem:[#allocation2 + $0x528] sm:$0xff] }
 0x2e7   :  { %4182 = vmatpush.msrb.mxu0 %v1403_v58  ;;  %4092 = vmatmul.f32.vlgmr.msrb.gmra.mxu3 %v6003_v43  ;;  %v1220_v58 = vld [vmem:[#allocation2 + $0xc28] sm:$0xff] }
 0x2e8   :  { %4202 = vmatpush.msrb.mxu1 %v1467_v61  ;;  %4222 = vmatpush.msrb.mxu2 %v1531_v16  ;;  %v1284_v61 = vld [vmem:[#allocation2 + $0x1328] sm:$0xff]  ;;  %v1311_v16 = vld [vmem:[#allocation2 + $0x1630] sm:$0xff] }
 0x2e9   :  { %4156 = vmatpush.msra.mxu3 %v1363_v1  ;;  %4183 = vmatpush.msrb.mxu0 %v1399_v6  ;;  %v1152_v1 = vld [vmem:[#allocation2 + $0x4b8] sm:$0xff] }
 0x2ea   :  { %4203 = vmatpush.msrb.mxu1 %v1463_v0  ;;  %4223 = vmatpush.msrb.mxu2 %v1527_v25  ;;  %v1216_v6 = vld [vmem:[#allocation2 + $0xbb8] sm:$0xff]  ;;  %v1307_v25 = vld [vmem:[#allocation2 + $0x15c0] sm:$0xff] }
 0x2eb   :  { %4157 = vmatpush.msra.mxu3 %v1359_v42  ;;  %4184 = vmatpush.msrb.mxu0 %v1395_v9  ;;  %v1280_v0 = vld [vmem:[#allocation2 + $0x12b8] sm:$0xff]  ;;  %v1148_v42 = vld [vmem:[#allocation2 + $0x448] sm:$0xff] }
 0x2ec   :  { %4204 = vmatpush.msrb.mxu1 %v1459_v41  ;;  %4224 = vmatpush.msrb.mxu2 %v1523_v8  ;;  %v1212_v9 = vld [vmem:[#allocation2 + $0xb48] sm:$0xff]  ;;  %v1303_v8 = vld [vmem:[#allocation2 + $0x1550] sm:$0xff] }
 0x2ed   :  { %4158 = vmatpush.msra.mxu3 %v1355_v20  ;;  %4185 = vmatpush.msrb.mxu0 %v1391_v12  ;;  %v1276_v41 = vld [vmem:[#allocation2 + $0x1248] sm:$0xff]  ;;  %v1144_v20 = vld [vmem:[#allocation2 + $0x3d8] sm:$0xff] }
 0x2ee   :  { %4205 = vmatpush.msrb.mxu1 %v1455_v54  ;;  %4225 = vmatpush.msrb.mxu2 %v1519_v13  ;;  %v1208_v12 = vld [vmem:[#allocation2 + $0xad8] sm:$0xff]  ;;  %v1619_v54 = vld [vmem:[#allocation2 + $0x37e0] sm:$0xff] }
 0x2ef   :  { %4159 = vmatpush.msra.mxu3 %v1351_v14  ;;  %4186 = vmatpush.msrb.mxu0 %v1387_v15  ;;  %v1272_v13 = vld [vmem:[#allocation2 + $0x11d8] sm:$0xff]  ;;  %v1140_v14 = vld [vmem:[#allocation2 + $0x368] sm:$0xff] }
 0x2f0   :  { %4206 = vmatpush.msrb.mxu1 %v1451_v44  ;;  %4226 = vmatpush.msrb.mxu2 %v1515_v33  ;;  %v1204_v15 = vld [vmem:[#allocation2 + $0xa68] sm:$0xff]  ;;  %v1615_v44 = vld [vmem:[#allocation2 + $0x3770] sm:$0xff] }
 0x2f1   :  { %4160 = vmatpush.msra.mxu3 %v1347_v17  ;;  %4187 = vmatpush.msrb.mxu0 %v1383_v62  ;;  %v1268_v33 = vld [vmem:[#allocation2 + $0x1168] sm:$0xff]  ;;  %v1136_v17 = vld [vmem:[#allocation2 + $0x2f8] sm:$0xff] }
 0x2f2   :  { %4207 = vmatpush.msrb.mxu1 %v1447_v21  ;;  %4227 = vmatpush.msrb.mxu2 %v1511_v29  ;;  %v1200_v62 = vld [vmem:[#allocation2 + $0x9f8] sm:$0xff]  ;;  %v1611_v21 = vld [vmem:[#allocation2 + $0x3700] sm:$0xff] }
 0x2f3   :  { %4161 = vmatpush.msra.mxu3 %v1343_v24  ;;  %4188 = vmatpush.msrb.mxu0 %v1379_v46  ;;  %v1264_v29 = vld [vmem:[#allocation2 + $0x10f8] sm:$0xff]  ;;  %v1132_v24 = vld [vmem:[#allocation2 + $0x288] sm:$0xff] }
 0x2f4   :  { %4208 = vmatpush.msrb.mxu1 %v1443_v30  ;;  %4228 = vmatpush.msrb.mxu2 %v1507_v35  ;;  %v1196_v46 = vld [vmem:[#allocation2 + $0x988] sm:$0xff]  ;;  %v1607_v30 = vld [vmem:[#allocation2 + $0x3690] sm:$0xff] }
 0x2f5   :  { %4162 = vmatpush.msra.mxu3 %v1339_v10  ;;  %4189 = vmatpush.msrb.mxu0 %v1375_v2  ;;  %v1260_v35 = vld [vmem:[#allocation2 + $0x1088] sm:$0xff]  ;;  %v1128_v10 = vld [vmem:[#allocation2 + $0x218] sm:$0xff] }
 0x2f6   :  { %4209 = vmatpush.msrb.mxu1 %v1439_v3  ;;  %4229 = vmatpush.msrb.mxu2 %v1503_v11  ;;  %v1192_v2 = vld [vmem:[#allocation2 + $0x918] sm:$0xff]  ;;  %v1603_v3 = vld [vmem:[#allocation2 + $0x3620] sm:$0xff] }
 0x2f7   :  { %4163 = vmatpush.msra.mxu3 %v1335_v22  ;;  %4190 = vmatpush.msrb.mxu0 %v1371_v19  ;;  %v1256_v11 = vld [vmem:[#allocation2 + $0x1018] sm:$0xff]  ;;  %v1124_v22 = vld [vmem:[#allocation2 + $0x1a8] sm:$0xff] }
 0x2f8   :  { %4210 = vmatpush.msrb.mxu1 %v1435_v36  ;;  %4230 = vmatpush.msrb.mxu2 %v1499_v53  ;;  %v1188_v19 = vld [vmem:[#allocation2 + $0x8a8] sm:$0xff]  ;;  %v1599_v36 = vld [vmem:[#allocation2 + $0x35b0] sm:$0xff] }
 0x2f9   :  { %4164 = vmatpush.msra.mxu3 %v1331_v4  ;;  %4191 = vmatpush.msrb.mxu0 %v1367_v38  ;;  %v1252_v53 = vld [vmem:[#allocation2 + $0xfa8] sm:$0xff]  ;;  %v1120_v4 = vld [vmem:[#allocation2 + $0x138] sm:$0xff] }
 0x2fa   :  { %4211 = vmatpush.msrb.mxu1 %v1431_v59  ;;  %4231 = vmatpush.msrb.mxu2 %v1495_v40  ;;  %v1184_v38 = vld [vmem:[#allocation2 + $0x838] sm:$0xff]  ;;  %v1595_v59 = vld [vmem:[#allocation2 + $0x3540] sm:$0xff] }
 0x2fb   :  { %4192 = vmatmul.f32.vlgmr.msrb.gmra.mxu0 %v5987_v63  ;;  %4212 = vmatmul.f32.vlgmr.msrb.gmra.mxu1 %v5989_v45  ;;  %v1248_v40 = vld [vmem:[#allocation2 + $0xf38] sm:$0xff] }
 0x2fc   :  { %4232 = vmatmul.f32.vlgmr.msrb.gmra.mxu2 %v5993_v49  ;;  %4256 = vmatpush.msra.mxu0 %v1172_v7  ;;  %v1116_v7 = vld [vmem:[#allocation2 + $0xc8] sm:$0xff] }
 0x2fd   :  { %4276 = vmatpush.msra.mxu1 %v1236_v27  ;;  %4296 = vmatpush.msra.mxu2 %v1300_v26  ;;  %v1180_v27 = vld [vmem:[#allocation2 + $0x7c8] sm:$0xff]  ;;  %v1591_v26 = vld [vmem:[#allocation2 + $0x34d0] sm:$0xff] }
 0x2fe   :  { %4165 = vmatpush.msra.mxu3 %v1327_v28  ;;  %4257 = vmatpush.msra.mxu0 %v1168_v39  ;;  %v1244_v28 = vld [vmem:[#allocation2 + $0xec8] sm:$0xff]  ;;  %v1112_v39 = vld [vmem:[#allocation2 + $0x58] sm:$0xff] }
 0x2ff   :  { %4277 = vmatpush.msra.mxu1 %v1232_v31  ;;  %4297 = vmatpush.msra.mxu2 %v1296_v18  ;;  %v1176_v31 = vld [vmem:[#allocation2 + $0x758] sm:$0xff]  ;;  %v1587_v18 = vld [vmem:[#allocation2 + $0x3460] sm:$0xff] }
 0x300   :  { %4166 = vmatpush.msra.mxu3 %v1323_v32  ;;  %4258 = vmatpush.msra.mxu0 %v1164_v5  ;;  %v1240_v32 = vld [vmem:[#allocation2 + $0xe58] sm:$0xff]  ;;  %v1428_v5 = vld [vmem:[#allocation2 + $0x22e8] sm:$0xff] }
 0x301   :  { %4278 = vmatpush.msra.mxu1 %v1228_v60  ;;  %4298 = vmatpush.msra.mxu2 %v1292_v47  ;;  %v1492_v60 = vld [vmem:[#allocation2 + $0x29e8] sm:$0xff] }
 0x302   :  { %4167 = vmatpush.msra.mxu3 %v1319_v56  ;;  %4259 = vmatpush.msra.mxu0 %v1160_v57  ;;  %v1556_v47 = vld [vmem:[#allocation2 + $0x30e8] sm:$0xff]  ;;  %v1583_v56 = vld [vmem:[#allocation2 + $0x33f0] sm:$0xff]  ;;  %v1424_v57 = vld [vmem:[#allocation2 + $0x2278] sm:$0xff] }
 0x303   :  { %4279 = vmatpush.msra.mxu1 %v1224_v37  ;;  %4299 = vmatpush.msra.mxu2 %v1288_v51  ;;  %v1488_v37 = vld [vmem:[#allocation2 + $0x2978] sm:$0xff] }
 0x304   :  { %4168 = vmatpush.msra.mxu3 %v1315_v34  ;;  %4260 = vmatpush.msra.mxu0 %v1156_v48  ;;  %v1552_v51 = vld [vmem:[#allocation2 + $0x3078] sm:$0xff]  ;;  %v1579_v34 = vld [vmem:[#allocation2 + $0x3380] sm:$0xff]  ;;  %v1420_v48 = vld [vmem:[#allocation2 + $0x2208] sm:$0xff] }
 0x305   :  { %4280 = vmatpush.msra.mxu1 %v1220_v58  ;;  %4300 = vmatpush.msra.mxu2 %v1284_v61  ;;  %v1484_v58 = vld [vmem:[#allocation2 + $0x2908] sm:$0xff] }
 0x306   :  { %4169 = vmatpush.msra.mxu3 %v1311_v16  ;;  %4261 = vmatpush.msra.mxu0 %v1152_v1  ;;  %v1548_v61 = vld [vmem:[#allocation2 + $0x3008] sm:$0xff]  ;;  %v1575_v16 = vld [vmem:[#allocation2 + $0x3310] sm:$0xff]  ;;  %v1416_v1 = vld [vmem:[#allocation2 + $0x2198] sm:$0xff] }
 0x307   :  { %4281 = vmatpush.msra.mxu1 %v1216_v6  ;;  %4301 = vmatpush.msra.mxu2 %v1280_v0  ;;  %v1480_v6 = vld [vmem:[#allocation2 + $0x2898] sm:$0xff] }
 0x308   :  { %4170 = vmatpush.msra.mxu3 %v1307_v25  ;;  %4262 = vmatpush.msra.mxu0 %v1148_v42  ;;  %v1544_v0 = vld [vmem:[#allocation2 + $0x2f98] sm:$0xff]  ;;  %v1571_v25 = vld [vmem:[#allocation2 + $0x32a0] sm:$0xff]  ;;  %v1412_v42 = vld [vmem:[#allocation2 + $0x2128] sm:$0xff] }
 0x309   :  { %4282 = vmatpush.msra.mxu1 %v1212_v9  ;;  %4302 = vmatpush.msra.mxu2 %v1276_v41  ;;  %v1476_v9 = vld [vmem:[#allocation2 + $0x2828] sm:$0xff] }
 0x30a   :  { %4171 = vmatpush.msra.mxu3 %v1303_v8  ;;  %4263 = vmatpush.msra.mxu0 %v1144_v20  ;;  %v1540_v41 = vld [vmem:[#allocation2 + $0x2f28] sm:$0xff]  ;;  %v1567_v8 = vld [vmem:[#allocation2 + $0x3230] sm:$0xff]  ;;  %v1408_v20 = vld [vmem:[#allocation2 + $0x20b8] sm:$0xff] }
 0x30b   :  { %4172 = vmatmul.f32.vlgmr.msra.gmra.mxu3 %v5966_v23  ;;  %4283 = vmatpush.msra.mxu1 %v1208_v12  ;;  %v1472_v12 = vld [vmem:[#allocation2 + $0x27b8] sm:$0xff] }
 0x30c   :  { %4236 = vmatpush.msrb.mxu3 %v1619_v54  ;;  %4303 = vmatpush.msra.mxu2 %v1272_v13  ;;  %v1536_v54 = vld [vmem:[#allocation2 + $0x2eb8] sm:$0xff]  ;;  %v1563_v13 = vld [vmem:[#allocation2 + $0x31c0] sm:$0xff] }
 0x30d   :  { %4264 = vmatpush.msra.mxu0 %v1140_v14  ;;  %4284 = vmatpush.msra.mxu1 %v1204_v15  ;;  %v1404_v14 = vld [vmem:[#allocation2 + $0x2048] sm:$0xff] }
 0x30e   :  { %4237 = vmatpush.msrb.mxu3 %v1615_v44  ;;  %4304 = vmatpush.msra.mxu2 %v1268_v33  ;;  %v1468_v15 = vld [vmem:[#allocation2 + $0x2748] sm:$0xff]  ;;  %v1559_v33 = vld [vmem:[#allocation2 + $0x3150] sm:$0xff] }
 0x30f   :  { %4265 = vmatpush.msra.mxu0 %v1136_v17  ;;  %4285 = vmatpush.msra.mxu1 %v1200_v62  ;;  %v1532_v44 = vld [vmem:[#allocation2 + $0x2e48] sm:$0xff]  ;;  %v1400_v17 = vld [vmem:[#allocation2 + $0x1fd8] sm:$0xff] }
 0x310   :  { %4238 = vmatpush.msrb.mxu3 %v1611_v21  ;;  %4305 = vmatpush.msra.mxu2 %v1264_v29  ;;  %v1464_v62 = vld [vmem:[#allocation2 + $0x26d8] sm:$0xff]  ;;  %v1364_v21 = vld [vmem:[#allocation2 + $0x1be8] sm:$0xff] }
 0x311   :  { %4266 = vmatpush.msra.mxu0 %v1132_v24  ;;  %4286 = vmatpush.msra.mxu1 %v1196_v46  ;;  %v1528_v29 = vld [vmem:[#allocation2 + $0x2dd8] sm:$0xff]  ;;  %v1396_v24 = vld [vmem:[#allocation2 + $0x1f68] sm:$0xff] }
 0x312   :  { %4239 = vmatpush.msrb.mxu3 %v1607_v30  ;;  %4306 = vmatpush.msra.mxu2 %v1260_v35  ;;  %v1460_v46 = vld [vmem:[#allocation2 + $0x2668] sm:$0xff]  ;;  %v1360_v30 = vld [vmem:[#allocation2 + $0x1b78] sm:$0xff] }
 0x313   :  { %4267 = vmatpush.msra.mxu0 %v1128_v10  ;;  %4287 = vmatpush.msra.mxu1 %v1192_v2  ;;  %v1524_v35 = vld [vmem:[#allocation2 + $0x2d68] sm:$0xff]  ;;  %v1392_v10 = vld [vmem:[#allocation2 + $0x1ef8] sm:$0xff] }
 0x314   :  { %4240 = vmatpush.msrb.mxu3 %v1603_v3  ;;  %4307 = vmatpush.msra.mxu2 %v1256_v11  ;;  %v1456_v2 = vld [vmem:[#allocation2 + $0x25f8] sm:$0xff]  ;;  %v1356_v3 = vld [vmem:[#allocation2 + $0x1b08] sm:$0xff] }
 0x315   :  { %4268 = vmatpush.msra.mxu0 %v1124_v22  ;;  %4288 = vmatpush.msra.mxu1 %v1188_v19  ;;  %v1520_v11 = vld [vmem:[#allocation2 + $0x2cf8] sm:$0xff]  ;;  %v1388_v22 = vld [vmem:[#allocation2 + $0x1e88] sm:$0xff] }
 0x316   :  { %4241 = vmatpush.msrb.mxu3 %v1599_v36  ;;  %4308 = vmatpush.msra.mxu2 %v1252_v53  ;;  %v1452_v19 = vld [vmem:[#allocation2 + $0x2588] sm:$0xff]  ;;  %v1352_v36 = vld [vmem:[#allocation2 + $0x1a98] sm:$0xff] }
 0x317   :  { %4269 = vmatpush.msra.mxu0 %v1120_v4  ;;  %4289 = vmatpush.msra.mxu1 %v1184_v38  ;;  %v1516_v53 = vld [vmem:[#allocation2 + $0x2c88] sm:$0xff]  ;;  %v1384_v4 = vld [vmem:[#allocation2 + $0x1e18] sm:$0xff] }
 0x318   :  { %4242 = vmatpush.msrb.mxu3 %v1595_v59  ;;  %4309 = vmatpush.msra.mxu2 %v1248_v40  ;;  %v1448_v38 = vld [vmem:[#allocation2 + $0x2518] sm:$0xff]  ;;  %v1348_v59 = vld [vmem:[#allocation2 + $0x1a28] sm:$0xff] }
 0x319   :  { %4270 = vmatpush.msra.mxu0 %v1116_v7  ;;  %4290 = vmatpush.msra.mxu1 %v1180_v27  ;;  %v1512_v40 = vld [vmem:[#allocation2 + $0x2c18] sm:$0xff]  ;;  %v1380_v7 = vld [vmem:[#allocation2 + $0x1da8] sm:$0xff] }
 0x31a   :  { %4243 = vmatpush.msrb.mxu3 %v1591_v26  ;;  %4310 = vmatpush.msra.mxu2 %v1244_v28  ;;  %v1444_v27 = vld [vmem:[#allocation2 + $0x24a8] sm:$0xff]  ;;  %v1344_v26 = vld [vmem:[#allocation2 + $0x19b8] sm:$0xff] }
 0x31b   :  { %4271 = vmatpush.msra.mxu0 %v1112_v39  ;;  %4291 = vmatpush.msra.mxu1 %v1176_v31  ;;  %v1508_v28 = vld [vmem:[#allocation2 + $0x2ba8] sm:$0xff]  ;;  %v1376_v39 = vld [vmem:[#allocation2 + $0x1d38] sm:$0xff] }
 0x31c   :  { %4244 = vmatpush.msrb.mxu3 %v1587_v18  ;;  %4311 = vmatpush.msra.mxu2 %v1240_v32  ;;  %v1440_v31 = vld [vmem:[#allocation2 + $0x2438] sm:$0xff]  ;;  %v1340_v18 = vld [vmem:[#allocation2 + $0x1948] sm:$0xff] }
 0x31d   :  { %4272 = vmatmul.f32.vlgmr.msra.gmra.mxu0 %v5960_v55  ;;  %4292 = vmatmul.f32.vlgmr.msra.gmra.mxu1 %v5962_v50  ;;  %v1504_v32 = vld [vmem:[#allocation2 + $0x2b38] sm:$0xff] }
 0x31e   :  { %4312 = vmatmul.f32.vlgmr.msra.gmra.mxu2 %v5964_v52  ;;  %4336 = vmatpush.msrb.mxu0 %v1428_v5  ;;  %v1372_v5 = vld [vmem:[#allocation2 + $0x1cc8] sm:$0xff] }
 0x31f   :  { %4356 = vmatpush.msrb.mxu1 %v1492_v60  ;;  %4376 = vmatpush.msrb.mxu2 %v1556_v47  ;;  %v1436_v60 = vld [vmem:[#allocation2 + $0x23c8] sm:$0xff]  ;;  %v1336_v47 = vld [vmem:[#allocation2 + $0x18d8] sm:$0xff] }
 0x320   :  { %4245 = vmatpush.msrb.mxu3 %v1583_v56  ;;  %4337 = vmatpush.msrb.mxu0 %v1424_v57  ;;  %v1500_v56 = vld [vmem:[#allocation2 + $0x2ac8] sm:$0xff]  ;;  %v1368_v57 = vld [vmem:[#allocation2 + $0x1c58] sm:$0xff] }
 0x321   :  { %4357 = vmatpush.msrb.mxu1 %v1488_v37  ;;  %4377 = vmatpush.msrb.mxu2 %v1552_v51  ;;  %v1432_v37 = vld [vmem:[#allocation2 + $0x2358] sm:$0xff]  ;;  %v1332_v51 = vld [vmem:[#allocation2 + $0x1868] sm:$0xff] }
 0x322   :  { %4246 = vmatpush.msrb.mxu3 %v1579_v34  ;;  %4338 = vmatpush.msrb.mxu0 %v1420_v48  ;;  %v1496_v34 = vld [vmem:[#allocation2 + $0x2a58] sm:$0xff] }
 0x323   :  { %4358 = vmatpush.msrb.mxu1 %v1484_v58  ;;  %4378 = vmatpush.msrb.mxu2 %v1548_v61  ;;  %v1892_v48 = vld [vmem:[#allocation4 + $0x78] sm:$0xff] }
 0x324   :  { %4247 = vmatpush.msrb.mxu3 %v1575_v16  ;;  %4339 = vmatpush.msrb.mxu0 %v1416_v1  ;;  %v6019_v58 = vld [vmem:[#allocation7 + $0x1] ss:$8 sm:$0xf] }
 0x325   :  { %4359 = vmatpush.msrb.mxu1 %v1480_v6  ;;  %4379 = vmatpush.msrb.mxu2 %v1544_v0  ;;  %v1328_v61 = vld [vmem:[#allocation2 + $0x17f8] sm:$0xff]  ;;  %v1891_v1 = vld [vmem:[#allocation4 + $0x70] sm:$0xff]  ;;  %v1324_v6 = vld [vmem:[#allocation2 + $0x1788] sm:$0xff] }
 0x326   :  { %4248 = vmatpush.msrb.mxu3 %v1571_v25  ;;  %4340 = vmatpush.msrb.mxu0 %v1412_v42  ;;  %v1908_v16 = vld [vmem:[#allocation4 + $0xf8] sm:$0xff]  ;;  %v1907_v0 = vld [vmem:[#allocation4 + $0xf0] sm:$0xff]  ;;  %v3768_v25 = vperm.slane %v6019_v58, 0  ;;  %v1890_v42 = vld [vmem:[#allocation4 + $0x68] sm:$0xff] }
 0x327   :  { %4360 = vmatpush.msrb.mxu1 %v1476_v9  ;;  %4380 = vmatpush.msrb.mxu2 %v1540_v41  ;;  %v3793_v9 = vpop.f32.mrf.mxu0  ;;  %v1320_v41 = vld [vmem:[#allocation2 + $0x1718] sm:$0xff] }
 0x328   :  { %4249 = vmatpush.msrb.mxu3 %v1567_v8  ;;  %4341 = vmatpush.msrb.mxu0 %v1408_v20  ;;  %v1906_v8 = vld [vmem:[#allocation4 + $0xe8] sm:$0xff]  ;;  %v1889_v20 = vld [vmem:[#allocation4 + $0x60] sm:$0xff] }
 0x329   :  { %4361 = vmatpush.msrb.mxu1 %v1472_v12  ;;  %4381 = vmatpush.msrb.mxu2 %v1536_v54  ;;  %v1316_v12 = vld [vmem:[#allocation2 + $0x16a8] sm:$0xff]  ;;  %v1905_v54 = vld [vmem:[#allocation4 + $0xe0] sm:$0xff] }
 0x32a   :  { %4250 = vmatpush.msrb.mxu3 %v1563_v13  ;;  %4342 = vmatpush.msrb.mxu0 %v1404_v14  ;;  %v3794_v13 = vadd.f32 %v3793_v9, %v3768_v25  ;;  %v1888_v14 = vld [vmem:[#allocation4 + $0x58] sm:$0xff]  ;;  %v1596_v25 = vld [vmem:[#allocation2 + $0x3548] sm:$0xff] }
 0x32b   :  { %4362 = vmatpush.msrb.mxu1 %v1468_v15  ;;  %4382 = vmatpush.msrb.mxu2 %v1532_v44  ;;  %v1312_v15 = vld [vmem:[#allocation2 + $0x1638] sm:$0xff] }
 0x32c   :  { %4251 = vmatpush.msrb.mxu3 %v1559_v33  ;;  %4343 = vmatpush.msrb.mxu0 %v1400_v17  ;;  %v1904_v44 = vld [vmem:[#allocation4 + $0xd8] sm:$0xff]  ;;  %v3813_v33 = vpop.f32.mrf.mxu1  ;;  %v1887_v17 = vld [vmem:[#allocation4 + $0x50] sm:$0xff] }
 0x32d   :  { %4252 = vmatmul.f32.vlgmr.msrb.gmra.mxu3 %v6003_v43  ;;  %4363 = vmatpush.msrb.mxu1 %v1464_v62  ;;  %v3833_v62 = vpop.f32.mrf.mxu2 }
 0x32e   :  { %4316 = vmatpush.msra.mxu3 %v1364_v21  ;;  %4383 = vmatpush.msrb.mxu2 %v1528_v29  ;;  %v3853_v21 = vpop.f32.mrf.mxu3  ;;  %v1308_v29 = vld [vmem:[#allocation2 + $0x15c8] sm:$0xff] }
 0x32f   :  { %4344 = vmatpush.msrb.mxu0 %v1396_v24  ;;  %4364 = vmatpush.msrb.mxu1 %v1460_v46  ;;  %v1903_v24 = vld [vmem:[#allocation4 + $0xd0] sm:$0xff]  ;;  %v3814_v46 = vadd.f32 %v3813_v33, %v3794_v13 }
 0x330   :  { %4317 = vmatpush.msra.mxu3 %v1360_v30  ;;  %4384 = vmatpush.msrb.mxu2 %v1524_v35  ;;  %v1886_v30 = vld [vmem:[#allocation4 + $0x48] sm:$0xff]  ;;  %v3873_v35 = vpop.f32.mrf.mxu0 }
 0x331   :  { %4345 = vmatpush.msrb.mxu0 %v1392_v10  ;;  %4365 = vmatpush.msrb.mxu1 %v1456_v2  ;;  %v1304_v10 = vld [vmem:[#allocation2 + $0x1558] sm:$0xff]  ;;  %v1902_v2 = vld [vmem:[#allocation4 + $0xc8] sm:$0xff] }
 0x332   :  { %4318 = vmatpush.msra.mxu3 %v1356_v3  ;;  %4385 = vmatpush.msrb.mxu2 %v1520_v11  ;;  %v3834_v3 = vadd.f32 %v3833_v62, %v3814_v46  ;;  %v1885_v11 = vld [vmem:[#allocation4 + $0x40] sm:$0xff]  ;;  %v1584_v62 = vld [vmem:[#allocation2 + $0x33f8] sm:$0xff] }
 0x333   :  { %4346 = vmatpush.msrb.mxu0 %v1388_v22  ;;  %4366 = vmatpush.msrb.mxu1 %v1452_v19  ;;  %v1620_v22 = vld [vmem:[#allocation2 + $0x37e8] sm:$0xff]  ;;  %v1901_v19 = vld [vmem:[#allocation4 + $0xc0] sm:$0xff]  ;;  %v1576_v46 = vld [vmem:[#allocation2 + $0x3318] sm:$0xff] }
 0x334   :  { %4319 = vmatpush.msra.mxu3 %v1352_v36  ;;  %4386 = vmatpush.msrb.mxu2 %v1516_v53  ;;  %v1884_v36 = vld [vmem:[#allocation4 + $0x38] sm:$0xff] }
 0x335   :  { %4347 = vmatpush.msrb.mxu0 %v1384_v4  ;;  %4367 = vmatpush.msrb.mxu1 %v1448_v38  ;;  %v1616_v53 = vld [vmem:[#allocation2 + $0x3778] sm:$0xff]  ;;  %v3854_v38 = vadd.f32 %v3853_v21, %v3834_v3 }
 0x336   :  { %4320 = vmatpush.msra.mxu3 %v1348_v59  ;;  %4387 = vmatpush.msrb.mxu2 %v1512_v40  ;;  %v1900_v4 = vld [vmem:[#allocation4 + $0xb8] sm:$0xff]  ;;  %v3893_v59 = vpop.f32.mrf.mxu1  ;;  %v1883_v40 = vld [vmem:[#allocation4 + $0x30] sm:$0xff] }
 0x337   :  { %4348 = vmatpush.msrb.mxu0 %v1380_v7  ;;  %4368 = vmatpush.msrb.mxu1 %v1444_v27  ;;  %v3913_v7 = vpop.f32.mrf.mxu2  ;;  %v1612_v27 = vld [vmem:[#allocation2 + $0x3708] sm:$0xff] }
 0x338   :  { %4321 = vmatpush.msra.mxu3 %v1344_v26  ;;  %4388 = vmatpush.msrb.mxu2 %v1508_v28  ;;  %v1899_v28 = vld [vmem:[#allocation4 + $0xb0] sm:$0xff] }
 0x339   :  { %4349 = vmatpush.msrb.mxu0 %v1376_v39  ;;  %4369 = vmatpush.msrb.mxu1 %v1440_v31  ;;  %v3874_v39 = vadd.f32 %v3873_v35, %v3854_v38  ;;  %v3769_v31 = vperm.slane %v6019_v58, 1  ;;  %v1572_v35 = vld [vmem:[#allocation2 + $0x32a8] sm:$0xff]  ;;  %v1924_v38 = vld [vmem:[#allocation4 + $0x178] sm:$0xff] }
 0x33a   :  { %4322 = vmatpush.msra.mxu3 %v1340_v18  ;;  %4389 = vmatpush.msrb.mxu2 %v1504_v32  ;;  %v1882_v18 = vld [vmem:[#allocation4 + $0x28] sm:$0xff]  ;;  %v3953_v32 = vpop.f32.mrf.mxu0 }
 0x33b   :  { %4350 = vmatpush.msrb.mxu0 %v1372_v5  ;;  %4370 = vmatpush.msrb.mxu1 %v1436_v60  ;;  %v1608_v5 = vld [vmem:[#allocation2 + $0x3698] sm:$0xff]  ;;  %v1898_v60 = vld [vmem:[#allocation4 + $0xa8] sm:$0xff] }
 0x33c   :  { %4323 = vmatpush.msra.mxu3 %v1336_v47  ;;  %4390 = vmatpush.msrb.mxu2 %v1500_v56  ;;  %v1881_v47 = vld [vmem:[#allocation4 + $0x20] sm:$0xff]  ;;  %v1604_v56 = vld [vmem:[#allocation2 + $0x3628] sm:$0xff] }
 0x33d   :  { %4351 = vmatpush.msrb.mxu0 %v1368_v57  ;;  %4371 = vmatpush.msrb.mxu1 %v1432_v37  ;;  %v1897_v57 = vld [vmem:[#allocation4 + $0xa0] sm:$0xff]  ;;  %v3894_v37 = vadd.f32 %v3893_v59, %v3874_v39  ;;  %v1923_v59 = vld [vmem:[#allocation4 + $0x170] sm:$0xff] }
 0x33e   :  { %4324 = vmatpush.msra.mxu3 %v1332_v51  ;;  %4391 = vmatpush.msrb.mxu2 %v1496_v34  ;;  %v3954_v51 = vadd.f32 %v3953_v32, %v3769_v31  ;;  %v1880_v34 = vld [vmem:[#allocation4 + $0x18] sm:$0xff]  ;;  %v1917_v39 = vld [vmem:[#allocation4 + $0x140] sm:$0xff]  ;;  %v1914_v32 = vld [vmem:[#allocation4 + $0x128] sm:$0xff] }
 0x33f   :  { %4352 = vmatmul.f32.vlgmr.msrb.gmra.mxu0 %v5987_v63  ;;  %4372 = vmatmul.f32.vlgmr.msrb.gmra.mxu1 %v5989_v45  ;;  %v1916_v31 = vld [vmem:[#allocation4 + $0x138] sm:$0xff] }
 0x340   :  { %4392 = vmatmul.f32.vlgmr.msrb.gmra.mxu2 %v5993_v49  ;;  %4420 = vmatpush.msra.mxu0 %v1892_v48  ;;  %v1600_v48 = vld [vmem:[#allocation2 + $0x35b8] sm:$0xff] }
 0x341   :  { %4325 = vmatpush.msra.mxu3 %v1328_v61  ;;  %4440 = vmatpush.msra.mxu1 %v1908_v16  ;;  %v1896_v61 = vld [vmem:[#allocation4 + $0x98] sm:$0xff]  ;;  %v3914_v16 = vadd.f32 %v3913_v7, %v3894_v37  ;;  %v1921_v7 = vld [vmem:[#allocation4 + $0x160] sm:$0xff]  ;;  %v3770_v37 = vperm.slane %v6019_v58, 2 }
 0x342   :  { %4421 = vmatpush.msra.mxu0 %v1891_v1  ;;  %v1879_v1 = vld [vmem:[#allocation4 + $0x10] sm:$0xff]  ;;  %v4033_v21 = vpop.f32.mrf.mxu0  ;;  %4460 = vmatpush.msra.mxu2 %v1924_v38 }
 0x343   :  { %4326 = vmatpush.msra.mxu3 %v1324_v6  ;;  %4441 = vmatpush.msra.mxu1 %v1907_v0  ;;  %v3933_v26 = vpop.f32.mrf.mxu3  ;;  %v3973_v6 = vpop.f32.mrf.mxu1 }
 0x344   :  { %4422 = vmatpush.msra.mxu0 %v1890_v42  ;;  %v3993_v0 = vpop.f32.mrf.mxu2  ;;  %v1895_v42 = vld [vmem:[#allocation4 + $0x90] sm:$0xff]  ;;  %v3974_v9 = vadd.f32 %v3973_v6, %v3954_v51  ;;  %4461 = vmatpush.msra.mxu2 %v1923_v59 }
 0x345   :  { %4327 = vmatpush.msra.mxu3 %v1320_v41  ;;  %4442 = vmatpush.msra.mxu1 %v1906_v8  ;;  %v3934_v41 = vadd.f32 %v3933_v26, %v3914_v16  ;;  %v1878_v8 = vld [vmem:[#allocation4 + $0x8] sm:$0xff]  ;;  %v1919_v26 = vld [vmem:[#allocation4 + $0x150] sm:$0xff] }
 0x346   :  { %4423 = vmatpush.msra.mxu0 %v1889_v20  ;;  %v1592_v20 = vld [vmem:[#allocation2 + $0x34d8] sm:$0xff]  ;;  %v3994_v13 = vadd.f32 %v3993_v0, %v3974_v9 }
 0x347   :  { %4328 = vmatpush.msra.mxu3 %v1316_v12  ;;  %4443 = vmatpush.msra.mxu1 %v1905_v54  ;;  %v1894_v54 = vld [vmem:[#allocation4 + $0x88] sm:$0xff] }
 0x348   :  { %4424 = vmatpush.msra.mxu0 %v1888_v14  ;;  %v1877_v14 = vld [vmem:[#allocation4] sm:$0xff] }
 0x349   :  { %4329 = vmatpush.msra.mxu3 %v1312_v15  ;;  %4444 = vmatpush.msra.mxu1 %v1904_v44  ;;  %v1588_v15 = vld [vmem:[#allocation2 + $0x3468] sm:$0xff]  ;;  %v4416_v44 = vmax.f32 %v3934_v41, 0.0 }
 0x34a   :  { %4425 = vmatpush.msra.mxu0 %v1887_v17  ;;  %v1893_v17 = vld [vmem:[#allocation4 + $0x80] sm:$0xff] }
 0x34b   :  { %4330 = vmatpush.msra.mxu3 %v1308_v29  ;;  %4445 = vmatpush.msra.mxu1 %v1903_v24  ;;  %v1580_v29 = vld [vmem:[#allocation2 + $0x3388] sm:$0xff] }
 0x34c   :  { %4426 = vmatpush.msra.mxu0 %v1886_v30  ;;  %v4053_v30 = vpop.f32.mrf.mxu1  ;;  %v4073_v3 = vpop.f32.mrf.mxu2 }
 0x34d   :  { %4331 = vmatpush.msra.mxu3 %v1304_v10  ;;  %4446 = vmatpush.msra.mxu1 %v1902_v2  ;;  %v4013_v12 = vpop.f32.mrf.mxu3  ;;  %v1568_v2 = vld [vmem:[#allocation2 + $0x3238] sm:$0xff] }
 0x34e   :  { %4332 = vmatmul.f32.vlgmr.msra.gmra.mxu3 %v5966_v23  ;;  %4427 = vmatpush.msra.mxu0 %v1885_v11  ;;  %v4014_v33 = vadd.f32 %v4013_v12, %v3994_v13  ;;  %v1564_v11 = vld [vmem:[#allocation2 + $0x31c8] sm:$0xff] }
 0x34f   :  { %4396 = vmatpush.msrb.mxu3 %v1620_v22  ;;  %4447 = vmatpush.msra.mxu1 %v1901_v19  ;;  %v1560_v19 = vld [vmem:[#allocation2 + $0x3158] sm:$0xff] }
 0x350   :  { %4428 = vmatpush.msra.mxu0 %v1884_v36  ;;  %v4034_v24 = vadd.f32 %v4033_v21, %v4014_v33  ;;  %v1937_v33 = vld [vmem:[#allocation4 + $0x1e0] sm:$0xff]  ;;  %v1934_v21 = vld [vmem:[#allocation4 + $0x1c8] sm:$0xff] }
 0x351   :  { %4397 = vmatpush.msrb.mxu3 %v1616_v53  ;;  %4448 = vmatpush.msra.mxu1 %v1900_v4 }
 0x352   :  { %4429 = vmatpush.msra.mxu0 %v1883_v40  ;;  %v4054_v10 = vadd.f32 %v4053_v30, %v4034_v24  ;;  %v1922_v40 = vld [vmem:[#allocation4 + $0x168] sm:$0xff]  ;;  %v1932_v24 = vld [vmem:[#allocation4 + $0x1b8] sm:$0xff] }
 0x353   :  { %4398 = vmatpush.msrb.mxu3 %v1612_v27  ;;  %4449 = vmatpush.msra.mxu1 %v1899_v28  ;;  %v1920_v27 = vld [vmem:[#allocation4 + $0x158] sm:$0xff]  ;;  %v1918_v28 = vld [vmem:[#allocation4 + $0x148] sm:$0xff] }
 0x354   :  { %4430 = vmatpush.msra.mxu0 %v1882_v18  ;;  %v4074_v22 = vadd.f32 %v4073_v3, %v4054_v10  ;;  %4462 = vmatpush.msra.mxu2 %v1922_v40  ;;  %v1915_v18 = vld [vmem:[#allocation4 + $0x130] sm:$0xff]  ;;  %v1930_v30 = vld [vmem:[#allocation4 + $0x1a8] sm:$0xff]  ;;  %v1928_v10 = vld [vmem:[#allocation4 + $0x198] sm:$0xff] }
 0x355   :  { %4399 = vmatpush.msrb.mxu3 %v1608_v5  ;;  %4450 = vmatpush.msra.mxu1 %v1898_v60  ;;  %v1913_v5 = vld [vmem:[#allocation4 + $0x120] sm:$0xff]  ;;  %v1912_v60 = vld [vmem:[#allocation4 + $0x118] sm:$0xff]  ;;  %v1926_v3 = vld [vmem:[#allocation4 + $0x188] sm:$0xff] }
 0x356   :  { %4431 = vmatpush.msra.mxu0 %v1881_v47  ;;  %4463 = vmatpush.msra.mxu2 %v1921_v7  ;;  %v1911_v47 = vld [vmem:[#allocation4 + $0x110] sm:$0xff] }
 0x357   :  { %4400 = vmatpush.msrb.mxu3 %v1604_v56  ;;  %4451 = vmatpush.msra.mxu1 %v1897_v57  ;;  %v1910_v56 = vld [vmem:[#allocation4 + $0x108] sm:$0xff]  ;;  %v1909_v57 = vld [vmem:[#allocation4 + $0x100] sm:$0xff]  ;;  %v4113_v51 = vpop.f32.mrf.mxu0 }
 0x358   :  { %4432 = vmatpush.msra.mxu0 %v1880_v34  ;;  %4464 = vmatpush.msra.mxu2 %v1920_v27  ;;  %v4114_v34 = vadd.f32 %v4113_v51, %v3770_v37  ;;  %v2081_v37 = vld [vmem:[#allocation6 + $0x460] sm:$0xff]  ;;  %v2082_v51 = vld [vmem:[#allocation6 + $0x468] sm:$0xff] }
 0x359   :  { %4401 = vmatpush.msrb.mxu3 %v1600_v48  ;;  %4452 = vmatpush.msra.mxu1 %v1896_v61  ;;  %v4133_v48 = vpop.f32.mrf.mxu1 }
 0x35a   :  { %4433 = vmatpush.msra.mxu0 %v1879_v1  ;;  %4465 = vmatpush.msra.mxu2 %v1919_v26  ;;  %v4134_v16 = vadd.f32 %v4133_v48, %v4114_v34  ;;  %v2083_v34 = vld [vmem:[#allocation6 + $0x470] sm:$0xff]  ;;  %v2084_v48 = vld [vmem:[#allocation6 + $0x478] sm:$0xff] }
 0x35b   :  { %4402 = vmatpush.msrb.mxu3 %v1596_v25  ;;  %4453 = vmatpush.msra.mxu1 %v1895_v42 }
 0x35c   :  { %4434 = vmatpush.msra.mxu0 %v1878_v8  ;;  %4466 = vmatpush.msra.mxu2 %v1918_v28 }
 0x35d   :  { %4403 = vmatpush.msrb.mxu3 %v1592_v20  ;;  %4454 = vmatpush.msra.mxu1 %v1894_v54 }
 0x35e   :  { %4435 = vmatpush.msra.mxu0 %v1877_v14  ;;  %4467 = vmatpush.msra.mxu2 %v1917_v39  ;;  %v4153_v61 = vpop.f32.mrf.mxu2  ;;  %v1940_v14 = vld [vmem:[#allocation4 + $0x1f8] sm:$0xff] }
 0x35f   :  { %4404 = vmatpush.msrb.mxu3 %v1588_v15  ;;  %4436 = vmatmul.f32.vlgmr.msra.gmra.mxu0 %v4416_v44  ;;  %v4154_v6 = vadd.f32 %v4153_v61, %v4134_v16  ;;  %v1939_v15 = vld [vmem:[#allocation4 + $0x1f0] sm:$0xff]  ;;  %v1938_v44 = vld [vmem:[#allocation4 + $0x1e8] sm:$0xff]  ;;  %v2072_v16 = vld [vmem:[#allocation6 + $0x418] sm:$0xff] }
 0x360   :  { %4455 = vmatpush.msra.mxu1 %v1893_v17  ;;  %4468 = vmatpush.msra.mxu2 %v1916_v31  ;;  %v1936_v17 = vld [vmem:[#allocation4 + $0x1d8] sm:$0xff]  ;;  %v2071_v61 = vld [vmem:[#allocation6 + $0x410] sm:$0xff] }
 0x361   :  { %4405 = vmatpush.msrb.mxu3 %v1584_v62  ;;  %v1935_v62 = vld [vmem:[#allocation4 + $0x1d0] sm:$0xff] }
 0x362   :  { %4469 = vmatpush.msra.mxu2 %v1915_v18 }
 0x363   :  { %4406 = vmatpush.msrb.mxu3 %v1580_v29  ;;  %v1933_v29 = vld [vmem:[#allocation4 + $0x1c0] sm:$0xff] }
 0x364   :  { %4470 = vmatpush.msra.mxu2 %v1914_v32 }
 0x365   :  { %4407 = vmatpush.msrb.mxu3 %v1576_v46  ;;  %v1931_v46 = vld [vmem:[#allocation4 + $0x1b0] sm:$0xff] }
 0x366   :  { %4471 = vmatpush.msra.mxu2 %v1913_v5 }
 0x367   :  { %4408 = vmatpush.msrb.mxu3 %v1572_v35  ;;  %v1929_v35 = vld [vmem:[#allocation4 + $0x1a0] sm:$0xff] }
 0x368   :  { %4472 = vmatpush.msra.mxu2 %v1912_v60 }
 0x369   :  { %4409 = vmatpush.msrb.mxu3 %v1568_v2  ;;  %v1927_v2 = vld [vmem:[#allocation4 + $0x190] sm:$0xff] }
 0x36a   :  { %v4093_v36 = vpop.f32.mrf.mxu3  ;;  %4473 = vmatpush.msra.mxu2 %v1911_v47  ;;  %v2091_v47 = vld [vmem:[#allocation6 + $0x4b0] sm:$0xff] }
 0x36b   :  { %4410 = vmatpush.msrb.mxu3 %v1564_v11  ;;  %v4094_v53 = vadd.f32 %v4093_v36, %v4074_v22  ;;  %v1925_v11 = vld [vmem:[#allocation4 + $0x180] sm:$0xff]  ;;  %v3771_v22 = vperm.slane %v6019_v58, 3  ;;  %v2092_v58 = vld [vmem:[#allocation6 + $0x4b8] sm:$0xff]  ;;  %4523 = vmatpush.msrb.mxu0 %v2091_v47  ;;  %v1951_v47 = vld [vmem:[#allocation6 + $0x50] sm:$0xff] }
 0x36c   :  { %4474 = vmatpush.msra.mxu2 %v1910_v56  ;;  %v2093_v56 = vld [vmem:[#allocation6 + $0x4c0] sm:$0xff]  ;;  %4543 = vmatpush.msrb.mxu1 %v2092_v58  ;;  %v1952_v58 = vld [vmem:[#allocation6 + $0x58] sm:$0xff] }
 0x36d   :  { %4411 = vmatpush.msrb.mxu3 %v1560_v19  ;;  %v4417_v4 = vmax.f32 %v4094_v53, 0.0  ;;  %4524 = vmatpush.msrb.mxu0 %v2081_v37  ;;  %v1941_v37 = vld [vmem:[#allocation6] sm:$0xff] }
 0x36e   :  { %4412 = vmatmul.f32.vlgmr.msrb.gmra.mxu3 %v6003_v43  ;;  %4475 = vmatpush.msra.mxu2 %v1909_v57  ;;  %v2094_v57 = vld [vmem:[#allocation6 + $0x4c8] sm:$0xff] }
 0x36f   :  { %4456 = vmatmul.f32.vlgmr.msra.gmra.mxu1 %v4417_v4  ;;  %4480 = vmatpush.msra.mxu3 %v1940_v14  ;;  %v2043_v14 = vld [vmem:[#allocation6 + $0x330] sm:$0xff] }
 0x370   :  { %4563 = vmatpush.msrb.mxu2 %v2093_v56  ;;  %4544 = vmatpush.msrb.mxu1 %v2082_v51  ;;  %v1953_v56 = vld [vmem:[#allocation6 + $0x60] sm:$0xff]  ;;  %v1942_v51 = vld [vmem:[#allocation6 + $0x8] sm:$0xff] }
 0x371   :  { %4481 = vmatpush.msra.mxu3 %v1939_v15  ;;  %4525 = vmatpush.msrb.mxu0 %v2071_v61  ;;  %v2044_v15 = vld [vmem:[#allocation6 + $0x338] sm:$0xff]  ;;  %v2095_v61 = vld [vmem:[#allocation6 + $0x4d0] sm:$0xff] }
 0x372   :  { %4564 = vmatpush.msrb.mxu2 %v2083_v34  ;;  %4545 = vmatpush.msrb.mxu1 %v2072_v16  ;;  %v1943_v34 = vld [vmem:[#allocation6 + $0x10] sm:$0xff]  ;;  %v2096_v16 = vld [vmem:[#allocation6 + $0x4d8] sm:$0xff] }
 0x373   :  { %4482 = vmatpush.msra.mxu3 %v1938_v44  ;;  %v2031_v44 = vld [vmem:[#allocation6 + $0x2d0] sm:$0xff] }
 0x375   :  { %4483 = vmatpush.msra.mxu3 %v1937_v33  ;;  %v2032_v33 = vld [vmem:[#allocation6 + $0x2d8] sm:$0xff] }
 0x377   :  { %4484 = vmatpush.msra.mxu3 %v1936_v17  ;;  %v2033_v17 = vld [vmem:[#allocation6 + $0x2e0] sm:$0xff] }
 0x378   :  { %v4193_v25 = vpop.f32.mrf.mxu0  ;;  %v4213_v9 = vpop.f32.mrf.mxu1 }
 0x379   :  { %4485 = vmatpush.msra.mxu3 %v1935_v62  ;;  %v2034_v62 = vld [vmem:[#allocation6 + $0x2e8] sm:$0xff] }
 0x37b   :  { %4486 = vmatpush.msra.mxu3 %v1934_v21  ;;  %v2021_v21 = vld [vmem:[#allocation6 + $0x280] sm:$0xff] }
 0x37d   :  { %4487 = vmatpush.msra.mxu3 %v1933_v29  ;;  %v2022_v29 = vld [vmem:[#allocation6 + $0x288] sm:$0xff] }
 0x37f   :  { %v4233_v8 = vpop.f32.mrf.mxu2  ;;  %4488 = vmatpush.msra.mxu3 %v1932_v24  ;;  %v2023_v24 = vld [vmem:[#allocation6 + $0x290] sm:$0xff] }
 0x381   :  { %4489 = vmatpush.msra.mxu3 %v1931_v46  ;;  %v2024_v46 = vld [vmem:[#allocation6 + $0x298] sm:$0xff] }
 0x383   :  { %4490 = vmatpush.msra.mxu3 %v1930_v30  ;;  %v2011_v30 = vld [vmem:[#allocation6 + $0x230] sm:$0xff] }
 0x385   :  { %4491 = vmatpush.msra.mxu3 %v1929_v35  ;;  %v2012_v35 = vld [vmem:[#allocation6 + $0x238] sm:$0xff] }
 0x387   :  { %4492 = vmatpush.msra.mxu3 %v1928_v10  ;;  %v2013_v10 = vld [vmem:[#allocation6 + $0x240] sm:$0xff] }
 0x389   :  { %4493 = vmatpush.msra.mxu3 %v1927_v2  ;;  %v2014_v2 = vld [vmem:[#allocation6 + $0x248] sm:$0xff] }
 0x38b   :  { %4494 = vmatpush.msra.mxu3 %v1926_v3  ;;  %v2001_v3 = vld [vmem:[#allocation6 + $0x1e0] sm:$0xff] }
 0x38d   :  { %4495 = vmatpush.msra.mxu3 %v1925_v11  ;;  %v2002_v11 = vld [vmem:[#allocation6 + $0x1e8] sm:$0xff] }
 0x38e   :  { %v4173_v1 = vpop.f32.mrf.mxu3 }
 0x38f   :  { %v4174_v0 = vadd.f32 %v4173_v1, %v4154_v6  ;;  %4583 = vmatpush.msrb.mxu3 %v2094_v57  ;;  %v2073_v1 = vld [vmem:[#allocation6 + $0x420] sm:$0xff]  ;;  %v2074_v6 = vld [vmem:[#allocation6 + $0x428] sm:$0xff] }
 0x390   :  { %4565 = vmatpush.msrb.mxu2 %v2073_v1  ;;  %v1954_v57 = vld [vmem:[#allocation6 + $0x68] sm:$0xff]  ;;  %v2097_v1 = vld [vmem:[#allocation6 + $0x4e0] sm:$0xff] }
 0x391   :  { %v4194_v42 = vadd.f32 %v4193_v25, %v4174_v0  ;;  %4584 = vmatpush.msrb.mxu3 %v2084_v48  ;;  %v2061_v0 = vld [vmem:[#allocation6 + $0x3c0] sm:$0xff]  ;;  %v2062_v25 = vld [vmem:[#allocation6 + $0x3c8] sm:$0xff]  ;;  %v1944_v48 = vld [vmem:[#allocation6 + $0x18] sm:$0xff] }
 0x392   :  { %4526 = vmatpush.msrb.mxu0 %v2061_v0  ;;  %4546 = vmatpush.msrb.mxu1 %v2062_v25  ;;  %v2085_v0 = vld [vmem:[#allocation6 + $0x480] sm:$0xff]  ;;  %v2086_v25 = vld [vmem:[#allocation6 + $0x488] sm:$0xff] }
 0x393   :  { %v4214_v41 = vadd.f32 %v4213_v9, %v4194_v42  ;;  %v2063_v42 = vld [vmem:[#allocation6 + $0x3d0] sm:$0xff]  ;;  %v2064_v9 = vld [vmem:[#allocation6 + $0x3d8] sm:$0xff]  ;;  %4585 = vmatpush.msrb.mxu3 %v2074_v6  ;;  %v2098_v6 = vld [vmem:[#allocation6 + $0x4e8] sm:$0xff] }
 0x394   :  { %4566 = vmatpush.msrb.mxu2 %v2063_v42  ;;  %v2087_v42 = vld [vmem:[#allocation6 + $0x490] sm:$0xff] }
 0x395   :  { %v4234_v20 = vadd.f32 %v4233_v8, %v4214_v41  ;;  %v2051_v41 = vld [vmem:[#allocation6 + $0x370] sm:$0xff]  ;;  %v2052_v8 = vld [vmem:[#allocation6 + $0x378] sm:$0xff]  ;;  %4586 = vmatpush.msrb.mxu3 %v2064_v9 }
 0x396   :  { %4527 = vmatpush.msrb.mxu0 %v2051_v41  ;;  %4547 = vmatpush.msrb.mxu1 %v2052_v8  ;;  %v2088_v9 = vld [vmem:[#allocation6 + $0x498] sm:$0xff]  ;;  %v2075_v41 = vld [vmem:[#allocation6 + $0x430] sm:$0xff] }
 0x397   :  { %v2076_v8 = vld [vmem:[#allocation6 + $0x438] sm:$0xff] }
 0x39a   :  { %v4273_v19 = vpop.f32.mrf.mxu0  ;;  %v4293_v53 = vpop.f32.mrf.mxu1 }
 0x39b   :  { %v4274_v36 = vadd.f32 %v4273_v19, %v3771_v22  ;;  %v2003_v22 = vld [vmem:[#allocation6 + $0x1f0] sm:$0xff]  ;;  %v2004_v19 = vld [vmem:[#allocation6 + $0x1f8] sm:$0xff] }
 0x39d   :  { %v4294_v38 = vadd.f32 %v4293_v53, %v4274_v36  ;;  %v1991_v36 = vld [vmem:[#allocation6 + $0x190] sm:$0xff]  ;;  %v1992_v53 = vld [vmem:[#allocation6 + $0x198] sm:$0xff] }
 0x3a1   :  { %v4313_v4 = vpop.f32.mrf.mxu2 }
 0x3a2   :  { %v4314_v40 = vadd.f32 %v4313_v4, %v4294_v38  ;;  %v1993_v4 = vld [vmem:[#allocation6 + $0x1a0] sm:$0xff]  ;;  %v1994_v38 = vld [vmem:[#allocation6 + $0x1a8] sm:$0xff] }
 0x3b0   :  { %v4253_v12 = vpop.f32.mrf.mxu3 }
 0x3b1   :  { %v4254_v54 = vadd.f32 %v4253_v12, %v4234_v20  ;;  %v2053_v20 = vld [vmem:[#allocation6 + $0x380] sm:$0xff]  ;;  %v2054_v12 = vld [vmem:[#allocation6 + $0x388] sm:$0xff] }
 0x3b2   :  { %4567 = vmatpush.msrb.mxu2 %v2053_v20  ;;  %4587 = vmatpush.msrb.mxu3 %v2054_v12  ;;  %v2077_v20 = vld [vmem:[#allocation6 + $0x440] sm:$0xff]  ;;  %v2078_v12 = vld [vmem:[#allocation6 + $0x448] sm:$0xff] }
 0x3b3   :  { %v4418_v13 = vmax.f32 %v4254_v54, 0.0  ;;  %v2041_v54 = vld [vmem:[#allocation6 + $0x320] sm:$0xff] }
 0x3b4   :  { %4528 = vmatpush.msrb.mxu0 %v2041_v54  ;;  %4568 = vmatpush.msrb.mxu2 %v2043_v14  ;;  %v2065_v54 = vld [vmem:[#allocation6 + $0x3e0] sm:$0xff]  ;;  %v2067_v14 = vld [vmem:[#allocation6 + $0x3f0] sm:$0xff] }
 0x3b5   :  { %4476 = vmatmul.f32.vlgmr.msra.gmra.mxu2 %v4418_v13  ;;  %v2042_v13 = vld [vmem:[#allocation6 + $0x328] sm:$0xff]  ;;  %4588 = vmatpush.msrb.mxu3 %v2044_v15  ;;  %v2068_v15 = vld [vmem:[#allocation6 + $0x3f8] sm:$0xff] }
 0x3b6   :  { %4548 = vmatpush.msrb.mxu1 %v2042_v13  ;;  %4529 = vmatpush.msrb.mxu0 %v2031_v44  ;;  %v2066_v13 = vld [vmem:[#allocation6 + $0x3e8] sm:$0xff]  ;;  %v2055_v44 = vld [vmem:[#allocation6 + $0x390] sm:$0xff] }
 0x3b7   :  { %4569 = vmatpush.msrb.mxu2 %v2033_v17  ;;  %4589 = vmatpush.msrb.mxu3 %v2034_v62  ;;  %v2057_v17 = vld [vmem:[#allocation6 + $0x3a0] sm:$0xff]  ;;  %v2058_v62 = vld [vmem:[#allocation6 + $0x3a8] sm:$0xff] }
 0x3b8   :  { %4549 = vmatpush.msrb.mxu1 %v2032_v33  ;;  %4530 = vmatpush.msrb.mxu0 %v2021_v21  ;;  %v2056_v33 = vld [vmem:[#allocation6 + $0x398] sm:$0xff]  ;;  %v2045_v21 = vld [vmem:[#allocation6 + $0x340] sm:$0xff] }
 0x3b9   :  { %4570 = vmatpush.msrb.mxu2 %v2023_v24  ;;  %4590 = vmatpush.msrb.mxu3 %v2024_v46  ;;  %v2047_v24 = vld [vmem:[#allocation6 + $0x350] sm:$0xff]  ;;  %v2048_v46 = vld [vmem:[#allocation6 + $0x358] sm:$0xff] }
 0x3ba   :  { %4550 = vmatpush.msrb.mxu1 %v2022_v29  ;;  %4531 = vmatpush.msrb.mxu0 %v2011_v30  ;;  %v2046_v29 = vld [vmem:[#allocation6 + $0x348] sm:$0xff]  ;;  %v2035_v30 = vld [vmem:[#allocation6 + $0x2f0] sm:$0xff] }
 0x3bb   :  { %4571 = vmatpush.msrb.mxu2 %v2013_v10  ;;  %4591 = vmatpush.msrb.mxu3 %v2014_v2  ;;  %v2037_v10 = vld [vmem:[#allocation6 + $0x300] sm:$0xff]  ;;  %v2038_v2 = vld [vmem:[#allocation6 + $0x308] sm:$0xff] }
 0x3bc   :  { %v4353_v27 = vpop.f32.mrf.mxu0  ;;  %v4373_v28 = vpop.f32.mrf.mxu1  ;;  %4551 = vmatpush.msrb.mxu1 %v2012_v35  ;;  %4532 = vmatpush.msrb.mxu0 %v2001_v3  ;;  %v2036_v35 = vld [vmem:[#allocation6 + $0x2f8] sm:$0xff]  ;;  %v2025_v3 = vld [vmem:[#allocation6 + $0x2a0] sm:$0xff] }
 0x3bd   :  { %4572 = vmatpush.msrb.mxu2 %v2003_v22  ;;  %4592 = vmatpush.msrb.mxu3 %v2004_v19  ;;  %v2027_v22 = vld [vmem:[#allocation6 + $0x2b0] sm:$0xff]  ;;  %v2028_v19 = vld [vmem:[#allocation6 + $0x2b8] sm:$0xff] }
 0x3be   :  { %4552 = vmatpush.msrb.mxu1 %v2002_v11  ;;  %4533 = vmatpush.msrb.mxu0 %v1991_v36  ;;  %v2026_v11 = vld [vmem:[#allocation6 + $0x2a8] sm:$0xff]  ;;  %v2015_v36 = vld [vmem:[#allocation6 + $0x250] sm:$0xff] }
 0x3bf   :  { %4573 = vmatpush.msrb.mxu2 %v1993_v4  ;;  %4593 = vmatpush.msrb.mxu3 %v1994_v38  ;;  %v2017_v4 = vld [vmem:[#allocation6 + $0x260] sm:$0xff]  ;;  %v2018_v38 = vld [vmem:[#allocation6 + $0x268] sm:$0xff] }
 0x3c0   :  { %4553 = vmatpush.msrb.mxu1 %v1992_v53  ;;  %v2016_v53 = vld [vmem:[#allocation6 + $0x258] sm:$0xff] }
 0x3c3   :  { %v4393_v31 = vpop.f32.mrf.mxu2 }
 0x3d1   :  { %v4333_v59 = vpop.f32.mrf.mxu3 }
 0x3d2   :  { %v4334_v7 = vadd.f32 %v4333_v59, %v4314_v40  ;;  %v1981_v59 = vld [vmem:[#allocation6 + $0x140] sm:$0xff]  ;;  %v1982_v40 = vld [vmem:[#allocation6 + $0x148] sm:$0xff] }
 0x3d3   :  { %4534 = vmatpush.msrb.mxu0 %v1981_v59  ;;  %4554 = vmatpush.msrb.mxu1 %v1982_v40  ;;  %v2005_v59 = vld [vmem:[#allocation6 + $0x200] sm:$0xff]  ;;  %v2006_v40 = vld [vmem:[#allocation6 + $0x208] sm:$0xff] }
 0x3d4   :  { %v4354_v26 = vadd.f32 %v4353_v27, %v4334_v7  ;;  %v1983_v7 = vld [vmem:[#allocation6 + $0x150] sm:$0xff]  ;;  %v1984_v27 = vld [vmem:[#allocation6 + $0x158] sm:$0xff] }
 0x3d5   :  { %4574 = vmatpush.msrb.mxu2 %v1983_v7  ;;  %4594 = vmatpush.msrb.mxu3 %v1984_v27  ;;  %v2007_v7 = vld [vmem:[#allocation6 + $0x210] sm:$0xff]  ;;  %v2008_v27 = vld [vmem:[#allocation6 + $0x218] sm:$0xff] }
 0x3d6   :  { %v4374_v39 = vadd.f32 %v4373_v28, %v4354_v26  ;;  %v1971_v26 = vld [vmem:[#allocation6 + $0xf0] sm:$0xff]  ;;  %v1972_v28 = vld [vmem:[#allocation6 + $0xf8] sm:$0xff] }
 0x3d7   :  { %4535 = vmatpush.msrb.mxu0 %v1971_v26  ;;  %4555 = vmatpush.msrb.mxu1 %v1972_v28  ;;  %v1995_v26 = vld [vmem:[#allocation6 + $0x1b0] sm:$0xff]  ;;  %v1996_v28 = vld [vmem:[#allocation6 + $0x1b8] sm:$0xff] }
 0x3d8   :  { %v4394_v18 = vadd.f32 %v4393_v31, %v4374_v39  ;;  %v1973_v39 = vld [vmem:[#allocation6 + $0x100] sm:$0xff]  ;;  %v1974_v31 = vld [vmem:[#allocation6 + $0x108] sm:$0xff] }
 0x3d9   :  { %4575 = vmatpush.msrb.mxu2 %v1973_v39  ;;  %4595 = vmatpush.msrb.mxu3 %v1974_v31  ;;  %v1997_v39 = vld [vmem:[#allocation6 + $0x1c0] sm:$0xff]  ;;  %v1998_v31 = vld [vmem:[#allocation6 + $0x1c8] sm:$0xff] }
 0x3f1   :  { %v4413_v32 = vpop.f32.mrf.mxu3 }
 0x3f2   :  { %v4414_v5 = vadd.f32 %v4413_v32, %v4394_v18  ;;  %v1961_v18 = vld [vmem:[#allocation6 + $0xa0] sm:$0xff]  ;;  %v1962_v32 = vld [vmem:[#allocation6 + $0xa8] sm:$0xff] }
 0x3f3   :  { %4536 = vmatpush.msrb.mxu0 %v1961_v18  ;;  %4556 = vmatpush.msrb.mxu1 %v1962_v32  ;;  %v1985_v18 = vld [vmem:[#allocation6 + $0x160] sm:$0xff]  ;;  %v1986_v32 = vld [vmem:[#allocation6 + $0x168] sm:$0xff] }
 0x3f4   :  { %v4419_v60 = vmax.f32 %v4414_v5, 0.0  ;;  %v1963_v5 = vld [vmem:[#allocation6 + $0xb0] sm:$0xff] }
 0x3f5   :  { %4576 = vmatpush.msrb.mxu2 %v1963_v5  ;;  %4537 = vmatpush.msrb.mxu0 %v1951_v47  ;;  %v1987_v5 = vld [vmem:[#allocation6 + $0x170] sm:$0xff] }
 0x3f6   :  { %4496 = vmatmul.f32.vlgmr.msra.gmra.mxu3 %v4419_v60  ;;  %v1964_v60 = vld [vmem:[#allocation6 + $0xb8] sm:$0xff]  ;;  %4557 = vmatpush.msrb.mxu1 %v1952_v58  ;;  %v1975_v47 = vld [vmem:[#allocation6 + $0x110] sm:$0xff] }
 0x3f7   :  { %4596 = vmatpush.msrb.mxu3 %v1964_v60  ;;  %4577 = vmatpush.msrb.mxu2 %v1953_v56  ;;  %v1988_v60 = vld [vmem:[#allocation6 + $0x178] sm:$0xff]  ;;  %v1977_v56 = vld [vmem:[#allocation6 + $0x120] sm:$0xff] }
 0x3f8   :  { %4538 = vmatpush.msrb.mxu0 %v1941_v37  ;;  %4558 = vmatpush.msrb.mxu1 %v1942_v51  ;;  %v1976_v58 = vld [vmem:[#allocation6 + $0x118] sm:$0xff]  ;;  %v1965_v37 = vld [vmem:[#allocation6 + $0xc0] sm:$0xff]  ;;  %v1966_v51 = vld [vmem:[#allocation6 + $0xc8] sm:$0xff] }
 0x3f9   :  { %4597 = vmatpush.msrb.mxu3 %v1954_v57  ;;  %4578 = vmatpush.msrb.mxu2 %v1943_v34  ;;  %v1978_v57 = vld [vmem:[#allocation6 + $0x128] sm:$0xff]  ;;  %v1967_v34 = vld [vmem:[#allocation6 + $0xd0] sm:$0xff] }
 0x3fa   :  { %4603 = vmatpush.msra.mxu0 %v2095_v61  ;;  %4623 = vmatpush.msra.mxu1 %v2096_v16  ;;  %v1955_v61 = vld [vmem:[#allocation6 + $0x70] sm:$0xff]  ;;  %v1956_v16 = vld [vmem:[#allocation6 + $0x78] sm:$0xff] }
 0x3fb   :  { %4598 = vmatpush.msrb.mxu3 %v1944_v48  ;;  %4643 = vmatpush.msra.mxu2 %v2097_v1  ;;  %v1968_v48 = vld [vmem:[#allocation6 + $0xd8] sm:$0xff]  ;;  %v1957_v1 = vld [vmem:[#allocation6 + $0x80] sm:$0xff] }
 0x3fc   :  { %4604 = vmatpush.msra.mxu0 %v2085_v0  ;;  %4624 = vmatpush.msra.mxu1 %v2086_v25  ;;  %v1945_v0 = vld [vmem:[#allocation6 + $0x20] sm:$0xff]  ;;  %v1946_v25 = vld [vmem:[#allocation6 + $0x28] sm:$0xff] }
 0x3fd   :  { %4663 = vmatpush.msra.mxu3 %v2098_v6  ;;  %4644 = vmatpush.msra.mxu2 %v2087_v42  ;;  %v1958_v6 = vld [vmem:[#allocation6 + $0x88] sm:$0xff]  ;;  %v1947_v42 = vld [vmem:[#allocation6 + $0x30] sm:$0xff] }
 0x3fe   :  { %4605 = vmatpush.msra.mxu0 %v2075_v41  ;;  %4625 = vmatpush.msra.mxu1 %v2076_v8  ;;  %v2426_v41 = vld [vmem:[#allocation7 + $0x2] ss:$0 sm:$0xff]  ;;  %v4437_v8 = vpop.f32.mrf.mxu0 }
 0x3ff   :  { %4664 = vmatpush.msra.mxu3 %v2088_v9  ;;  %4645 = vmatpush.msra.mxu2 %v2077_v20  ;;  %v1948_v9 = vld [vmem:[#allocation6 + $0x38] sm:$0xff]  ;;  %v4457_v20 = vpop.f32.mrf.mxu1 }
 0x400   :  { %4606 = vmatpush.msra.mxu0 %v2065_v54  ;;  %4626 = vmatpush.msra.mxu1 %v2066_v13 }
 0x401   :  { %4665 = vmatpush.msra.mxu3 %v2078_v12  ;;  %4646 = vmatpush.msra.mxu2 %v2067_v14  ;;  %v4438_v12 = vadd.f32 %v4437_v8, %v2426_v41  ;;  %v1629_v41 = vld [vmem:[#allocation2 + $0x220] sm:$0xff] }
 0x402   :  { %4607 = vmatpush.msra.mxu0 %v2055_v44  ;;  %4627 = vmatpush.msra.mxu1 %v2056_v33  ;;  %v1661_v8 = vld [vmem:[#allocation2 + $0x920] sm:$0xff] }
 0x403   :  { %4666 = vmatpush.msra.mxu3 %v2068_v15  ;;  %4647 = vmatpush.msra.mxu2 %v2057_v17  ;;  %v4458_v13 = vadd.f32 %v4457_v20, %v4438_v12  ;;  %v2099_v17 = vld [vmem:[#allocation6 + $0x4f0] sm:$0xff]  ;;  %v1980_v12 = vld [vmem:[#allocation6 + $0x138] sm:$0xff] }
 0x404   :  { %4608 = vmatpush.msra.mxu0 %v2045_v21  ;;  %4628 = vmatpush.msra.mxu1 %v2046_v29  ;;  %v1651_v21 = vld [vmem:[#allocation2 + $0x6f0] sm:$0xff] }
 0x405   :  { %4667 = vmatpush.msra.mxu3 %v2058_v62  ;;  %4648 = vmatpush.msra.mxu2 %v2047_v24  ;;  %v2100_v62 = vld [vmem:[#allocation6 + $0x4f8] sm:$0xff]  ;;  %v1683_v29 = vld [vmem:[#allocation2 + $0xdf0] sm:$0xff]  ;;  %v2089_v24 = vld [vmem:[#allocation6 + $0x4a0] sm:$0xff] }
 0x406   :  { %4609 = vmatpush.msra.mxu0 %v2035_v30  ;;  %4629 = vmatpush.msra.mxu1 %v2036_v35  ;;  %v1649_v30 = vld [vmem:[#allocation2 + $0x680] sm:$0xff]  ;;  %v1979_v20 = vld [vmem:[#allocation6 + $0x130] sm:$0xff] }
 0x407   :  { %4668 = vmatpush.msra.mxu3 %v2048_v46  ;;  %4649 = vmatpush.msra.mxu2 %v2037_v10  ;;  %v2090_v46 = vld [vmem:[#allocation6 + $0x4a8] sm:$0xff]  ;;  %v1681_v35 = vld [vmem:[#allocation2 + $0xd80] sm:$0xff]  ;;  %v2079_v10 = vld [vmem:[#allocation6 + $0x450] sm:$0xff] }
 0x408   :  { %4610 = vmatpush.msra.mxu0 %v2025_v3  ;;  %4630 = vmatpush.msra.mxu1 %v2026_v11  ;;  %v1647_v3 = vld [vmem:[#allocation2 + $0x610] sm:$0xff] }
 0x409   :  { %4669 = vmatpush.msra.mxu3 %v2038_v2  ;;  %4650 = vmatpush.msra.mxu2 %v2027_v22  ;;  %v2080_v2 = vld [vmem:[#allocation6 + $0x458] sm:$0xff]  ;;  %v1679_v11 = vld [vmem:[#allocation2 + $0xd10] sm:$0xff]  ;;  %v2069_v22 = vld [vmem:[#allocation6 + $0x400] sm:$0xff] }
 0x40a   :  { %4611 = vmatpush.msra.mxu0 %v2015_v36  ;;  %4631 = vmatpush.msra.mxu1 %v2016_v53  ;;  %v1645_v36 = vld [vmem:[#allocation2 + $0x5a0] sm:$0xff] }
 0x40b   :  { %4670 = vmatpush.msra.mxu3 %v2028_v19  ;;  %4651 = vmatpush.msra.mxu2 %v2017_v4  ;;  %v2070_v19 = vld [vmem:[#allocation6 + $0x408] sm:$0xff]  ;;  %v1677_v53 = vld [vmem:[#allocation2 + $0xca0] sm:$0xff]  ;;  %v2059_v4 = vld [vmem:[#allocation6 + $0x3b0] sm:$0xff] }
 0x40c   :  { %4612 = vmatpush.msra.mxu0 %v2005_v59  ;;  %4632 = vmatpush.msra.mxu1 %v2006_v40  ;;  %v1643_v59 = vld [vmem:[#allocation2 + $0x530] sm:$0xff] }
 0x40d   :  { %4671 = vmatpush.msra.mxu3 %v2018_v38  ;;  %4652 = vmatpush.msra.mxu2 %v2007_v7  ;;  %v2060_v38 = vld [vmem:[#allocation6 + $0x3b8] sm:$0xff]  ;;  %v1675_v40 = vld [vmem:[#allocation2 + $0xc30] sm:$0xff]  ;;  %v2049_v7 = vld [vmem:[#allocation6 + $0x360] sm:$0xff] }
 0x40e   :  { %4613 = vmatpush.msra.mxu0 %v1995_v26  ;;  %4633 = vmatpush.msra.mxu1 %v1996_v28  ;;  %v1641_v26 = vld [vmem:[#allocation2 + $0x4c0] sm:$0xff] }
 0x40f   :  { %4672 = vmatpush.msra.mxu3 %v2008_v27  ;;  %4653 = vmatpush.msra.mxu2 %v1997_v39  ;;  %v2050_v27 = vld [vmem:[#allocation6 + $0x368] sm:$0xff]  ;;  %v1673_v28 = vld [vmem:[#allocation2 + $0xbc0] sm:$0xff]  ;;  %v2039_v39 = vld [vmem:[#allocation6 + $0x310] sm:$0xff] }
 0x410   :  { %4614 = vmatpush.msra.mxu0 %v1985_v18  ;;  %4634 = vmatpush.msra.mxu1 %v1986_v32  ;;  %v1639_v18 = vld [vmem:[#allocation2 + $0x450] sm:$0xff] }
 0x411   :  { %4673 = vmatpush.msra.mxu3 %v1998_v31  ;;  %4654 = vmatpush.msra.mxu2 %v1987_v5  ;;  %v2040_v31 = vld [vmem:[#allocation6 + $0x318] sm:$0xff]  ;;  %v1671_v32 = vld [vmem:[#allocation2 + $0xb50] sm:$0xff]  ;;  %v2029_v5 = vld [vmem:[#allocation6 + $0x2c0] sm:$0xff] }
 0x412   :  { %4615 = vmatpush.msra.mxu0 %v1975_v47  ;;  %4635 = vmatpush.msra.mxu1 %v1976_v58  ;;  %v1637_v47 = vld [vmem:[#allocation2 + $0x3e0] sm:$0xff] }
 0x413   :  { %4674 = vmatpush.msra.mxu3 %v1988_v60  ;;  %4655 = vmatpush.msra.mxu2 %v1977_v56  ;;  %v2030_v60 = vld [vmem:[#allocation6 + $0x2c8] sm:$0xff]  ;;  %v1669_v58 = vld [vmem:[#allocation2 + $0xae0] sm:$0xff]  ;;  %v2019_v56 = vld [vmem:[#allocation6 + $0x270] sm:$0xff] }
 0x414   :  { %4616 = vmatpush.msra.mxu0 %v1965_v37  ;;  %4636 = vmatpush.msra.mxu1 %v1966_v51  ;;  %v1635_v37 = vld [vmem:[#allocation2 + $0x370] sm:$0xff] }
 0x415   :  { %4675 = vmatpush.msra.mxu3 %v1978_v57  ;;  %4656 = vmatpush.msra.mxu2 %v1967_v34  ;;  %v2020_v57 = vld [vmem:[#allocation6 + $0x278] sm:$0xff]  ;;  %v1667_v51 = vld [vmem:[#allocation2 + $0xa70] sm:$0xff]  ;;  %v2009_v34 = vld [vmem:[#allocation6 + $0x220] sm:$0xff] }
 0x416   :  { %4617 = vmatpush.msra.mxu0 %v1955_v61  ;;  %4637 = vmatpush.msra.mxu1 %v1956_v16  ;;  %v1633_v61 = vld [vmem:[#allocation2 + $0x300] sm:$0xff] }
 0x417   :  { %4676 = vmatpush.msra.mxu3 %v1968_v48  ;;  %4657 = vmatpush.msra.mxu2 %v1957_v1  ;;  %v2010_v48 = vld [vmem:[#allocation6 + $0x228] sm:$0xff]  ;;  %v1665_v16 = vld [vmem:[#allocation2 + $0xa00] sm:$0xff]  ;;  %v1999_v1 = vld [vmem:[#allocation6 + $0x1d0] sm:$0xff] }
 0x418   :  { %4618 = vmatpush.msra.mxu0 %v1945_v0  ;;  %4638 = vmatpush.msra.mxu1 %v1946_v25  ;;  %v1631_v0 = vld [vmem:[#allocation2 + $0x290] sm:$0xff] }
 0x419   :  { %4677 = vmatpush.msra.mxu3 %v1958_v6  ;;  %4658 = vmatpush.msra.mxu2 %v1947_v42  ;;  %v2000_v6 = vld [vmem:[#allocation6 + $0x1d8] sm:$0xff]  ;;  %v1663_v25 = vld [vmem:[#allocation2 + $0x990] sm:$0xff]  ;;  %v1989_v42 = vld [vmem:[#allocation6 + $0x180] sm:$0xff] }
 0x41b   :  { %4678 = vmatpush.msra.mxu3 %v1948_v9  ;;  %v1990_v9 = vld [vmem:[#allocation6 + $0x188] sm:$0xff] }
 0x438   :  { %v4477_v54 = vpop.f32.mrf.mxu2 }
 0x439   :  { %v4478_v14 = vadd.f32 %v4477_v54, %v4458_v13  ;;  %v1627_v54 = vld [vmem:[#allocation2 + $0x1b0] sm:$0xff] }
 0x43a   :  { %v1659_v13 = vld [vmem:[#allocation2 + $0x8b0] sm:$0xff] }
 0x479   :  { %v4497_v15 = vpop.f32.mrf.mxu3 }
 0x47a   :  { %v4498_v44 = vadd.f32 %v4497_v15, %v4478_v14  ;;  %v1969_v14 = vld [vmem:[#allocation6 + $0xe0] sm:$0xff]  ;;  %v1970_v15 = vld [vmem:[#allocation6 + $0xe8] sm:$0xff] }
 0x47c   :  { %v6030_v33 = vmax.f32 %v4498_v44, 0.0  ;;  %v1625_v44 = vld [vmem:[#allocation2 + $0x140] sm:$0xff] }
 0x47e   :  { %4539 = vmatmul.f32.vlgmr.msrb.gmra.mxu0 %v6030_v33  ;;  %4559 = vmatmul.f32.vlgmr.msrb.gmra.mxu1 %v6030_v33 }
 0x47f   :  { %4579 = vmatmul.f32.vlgmr.msrb.gmra.mxu2 %v6030_v33  ;;  %4599 = vmatmul.f32.vlgmr.msrb.gmra.mxu3 %v6030_v33 }
 0x480   :  { %4683 = vmatpush.msrb.mxu0 %v2099_v17  ;;  %4703 = vmatpush.msrb.mxu1 %v2100_v62  ;;  %v1657_v17 = vld [vmem:[#allocation2 + $0x840] sm:$0xff]  ;;  %v1959_v62 = vld [vmem:[#allocation6 + $0x90] sm:$0xff] }
 0x481   :  { %4761 = vmatpush.msrb.mxu2 %v1651_v21  ;;  %4781 = vmatpush.msrb.mxu3 %v1683_v29  ;;  %v1960_v21 = vld [vmem:[#allocation6 + $0x98] sm:$0xff]  ;;  %v1623_v29 = vld [vmem:[#allocation2 + $0xd0] sm:$0xff] }
 0x482   :  { %4684 = vmatpush.msrb.mxu0 %v2089_v24  ;;  %4704 = vmatpush.msrb.mxu1 %v2090_v46  ;;  %v1655_v24 = vld [vmem:[#allocation2 + $0x7d0] sm:$0xff]  ;;  %v1949_v46 = vld [vmem:[#allocation6 + $0x40] sm:$0xff] }
 0x483   :  { %4762 = vmatpush.msrb.mxu2 %v1649_v30  ;;  %4782 = vmatpush.msrb.mxu3 %v1681_v35  ;;  %v1950_v30 = vld [vmem:[#allocation6 + $0x48] sm:$0xff]  ;;  %v1621_v35 = vld [vmem:[#allocation2 + $0x60] sm:$0xff] }
 0x484   :  { %4685 = vmatpush.msrb.mxu0 %v2079_v10  ;;  %4705 = vmatpush.msrb.mxu1 %v2080_v2  ;;  %v1653_v10 = vld [vmem:[#allocation2 + $0x760] sm:$0xff]  ;;  %v1715_v2 = vld [vmem:[#allocation2 + $0x14f0] sm:$0xff] }
 0x485   :  { %4763 = vmatpush.msrb.mxu2 %v1647_v3  ;;  %4783 = vmatpush.msrb.mxu3 %v1679_v11  ;;  %v1747_v3 = vld [vmem:[#allocation2 + $0x1bf0] sm:$0xff] }
 0x486   :  { %4686 = vmatpush.msrb.mxu0 %v2069_v22  ;;  %4706 = vmatpush.msrb.mxu1 %v2070_v19  ;;  %v1779_v11 = vld [vmem:[#allocation2 + $0x22f0] sm:$0xff]  ;;  %v1713_v19 = vld [vmem:[#allocation2 + $0x1480] sm:$0xff] }
 0x487   :  { %4764 = vmatpush.msrb.mxu2 %v1645_v36  ;;  %4784 = vmatpush.msrb.mxu3 %v1677_v53  ;;  %v1811_v22 = vld [vmem:[#allocation2 + $0x29f0] sm:$0xff]  ;;  %v1745_v36 = vld [vmem:[#allocation2 + $0x1b80] sm:$0xff] }
 0x488   :  { %4619 = vmatmul.f32.vlgmr.msra.gmra.mxu0 %v6030_v33  ;;  %4639 = vmatmul.f32.vlgmr.msra.gmra.mxu1 %v6030_v33  ;;  %v1777_v53 = vld [vmem:[#allocation2 + $0x2280] sm:$0xff] }
 0x489   :  { %4659 = vmatmul.f32.vlgmr.msra.gmra.mxu2 %v6030_v33  ;;  %4679 = vmatmul.f32.vlgmr.msra.gmra.mxu3 %v6030_v33 }
 0x48a   :  { %4687 = vmatpush.msrb.mxu0 %v2059_v4  ;;  %4707 = vmatpush.msrb.mxu1 %v2060_v38  ;;  %v1809_v4 = vld [vmem:[#allocation2 + $0x2980] sm:$0xff]  ;;  %v1711_v38 = vld [vmem:[#allocation2 + $0x1410] sm:$0xff] }
 0x48b   :  { %4765 = vmatpush.msrb.mxu2 %v1643_v59  ;;  %4785 = vmatpush.msrb.mxu3 %v1675_v40  ;;  %v1743_v59 = vld [vmem:[#allocation2 + $0x1b10] sm:$0xff] }
 0x48c   :  { %4688 = vmatpush.msrb.mxu0 %v2049_v7  ;;  %4708 = vmatpush.msrb.mxu1 %v2050_v27  ;;  %v1775_v40 = vld [vmem:[#allocation2 + $0x2210] sm:$0xff]  ;;  %v1709_v7 = vld [vmem:[#allocation2 + $0x13a0] sm:$0xff] }
 0x48d   :  { %4766 = vmatpush.msrb.mxu2 %v1641_v26  ;;  %4786 = vmatpush.msrb.mxu3 %v1673_v28  ;;  %v1741_v27 = vld [vmem:[#allocation2 + $0x1aa0] sm:$0xff] }
 0x48e   :  { %4689 = vmatpush.msrb.mxu0 %v2039_v39  ;;  %4709 = vmatpush.msrb.mxu1 %v2040_v31  ;;  %v1773_v26 = vld [vmem:[#allocation2 + $0x21a0] sm:$0xff]  ;;  %v1707_v39 = vld [vmem:[#allocation2 + $0x1330] sm:$0xff] }
 0x48f   :  { %4767 = vmatpush.msrb.mxu2 %v1639_v18  ;;  %4787 = vmatpush.msrb.mxu3 %v1671_v32  ;;  %v1805_v28 = vld [vmem:[#allocation2 + $0x28a0] sm:$0xff]  ;;  %v1739_v31 = vld [vmem:[#allocation2 + $0x1a30] sm:$0xff] }
 0x490   :  { %4690 = vmatpush.msrb.mxu0 %v2029_v5  ;;  %4710 = vmatpush.msrb.mxu1 %v2030_v60  ;;  %v1771_v18 = vld [vmem:[#allocation2 + $0x2130] sm:$0xff]  ;;  %v1705_v5 = vld [vmem:[#allocation2 + $0x12c0] sm:$0xff] }
 0x491   :  { %4768 = vmatpush.msrb.mxu2 %v1637_v47  ;;  %4788 = vmatpush.msrb.mxu3 %v1669_v58  ;;  %v1803_v32 = vld [vmem:[#allocation2 + $0x2830] sm:$0xff]  ;;  %v1737_v60 = vld [vmem:[#allocation2 + $0x19c0] sm:$0xff] }
 0x492   :  { %4691 = vmatpush.msrb.mxu0 %v2019_v56  ;;  %4711 = vmatpush.msrb.mxu1 %v2020_v57  ;;  %v1769_v47 = vld [vmem:[#allocation2 + $0x20c0] sm:$0xff]  ;;  %v1703_v56 = vld [vmem:[#allocation2 + $0x1250] sm:$0xff] }
 0x493   :  { %4769 = vmatpush.msrb.mxu2 %v1635_v37  ;;  %4789 = vmatpush.msrb.mxu3 %v1667_v51  ;;  %v1801_v58 = vld [vmem:[#allocation2 + $0x27c0] sm:$0xff]  ;;  %v1735_v57 = vld [vmem:[#allocation2 + $0x1950] sm:$0xff] }
 0x494   :  { %4692 = vmatpush.msrb.mxu0 %v2009_v34  ;;  %4712 = vmatpush.msrb.mxu1 %v2010_v48  ;;  %v1767_v37 = vld [vmem:[#allocation2 + $0x2050] sm:$0xff]  ;;  %v1701_v34 = vld [vmem:[#allocation2 + $0x11e0] sm:$0xff] }
 0x495   :  { %4770 = vmatpush.msrb.mxu2 %v1633_v61  ;;  %4790 = vmatpush.msrb.mxu3 %v1665_v16  ;;  %v1799_v51 = vld [vmem:[#allocation2 + $0x2750] sm:$0xff]  ;;  %v1733_v48 = vld [vmem:[#allocation2 + $0x18e0] sm:$0xff] }
 0x496   :  { %4693 = vmatpush.msrb.mxu0 %v1999_v1  ;;  %4713 = vmatpush.msrb.mxu1 %v2000_v6  ;;  %v1765_v61 = vld [vmem:[#allocation2 + $0x1fe0] sm:$0xff]  ;;  %v1699_v1 = vld [vmem:[#allocation2 + $0x1170] sm:$0xff] }
 0x497   :  { %4771 = vmatpush.msrb.mxu2 %v1631_v0  ;;  %4791 = vmatpush.msrb.mxu3 %v1663_v25  ;;  %v1797_v16 = vld [vmem:[#allocation2 + $0x26e0] sm:$0xff]  ;;  %v1731_v6 = vld [vmem:[#allocation2 + $0x1870] sm:$0xff] }
 0x498   :  { %4694 = vmatpush.msrb.mxu0 %v1989_v42  ;;  %4714 = vmatpush.msrb.mxu1 %v1990_v9  ;;  %v1763_v0 = vld [vmem:[#allocation2 + $0x1f70] sm:$0xff]  ;;  %v1697_v42 = vld [vmem:[#allocation2 + $0x1100] sm:$0xff] }
 0x499   :  { %4772 = vmatpush.msrb.mxu2 %v1629_v41  ;;  %4792 = vmatpush.msrb.mxu3 %v1661_v8  ;;  %v1795_v25 = vld [vmem:[#allocation2 + $0x2670] sm:$0xff]  ;;  %v1729_v9 = vld [vmem:[#allocation2 + $0x1800] sm:$0xff] }
 0x49a   :  { %4695 = vmatpush.msrb.mxu0 %v1979_v20  ;;  %4715 = vmatpush.msrb.mxu1 %v1980_v12  ;;  %v1761_v41 = vld [vmem:[#allocation2 + $0x1f00] sm:$0xff]  ;;  %v1695_v20 = vld [vmem:[#allocation2 + $0x1090] sm:$0xff] }
 0x49b   :  { %4773 = vmatpush.msrb.mxu2 %v1627_v54  ;;  %4793 = vmatpush.msrb.mxu3 %v1659_v13  ;;  %v1793_v8 = vld [vmem:[#allocation2 + $0x2600] sm:$0xff]  ;;  %v1727_v12 = vld [vmem:[#allocation2 + $0x1790] sm:$0xff] }
 0x49c   :  { %4696 = vmatpush.msrb.mxu0 %v1969_v14  ;;  %4716 = vmatpush.msrb.mxu1 %v1970_v15  ;;  %v1759_v54 = vld [vmem:[#allocation2 + $0x1e90] sm:$0xff]  ;;  %v1693_v14 = vld [vmem:[#allocation2 + $0x1020] sm:$0xff] }
 0x49d   :  { %4774 = vmatpush.msrb.mxu2 %v1625_v44  ;;  %4794 = vmatpush.msrb.mxu3 %v1657_v17  ;;  %v1791_v13 = vld [vmem:[#allocation2 + $0x2590] sm:$0xff]  ;;  %v1725_v15 = vld [vmem:[#allocation2 + $0x1720] sm:$0xff] }
 0x49e   :  { %4697 = vmatpush.msrb.mxu0 %v1959_v62  ;;  %4717 = vmatpush.msrb.mxu1 %v1960_v21  ;;  %v1757_v44 = vld [vmem:[#allocation2 + $0x1e20] sm:$0xff]  ;;  %v1691_v62 = vld [vmem:[#allocation2 + $0xfb0] sm:$0xff] }
 0x49f   :  { %4775 = vmatpush.msrb.mxu2 %v1623_v29  ;;  %4795 = vmatpush.msrb.mxu3 %v1655_v24  ;;  %v1789_v17 = vld [vmem:[#allocation2 + $0x2520] sm:$0xff]  ;;  %v1723_v21 = vld [vmem:[#allocation2 + $0x16b0] sm:$0xff] }
 0x4a0   :  { %4698 = vmatpush.msrb.mxu0 %v1949_v46  ;;  %4718 = vmatpush.msrb.mxu1 %v1950_v30  ;;  %v1755_v29 = vld [vmem:[#allocation2 + $0x1db0] sm:$0xff]  ;;  %v1689_v46 = vld [vmem:[#allocation2 + $0xf40] sm:$0xff] }
 0x4a1   :  { %4776 = vmatpush.msrb.mxu2 %v1621_v35  ;;  %4796 = vmatpush.msrb.mxu3 %v1653_v10  ;;  %v1787_v24 = vld [vmem:[#allocation2 + $0x24b0] sm:$0xff]  ;;  %v1721_v30 = vld [vmem:[#allocation2 + $0x1640] sm:$0xff] }
 0x4a2   :  { %4699 = vmatmul.f32.vlgmr.msrb.gmra.mxu0 %v6030_v33  ;;  %4719 = vmatmul.f32.vlgmr.msrb.gmra.mxu1 %v6030_v33  ;;  %v1807_v33 = vld [vmem:[#allocation2 + $0x2910] sm:$0xff]  ;;  %v1753_v35 = vld [vmem:[#allocation2 + $0x1d40] sm:$0xff] }
 0x4a3   :  { %4777 = vmatmul.f32.vlgmr.msrb.gmra.mxu2 %v5960_v55  ;;  %4797 = vmatmul.f32.vlgmr.msrb.gmra.mxu3 %v5962_v50  ;;  %v1785_v10 = vld [vmem:[#allocation2 + $0x2440] sm:$0xff] }
 0x4a4   :  { %4801 = vmatpush.msra.mxu0 %v1715_v2  ;;  %4821 = vmatpush.msra.mxu1 %v1747_v3  ;;  %v1687_v2 = vld [vmem:[#allocation2 + $0xed0] sm:$0xff] }
 0x4a5   :  { %4841 = vmatpush.msra.mxu2 %v1779_v11  ;;  %4861 = vmatpush.msra.mxu3 %v1811_v22  ;;  %v1719_v3 = vld [vmem:[#allocation2 + $0x15d0] sm:$0xff] }
 0x4a6   :  { %4802 = vmatpush.msra.mxu0 %v1713_v19  ;;  %4822 = vmatpush.msra.mxu1 %v1745_v36  ;;  %v1751_v11 = vld [vmem:[#allocation2 + $0x1cd0] sm:$0xff]  ;;  %v1685_v19 = vld [vmem:[#allocation2 + $0xe60] sm:$0xff] }
 0x4a7   :  { %4842 = vmatpush.msra.mxu2 %v1777_v53  ;;  %4862 = vmatpush.msra.mxu3 %v1809_v4  ;;  %v1783_v22 = vld [vmem:[#allocation2 + $0x23d0] sm:$0xff]  ;;  %v1717_v36 = vld [vmem:[#allocation2 + $0x1560] sm:$0xff] }
 0x4a8   :  { %4803 = vmatpush.msra.mxu0 %v1711_v38  ;;  %4823 = vmatpush.msra.mxu1 %v1743_v59  ;;  %v1749_v53 = vld [vmem:[#allocation2 + $0x1c60] sm:$0xff]  ;;  %v1843_v38 = vld [vmem:[#allocation2 + $0x30f0] sm:$0xff] }
 0x4a9   :  { %4843 = vmatpush.msra.mxu2 %v1775_v40  ;;  %4863 = vmatpush.msra.mxu3 %v1807_v33  ;;  %v1781_v4 = vld [vmem:[#allocation2 + $0x2360] sm:$0xff]  ;;  %v1875_v59 = vld [vmem:[#allocation2 + $0x37f0] sm:$0xff]  ;;  %v1652_v40 = vld [vmem:[#allocation2 + $0x6f8] sm:$0xff] }
 0x4aa   :  { %4804 = vmatpush.msra.mxu0 %v1709_v7  ;;  %4824 = vmatpush.msra.mxu1 %v1741_v27  ;;  %v1684_v33 = vld [vmem:[#allocation2 + $0xdf8] sm:$0xff]  ;;  %v1841_v7 = vld [vmem:[#allocation2 + $0x3080] sm:$0xff] }
 0x4ab   :  { %4844 = vmatpush.msra.mxu2 %v1773_v26  ;;  %4864 = vmatpush.msra.mxu3 %v1805_v28  ;;  %v1873_v27 = vld [vmem:[#allocation2 + $0x3780] sm:$0xff]  ;;  %v1650_v26 = vld [vmem:[#allocation2 + $0x688] sm:$0xff] }
 0x4ac   :  { %4805 = vmatpush.msra.mxu0 %v1707_v39  ;;  %4825 = vmatpush.msra.mxu1 %v1739_v31  ;;  %v1682_v28 = vld [vmem:[#allocation2 + $0xd88] sm:$0xff]  ;;  %v1839_v39 = vld [vmem:[#allocation2 + $0x3010] sm:$0xff] }
 0x4ad   :  { %4845 = vmatpush.msra.mxu2 %v1771_v18  ;;  %4865 = vmatpush.msra.mxu3 %v1803_v32  ;;  %v1871_v31 = vld [vmem:[#allocation2 + $0x3710] sm:$0xff]  ;;  %v1648_v18 = vld [vmem:[#allocation2 + $0x618] sm:$0xff] }
 0x4ae   :  { %4806 = vmatpush.msra.mxu0 %v1705_v5  ;;  %4826 = vmatpush.msra.mxu1 %v1737_v60  ;;  %v1680_v32 = vld [vmem:[#allocation2 + $0xd18] sm:$0xff]  ;;  %v1837_v5 = vld [vmem:[#allocation2 + $0x2fa0] sm:$0xff] }
 0x4af   :  { %4846 = vmatpush.msra.mxu2 %v1769_v47  ;;  %4866 = vmatpush.msra.mxu3 %v1801_v58  ;;  %v1869_v60 = vld [vmem:[#allocation2 + $0x36a0] sm:$0xff]  ;;  %v1646_v47 = vld [vmem:[#allocation2 + $0x5a8] sm:$0xff] }
 0x4b0   :  { %4807 = vmatpush.msra.mxu0 %v1703_v56  ;;  %4827 = vmatpush.msra.mxu1 %v1735_v57  ;;  %v1678_v58 = vld [vmem:[#allocation2 + $0xca8] sm:$0xff]  ;;  %v1835_v56 = vld [vmem:[#allocation2 + $0x2f30] sm:$0xff] }
 0x4b1   :  { %4847 = vmatpush.msra.mxu2 %v1767_v37  ;;  %4867 = vmatpush.msra.mxu3 %v1799_v51  ;;  %v1867_v57 = vld [vmem:[#allocation2 + $0x3630] sm:$0xff]  ;;  %v1644_v37 = vld [vmem:[#allocation2 + $0x538] sm:$0xff] }
 0x4b2   :  { %4808 = vmatpush.msra.mxu0 %v1701_v34  ;;  %4828 = vmatpush.msra.mxu1 %v1733_v48  ;;  %v1676_v51 = vld [vmem:[#allocation2 + $0xc38] sm:$0xff]  ;;  %v1833_v34 = vld [vmem:[#allocation2 + $0x2ec0] sm:$0xff] }
 0x4b3   :  { %4848 = vmatpush.msra.mxu2 %v1765_v61  ;;  %4868 = vmatpush.msra.mxu3 %v1797_v16  ;;  %v1865_v48 = vld [vmem:[#allocation2 + $0x35c0] sm:$0xff]  ;;  %v1642_v61 = vld [vmem:[#allocation2 + $0x4c8] sm:$0xff] }
 0x4b4   :  { %4809 = vmatpush.msra.mxu0 %v1699_v1  ;;  %4829 = vmatpush.msra.mxu1 %v1731_v6  ;;  %v1674_v16 = vld [vmem:[#allocation2 + $0xbc8] sm:$0xff]  ;;  %v1831_v1 = vld [vmem:[#allocation2 + $0x2e50] sm:$0xff] }
 0x4b5   :  { %4849 = vmatpush.msra.mxu2 %v1763_v0  ;;  %4869 = vmatpush.msra.mxu3 %v1795_v25  ;;  %v1863_v6 = vld [vmem:[#allocation2 + $0x3550] sm:$0xff]  ;;  %v1640_v0 = vld [vmem:[#allocation2 + $0x458] sm:$0xff] }
 0x4b6   :  { %4810 = vmatpush.msra.mxu0 %v1697_v42  ;;  %4830 = vmatpush.msra.mxu1 %v1729_v9  ;;  %v1672_v25 = vld [vmem:[#allocation2 + $0xb58] sm:$0xff]  ;;  %v1829_v42 = vld [vmem:[#allocation2 + $0x2de0] sm:$0xff] }
 0x4b7   :  { %4850 = vmatpush.msra.mxu2 %v1761_v41  ;;  %4870 = vmatpush.msra.mxu3 %v1793_v8  ;;  %v1861_v9 = vld [vmem:[#allocation2 + $0x34e0] sm:$0xff]  ;;  %v1638_v41 = vld [vmem:[#allocation2 + $0x3e8] sm:$0xff] }
 0x4b8   :  { %4811 = vmatpush.msra.mxu0 %v1695_v20  ;;  %4831 = vmatpush.msra.mxu1 %v1727_v12  ;;  %v1670_v8 = vld [vmem:[#allocation2 + $0xae8] sm:$0xff]  ;;  %v1827_v20 = vld [vmem:[#allocation2 + $0x2d70] sm:$0xff] }
 0x4b9   :  { %4851 = vmatpush.msra.mxu2 %v1759_v54  ;;  %4871 = vmatpush.msra.mxu3 %v1791_v13  ;;  %v1859_v12 = vld [vmem:[#allocation2 + $0x3470] sm:$0xff]  ;;  %v1636_v54 = vld [vmem:[#allocation2 + $0x378] sm:$0xff] }
 0x4ba   :  { %4812 = vmatpush.msra.mxu0 %v1693_v14  ;;  %4832 = vmatpush.msra.mxu1 %v1725_v15  ;;  %v1668_v13 = vld [vmem:[#allocation2 + $0xa78] sm:$0xff]  ;;  %v1825_v14 = vld [vmem:[#allocation2 + $0x2d00] sm:$0xff] }
 0x4bb   :  { %4852 = vmatpush.msra.mxu2 %v1757_v44  ;;  %4872 = vmatpush.msra.mxu3 %v1789_v17  ;;  %v1857_v15 = vld [vmem:[#allocation2 + $0x3400] sm:$0xff]  ;;  %v1634_v44 = vld [vmem:[#allocation2 + $0x308] sm:$0xff] }
 0x4bc   :  { %4813 = vmatpush.msra.mxu0 %v1691_v62  ;;  %4833 = vmatpush.msra.mxu1 %v1723_v21  ;;  %v1666_v17 = vld [vmem:[#allocation2 + $0xa08] sm:$0xff]  ;;  %v1823_v62 = vld [vmem:[#allocation2 + $0x2c90] sm:$0xff] }
 0x4bd   :  { %4853 = vmatpush.msra.mxu2 %v1755_v29  ;;  %4873 = vmatpush.msra.mxu3 %v1787_v24  ;;  %v1855_v21 = vld [vmem:[#allocation2 + $0x3390] sm:$0xff]  ;;  %v1632_v29 = vld [vmem:[#allocation2 + $0x298] sm:$0xff] }
 0x4be   :  { %4814 = vmatpush.msra.mxu0 %v1689_v46  ;;  %4834 = vmatpush.msra.mxu1 %v1721_v30  ;;  %v1664_v24 = vld [vmem:[#allocation2 + $0x998] sm:$0xff]  ;;  %v1821_v46 = vld [vmem:[#allocation2 + $0x2c20] sm:$0xff] }
 0x4bf   :  { %4854 = vmatpush.msra.mxu2 %v1753_v35  ;;  %4874 = vmatpush.msra.mxu3 %v1785_v10  ;;  %v1853_v30 = vld [vmem:[#allocation2 + $0x3320] sm:$0xff]  ;;  %v1630_v35 = vld [vmem:[#allocation2 + $0x228] sm:$0xff] }
 0x4c0   :  { %4815 = vmatpush.msra.mxu0 %v1687_v2  ;;  %4835 = vmatpush.msra.mxu1 %v1719_v3  ;;  %v1662_v10 = vld [vmem:[#allocation2 + $0x928] sm:$0xff]  ;;  %v1819_v2 = vld [vmem:[#allocation2 + $0x2bb0] sm:$0xff] }
 0x4c1   :  { %4855 = vmatpush.msra.mxu2 %v1751_v11  ;;  %4875 = vmatpush.msra.mxu3 %v1783_v22  ;;  %v1851_v3 = vld [vmem:[#allocation2 + $0x32b0] sm:$0xff]  ;;  %v1628_v11 = vld [vmem:[#allocation2 + $0x1b8] sm:$0xff] }
 0x4c2   :  { %4816 = vmatpush.msra.mxu0 %v1685_v19  ;;  %4836 = vmatpush.msra.mxu1 %v1717_v36  ;;  %v1660_v22 = vld [vmem:[#allocation2 + $0x8b8] sm:$0xff]  ;;  %v1817_v19 = vld [vmem:[#allocation2 + $0x2b40] sm:$0xff] }
 0x4c3   :  { %4856 = vmatpush.msra.mxu2 %v1749_v53  ;;  %4876 = vmatpush.msra.mxu3 %v1781_v4  ;;  %v1849_v36 = vld [vmem:[#allocation2 + $0x3240] sm:$0xff]  ;;  %v1626_v53 = vld [vmem:[#allocation2 + $0x148] sm:$0xff] }
 0x4c4   :  { %4817 = vmatmul.f32.vlgmr.msra.gmra.mxu0 %v5964_v52  ;;  %4837 = vmatmul.f32.vlgmr.msra.gmra.mxu1 %v5966_v23  ;;  %v1658_v4 = vld [vmem:[#allocation2 + $0x848] sm:$0xff] }
 0x4c5   :  { %4857 = vmatmul.f32.vlgmr.msra.gmra.mxu2 %v5987_v63  ;;  %4877 = vmatmul.f32.vlgmr.msra.gmra.mxu3 %v5989_v45 }
 0x4c6   :  { %4881 = vmatpush.msrb.mxu0 %v1843_v38  ;;  %4901 = vmatpush.msrb.mxu1 %v1875_v59  ;;  %v1815_v38 = vld [vmem:[#allocation2 + $0x2ad0] sm:$0xff] }
 0x4c7   :  { %4921 = vmatpush.msrb.mxu2 %v1652_v40  ;;  %4941 = vmatpush.msrb.mxu3 %v1684_v33  ;;  %v1847_v59 = vld [vmem:[#allocation2 + $0x31d0] sm:$0xff]  ;;  %v1624_v40 = vld [vmem:[#allocation2 + $0xd8] sm:$0xff] }
 0x4c8   :  { %4882 = vmatpush.msrb.mxu0 %v1841_v7  ;;  %4902 = vmatpush.msrb.mxu1 %v1873_v27  ;;  %v1656_v33 = vld [vmem:[#allocation2 + $0x7d8] sm:$0xff]  ;;  %v1813_v7 = vld [vmem:[#allocation2 + $0x2a60] sm:$0xff] }
 0x4c9   :  { %4922 = vmatpush.msrb.mxu2 %v1650_v26  ;;  %4942 = vmatpush.msrb.mxu3 %v1682_v28  ;;  %v1845_v27 = vld [vmem:[#allocation2 + $0x3160] sm:$0xff]  ;;  %v1622_v26 = vld [vmem:[#allocation2 + $0x68] sm:$0xff] }
 0x4ca   :  { %4883 = vmatpush.msrb.mxu0 %v1839_v39  ;;  %4903 = vmatpush.msrb.mxu1 %v1871_v31  ;;  %v1654_v28 = vld [vmem:[#allocation2 + $0x768] sm:$0xff]  ;;  %v1716_v39 = vld [vmem:[#allocation2 + $0x14f8] sm:$0xff] }
 0x4cb   :  { %4923 = vmatpush.msrb.mxu2 %v1648_v18  ;;  %4943 = vmatpush.msrb.mxu3 %v1680_v32  ;;  %v1748_v31 = vld [vmem:[#allocation2 + $0x1bf8] sm:$0xff] }
 0x4cc   :  { %4884 = vmatpush.msrb.mxu0 %v1837_v5  ;;  %4904 = vmatpush.msrb.mxu1 %v1869_v60  ;;  %v1780_v18 = vld [vmem:[#allocation2 + $0x22f8] sm:$0xff]  ;;  %v1714_v5 = vld [vmem:[#allocation2 + $0x1488] sm:$0xff] }
 0x4cd   :  { %4924 = vmatpush.msrb.mxu2 %v1646_v47  ;;  %4944 = vmatpush.msrb.mxu3 %v1678_v58  ;;  %v1812_v32 = vld [vmem:[#allocation2 + $0x29f8] sm:$0xff]  ;;  %v1746_v60 = vld [vmem:[#allocation2 + $0x1b88] sm:$0xff] }
 0x4ce   :  { %4885 = vmatpush.msrb.mxu0 %v1835_v56  ;;  %4905 = vmatpush.msrb.mxu1 %v1867_v57  ;;  %v1778_v47 = vld [vmem:[#allocation2 + $0x2288] sm:$0xff]  ;;  %v1712_v56 = vld [vmem:[#allocation2 + $0x1418] sm:$0xff] }
 0x4cf   :  { %4925 = vmatpush.msrb.mxu2 %v1644_v37  ;;  %4945 = vmatpush.msrb.mxu3 %v1676_v51  ;;  %v1810_v58 = vld [vmem:[#allocation2 + $0x2988] sm:$0xff]  ;;  %v1744_v57 = vld [vmem:[#allocation2 + $0x1b18] sm:$0xff] }
 0x4d0   :  { %4886 = vmatpush.msrb.mxu0 %v1833_v34  ;;  %4906 = vmatpush.msrb.mxu1 %v1865_v48  ;;  %v1776_v37 = vld [vmem:[#allocation2 + $0x2218] sm:$0xff]  ;;  %v1710_v34 = vld [vmem:[#allocation2 + $0x13a8] sm:$0xff] }
 0x4d1   :  { %4926 = vmatpush.msrb.mxu2 %v1642_v61  ;;  %4946 = vmatpush.msrb.mxu3 %v1674_v16  ;;  %v1808_v51 = vld [vmem:[#allocation2 + $0x2918] sm:$0xff]  ;;  %v1806_v48 = vld [vmem:[#allocation2 + $0x28a8] sm:$0xff] }
 0x4d2   :  { %4887 = vmatpush.msrb.mxu0 %v1831_v1  ;;  %4907 = vmatpush.msrb.mxu1 %v1863_v6  ;;  %v1708_v61 = vld [vmem:[#allocation2 + $0x1338] sm:$0xff] }
 0x4d3   :  { %4927 = vmatpush.msrb.mxu2 %v1640_v0  ;;  %4947 = vmatpush.msrb.mxu3 %v1672_v25  ;;  %v1740_v16 = vld [vmem:[#allocation2 + $0x1a38] sm:$0xff]  ;;  %v1706_v0 = vld [vmem:[#allocation2 + $0x12c8] sm:$0xff] }
 0x4d4   :  { %4888 = vmatpush.msrb.mxu0 %v1829_v42  ;;  %4908 = vmatpush.msrb.mxu1 %v1861_v9  ;;  %v1772_v1 = vld [vmem:[#allocation2 + $0x2138] sm:$0xff]  ;;  %v1738_v25 = vld [vmem:[#allocation2 + $0x19c8] sm:$0xff] }
 0x4d5   :  { %4928 = vmatpush.msrb.mxu2 %v1638_v41  ;;  %4948 = vmatpush.msrb.mxu3 %v1670_v8  ;;  %v1804_v6 = vld [vmem:[#allocation2 + $0x2838] sm:$0xff]  ;;  %v1770_v42 = vld [vmem:[#allocation2 + $0x20c8] sm:$0xff] }
 0x4d6   :  { %4889 = vmatpush.msrb.mxu0 %v1827_v20  ;;  %4909 = vmatpush.msrb.mxu1 %v1859_v12  ;;  %v1802_v9 = vld [vmem:[#allocation2 + $0x27c8] sm:$0xff]  ;;  %v1704_v41 = vld [vmem:[#allocation2 + $0x1258] sm:$0xff] }
 0x4d7   :  { %4929 = vmatpush.msrb.mxu2 %v1636_v54  ;;  %4949 = vmatpush.msrb.mxu3 %v1668_v13  ;;  %v1736_v8 = vld [vmem:[#allocation2 + $0x1958] sm:$0xff]  ;;  %v1702_v54 = vld [vmem:[#allocation2 + $0x11e8] sm:$0xff] }
 0x4d8   :  { %4890 = vmatpush.msrb.mxu0 %v1825_v14  ;;  %4910 = vmatpush.msrb.mxu1 %v1857_v15  ;;  %v1768_v20 = vld [vmem:[#allocation2 + $0x2058] sm:$0xff]  ;;  %v1734_v13 = vld [vmem:[#allocation2 + $0x18e8] sm:$0xff] }
 0x4d9   :  { %4930 = vmatpush.msrb.mxu2 %v1634_v44  ;;  %4950 = vmatpush.msrb.mxu3 %v1666_v17  ;;  %v1800_v12 = vld [vmem:[#allocation2 + $0x2758] sm:$0xff]  ;;  %v1766_v14 = vld [vmem:[#allocation2 + $0x1fe8] sm:$0xff] }
 0x4da   :  { %4891 = vmatpush.msrb.mxu0 %v1823_v62  ;;  %4911 = vmatpush.msrb.mxu1 %v1855_v21  ;;  %v1798_v15 = vld [vmem:[#allocation2 + $0x26e8] sm:$0xff]  ;;  %v1700_v62 = vld [vmem:[#allocation2 + $0x1178] sm:$0xff] }
 0x4db   :  { %4931 = vmatpush.msrb.mxu2 %v1632_v29  ;;  %4951 = vmatpush.msrb.mxu3 %v1664_v24  ;;  %v2428_v44 = vld [vmem:[#allocation7 + $0x3] ss:$8 sm:$0xf] }
 0x4dc   :  { %4892 = vmatpush.msrb.mxu0 %v1821_v46  ;;  %4912 = vmatpush.msrb.mxu1 %v1853_v30  ;;  %v2429_v17 = vld [vmem:[#allocation7 + $0x3] ss:$8 sm:$0xf0] }
 0x4dd   :  { %4932 = vmatpush.msrb.mxu2 %v1630_v35  ;;  %4952 = vmatpush.msrb.mxu3 %v1662_v10  ;;  %v1732_v21 = vld [vmem:[#allocation2 + $0x1878] sm:$0xff]  ;;  %v1698_v46 = vld [vmem:[#allocation2 + $0x1108] sm:$0xff]  ;;  %v6052_v35 = vor.u32 %v2429_v17, %v2428_v44 }
 0x4de   :  { %4893 = vmatpush.msrb.mxu0 %v1819_v2  ;;  %4913 = vmatpush.msrb.mxu1 %v1851_v3  ;;  %v1764_v29 = vld [vmem:[#allocation2 + $0x1f78] sm:$0xff]  ;;  %v1730_v30 = vld [vmem:[#allocation2 + $0x1808] sm:$0xff] }
 0x4df   :  { %4933 = vmatpush.msrb.mxu2 %v1628_v11  ;;  %4953 = vmatpush.msrb.mxu3 %v1660_v22  ;;  %v1796_v24 = vld [vmem:[#allocation2 + $0x2678] sm:$0xff]  ;;  %v1762_v10 = vld [vmem:[#allocation2 + $0x1f08] sm:$0xff] }
 0x4e0   :  { %4894 = vmatpush.msrb.mxu0 %v1817_v19  ;;  %4914 = vmatpush.msrb.mxu1 %v1849_v36  ;;  %v1794_v2 = vld [vmem:[#allocation2 + $0x2608] sm:$0xff]  ;;  %v1696_v3 = vld [vmem:[#allocation2 + $0x1098] sm:$0xff] }
 0x4e1   :  { %4934 = vmatpush.msrb.mxu2 %v1626_v53  ;;  %4954 = vmatpush.msrb.mxu3 %v1658_v4  ;;  %v1728_v11 = vld [vmem:[#allocation2 + $0x1798] sm:$0xff]  ;;  %v1694_v36 = vld [vmem:[#allocation2 + $0x1028] sm:$0xff]  ;;  %v4504_v4 = vperm.slane %v6052_v35, 1 }
 0x4e2   :  { %4895 = vmatpush.msrb.mxu0 %v1815_v38  ;;  %4915 = vmatpush.msrb.mxu1 %v1847_v59  ;;  %v1760_v22 = vld [vmem:[#allocation2 + $0x1e98] sm:$0xff]  ;;  %v1726_v53 = vld [vmem:[#allocation2 + $0x1728] sm:$0xff] }
 0x4e3   :  { %4935 = vmatpush.msrb.mxu2 %v1624_v40  ;;  %4955 = vmatpush.msrb.mxu3 %v1656_v33  ;;  %v1792_v19 = vld [vmem:[#allocation2 + $0x2598] sm:$0xff]  ;;  %v1758_v38 = vld [vmem:[#allocation2 + $0x1e28] sm:$0xff] }
 0x4e4   :  { %4896 = vmatpush.msrb.mxu0 %v1813_v7  ;;  %4916 = vmatpush.msrb.mxu1 %v1845_v27  ;;  %v1790_v59 = vld [vmem:[#allocation2 + $0x2528] sm:$0xff]  ;;  %v1692_v33 = vld [vmem:[#allocation2 + $0xfb8] sm:$0xff] }
 0x4e5   :  { %4936 = vmatpush.msrb.mxu2 %v1622_v26  ;;  %4956 = vmatpush.msrb.mxu3 %v1654_v28  ;;  %v1724_v7 = vld [vmem:[#allocation2 + $0x16b8] sm:$0xff]  ;;  %v1690_v28 = vld [vmem:[#allocation2 + $0xf48] sm:$0xff] }
 0x4e6   :  { %4897 = vmatmul.f32.vlgmr.msrb.gmra.mxu0 %v5993_v49  ;;  %4917 = vmatmul.f32.vlgmr.msrb.gmra.mxu1 %v6003_v43  ;;  %v1756_v27 = vld [vmem:[#allocation2 + $0x1db8] sm:$0xff]  ;;  %v1874_v44 = vld [vmem:[#allocation2 + $0x3788] sm:$0xff] }
 0x4e7   :  { %4937 = vmatmul.f32.vlgmr.msrb.gmra.mxu2 %v5960_v55  ;;  %4957 = vmatmul.f32.vlgmr.msrb.gmra.mxu3 %v5962_v50  ;;  %v1742_v55 = vld [vmem:[#allocation2 + $0x1aa8] sm:$0xff]  ;;  %v1788_v26 = vld [vmem:[#allocation2 + $0x24b8] sm:$0xff] }
 0x4e8   :  { %4961 = vmatpush.msra.mxu0 %v1716_v39  ;;  %4981 = vmatpush.msra.mxu1 %v1748_v31  ;;  %v1774_v50 = vld [vmem:[#allocation2 + $0x21a8] sm:$0xff] }
 0x4e9   :  { %5001 = vmatpush.msra.mxu2 %v1780_v18  ;;  %5021 = vmatpush.msra.mxu3 %v1812_v32  ;;  %v1722_v39 = vld [vmem:[#allocation2 + $0x1648] sm:$0xff]  ;;  %v4505_v18 = vperm.slane %v6052_v35, 2  ;;  %v4506_v32 = vperm.slane %v6052_v35, 3 }
 0x4ea   :  { %4962 = vmatpush.msra.mxu0 %v1714_v5  ;;  %4982 = vmatpush.msra.mxu1 %v1746_v60  ;;  %v1754_v5 = vld [vmem:[#allocation2 + $0x1d48] sm:$0xff] }
 0x4eb   :  { %5002 = vmatpush.msra.mxu2 %v1778_v47  ;;  %5022 = vmatpush.msra.mxu3 %v1810_v58  ;;  %v1786_v60 = vld [vmem:[#allocation2 + $0x2448] sm:$0xff]  ;;  %v1688_v47 = vld [vmem:[#allocation2 + $0xed8] sm:$0xff] }
 0x4ec   :  { %4963 = vmatpush.msra.mxu0 %v1712_v56  ;;  %4983 = vmatpush.msra.mxu1 %v1744_v57  ;;  %v1720_v58 = vld [vmem:[#allocation2 + $0x15d8] sm:$0xff]  ;;  %v4503_v56 = vperm.slane %v6052_v35, 0 }
 0x4ed   :  { %5003 = vmatpush.msra.mxu2 %v1776_v37  ;;  %5023 = vmatpush.msra.mxu3 %v1808_v51  ;;  %v1752_v37 = vld [vmem:[#allocation2 + $0x1cd8] sm:$0xff] }
 0x4ee   :  { %4964 = vmatpush.msra.mxu0 %v1710_v34  ;;  %4984 = vmatpush.msra.mxu1 %v1742_v55  ;;  %v1784_v51 = vld [vmem:[#allocation2 + $0x23d8] sm:$0xff] }
 0x4ef   :  { %5004 = vmatpush.msra.mxu2 %v1774_v50  ;;  %5024 = vmatpush.msra.mxu3 %v1806_v48  ;;  %v1686_v50 = vld [vmem:[#allocation2 + $0xe68] sm:$0xff] }
 0x4f0   :  { %4965 = vmatpush.msra.mxu0 %v1708_v61  ;;  %4985 = vmatpush.msra.mxu1 %v1740_v16  ;;  %v1718_v48 = vld [vmem:[#allocation2 + $0x1568] sm:$0xff] }
 0x4f1   :  { %5005 = vmatpush.msra.mxu2 %v1772_v1  ;;  %5025 = vmatpush.msra.mxu3 %v1804_v6  ;;  %v1750_v6 = vld [vmem:[#allocation2 + $0x1c68] sm:$0xff] }
 0x4f2   :  { %4966 = vmatpush.msra.mxu0 %v1706_v0  ;;  %4986 = vmatpush.msra.mxu1 %v1738_v25  ;;  %v1782_v0 = vld [vmem:[#allocation2 + $0x2368] sm:$0xff] }
 0x4f3   :  { %5006 = vmatpush.msra.mxu2 %v1770_v42  ;;  %5026 = vmatpush.msra.mxu3 %v1802_v9 }
 0x4f4   :  { %4967 = vmatpush.msra.mxu0 %v1704_v41  ;;  %4987 = vmatpush.msra.mxu1 %v1736_v8  ;;  %v4508_v41 = vperm.slane %v6052_v35, 5 }
 0x4f5   :  { %5007 = vmatpush.msra.mxu2 %v1768_v20  ;;  %5027 = vmatpush.msra.mxu3 %v1800_v12  ;;  %v1844_v20 = vld [vmem:[#allocation2 + $0x30f8] sm:$0xff] }
 0x4f6   :  { %4968 = vmatpush.msra.mxu0 %v1702_v54  ;;  %4988 = vmatpush.msra.mxu1 %v1734_v13  ;;  %v1876_v12 = vld [vmem:[#allocation2 + $0x37f8] sm:$0xff] }
 0x4f7   :  { %5008 = vmatpush.msra.mxu2 %v1766_v14  ;;  %5028 = vmatpush.msra.mxu3 %v1798_v15  ;;  %v1842_v15 = vld [vmem:[#allocation2 + $0x3088] sm:$0xff] }
 0x4f8   :  { %4969 = vmatpush.msra.mxu0 %v1700_v62  ;;  %4989 = vmatpush.msra.mxu1 %v1732_v21  ;;  %v4509_v62 = vperm.slane %v6052_v35, 6  ;;  %v4510_v21 = vperm.slane %v6052_v35, 7 }
 0x4f9   :  { %5009 = vmatpush.msra.mxu2 %v1764_v29  ;;  %5029 = vmatpush.msra.mxu3 %v1796_v24  ;;  %v1840_v29 = vld [vmem:[#allocation2 + $0x3018] sm:$0xff] }
 0x4fa   :  { %4970 = vmatpush.msra.mxu0 %v1698_v46  ;;  %4990 = vmatpush.msra.mxu1 %v1730_v30  ;;  %v1872_v24 = vld [vmem:[#allocation2 + $0x3718] sm:$0xff] }
 0x4fb   :  { %5010 = vmatpush.msra.mxu2 %v1762_v10  ;;  %5030 = vmatpush.msra.mxu3 %v1794_v2  ;;  %v4560_v40 = vpop.f32.mrf.mxu1  ;;  %v4540_v57 = vpop.f32.mrf.mxu0  ;;  %v2231_v10 = vld [vmem:[#allocation6 + $0x910] sm:$0xff]  ;;  %v1838_v2 = vld [vmem:[#allocation2 + $0x2fa8] sm:$0xff] }
 0x4fc   :  { %4971 = vmatpush.msra.mxu0 %v1696_v3  ;;  %4991 = vmatpush.msra.mxu1 %v1728_v11  ;;  %v4561_v31 = vadd.f32 %v4560_v40, %v4504_v4  ;;  %v4541_v25 = vadd.f32 %v4540_v57, %v4503_v56  ;;  %v1870_v3 = vld [vmem:[#allocation2 + $0x36a8] sm:$0xff]  ;;  %v1868_v4 = vld [vmem:[#allocation2 + $0x3638] sm:$0xff]  ;;  %v2211_v40 = vld [vmem:[#allocation6 + $0x870] sm:$0xff] }
 0x4fd   :  { %5011 = vmatpush.msra.mxu2 %v1760_v22  ;;  %5031 = vmatpush.msra.mxu3 %v1792_v19  ;;  %v1860_v56 = vld [vmem:[#allocation2 + $0x3478] sm:$0xff]  ;;  %v2171_v57 = vld [vmem:[#allocation6 + $0x730] sm:$0xff] }
 0x4fe   :  { %4972 = vmatpush.msra.mxu0 %v1694_v36  ;;  %4992 = vmatpush.msra.mxu1 %v1726_v53  ;;  %v4733_v61 = vrot.slane %v4561_v31, 6  ;;  %v2221_v36 = vld [vmem:[#allocation6 + $0x8c0] sm:$0xff]  ;;  %v1836_v53 = vld [vmem:[#allocation2 + $0x2f38] sm:$0xff] }
 0x4ff   :  { %5012 = vmatpush.msra.mxu2 %v1758_v38  ;;  %5032 = vmatpush.msra.mxu3 %v1790_v59  ;;  %v1832_v31 = vld [vmem:[#allocation2 + $0x2e58] sm:$0xff] }
 0x500   :  { %4973 = vmatpush.msra.mxu0 %v1692_v33  ;;  %4993 = vmatpush.msra.mxu1 %v1724_v7  ;;  %v4741_v54 = vsel %vm4740_vm0, %v4541_v25, %v4733_v61  ;;  %v1834_v7 = vld [vmem:[#allocation2 + $0x2ec8] sm:$0xff]  ;;  %v2141_v25 = vld [vmem:[#allocation6 + $0x640] sm:$0xff] }
 0x501   :  { %5013 = vmatpush.msra.mxu2 %v1756_v27  ;;  %5033 = vmatpush.msra.mxu3 %v1788_v26  ;;  %v1866_v27 = vld [vmem:[#allocation2 + $0x35c8] sm:$0xff] }
 0x502   :  { %4974 = vmatpush.msra.mxu0 %v1690_v28  ;;  %4994 = vmatpush.msra.mxu1 %v1722_v39  ;;  %v4580_v34 = vpop.f32.mrf.mxu2  ;;  %v4600_v55 = vpop.f32.mrf.mxu3  ;;  %v2201_v39 = vld [vmem:[#allocation6 + $0x820] sm:$0xff] }
 0x503   :  { %5014 = vmatpush.msra.mxu2 %v1754_v5  ;;  %5034 = vmatpush.msra.mxu3 %v1786_v60  ;;  %v4581_v16 = vadd.f32 %v4580_v34, %v4505_v18  ;;  %v4601_v1 = vadd.f32 %v4600_v55, %v4506_v32  ;;  %v1864_v18 = vld [vmem:[#allocation2 + $0x3558] sm:$0xff]  ;;  %v2191_v32 = vld [vmem:[#allocation6 + $0x7d0] sm:$0xff]  ;;  %v1830_v5 = vld [vmem:[#allocation2 + $0x2de8] sm:$0xff] }
 0x504   :  { %4975 = vmatpush.msra.mxu0 %v1688_v47  ;;  %4995 = vmatpush.msra.mxu1 %v1720_v58  ;;  %v1862_v60 = vld [vmem:[#allocation2 + $0x34e8] sm:$0xff]  ;;  %v2181_v47 = vld [vmem:[#allocation6 + $0x780] sm:$0xff]  ;;  %v1828_v58 = vld [vmem:[#allocation2 + $0x2d78] sm:$0xff] }
 0x505   :  { %5015 = vmatpush.msra.mxu2 %v1752_v37  ;;  %5035 = vmatpush.msra.mxu3 %v1784_v51  ;;  %v4734_v42 = vrot.slane %v4581_v16, 4  ;;  %v4735_v9 = vrot.slane %v4601_v1, 2  ;;  %v4640_v8 = vpop.f32.mrf.mxu1  ;;  %v1826_v37 = vld [vmem:[#allocation2 + $0x2d08] sm:$0xff]  ;;  %v2161_v55 = vld [vmem:[#allocation6 + $0x6e0] sm:$0xff]  ;;  %v2151_v16 = vld [vmem:[#allocation6 + $0x690] sm:$0xff] }
 0x506   :  { %4976 = vmatpush.msra.mxu0 %v1686_v50  ;;  %4996 = vmatpush.msra.mxu1 %v1718_v48  ;;  %v4641_v17 = vadd.f32 %v4640_v8, %v4508_v41  ;;  %v1858_v51 = vld [vmem:[#allocation2 + $0x3408] sm:$0xff]  ;;  %v1824_v50 = vld [vmem:[#allocation2 + $0x2c98] sm:$0xff] }
 0x507   :  { %5016 = vmatpush.msra.mxu2 %v1750_v6  ;;  %5036 = vmatpush.msra.mxu3 %v1782_v0  ;;  %v4743_v13 = vsel %vm4742_vm1, %v4734_v42, %v4735_v9  ;;  %v2432_v34 = vld [vmem:[#allocation7 + $0x43] ss:$8 sm:$0x3]  ;;  %v1856_v48 = vld [vmem:[#allocation2 + $0x3398] sm:$0xff] }
 0x508   :  { %4977 = vmatmul.f32.vlgmr.msra.gmra.mxu0 %v5964_v52  ;;  %4997 = vmatmul.f32.vlgmr.msra.gmra.mxu1 %v5966_v23  ;;  %v4745_v14 = vsel %vm4744_vm2, %v4741_v54, %v4743_v13  ;;  %v2251_v52 = vld [vmem:[#allocation6 + $0x9b0] sm:$0xff]  ;;  %v2241_v23 = vld [vmem:[#allocation6 + $0x960] sm:$0xff]  ;;  %v4736_v11 = vrot.slane %v4641_v17, 6  ;;  %v4512_v61 = vperm.slane %v2432_v34, 1  ;;  %v1822_v1 = vld [vmem:[#allocation2 + $0x2c28] sm:$0xff]  ;;  %v4511_v0 = vperm.slane %v2432_v34, 0 }
 0x509   :  { %5017 = vmatmul.f32.vlgmr.msra.gmra.mxu2 %v5987_v63  ;;  %5037 = vmatmul.f32.vlgmr.msra.gmra.mxu3 %v5989_v45  ;;  %4753 = vst [vmem:[%s6133_s5] sm:$0xff] %v4745_v14  ;;  %v4507_v63 = vperm.slane %v6052_v35, 4  ;;  %v4620_v45 = vpop.f32.mrf.mxu0  ;;  %v1854_v6 = vld [vmem:[#allocation2 + $0x3328] sm:$0xff]  ;;  %v1820_v42 = vld [vmem:[#allocation2 + $0x2bb8] sm:$0xff]  ;;  %v2103_v34 = vld [vmem:[#allocation6 + $0x510] sm:$0xff] }
 0x50a   :  { %5041 = vmatpush.msrb.mxu0 %v1844_v20  ;;  %5061 = vmatpush.msrb.mxu1 %v1876_v12  ;;  %v1852_v9 = vld [vmem:[#allocation2 + $0x32b8] sm:$0xff]  ;;  %v1818_v12 = vld [vmem:[#allocation2 + $0x2b48] sm:$0xff] }
 0x50b   :  { %5105 = vmatpush.msrb.mxu2 %v2251_v52  ;;  %v4621_v38 = vadd.f32 %v4620_v45, %v4507_v63  ;;  %v1850_v54 = vld [vmem:[#allocation2 + $0x3248] sm:$0xff]  ;;  %v2232_v45 = vld [vmem:[#allocation6 + $0x918] sm:$0xff] }
 0x50c   :  { %5042 = vmatpush.msrb.mxu0 %v1842_v15  ;;  %5062 = vmatpush.msrb.mxu1 %v1874_v44  ;;  %v4660_v46 = vpop.f32.mrf.mxu2  ;;  %v4680_v30 = vpop.f32.mrf.mxu3  ;;  %v1816_v15 = vld [vmem:[#allocation2 + $0x2ad8] sm:$0xff]  ;;  %v1814_v52 = vld [vmem:[#allocation2 + $0x2a68] sm:$0xff] }
 0x50d   :  { %v4661_v22 = vadd.f32 %v4660_v46, %v4509_v62  ;;  %v4681_v19 = vadd.f32 %v4680_v30, %v4510_v21  ;;  %5106 = vmatpush.msrb.mxu2 %v2241_v23  ;;  %v4746_v33 = vsel %vm4740_vm0, %v4621_v38, %v4736_v11  ;;  %v1848_v44 = vld [vmem:[#allocation2 + $0x31d8] sm:$0xff]  ;;  %v2131_v62 = vld [vmem:[#allocation6 + $0x5f0] sm:$0xff]  ;;  %v2121_v21 = vld [vmem:[#allocation6 + $0x5a0] sm:$0xff] }
 0x50e   :  { %5043 = vmatpush.msrb.mxu0 %v1840_v29  ;;  %5063 = vmatpush.msrb.mxu1 %v1872_v24  ;;  %v1846_v23 = vld [vmem:[#allocation2 + $0x3168] sm:$0xff]  ;;  %v2252_v29 = vld [vmem:[#allocation6 + $0x9b8] sm:$0xff]  ;;  %v2111_v24 = vld [vmem:[#allocation6 + $0x550] sm:$0xff] }
 0x50f   :  { %v4737_v35 = vrot.slane %v4661_v22, 4  ;;  %v4738_v59 = vrot.slane %v4681_v19, 2  ;;  %5107 = vmatpush.msrb.mxu2 %v2231_v10  ;;  %v2242_v63 = vld [vmem:[#allocation6 + $0x968] sm:$0xff]  ;;  %v2101_v46 = vld [vmem:[#allocation6 + $0x500] sm:$0xff]  ;;  %v2243_v10 = vld [vmem:[#allocation6 + $0x970] sm:$0xff] }
 0x510   :  { %5044 = vmatpush.msrb.mxu0 %v1838_v2  ;;  %5064 = vmatpush.msrb.mxu1 %v1870_v3  ;;  %v2253_v30 = vld [vmem:[#allocation6 + $0x9c0] sm:$0xff]  ;;  %v2222_v2 = vld [vmem:[#allocation6 + $0x8c8] sm:$0xff]  ;;  %v2212_v11 = vld [vmem:[#allocation6 + $0x878] sm:$0xff] }
 0x511   :  { %v4747_v26 = vsel %vm4742_vm1, %v4737_v35, %v4738_v59  ;;  %5108 = vmatpush.msrb.mxu2 %v2221_v36  ;;  %v2233_v3 = vld [vmem:[#allocation6 + $0x920] sm:$0xff]  ;;  %v2223_v22 = vld [vmem:[#allocation6 + $0x8d0] sm:$0xff]  ;;  %v2192_v19 = vld [vmem:[#allocation6 + $0x7d8] sm:$0xff] }
 0x512   :  { %5045 = vmatpush.msrb.mxu0 %v1836_v53  ;;  %5065 = vmatpush.msrb.mxu1 %v1868_v4  ;;  %v4748_v28 = vsel %vm4744_vm2, %v4746_v33, %v4747_v26  ;;  %v2203_v36 = vld [vmem:[#allocation6 + $0x830] sm:$0xff]  ;;  %v2182_v53 = vld [vmem:[#allocation6 + $0x788] sm:$0xff]  ;;  %v2193_v4 = vld [vmem:[#allocation6 + $0x7e0] sm:$0xff] }
 0x513   :  { %4754 = vst [vmem:[%s6133_s5 + $0x8] sm:$0xff] %v4748_v28  ;;  %5109 = vmatpush.msrb.mxu2 %v2211_v40  ;;  %v2172_v38 = vld [vmem:[#allocation6 + $0x738] sm:$0xff]  ;;  %v2183_v35 = vld [vmem:[#allocation6 + $0x790] sm:$0xff]  ;;  %v2162_v59 = vld [vmem:[#allocation6 + $0x6e8] sm:$0xff] }
 0x514   :  { %5046 = vmatpush.msrb.mxu0 %v1834_v7  ;;  %5066 = vmatpush.msrb.mxu1 %v1866_v27  ;;  %v2173_v40 = vld [vmem:[#allocation6 + $0x740] sm:$0xff]  ;;  %v2152_v33 = vld [vmem:[#allocation6 + $0x698] sm:$0xff]  ;;  %v2163_v7 = vld [vmem:[#allocation6 + $0x6f0] sm:$0xff] }
 0x515   :  { %5110 = vmatpush.msrb.mxu2 %v2201_v39  ;;  %v2142_v27 = vld [vmem:[#allocation6 + $0x648] sm:$0xff]  ;;  %v2153_v26 = vld [vmem:[#allocation6 + $0x6a0] sm:$0xff]  ;;  %v2132_v28 = vld [vmem:[#allocation6 + $0x5f8] sm:$0xff] }
 0x516   :  { %5047 = vmatpush.msrb.mxu0 %v1832_v31  ;;  %5067 = vmatpush.msrb.mxu1 %v1864_v18  ;;  %v2143_v39 = vld [vmem:[#allocation6 + $0x650] sm:$0xff]  ;;  %v2122_v31 = vld [vmem:[#allocation6 + $0x5a8] sm:$0xff]  ;;  %v2112_v18 = vld [vmem:[#allocation6 + $0x558] sm:$0xff] }
 0x517   :  { %5111 = vmatpush.msrb.mxu2 %v2191_v32  ;;  %v2102_v32 = vld [vmem:[#allocation6 + $0x508] sm:$0xff] }
 0x518   :  { %5048 = vmatpush.msrb.mxu0 %v1830_v5  ;;  %5068 = vmatpush.msrb.mxu1 %v1862_v60  ;;  %v2254_v5 = vld [vmem:[#allocation6 + $0x9c8] sm:$0xff]  ;;  %v2133_v60 = vld [vmem:[#allocation6 + $0x600] sm:$0xff] }
 0x519   :  { %5112 = vmatpush.msrb.mxu2 %v2181_v47  ;;  %v2244_v47 = vld [vmem:[#allocation6 + $0x978] sm:$0xff] }
 0x51a   :  { %5049 = vmatpush.msrb.mxu0 %v1828_v58  ;;  %5069 = vmatpush.msrb.mxu1 %v1860_v56  ;;  %v2123_v58 = vld [vmem:[#allocation6 + $0x5b0] sm:$0xff]  ;;  %v2113_v56 = vld [vmem:[#allocation6 + $0x560] sm:$0xff] }
 0x51b   :  { %5113 = vmatpush.msrb.mxu2 %v2171_v57  ;;  %v2234_v57 = vld [vmem:[#allocation6 + $0x928] sm:$0xff] }
 0x51c   :  { %5050 = vmatpush.msrb.mxu0 %v1826_v37  ;;  %5070 = vmatpush.msrb.mxu1 %v1858_v51  ;;  %v6084_v37 = vld [vmem:[#allocation7 + $0x4] ss:$8 sm:$0x3]  ;;  %v2224_v51 = vld [vmem:[#allocation6 + $0x8d8] sm:$0xff] }
 0x51d   :  { %5114 = vmatpush.msrb.mxu2 %v2161_v55  ;;  %v2411_v55 = vld [vmem:[#allocation6 + $0xeb0] sm:$0xff] }
 0x51e   :  { %5051 = vmatpush.msrb.mxu0 %v1824_v50  ;;  %5071 = vmatpush.msrb.mxu1 %v1856_v48  ;;  %v4757_v50 = vperm.slane %v6084_v37, 0  ;;  %v2214_v48 = vld [vmem:[#allocation6 + $0x888] sm:$0xff] }
 0x51f   :  { %v4700_v41 = vpop.f32.mrf.mxu0  ;;  %v4720_v8 = vpop.f32.mrf.mxu1  ;;  %5115 = vmatpush.msrb.mxu2 %v2151_v16  ;;  %5125 = vmatpush.msrb.mxu3 %v2411_v55  ;;  %v2272_v55 = vld [vmem:[#allocation6 + $0xa58] sm:$0xff] }
 0x520   :  { %5052 = vmatpush.msrb.mxu0 %v1822_v1  ;;  %5072 = vmatpush.msrb.mxu1 %v1854_v6  ;;  %v4721_v20 = vadd.f32 %v4720_v8, %v4512_v61  ;;  %v4701_v13 = vadd.f32 %v4700_v41, %v4511_v0  ;;  %v2412_v61 = vld [vmem:[#allocation6 + $0xeb8] sm:$0xff]  ;;  %v2401_v1 = vld [vmem:[#allocation6 + $0xe60] sm:$0xff]  ;;  %v2402_v6 = vld [vmem:[#allocation6 + $0xe68] sm:$0xff] }
 0x521   :  { %5116 = vmatpush.msrb.mxu2 %v2141_v25  ;;  %v2204_v0 = vld [vmem:[#allocation6 + $0x838] sm:$0xff]  ;;  %5126 = vmatpush.msrb.mxu3 %v2401_v1  ;;  %v2391_v25 = vld [vmem:[#allocation6 + $0xe10] sm:$0xff]  ;;  %v2194_v8 = vld [vmem:[#allocation6 + $0x7e8] sm:$0xff] }
 0x522   :  { %5053 = vmatpush.msrb.mxu0 %v1820_v42  ;;  %5073 = vmatpush.msrb.mxu1 %v1852_v9  ;;  %v4739_v14 = vrot.slane %v4721_v20, 6  ;;  %v2392_v42 = vld [vmem:[#allocation6 + $0xe18] sm:$0xff]  ;;  %v2381_v9 = vld [vmem:[#allocation6 + $0xdc0] sm:$0xff]  ;;  %v2382_v20 = vld [vmem:[#allocation6 + $0xdc8] sm:$0xff] }
 0x523   :  { %5117 = vmatpush.msrb.mxu2 %v2131_v62  ;;  %5127 = vmatpush.msrb.mxu3 %v2391_v25  ;;  %v2174_v62 = vld [vmem:[#allocation6 + $0x748] sm:$0xff]  ;;  %v2413_v1 = vld [vmem:[#allocation6 + $0xec0] sm:$0xff]  ;;  %v2215_v25 = vld [vmem:[#allocation6 + $0x890] sm:$0xff] }
 0x524   :  { %5054 = vmatpush.msrb.mxu0 %v1818_v12  ;;  %5074 = vmatpush.msrb.mxu1 %v1850_v54  ;;  %v4749_v17 = vsel %vm4740_vm0, %v4701_v13, %v4739_v14  ;;  %v2371_v12 = vld [vmem:[#allocation6 + $0xd70] sm:$0xff]  ;;  %v2184_v54 = vld [vmem:[#allocation6 + $0x798] sm:$0xff] }
 0x525   :  { %4755 = vst [vmem:[%s6133_s5 + $0x10] sm:$0xf] %v4749_v17  ;;  %5118 = vmatpush.msrb.mxu2 %v2121_v21  ;;  %5128 = vmatpush.msrb.mxu3 %v2381_v9  ;;  %v2372_v13 = vld [vmem:[#allocation6 + $0xd78] sm:$0xff]  ;;  %v2362_v21 = vld [vmem:[#allocation6 + $0xd28] sm:$0xff] }
 0x526   :  { %5055 = vmatpush.msrb.mxu0 %v1816_v15  ;;  %5075 = vmatpush.msrb.mxu1 %v1848_v44  ;;  %v4778_v16 = vpop.f32.mrf.mxu2  ;;  %v4798_v14 = vpop.f32.mrf.mxu3  ;;  %v2361_v44 = vld [vmem:[#allocation6 + $0xd20] sm:$0xff]  ;;  %v2414_v9 = vld [vmem:[#allocation6 + $0xec8] sm:$0xff] }
 0x527   :  { %5119 = vmatpush.msrb.mxu2 %v2111_v24  ;;  %v4779_v41 = vadd.f32 %v4778_v16, %v4757_v50  ;;  %5129 = vmatpush.msrb.mxu3 %v2371_v12  ;;  %v2352_v24 = vld [vmem:[#allocation6 + $0xcd8] sm:$0xff]  ;;  %v2235_v50 = vld [vmem:[#allocation6 + $0x930] sm:$0xff]  ;;  %v2262_v16 = vld [vmem:[#allocation6 + $0xa08] sm:$0xff] }
 0x528   :  { %5056 = vmatpush.msrb.mxu0 %v1814_v52  ;;  %5076 = vmatpush.msrb.mxu1 %v1846_v23  ;;  %v2351_v52 = vld [vmem:[#allocation6 + $0xcd0] sm:$0xff]  ;;  %v2404_v12 = vld [vmem:[#allocation6 + $0xe78] sm:$0xff] }
 0x529   :  { %5057 = vmatmul.f32.vlgmr.msrb.gmra.mxu0 %v5993_v49  ;;  %5077 = vmatmul.f32.vlgmr.msrb.gmra.mxu1 %v6003_v43  ;;  %v2202_v49 = vld [vmem:[#allocation6 + $0x828] sm:$0xff]  ;;  %v2213_v43 = vld [vmem:[#allocation6 + $0x880] sm:$0xff]  ;;  %v4799_v17 = vadd.f32 %v4798_v14, %v4779_v41  ;;  %v2403_v41 = vld [vmem:[#allocation6 + $0xe70] sm:$0xff] }
 0x52a   :  { %5145 = vmatpush.msra.mxu0 %v2252_v29  ;;  %5120 = vmatpush.msrb.mxu2 %v2101_v46  ;;  %v2164_v29 = vld [vmem:[#allocation6 + $0x6f8] sm:$0xff]  ;;  %v2342_v46 = vld [vmem:[#allocation6 + $0xc88] sm:$0xff] }
 0x52b   :  { %5165 = vmatpush.msra.mxu1 %v2412_v61  ;;  %5130 = vmatpush.msrb.mxu3 %v2361_v44  ;;  %v2261_v61 = vld [vmem:[#allocation6 + $0xa00] sm:$0xff]  ;;  %v2196_v14 = vld [vmem:[#allocation6 + $0x7f8] sm:$0xff]  ;;  %v2383_v44 = vld [vmem:[#allocation6 + $0xdd0] sm:$0xff] }
 0x52c   :  { %5146 = vmatpush.msra.mxu0 %v2242_v63  ;;  %5185 = vmatpush.msra.mxu2 %v2253_v30  ;;  %v2341_v63 = vld [vmem:[#allocation6 + $0xc80] sm:$0xff] }
 0x52d   :  { %5166 = vmatpush.msra.mxu1 %v2402_v6  ;;  %5131 = vmatpush.msrb.mxu3 %v2351_v52  ;;  %v2225_v6 = vld [vmem:[#allocation6 + $0x8e0] sm:$0xff] }
 0x52e   :  { %5147 = vmatpush.msra.mxu0 %v2232_v45  ;;  %5186 = vmatpush.msra.mxu2 %v2243_v10  ;;  %v2154_v45 = vld [vmem:[#allocation6 + $0x6a8] sm:$0xff]  ;;  %v2373_v52 = vld [vmem:[#allocation6 + $0xd80] sm:$0xff] }
 0x52f   :  { %5167 = vmatpush.msra.mxu1 %v2392_v42  ;;  %5132 = vmatpush.msrb.mxu3 %v2341_v63  ;;  %v2216_v42 = vld [vmem:[#allocation6 + $0x898] sm:$0xff]  ;;  %v2363_v63 = vld [vmem:[#allocation6 + $0xd30] sm:$0xff] }
 0x530   :  { %5148 = vmatpush.msra.mxu0 %v2222_v2  ;;  %5187 = vmatpush.msra.mxu2 %v2233_v3  ;;  %v2331_v2 = vld [vmem:[#allocation6 + $0xc30] sm:$0xff] }
 0x531   :  { %5168 = vmatpush.msra.mxu1 %v2382_v20  ;;  %5133 = vmatpush.msrb.mxu3 %v2331_v2  ;;  %v2206_v20 = vld [vmem:[#allocation6 + $0x848] sm:$0xff]  ;;  %v2155_v2 = vld [vmem:[#allocation6 + $0x6b0] sm:$0xff] }
 0x532   :  { %5149 = vmatpush.msra.mxu0 %v2212_v11  ;;  %5188 = vmatpush.msra.mxu2 %v2223_v22  ;;  %v2144_v11 = vld [vmem:[#allocation6 + $0x658] sm:$0xff] }
 0x533   :  { %5169 = vmatpush.msra.mxu1 %v2372_v13  ;;  %v2332_v22 = vld [vmem:[#allocation6 + $0xc38] sm:$0xff]  ;;  %v2195_v13 = vld [vmem:[#allocation6 + $0x7f0] sm:$0xff] }
 0x534   :  { %5150 = vmatpush.msra.mxu0 %v2202_v49  ;;  %5189 = vmatpush.msra.mxu2 %v2213_v43  ;;  %v2321_v49 = vld [vmem:[#allocation6 + $0xbe0] sm:$0xff] }
 0x535   :  { %5170 = vmatpush.msra.mxu1 %v2362_v21  ;;  %5134 = vmatpush.msrb.mxu3 %v2321_v49  ;;  %v2384_v21 = vld [vmem:[#allocation6 + $0xdd8] sm:$0xff]  ;;  %v2145_v49 = vld [vmem:[#allocation6 + $0x660] sm:$0xff] }
 0x536   :  { %5151 = vmatpush.msra.mxu0 %v2192_v19  ;;  %5190 = vmatpush.msra.mxu2 %v2203_v36  ;;  %v2134_v19 = vld [vmem:[#allocation6 + $0x608] sm:$0xff] }
 0x537   :  { %5171 = vmatpush.msra.mxu1 %v2352_v24  ;;  %v2322_v36 = vld [vmem:[#allocation6 + $0xbe8] sm:$0xff] }
 0x538   :  { %5152 = vmatpush.msra.mxu0 %v2182_v53  ;;  %5191 = vmatpush.msra.mxu2 %v2193_v4  ;;  %v2311_v53 = vld [vmem:[#allocation6 + $0xb90] sm:$0xff]  ;;  %v2124_v4 = vld [vmem:[#allocation6 + $0x5b8] sm:$0xff]  ;;  %v2374_v24 = vld [vmem:[#allocation6 + $0xd88] sm:$0xff] }
 0x539   :  { %5172 = vmatpush.msra.mxu1 %v2342_v46  ;;  %5135 = vmatpush.msrb.mxu3 %v2311_v53  ;;  %v2166_v46 = vld [vmem:[#allocation6 + $0x708] sm:$0xff]  ;;  %v2135_v53 = vld [vmem:[#allocation6 + $0x610] sm:$0xff] }
 0x53a   :  { %5153 = vmatpush.msra.mxu0 %v2172_v38  ;;  %5192 = vmatpush.msra.mxu2 %v2183_v35  ;;  %v2312_v38 = vld [vmem:[#allocation6 + $0xb98] sm:$0xff] }
 0x53b   :  { %5173 = vmatpush.msra.mxu1 %v2332_v22  ;;  %v2343_v22 = vld [vmem:[#allocation6 + $0xc90] sm:$0xff] }
 0x53c   :  { %5154 = vmatpush.msra.mxu0 %v2162_v59  ;;  %5193 = vmatpush.msra.mxu2 %v2173_v40  ;;  %v2301_v59 = vld [vmem:[#allocation6 + $0xb40] sm:$0xff] }
 0x53d   :  { %5174 = vmatpush.msra.mxu1 %v2322_v36  ;;  %5136 = vmatpush.msrb.mxu3 %v2301_v59  ;;  %v2333_v36 = vld [vmem:[#allocation6 + $0xc40] sm:$0xff] }
 0x53e   :  { %5155 = vmatpush.msra.mxu0 %v2152_v33  ;;  %5194 = vmatpush.msra.mxu2 %v2163_v7  ;;  %v2114_v33 = vld [vmem:[#allocation6 + $0x568] sm:$0xff]  ;;  %v2125_v59 = vld [vmem:[#allocation6 + $0x5c0] sm:$0xff] }
 0x53f   :  { %v2302_v7 = vld [vmem:[#allocation6 + $0xb48] sm:$0xff]  ;;  %5175 = vmatpush.msra.mxu1 %v2312_v38 }
 0x540   :  { %5156 = vmatpush.msra.mxu0 %v2142_v27  ;;  %5195 = vmatpush.msra.mxu2 %v2153_v26  ;;  %v2334_v38 = vld [vmem:[#allocation6 + $0xc48] sm:$0xff] }
 0x541   :  { %v4818_v15 = vpop.f32.mrf.mxu0  ;;  %v4838_v30 = vpop.f32.mrf.mxu1  ;;  %5176 = vmatpush.msra.mxu1 %v2302_v7  ;;  %v2313_v7 = vld [vmem:[#allocation6 + $0xba0] sm:$0xff] }
 0x542   :  { %5157 = vmatpush.msra.mxu0 %v2132_v28  ;;  %5196 = vmatpush.msra.mxu2 %v2143_v39  ;;  %v4819_v23 = vadd.f32 %v4818_v15, %v4799_v17  ;;  %v2104_v28 = vld [vmem:[#allocation6 + $0x518] sm:$0xff]  ;;  %v2394_v15 = vld [vmem:[#allocation6 + $0xe28] sm:$0xff]  ;;  %v2185_v17 = vld [vmem:[#allocation6 + $0x7a0] sm:$0xff] }
 0x544   :  { %5158 = vmatpush.msra.mxu0 %v2122_v31  ;;  %5197 = vmatpush.msra.mxu2 %v2133_v60  ;;  %v4839_v3 = vadd.f32 %v4838_v30, %v4819_v23  ;;  %v2255_v60 = vld [vmem:[#allocation6 + $0x9d0] sm:$0xff]  ;;  %v2364_v30 = vld [vmem:[#allocation6 + $0xd38] sm:$0xff] }
 0x545   :  { %v2175_v23 = vld [vmem:[#allocation6 + $0x750] sm:$0xff] }
 0x546   :  { %5159 = vmatpush.msra.mxu0 %v2112_v18  ;;  %5198 = vmatpush.msra.mxu2 %v2123_v58  ;;  %v2291_v18 = vld [vmem:[#allocation6 + $0xaf0] sm:$0xff]  ;;  %v2281_v58 = vld [vmem:[#allocation6 + $0xaa0] sm:$0xff] }
 0x547   :  { %5137 = vmatpush.msrb.mxu3 %v2291_v18  ;;  %v2106_v18 = vld [vmem:[#allocation6 + $0x528] sm:$0xff] }
 0x548   :  { %5160 = vmatpush.msra.mxu0 %v2102_v32  ;;  %5199 = vmatpush.msra.mxu2 %v2113_v56  ;;  %v4858_v10 = vpop.f32.mrf.mxu2  ;;  %v4878_v35 = vpop.f32.mrf.mxu3  ;;  %v2292_v32 = vld [vmem:[#allocation6 + $0xaf8] sm:$0xff]  ;;  %v2282_v56 = vld [vmem:[#allocation6 + $0xaa8] sm:$0xff] }
 0x549   :  { %v4859_v43 = vadd.f32 %v4858_v10, %v4839_v3  ;;  %5177 = vmatpush.msra.mxu1 %v2292_v32  ;;  %5138 = vmatpush.msrb.mxu3 %v2281_v58  ;;  %v2353_v10 = vld [vmem:[#allocation6 + $0xce0] sm:$0xff]  ;;  %v2156_v3 = vld [vmem:[#allocation6 + $0x6b8] sm:$0xff] }
 0x54a   :  { %5225 = vmatpush.msrb.mxu0 %v2254_v5  ;;  %5200 = vmatpush.msra.mxu2 %v2103_v34  ;;  %v2246_v34 = vld [vmem:[#allocation6 + $0x988] sm:$0xff]  ;;  %v2257_v32 = vld [vmem:[#allocation6 + $0x9e0] sm:$0xff] }
 0x54b   :  { %v4879_v40 = vadd.f32 %v4878_v35, %v4859_v43  ;;  %5178 = vmatpush.msra.mxu1 %v2282_v56  ;;  %v2146_v43 = vld [vmem:[#allocation6 + $0x668] sm:$0xff]  ;;  %v2323_v35 = vld [vmem:[#allocation6 + $0xbf0] sm:$0xff]  ;;  %v2293_v58 = vld [vmem:[#allocation6 + $0xb00] sm:$0xff] }
 0x54c   :  { %5226 = vmatpush.msrb.mxu0 %v2244_v47  ;;  %v2256_v47 = vld [vmem:[#allocation6 + $0x9d8] sm:$0xff]  ;;  %v2247_v56 = vld [vmem:[#allocation6 + $0x990] sm:$0xff] }
 0x54d   :  { %5179 = vmatpush.msra.mxu1 %v2272_v55  ;;  %v2237_v55 = vld [vmem:[#allocation6 + $0x940] sm:$0xff] }
 0x54e   :  { %5227 = vmatpush.msrb.mxu0 %v2234_v57  ;;  %v2271_v57 = vld [vmem:[#allocation6 + $0xa50] sm:$0xff] }
 0x54f   :  { %5139 = vmatpush.msrb.mxu3 %v2271_v57  ;;  %5180 = vmatpush.msra.mxu1 %v2262_v16  ;;  %v2248_v57 = vld [vmem:[#allocation6 + $0x998] sm:$0xff]  ;;  %v2227_v16 = vld [vmem:[#allocation6 + $0x8f0] sm:$0xff] }
 0x550   :  { %5228 = vmatpush.msrb.mxu0 %v2224_v51  ;;  %v2245_v51 = vld [vmem:[#allocation6 + $0x980] sm:$0xff] }
 0x551   :  { %5140 = vmatpush.msrb.mxu3 %v2261_v61  ;;  %5245 = vmatpush.msrb.mxu1 %v2414_v9  ;;  %v2273_v61 = vld [vmem:[#allocation6 + $0xa60] sm:$0xff]  ;;  %v4758_v9 = vperm.slane %v6084_v37, 1 }
 0x552   :  { %5229 = vmatpush.msrb.mxu0 %v2214_v48  ;;  %v2236_v48 = vld [vmem:[#allocation6 + $0x938] sm:$0xff] }
 0x553   :  { %5205 = vmatpush.msra.mxu3 %v2413_v1  ;;  %5246 = vmatpush.msrb.mxu1 %v2404_v12  ;;  %v2228_v1 = vld [vmem:[#allocation6 + $0x8f8] sm:$0xff] }
 0x554   :  { %5230 = vmatpush.msrb.mxu0 %v2204_v0  ;;  %v2226_v0 = vld [vmem:[#allocation6 + $0x8e8] sm:$0xff]  ;;  %v2208_v12 = vld [vmem:[#allocation6 + $0x858] sm:$0xff] }
 0x555   :  { %5206 = vmatpush.msra.mxu3 %v2403_v41  ;;  %5247 = vmatpush.msrb.mxu1 %v2394_v15  ;;  %v2264_v41 = vld [vmem:[#allocation6 + $0xa18] sm:$0xff]  ;;  %v2187_v15 = vld [vmem:[#allocation6 + $0x7b0] sm:$0xff] }
 0x556   :  { %5231 = vmatpush.msrb.mxu0 %v2194_v8  ;;  %v2205_v8 = vld [vmem:[#allocation6 + $0x840] sm:$0xff] }
 0x557   :  { %5248 = vmatpush.msrb.mxu1 %v2384_v21  ;;  %v2178_v21 = vld [vmem:[#allocation6 + $0x768] sm:$0xff] }
 0x558   :  { %5232 = vmatpush.msrb.mxu0 %v2184_v54  ;;  %v2393_v54 = vld [vmem:[#allocation6 + $0xe20] sm:$0xff] }
 0x559   :  { %5207 = vmatpush.msra.mxu3 %v2393_v54  ;;  %5249 = vmatpush.msrb.mxu1 %v2374_v24  ;;  %v2197_v54 = vld [vmem:[#allocation6 + $0x800] sm:$0xff] }
 0x55a   :  { %5233 = vmatpush.msrb.mxu0 %v2174_v62  ;;  %v2186_v62 = vld [vmem:[#allocation6 + $0x7a8] sm:$0xff] }
 0x55b   :  { %5208 = vmatpush.msra.mxu3 %v2383_v44  ;;  %5250 = vmatpush.msrb.mxu1 %v2364_v30  ;;  %v2188_v44 = vld [vmem:[#allocation6 + $0x7b8] sm:$0xff] }
 0x55c   :  { %5234 = vmatpush.msrb.mxu0 %v2164_v29  ;;  %v2176_v29 = vld [vmem:[#allocation6 + $0x758] sm:$0xff] }
 0x55d   :  { %5209 = vmatpush.msra.mxu3 %v2373_v52 }
 0x55e   :  { %5235 = vmatpush.msrb.mxu0 %v2154_v45  ;;  %v2165_v45 = vld [vmem:[#allocation6 + $0x700] sm:$0xff] }
 0x55f   :  { %5210 = vmatpush.msra.mxu3 %v2363_v63  ;;  %v2157_v63 = vld [vmem:[#allocation6 + $0x6c0] sm:$0xff] }
 0x560   :  { %5236 = vmatpush.msrb.mxu0 %v2144_v11  ;;  %v2354_v11 = vld [vmem:[#allocation6 + $0xce8] sm:$0xff] }
 0x561   :  { %5211 = vmatpush.msra.mxu3 %v2353_v10  ;;  %5251 = vmatpush.msrb.mxu1 %v2354_v11  ;;  %v2147_v10 = vld [vmem:[#allocation6 + $0x670] sm:$0xff]  ;;  %v2137_v11 = vld [vmem:[#allocation6 + $0x620] sm:$0xff] }
 0x562   :  { %5237 = vmatpush.msrb.mxu0 %v2134_v19  ;;  %v2344_v19 = vld [vmem:[#allocation6 + $0xc98] sm:$0xff] }
 0x563   :  { %v4898_v27 = vpop.f32.mrf.mxu0  ;;  %v4918_v39 = vpop.f32.mrf.mxu1  ;;  %5212 = vmatpush.msra.mxu3 %v2343_v22  ;;  %5252 = vmatpush.msrb.mxu1 %v2344_v19  ;;  %v2138_v22 = vld [vmem:[#allocation6 + $0x628] sm:$0xff]  ;;  %v2128_v19 = vld [vmem:[#allocation6 + $0x5d8] sm:$0xff] }
 0x564   :  { %5238 = vmatpush.msrb.mxu0 %v2124_v4  ;;  %v4899_v26 = vadd.f32 %v4898_v27, %v4879_v40  ;;  %v2136_v4 = vld [vmem:[#allocation6 + $0x618] sm:$0xff]  ;;  %v2126_v40 = vld [vmem:[#allocation6 + $0x5c8] sm:$0xff]  ;;  %v2115_v27 = vld [vmem:[#allocation6 + $0x570] sm:$0xff] }
 0x565   :  { %5213 = vmatpush.msra.mxu3 %v2333_v36  ;;  %5253 = vmatpush.msrb.mxu1 %v2334_v38 }
 0x566   :  { %5239 = vmatpush.msrb.mxu0 %v2114_v33  ;;  %v4919_v31 = vadd.f32 %v4918_v39, %v4899_v26  ;;  %v2324_v33 = vld [vmem:[#allocation6 + $0xbf8] sm:$0xff]  ;;  %v2303_v39 = vld [vmem:[#allocation6 + $0xb50] sm:$0xff] }
 0x567   :  { %v2116_v26 = vld [vmem:[#allocation6 + $0x578] sm:$0xff]  ;;  %5214 = vmatpush.msra.mxu3 %v2323_v35  ;;  %5254 = vmatpush.msrb.mxu1 %v2324_v33 }
 0x568   :  { %5240 = vmatpush.msrb.mxu0 %v2104_v28  ;;  %v6087_v5 = vmax.f32 %v4919_v31, 0.0  ;;  %v2314_v28 = vld [vmem:[#allocation6 + $0xba8] sm:$0xff]  ;;  %v2105_v31 = vld [vmem:[#allocation6 + $0x520] sm:$0xff] }
 0x569   :  { %5215 = vmatpush.msra.mxu3 %v2313_v7  ;;  %5255 = vmatpush.msrb.mxu1 %v2314_v28 }
 0x56a   :  { %5121 = vmatmul.f32.vlgmr.msrb.gmra.mxu2 %v6087_v5  ;;  %5161 = vmatmul.f32.vlgmr.msra.gmra.mxu0 %v6087_v5  ;;  %v4958_v37 = vpop.f32.mrf.mxu3 }
 0x56b   :  { %5265 = vmatpush.msrb.mxu2 %v2255_v60  ;;  %5305 = vmatpush.msra.mxu0 %v2256_v47  ;;  %v2258_v60 = vld [vmem:[#allocation6 + $0x9e8] sm:$0xff]  ;;  %v2304_v47 = vld [vmem:[#allocation6 + $0xb58] sm:$0xff] }
 0x56c   :  { %5216 = vmatpush.msra.mxu3 %v2303_v39  ;;  %5256 = vmatpush.msrb.mxu1 %v2304_v47  ;;  %v2405_v47 = vld [vmem:[#allocation6 + $0xe80] sm:$0xff] }
 0x56d   :  { %5266 = vmatpush.msrb.mxu2 %v2245_v51  ;;  %5306 = vmatpush.msra.mxu0 %v2246_v34  ;;  %v2294_v51 = vld [vmem:[#allocation6 + $0xb08] sm:$0xff]  ;;  %v2283_v34 = vld [vmem:[#allocation6 + $0xab0] sm:$0xff] }
 0x56e   :  { %5217 = vmatpush.msra.mxu3 %v2293_v58  ;;  %5257 = vmatpush.msrb.mxu1 %v2294_v51  ;;  %v2406_v58 = vld [vmem:[#allocation6 + $0xe88] sm:$0xff]  ;;  %v2395_v51 = vld [vmem:[#allocation6 + $0xe30] sm:$0xff] }
 0x56f   :  { %5267 = vmatpush.msrb.mxu2 %v2235_v50  ;;  %5307 = vmatpush.msra.mxu0 %v2236_v48  ;;  %v2238_v50 = vld [vmem:[#allocation6 + $0x948] sm:$0xff]  ;;  %v2284_v48 = vld [vmem:[#allocation6 + $0xab8] sm:$0xff] }
 0x570   :  { %5218 = vmatpush.msra.mxu3 %v2283_v34  ;;  %5258 = vmatpush.msrb.mxu1 %v2284_v48  ;;  %v2396_v34 = vld [vmem:[#allocation6 + $0xe38] sm:$0xff]  ;;  %v2385_v48 = vld [vmem:[#allocation6 + $0xde0] sm:$0xff] }
 0x571   :  { %5268 = vmatpush.msrb.mxu2 %v2225_v6  ;;  %5308 = vmatpush.msra.mxu0 %v2226_v0  ;;  %v2274_v6 = vld [vmem:[#allocation6 + $0xa68] sm:$0xff]  ;;  %v2263_v0 = vld [vmem:[#allocation6 + $0xa10] sm:$0xff] }
 0x572   :  { %5201 = vmatmul.f32.vlgmr.msra.gmra.mxu2 %v6087_v5  ;;  %5241 = vmatmul.f32.vlgmr.msrb.gmra.mxu0 %v6087_v5 }
 0x573   :  { %5269 = vmatpush.msrb.mxu2 %v2215_v25  ;;  %5309 = vmatpush.msra.mxu0 %v2216_v42  ;;  %v2217_v25 = vld [vmem:[#allocation6 + $0x8a0] sm:$0xff]  ;;  %v2218_v42 = vld [vmem:[#allocation6 + $0x8a8] sm:$0xff] }
 0x574   :  { %5219 = vmatpush.msra.mxu3 %v2273_v61  ;;  %5259 = vmatpush.msrb.mxu1 %v2274_v6  ;;  %v2386_v61 = vld [vmem:[#allocation6 + $0xde8] sm:$0xff]  ;;  %v2219_v6 = vld [vmem:[#allocation6 + $0x8b0] sm:$0xff] }
 0x575   :  { %5270 = vmatpush.msrb.mxu2 %v2205_v8  ;;  %5310 = vmatpush.msra.mxu0 %v2206_v20  ;;  %v4938_v8 = vpop.f32.mrf.mxu2  ;;  %v2207_v20 = vld [vmem:[#allocation6 + $0x850] sm:$0xff] }
 0x576   :  { %5220 = vmatpush.msra.mxu3 %v2263_v0  ;;  %5260 = vmatpush.msrb.mxu1 %v2264_v41  ;;  %v2220_v0 = vld [vmem:[#allocation6 + $0x8b8] sm:$0xff]  ;;  %v2210_v41 = vld [vmem:[#allocation6 + $0x868] sm:$0xff] }
 0x577   :  { %5271 = vmatpush.msrb.mxu2 %v2195_v13  ;;  %5311 = vmatpush.msra.mxu0 %v2196_v14  ;;  %v2198_v13 = vld [vmem:[#allocation6 + $0x808] sm:$0xff]  ;;  %v4939_v14 = vadd.f32 %v4938_v8, %v4758_v9  ;;  %v2209_v9 = vld [vmem:[#allocation6 + $0x860] sm:$0xff]  ;;  %v2355_v8 = vld [vmem:[#allocation6 + $0xcf0] sm:$0xff] }
 0x579   :  { %5272 = vmatpush.msrb.mxu2 %v2185_v17  ;;  %5312 = vmatpush.msra.mxu0 %v2186_v62  ;;  %v2177_v62 = vld [vmem:[#allocation6 + $0x760] sm:$0xff]  ;;  %v4959_v52 = vadd.f32 %v4958_v37, %v4939_v14  ;;  %v2346_v14 = vld [vmem:[#allocation6 + $0xca8] sm:$0xff]  ;;  %v2335_v37 = vld [vmem:[#allocation6 + $0xc50] sm:$0xff] }
 0x57b   :  { %5273 = vmatpush.msrb.mxu2 %v2175_v23  ;;  %5313 = vmatpush.msra.mxu0 %v2176_v29  ;;  %v2167_v23 = vld [vmem:[#allocation6 + $0x710] sm:$0xff]  ;;  %v2168_v29 = vld [vmem:[#allocation6 + $0x718] sm:$0xff] }
 0x57d   :  { %5274 = vmatpush.msrb.mxu2 %v2165_v45  ;;  %5314 = vmatpush.msra.mxu0 %v2166_v46  ;;  %v2158_v45 = vld [vmem:[#allocation6 + $0x6c8] sm:$0xff] }
 0x57f   :  { %5275 = vmatpush.msrb.mxu2 %v2155_v2  ;;  %5315 = vmatpush.msra.mxu0 %v2156_v3  ;;  %v2148_v2 = vld [vmem:[#allocation6 + $0x678] sm:$0xff] }
 0x581   :  { %5276 = vmatpush.msrb.mxu2 %v2145_v49  ;;  %5316 = vmatpush.msra.mxu0 %v2146_v43  ;;  %v2127_v43 = vld [vmem:[#allocation6 + $0x5d0] sm:$0xff] }
 0x583   :  { %5277 = vmatpush.msrb.mxu2 %v2135_v53  ;;  %5317 = vmatpush.msra.mxu0 %v2136_v4  ;;  %v2117_v53 = vld [vmem:[#allocation6 + $0x580] sm:$0xff]  ;;  %v2118_v4 = vld [vmem:[#allocation6 + $0x588] sm:$0xff] }
 0x585   :  { %5278 = vmatpush.msrb.mxu2 %v2125_v59  ;;  %5318 = vmatpush.msra.mxu0 %v2126_v40  ;;  %v4978_v17 = vpop.f32.mrf.mxu0  ;;  %v4998_v46 = vpop.f32.mrf.mxu1  ;;  %v2107_v59 = vld [vmem:[#allocation6 + $0x530] sm:$0xff]  ;;  %v2108_v40 = vld [vmem:[#allocation6 + $0x538] sm:$0xff] }
 0x586   :  { %v4979_v24 = vadd.f32 %v4978_v17, %v4959_v52  ;;  %v2336_v17 = vld [vmem:[#allocation6 + $0xc58] sm:$0xff]  ;;  %v2325_v52 = vld [vmem:[#allocation6 + $0xc00] sm:$0xff] }
 0x587   :  { %5279 = vmatpush.msrb.mxu2 %v2115_v27  ;;  %5319 = vmatpush.msra.mxu0 %v2116_v26  ;;  %v2259_v27 = vld [vmem:[#allocation6 + $0x9f0] sm:$0xff]  ;;  %v2260_v26 = vld [vmem:[#allocation6 + $0x9f8] sm:$0xff] }
 0x588   :  { %v4999_v3 = vadd.f32 %v4998_v46, %v4979_v24  ;;  %v2170_v24 = vld [vmem:[#allocation6 + $0x728] sm:$0xff]  ;;  %v2159_v46 = vld [vmem:[#allocation6 + $0x6d0] sm:$0xff] }
 0x589   :  { %5280 = vmatpush.msrb.mxu2 %v2105_v31  ;;  %5320 = vmatpush.msra.mxu0 %v2106_v18  ;;  %v2415_v31 = vld [vmem:[#allocation6 + $0xed0] sm:$0xff]  ;;  %v2416_v18 = vld [vmem:[#allocation6 + $0xed8] sm:$0xff] }
 0x58a   :  { %5281 = vmatmul.f32.vlgmr.msrb.gmra.mxu2 %v6087_v5  ;;  %5321 = vmatmul.f32.vlgmr.msra.gmra.mxu0 %v6087_v5 }
 0x58b   :  { %5345 = vmatpush.msra.mxu2 %v2257_v32  ;;  %5385 = vmatpush.msrb.mxu0 %v2258_v60  ;;  %v2249_v32 = vld [vmem:[#allocation6 + $0x9a0] sm:$0xff]  ;;  %v2250_v60 = vld [vmem:[#allocation6 + $0x9a8] sm:$0xff] }
 0x58c   :  { %v5018_v30 = vpop.f32.mrf.mxu2  ;;  %v5038_v36 = vpop.f32.mrf.mxu3 }
 0x58d   :  { %5346 = vmatpush.msra.mxu2 %v2247_v56  ;;  %5386 = vmatpush.msrb.mxu0 %v2248_v57  ;;  %v5019_v49 = vadd.f32 %v5018_v30, %v4999_v3  ;;  %v2239_v56 = vld [vmem:[#allocation6 + $0x950] sm:$0xff]  ;;  %v2240_v57 = vld [vmem:[#allocation6 + $0x958] sm:$0xff]  ;;  %v2149_v3 = vld [vmem:[#allocation6 + $0x680] sm:$0xff] }
 0x58e   :  { %v2160_v30 = vld [vmem:[#allocation6 + $0x6d8] sm:$0xff] }
 0x58f   :  { %5347 = vmatpush.msra.mxu2 %v2237_v55  ;;  %5387 = vmatpush.msrb.mxu0 %v2238_v50  ;;  %v5039_v38 = vadd.f32 %v5038_v36, %v5019_v49  ;;  %v2229_v55 = vld [vmem:[#allocation6 + $0x900] sm:$0xff]  ;;  %v2230_v50 = vld [vmem:[#allocation6 + $0x908] sm:$0xff]  ;;  %v2296_v49 = vld [vmem:[#allocation6 + $0xb18] sm:$0xff] }
 0x590   :  { %v2285_v36 = vld [vmem:[#allocation6 + $0xac0] sm:$0xff] }
 0x591   :  { %5348 = vmatpush.msra.mxu2 %v2227_v16  ;;  %5388 = vmatpush.msrb.mxu0 %v2228_v1  ;;  %v2375_v16 = vld [vmem:[#allocation6 + $0xd90] sm:$0xff]  ;;  %v2376_v1 = vld [vmem:[#allocation6 + $0xd98] sm:$0xff] }
 0x593   :  { %5349 = vmatpush.msra.mxu2 %v2217_v25  ;;  %5389 = vmatpush.msrb.mxu0 %v2218_v42  ;;  %v2365_v25 = vld [vmem:[#allocation6 + $0xd40] sm:$0xff]  ;;  %v2366_v42 = vld [vmem:[#allocation6 + $0xd48] sm:$0xff] }
 0x595   :  { %5350 = vmatpush.msra.mxu2 %v2207_v20  ;;  %5390 = vmatpush.msrb.mxu0 %v2208_v12  ;;  %v2356_v20 = vld [vmem:[#allocation6 + $0xcf8] sm:$0xff]  ;;  %v2199_v12 = vld [vmem:[#allocation6 + $0x810] sm:$0xff] }
 0x597   :  { %5351 = vmatpush.msra.mxu2 %v2197_v54  ;;  %5391 = vmatpush.msrb.mxu0 %v2198_v13  ;;  %v2200_v54 = vld [vmem:[#allocation6 + $0x818] sm:$0xff]  ;;  %v2345_v13 = vld [vmem:[#allocation6 + $0xca0] sm:$0xff] }
 0x599   :  { %5352 = vmatpush.msra.mxu2 %v2187_v15  ;;  %5392 = vmatpush.msrb.mxu0 %v2188_v44  ;;  %v2189_v15 = vld [vmem:[#allocation6 + $0x7c0] sm:$0xff]  ;;  %v2190_v44 = vld [vmem:[#allocation6 + $0x7c8] sm:$0xff] }
 0x59b   :  { %5353 = vmatpush.msra.mxu2 %v2177_v62  ;;  %5393 = vmatpush.msrb.mxu0 %v2178_v21  ;;  %v2179_v62 = vld [vmem:[#allocation6 + $0x770] sm:$0xff]  ;;  %v2180_v21 = vld [vmem:[#allocation6 + $0x778] sm:$0xff] }
 0x59d   :  { %5354 = vmatpush.msra.mxu2 %v2167_v23  ;;  %5394 = vmatpush.msrb.mxu0 %v2168_v29  ;;  %v2326_v23 = vld [vmem:[#allocation6 + $0xc08] sm:$0xff]  ;;  %v2169_v29 = vld [vmem:[#allocation6 + $0x720] sm:$0xff] }
 0x59f   :  { %5355 = vmatpush.msra.mxu2 %v2157_v63  ;;  %5395 = vmatpush.msrb.mxu0 %v2158_v45  ;;  %v2315_v63 = vld [vmem:[#allocation6 + $0xbb0] sm:$0xff]  ;;  %v2316_v45 = vld [vmem:[#allocation6 + $0xbb8] sm:$0xff] }
 0x5a1   :  { %5356 = vmatpush.msra.mxu2 %v2147_v10  ;;  %5396 = vmatpush.msrb.mxu0 %v2148_v2  ;;  %v2305_v10 = vld [vmem:[#allocation6 + $0xb60] sm:$0xff]  ;;  %v2306_v2 = vld [vmem:[#allocation6 + $0xb68] sm:$0xff] }
 0x5a3   :  { %5357 = vmatpush.msra.mxu2 %v2137_v11  ;;  %5397 = vmatpush.msrb.mxu0 %v2138_v22  ;;  %v2150_v11 = vld [vmem:[#allocation6 + $0x688] sm:$0xff]  ;;  %v2295_v22 = vld [vmem:[#allocation6 + $0xb10] sm:$0xff] }
 0x5a5   :  { %5358 = vmatpush.msra.mxu2 %v2127_v43  ;;  %5398 = vmatpush.msrb.mxu0 %v2128_v19  ;;  %v2139_v43 = vld [vmem:[#allocation6 + $0x630] sm:$0xff]  ;;  %v2140_v19 = vld [vmem:[#allocation6 + $0x638] sm:$0xff] }
 0x5a6   :  { %v5058_v35 = vpop.f32.mrf.mxu0  ;;  %v5078_v7 = vpop.f32.mrf.mxu1 }
 0x5a7   :  { %v5059_v33 = vadd.f32 %v5058_v35, %v5039_v38  ;;  %5359 = vmatpush.msra.mxu2 %v2117_v53  ;;  %5399 = vmatpush.msrb.mxu0 %v2118_v4  ;;  %v2286_v53 = vld [vmem:[#allocation6 + $0xac8] sm:$0xff]  ;;  %v2129_v4 = vld [vmem:[#allocation6 + $0x5e0] sm:$0xff]  ;;  %v2275_v35 = vld [vmem:[#allocation6 + $0xa70] sm:$0xff] }
 0x5a8   :  { %v2130_v38 = vld [vmem:[#allocation6 + $0x5e8] sm:$0xff] }
 0x5a9   :  { %v5079_v28 = vadd.f32 %v5078_v7, %v5059_v33  ;;  %5360 = vmatpush.msra.mxu2 %v2107_v59  ;;  %5400 = vmatpush.msrb.mxu0 %v2108_v40  ;;  %v2276_v59 = vld [vmem:[#allocation6 + $0xa78] sm:$0xff]  ;;  %v2119_v40 = vld [vmem:[#allocation6 + $0x590] sm:$0xff]  ;;  %v2265_v7 = vld [vmem:[#allocation6 + $0xa20] sm:$0xff] }
 0x5aa   :  { %5361 = vmatmul.f32.vlgmr.msra.gmra.mxu2 %v6087_v5  ;;  %5401 = vmatmul.f32.vlgmr.msrb.gmra.mxu0 %v6087_v5  ;;  %v2120_v33 = vld [vmem:[#allocation6 + $0x598] sm:$0xff] }
 0x5ab   :  { %v6098_v39 = vmax.f32 %v5079_v28, 0.0  ;;  %5425 = vmatpush.msrb.mxu2 %v2259_v27  ;;  %5465 = vmatpush.msra.mxu0 %v2260_v26  ;;  %v2266_v27 = vld [vmem:[#allocation6 + $0xa28] sm:$0xff]  ;;  %v2109_v26 = vld [vmem:[#allocation6 + $0x540] sm:$0xff] }
 0x5ac   :  { %v2110_v28 = vld [vmem:[#allocation6 + $0x548] sm:$0xff] }
 0x5ad   :  { %5141 = vmatmul.f32.vlgmr.msrb.gmra.mxu3 %v6098_v39  ;;  %5181 = vmatmul.f32.vlgmr.msra.gmra.mxu1 %v6098_v39 }
 0x5ae   :  { %5285 = vmatpush.msrb.mxu3 %v2415_v31  ;;  %5325 = vmatpush.msra.mxu1 %v2416_v18  ;;  %v2417_v31 = vld [vmem:[#allocation6 + $0xee0] sm:$0xff]  ;;  %v2418_v18 = vld [vmem:[#allocation6 + $0xee8] sm:$0xff] }
 0x5af   :  { %5426 = vmatpush.msrb.mxu2 %v2249_v32  ;;  %5466 = vmatpush.msra.mxu0 %v2250_v60  ;;  %v2407_v32 = vld [vmem:[#allocation6 + $0xe90] sm:$0xff]  ;;  %v2408_v60 = vld [vmem:[#allocation6 + $0xe98] sm:$0xff] }
 0x5b0   :  { %5286 = vmatpush.msrb.mxu3 %v2405_v47  ;;  %5326 = vmatpush.msra.mxu1 %v2406_v58  ;;  %v2397_v47 = vld [vmem:[#allocation6 + $0xe40] sm:$0xff]  ;;  %v2398_v58 = vld [vmem:[#allocation6 + $0xe48] sm:$0xff] }
 0x5b1   :  { %5427 = vmatpush.msrb.mxu2 %v2239_v56  ;;  %5467 = vmatpush.msra.mxu0 %v2240_v57  ;;  %v2387_v56 = vld [vmem:[#allocation6 + $0xdf0] sm:$0xff]  ;;  %v2388_v57 = vld [vmem:[#allocation6 + $0xdf8] sm:$0xff] }
 0x5b2   :  { %5287 = vmatpush.msrb.mxu3 %v2395_v51  ;;  %5327 = vmatpush.msra.mxu1 %v2396_v34  ;;  %v2377_v51 = vld [vmem:[#allocation6 + $0xda0] sm:$0xff]  ;;  %v2378_v34 = vld [vmem:[#allocation6 + $0xda8] sm:$0xff] }
 0x5b3   :  { %5428 = vmatpush.msrb.mxu2 %v2229_v55  ;;  %5468 = vmatpush.msra.mxu0 %v2230_v50  ;;  %v2367_v55 = vld [vmem:[#allocation6 + $0xd50] sm:$0xff]  ;;  %v2368_v50 = vld [vmem:[#allocation6 + $0xd58] sm:$0xff] }
 0x5b4   :  { %5288 = vmatpush.msrb.mxu3 %v2385_v48  ;;  %5328 = vmatpush.msra.mxu1 %v2386_v61  ;;  %v2357_v48 = vld [vmem:[#allocation6 + $0xd00] sm:$0xff]  ;;  %v2358_v61 = vld [vmem:[#allocation6 + $0xd08] sm:$0xff] }
 0x5b5   :  { %5221 = vmatmul.f32.vlgmr.msra.gmra.mxu3 %v6098_v39  ;;  %5261 = vmatmul.f32.vlgmr.msrb.gmra.mxu1 %v6098_v39 }
 0x5b6   :  { %5289 = vmatpush.msrb.mxu3 %v2375_v16  ;;  %5329 = vmatpush.msra.mxu1 %v2376_v1  ;;  %v2348_v16 = vld [vmem:[#allocation6 + $0xcb8] sm:$0xff]  ;;  %v2337_v1 = vld [vmem:[#allocation6 + $0xc60] sm:$0xff] }
 0x5b7   :  { %5429 = vmatpush.msrb.mxu2 %v2219_v6  ;;  %5469 = vmatpush.msra.mxu0 %v2220_v0  ;;  %v2338_v6 = vld [vmem:[#allocation6 + $0xc68] sm:$0xff]  ;;  %v2327_v0 = vld [vmem:[#allocation6 + $0xc10] sm:$0xff] }
 0x5b8   :  { %5290 = vmatpush.msrb.mxu3 %v2365_v25  ;;  %5330 = vmatpush.msra.mxu1 %v2366_v42  ;;  %v2328_v25 = vld [vmem:[#allocation6 + $0xc18] sm:$0xff]  ;;  %v2317_v42 = vld [vmem:[#allocation6 + $0xbc0] sm:$0xff] }
 0x5b9   :  { %5430 = vmatpush.msrb.mxu2 %v2209_v9  ;;  %5470 = vmatpush.msra.mxu0 %v2210_v41  ;;  %v2318_v9 = vld [vmem:[#allocation6 + $0xbc8] sm:$0xff]  ;;  %v2307_v41 = vld [vmem:[#allocation6 + $0xb70] sm:$0xff] }
 0x5ba   :  { %5291 = vmatpush.msrb.mxu3 %v2355_v8  ;;  %5331 = vmatpush.msra.mxu1 %v2356_v20  ;;  %v2308_v8 = vld [vmem:[#allocation6 + $0xb78] sm:$0xff]  ;;  %v2297_v20 = vld [vmem:[#allocation6 + $0xb20] sm:$0xff] }
 0x5bb   :  { %5431 = vmatpush.msrb.mxu2 %v2199_v12  ;;  %5471 = vmatpush.msra.mxu0 %v2200_v54  ;;  %v2298_v12 = vld [vmem:[#allocation6 + $0xb28] sm:$0xff]  ;;  %v2287_v54 = vld [vmem:[#allocation6 + $0xad0] sm:$0xff] }
 0x5bc   :  { %5292 = vmatpush.msrb.mxu3 %v2345_v13  ;;  %5332 = vmatpush.msra.mxu1 %v2346_v14  ;;  %v2288_v13 = vld [vmem:[#allocation6 + $0xad8] sm:$0xff]  ;;  %v2277_v14 = vld [vmem:[#allocation6 + $0xa80] sm:$0xff] }
 0x5bd   :  { %5432 = vmatpush.msrb.mxu2 %v2189_v15  ;;  %5472 = vmatpush.msra.mxu0 %v2190_v44  ;;  %v2278_v15 = vld [vmem:[#allocation6 + $0xa88] sm:$0xff]  ;;  %v2267_v44 = vld [vmem:[#allocation6 + $0xa30] sm:$0xff] }
 0x5be   :  { %5293 = vmatpush.msrb.mxu3 %v2335_v37  ;;  %5333 = vmatpush.msra.mxu1 %v2336_v17  ;;  %v2268_v37 = vld [vmem:[#allocation6 + $0xa38] sm:$0xff]  ;;  %v2419_v17 = vld [vmem:[#allocation6 + $0xef0] sm:$0xff] }
 0x5bf   :  { %5433 = vmatpush.msrb.mxu2 %v2179_v62  ;;  %5473 = vmatpush.msra.mxu0 %v2180_v21  ;;  %v2420_v62 = vld [vmem:[#allocation6 + $0xef8] sm:$0xff]  ;;  %v2409_v21 = vld [vmem:[#allocation6 + $0xea0] sm:$0xff] }
 0x5c0   :  { %5294 = vmatpush.msrb.mxu3 %v2325_v52  ;;  %5334 = vmatpush.msra.mxu1 %v2326_v23  ;;  %v2410_v52 = vld [vmem:[#allocation6 + $0xea8] sm:$0xff]  ;;  %v2399_v23 = vld [vmem:[#allocation6 + $0xe50] sm:$0xff] }
 0x5c1   :  { %5434 = vmatpush.msrb.mxu2 %v2169_v29  ;;  %5474 = vmatpush.msra.mxu0 %v2170_v24  ;;  %v2400_v29 = vld [vmem:[#allocation6 + $0xe58] sm:$0xff]  ;;  %v2389_v24 = vld [vmem:[#allocation6 + $0xe00] sm:$0xff] }
 0x5c2   :  { %5295 = vmatpush.msrb.mxu3 %v2315_v63  ;;  %5335 = vmatpush.msra.mxu1 %v2316_v45  ;;  %v2390_v63 = vld [vmem:[#allocation6 + $0xe08] sm:$0xff]  ;;  %v2379_v45 = vld [vmem:[#allocation6 + $0xdb0] sm:$0xff] }
 0x5c3   :  { %5435 = vmatpush.msrb.mxu2 %v2159_v46  ;;  %5475 = vmatpush.msra.mxu0 %v2160_v30  ;;  %v2380_v46 = vld [vmem:[#allocation6 + $0xdb8] sm:$0xff]  ;;  %v2369_v30 = vld [vmem:[#allocation6 + $0xd60] sm:$0xff] }
 0x5c4   :  { %5296 = vmatpush.msrb.mxu3 %v2305_v10  ;;  %5336 = vmatpush.msra.mxu1 %v2306_v2  ;;  %v2370_v10 = vld [vmem:[#allocation6 + $0xd68] sm:$0xff]  ;;  %v2359_v2 = vld [vmem:[#allocation6 + $0xd10] sm:$0xff] }
 0x5c5   :  { %5436 = vmatpush.msrb.mxu2 %v2149_v3  ;;  %5476 = vmatpush.msra.mxu0 %v2150_v11  ;;  %v2360_v3 = vld [vmem:[#allocation6 + $0xd18] sm:$0xff]  ;;  %v2349_v11 = vld [vmem:[#allocation6 + $0xcc0] sm:$0xff] }
 0x5c6   :  { %5297 = vmatpush.msrb.mxu3 %v2295_v22  ;;  %5337 = vmatpush.msra.mxu1 %v2296_v49  ;;  %v2350_v22 = vld [vmem:[#allocation6 + $0xcc8] sm:$0xff]  ;;  %v2339_v49 = vld [vmem:[#allocation6 + $0xc70] sm:$0xff] }
 0x5c7   :  { %5437 = vmatpush.msrb.mxu2 %v2139_v43  ;;  %5477 = vmatpush.msra.mxu0 %v2140_v19  ;;  %v2340_v43 = vld [vmem:[#allocation6 + $0xc78] sm:$0xff]  ;;  %v2329_v19 = vld [vmem:[#allocation6 + $0xc20] sm:$0xff] }
 0x5c8   :  { %5298 = vmatpush.msrb.mxu3 %v2285_v36  ;;  %5338 = vmatpush.msra.mxu1 %v2286_v53  ;;  %v2330_v36 = vld [vmem:[#allocation6 + $0xc28] sm:$0xff]  ;;  %v2319_v53 = vld [vmem:[#allocation6 + $0xbd0] sm:$0xff] }
 0x5c9   :  { %5438 = vmatpush.msrb.mxu2 %v2129_v4  ;;  %5478 = vmatpush.msra.mxu0 %v2130_v38  ;;  %v2320_v4 = vld [vmem:[#allocation6 + $0xbd8] sm:$0xff]  ;;  %v2309_v38 = vld [vmem:[#allocation6 + $0xb80] sm:$0xff] }
 0x5ca   :  { %5299 = vmatpush.msrb.mxu3 %v2275_v35  ;;  %5339 = vmatpush.msra.mxu1 %v2276_v59  ;;  %v2310_v35 = vld [vmem:[#allocation6 + $0xb88] sm:$0xff]  ;;  %v2299_v59 = vld [vmem:[#allocation6 + $0xb30] sm:$0xff] }
 0x5cb   :  { %5439 = vmatpush.msrb.mxu2 %v2119_v40  ;;  %5479 = vmatpush.msra.mxu0 %v2120_v33  ;;  %v2300_v40 = vld [vmem:[#allocation6 + $0xb38] sm:$0xff]  ;;  %v2289_v33 = vld [vmem:[#allocation6 + $0xae0] sm:$0xff] }
 0x5cc   :  { %5300 = vmatpush.msrb.mxu3 %v2265_v7  ;;  %5340 = vmatpush.msra.mxu1 %v2266_v27  ;;  %v2290_v7 = vld [vmem:[#allocation6 + $0xae8] sm:$0xff]  ;;  %v2279_v27 = vld [vmem:[#allocation6 + $0xa90] sm:$0xff] }
 0x5cd   :  { %5440 = vmatpush.msrb.mxu2 %v2109_v26  ;;  %5480 = vmatpush.msra.mxu0 %v2110_v28  ;;  %v2280_v26 = vld [vmem:[#allocation6 + $0xa98] sm:$0xff]  ;;  %v2269_v28 = vld [vmem:[#allocation6 + $0xa40] sm:$0xff] }
 0x5ce   :  { %5301 = vmatmul.f32.vlgmr.msrb.gmra.mxu3 %v6098_v39  ;;  %5341 = vmatmul.f32.vlgmr.msra.gmra.mxu1 %v6098_v39 }
 0x5cf   :  { %5365 = vmatpush.msra.mxu3 %v2417_v31  ;;  %5405 = vmatpush.msrb.mxu1 %v2418_v18  ;;  %v2270_v31 = vld [vmem:[#allocation6 + $0xa48] sm:$0xff] }
 0x5d0   :  { %5441 = vmatmul.f32.vlgmr.msrb.gmra.mxu2 %v6087_v5  ;;  %5481 = vmatmul.f32.vlgmr.msra.gmra.mxu0 %v6087_v5  ;;  %v2347_v5 = vld [vmem:[#allocation6 + $0xcb0] sm:$0xff] }
 0x5d1   :  { %5366 = vmatpush.msra.mxu3 %v2407_v32  ;;  %5406 = vmatpush.msrb.mxu1 %v2408_v60  ;;  %v2436_v32 = vld [vmem:[#allocation7 + $0x5] ss:$8 sm:$0xf] }
 0x5d2   :  { %v2437_v60 = vld [vmem:[#allocation7 + $0x5] ss:$8 sm:$0xf0] }
 0x5d3   :  { %5367 = vmatpush.msra.mxu3 %v2397_v47  ;;  %5407 = vmatpush.msrb.mxu1 %v2398_v58 }
 0x5d5   :  { %5368 = vmatpush.msra.mxu3 %v2387_v56  ;;  %5408 = vmatpush.msrb.mxu1 %v2388_v57  ;;  %v2438_v56 = vor.u32 %v2437_v60, %v2436_v32 }
 0x5d7   :  { %5369 = vmatpush.msra.mxu3 %v2377_v51  ;;  %5409 = vmatpush.msrb.mxu1 %v2378_v34  ;;  %v5086_v51 = vperm.slane %v2438_v56, 1  ;;  %v5088_v34 = vperm.slane %v2438_v56, 3 }
 0x5d9   :  { %5370 = vmatpush.msra.mxu3 %v2367_v55  ;;  %5410 = vmatpush.msrb.mxu1 %v2368_v50  ;;  %v5085_v50 = vperm.slane %v2438_v56, 0 }
 0x5db   :  { %5371 = vmatpush.msra.mxu3 %v2357_v48  ;;  %5411 = vmatpush.msrb.mxu1 %v2358_v61  ;;  %v5087_v48 = vperm.slane %v2438_v56, 2 }
 0x5dd   :  { %5372 = vmatpush.msra.mxu3 %v2347_v5  ;;  %5412 = vmatpush.msrb.mxu1 %v2348_v16 }
 0x5df   :  { %5373 = vmatpush.msra.mxu3 %v2337_v1  ;;  %5413 = vmatpush.msrb.mxu1 %v2338_v6 }
 0x5e1   :  { %5374 = vmatpush.msra.mxu3 %v2327_v0  ;;  %5414 = vmatpush.msrb.mxu1 %v2328_v25 }
 0x5e3   :  { %5375 = vmatpush.msra.mxu3 %v2317_v42  ;;  %5415 = vmatpush.msrb.mxu1 %v2318_v9 }
 0x5e5   :  { %5376 = vmatpush.msra.mxu3 %v2307_v41  ;;  %5416 = vmatpush.msrb.mxu1 %v2308_v8 }
 0x5e7   :  { %5377 = vmatpush.msra.mxu3 %v2297_v20  ;;  %5417 = vmatpush.msrb.mxu1 %v2298_v12  ;;  %v5162_v18 = vpop.f32.mrf.mxu0 }
 0x5e8   :  { %v5163_v16 = vadd.f32 %v5162_v18, %v5086_v51 }
 0x5e9   :  { %5378 = vmatpush.msra.mxu3 %v2287_v54  ;;  %5418 = vmatpush.msrb.mxu1 %v2288_v13 }
 0x5eb   :  { %5379 = vmatpush.msra.mxu3 %v2277_v14  ;;  %5419 = vmatpush.msrb.mxu1 %v2278_v15 }
 0x5ed   :  { %5380 = vmatpush.msra.mxu3 %v2267_v44  ;;  %5420 = vmatpush.msrb.mxu1 %v2268_v37  ;;  %v5122_v47 = vpop.f32.mrf.mxu2 }
 0x5ee   :  { %5381 = vmatmul.f32.vlgmr.msra.gmra.mxu3 %v6098_v39  ;;  %5421 = vmatmul.f32.vlgmr.msrb.gmra.mxu1 %v6098_v39  ;;  %v5123_v6 = vadd.f32 %v5122_v47, %v5085_v50 }
 0x5ef   :  { %5445 = vmatpush.msrb.mxu3 %v2419_v17  ;;  %5485 = vmatpush.msra.mxu1 %v2420_v62  ;;  %v5242_v55 = vpop.f32.mrf.mxu0  ;;  %v5090_v62 = vperm.slane %v2438_v56, 5 }
 0x5f0   :  { %v5243_v1 = vadd.f32 %v5242_v55, %v5088_v34 }
 0x5f1   :  { %5446 = vmatpush.msrb.mxu3 %v2409_v21  ;;  %5486 = vmatpush.msra.mxu1 %v2410_v52  ;;  %v5092_v21 = vperm.slane %v2438_v56, 7 }
 0x5f3   :  { %5447 = vmatpush.msrb.mxu3 %v2399_v23  ;;  %5487 = vmatpush.msra.mxu1 %v2400_v29  ;;  %v5089_v23 = vperm.slane %v2438_v56, 4  ;;  %v5091_v29 = vperm.slane %v2438_v56, 6 }
 0x5f5   :  { %5448 = vmatpush.msrb.mxu3 %v2389_v24  ;;  %5488 = vmatpush.msra.mxu1 %v2390_v63  ;;  %v5202_v61 = vpop.f32.mrf.mxu2 }
 0x5f6   :  { %v5203_v0 = vadd.f32 %v5202_v61, %v5087_v48 }
 0x5f7   :  { %5449 = vmatpush.msrb.mxu3 %v2379_v45  ;;  %5489 = vmatpush.msra.mxu1 %v2380_v46 }
 0x5f9   :  { %5450 = vmatpush.msrb.mxu3 %v2369_v30  ;;  %5490 = vmatpush.msra.mxu1 %v2370_v10 }
 0x5fb   :  { %5451 = vmatpush.msrb.mxu3 %v2359_v2  ;;  %5491 = vmatpush.msra.mxu1 %v2360_v3 }
 0x5fd   :  { %5452 = vmatpush.msrb.mxu3 %v2349_v11  ;;  %5492 = vmatpush.msra.mxu1 %v2350_v22 }
 0x5ff   :  { %5453 = vmatpush.msrb.mxu3 %v2339_v49  ;;  %5493 = vmatpush.msra.mxu1 %v2340_v43 }
 0x601   :  { %5454 = vmatpush.msrb.mxu3 %v2329_v19  ;;  %5494 = vmatpush.msra.mxu1 %v2330_v36 }
 0x603   :  { %5455 = vmatpush.msrb.mxu3 %v2319_v53  ;;  %5495 = vmatpush.msra.mxu1 %v2320_v4 }
 0x605   :  { %5456 = vmatpush.msrb.mxu3 %v2309_v38  ;;  %5496 = vmatpush.msra.mxu1 %v2310_v35  ;;  %v2440_v35 = vld [vmem:[#allocation7 + $0x45] ss:$8 sm:$0x3] }
 0x607   :  { %5457 = vmatpush.msrb.mxu3 %v2299_v59  ;;  %5497 = vmatpush.msra.mxu1 %v2300_v40  ;;  %v5322_v15 = vpop.f32.mrf.mxu0  ;;  %v5094_v59 = vperm.slane %v2440_v35, 1 }
 0x608   :  { %v5323_v45 = vadd.f32 %v5322_v15, %v5090_v62 }
 0x609   :  { %5458 = vmatpush.msrb.mxu3 %v2289_v33  ;;  %5498 = vmatpush.msra.mxu1 %v2290_v7 }
 0x60b   :  { %5459 = vmatpush.msrb.mxu3 %v2279_v27  ;;  %5499 = vmatpush.msra.mxu1 %v2280_v26  ;;  %v5093_v27 = vperm.slane %v2440_v35, 0 }
 0x60d   :  { %5460 = vmatpush.msrb.mxu3 %v2269_v28  ;;  %5500 = vmatpush.msra.mxu1 %v2270_v31  ;;  %v5282_v44 = vpop.f32.mrf.mxu2 }
 0x60e   :  { %5461 = vmatmul.f32.vlgmr.msrb.gmra.mxu3 %v6098_v39  ;;  %5501 = vmatmul.f32.vlgmr.msra.gmra.mxu1 %v6098_v39  ;;  %v5283_v30 = vadd.f32 %v5282_v44, %v5089_v23 }
 0x627   :  { %v5402_v52 = vpop.f32.mrf.mxu0 }
 0x628   :  { %v5403_v46 = vadd.f32 %v5402_v52, %v5092_v21 }
 0x62a   :  { %v5182_v58 = vpop.f32.mrf.mxu1 }
 0x62b   :  { %v5183_v25 = vadd.f32 %v5182_v58, %v5163_v16 }
 0x62d   :  { %v5515_v8 = vrot.slane %v5183_v25, 6  ;;  %v5362_v24 = vpop.f32.mrf.mxu2 }
 0x62e   :  { %v5363_v10 = vadd.f32 %v5362_v24, %v5091_v29 }
 0x630   :  { %v5142_v57 = vpop.f32.mrf.mxu3 }
 0x631   :  { %v5143_v9 = vadd.f32 %v5142_v57, %v5123_v6 }
 0x632   :  { %v5262_v5 = vpop.f32.mrf.mxu1 }
 0x633   :  { %v5263_v39 = vadd.f32 %v5262_v5, %v5243_v1  ;;  %v5522_v54 = vsel %vm4740_vm0, %v5143_v9, %v5515_v8 }
 0x635   :  { %v5517_v20 = vrot.slane %v5263_v39, 2 }
 0x638   :  { %v5222_v42 = vpop.f32.mrf.mxu3 }
 0x639   :  { %v5223_v41 = vadd.f32 %v5222_v42, %v5203_v0 }
 0x63b   :  { %v5516_v12 = vrot.slane %v5223_v41, 4 }
 0x63d   :  { %v5523_v13 = vsel %vm4742_vm1, %v5516_v12, %v5517_v20 }
 0x63e   :  { %v5524_v14 = vsel %vm4744_vm2, %v5522_v54, %v5523_v13 }
 0x63f   :  { %5532 = vst [vmem:[%s6134_s6] sm:$0xff] %v5524_v14 }
 0x64b   :  { %v5342_v37 = vpop.f32.mrf.mxu1 }
 0x64c   :  { %v5343_v2 = vadd.f32 %v5342_v37, %v5323_v45 }
 0x64d   :  { %v5482_v40 = vpop.f32.mrf.mxu0 }
 0x64e   :  { %v5518_v43 = vrot.slane %v5343_v2, 6  ;;  %v5483_v7 = vadd.f32 %v5482_v40, %v5094_v59 }
 0x651   :  { %v5302_v17 = vpop.f32.mrf.mxu3 }
 0x652   :  { %v5303_v22 = vadd.f32 %v5302_v17, %v5283_v30 }
 0x653   :  { %v5442_v26 = vpop.f32.mrf.mxu2 }
 0x654   :  { %v5525_v53 = vsel %vm4740_vm0, %v5303_v22, %v5518_v43  ;;  %v5443_v31 = vadd.f32 %v5442_v26, %v5093_v27 }
 0x66b   :  { %v5422_v63 = vpop.f32.mrf.mxu1 }
 0x66c   :  { %v5423_v3 = vadd.f32 %v5422_v63, %v5403_v46 }
 0x66e   :  { %v5520_v19 = vrot.slane %v5423_v3, 2 }
 0x671   :  { %v5382_v11 = vpop.f32.mrf.mxu3 }
 0x672   :  { %v5383_v49 = vadd.f32 %v5382_v11, %v5363_v10 }
 0x674   :  { %v5519_v36 = vrot.slane %v5383_v49, 4 }
 0x676   :  { %v5526_v4 = vsel %vm4742_vm1, %v5519_v36, %v5520_v19 }
 0x677   :  { %v5527_v38 = vsel %vm4744_vm2, %v5525_v53, %v5526_v4 }
 0x678   :  { %5533 = vst [vmem:[%s6134_s6 + $0x8] sm:$0xff] %v5527_v38 }
 0x68b   :  { %v5502_v33 = vpop.f32.mrf.mxu1 }
 0x68c   :  { %v5503_v28 = vadd.f32 %v5502_v33, %v5483_v7 }
 0x68e   :  { %v5521_v32 = vrot.slane %v5503_v28, 6 }
 0x691   :  { %v5462_v18 = vpop.f32.mrf.mxu3 }
 0x692   :  { %v5463_v60 = vadd.f32 %v5462_v18, %v5443_v31 }
 0x694   :  { %v5528_v47 = vsel %vm4740_vm0, %v5463_v60, %v5521_v32 }
 0x695   :  { %5534 = vst [vmem:[%s6134_s6 + $0x10] sm:$0xf] %v5528_v47 }
 0x696   :  { %5543 = vsyncpa [#allocation3], 1 }
 0x697   :  { %5544 = vsyncpa [#allocation5], 1 }
 0x698   :  { %5545 = vsyncpa [#allocation8], 1 }

</bundles_post_ra>
